<compile_context>
chip_gen: v5e
topology: v5e:2x2
jax: 0.10.0
libtpu: 0.0.40
codegen_flags: <defaults>
</compile_context>

<pallas_src>
import numpy as np
import jax
import jax.numpy as jnp
from jax import lax
from jax.experimental import pallas as pl
from jax.experimental.pallas import tpu as pltpu

LN_EPS = 1e-5
ROWS_PER_BLOCK = 256   # flattened token rows per grid step (raise to 512-1024 on v7x)
NUM_CHUNKS = 4         # chunks per block: overlap word-row gather DMAs with LayerNorm
ISSUE_UNROLL = 8       # manual unroll factor of the DMA-issue loop


def _embeddings_kernel(ids_smem,          # scalar prefetch (SMEM): (T_pad,) int32 token ids
                       wtab_hbm,          # HBM ref: (V, H) f32 word-embedding table
                       ptab_ref,          # VMEM: (P, H) f32 position table (resident)
                       pos_ref,           # VMEM: (ROWS, 1) int32 position ids for this block
                       g_ref, b_ref,      # VMEM: (1, H) f32 LayerNorm gamma / beta
                       out_ref,           # VMEM output block: (ROWS, H) f32
                       wbuf, sems):       # scratch: VMEM (ROWS, H) f32, DMA sems (NUM_CHUNKS,)
    rows, H = out_ref.shape
    chunk = rows // NUM_CHUNKS
    base = pl.program_id(0) * rows

    # ---- issue ALL word-row gather DMAs up front; chunk c signals sems[c] ------------
    for c in range(NUM_CHUNKS):                               # static Python loop
        def _issue8(r8, carry, c=c):
            row0 = c * chunk + r8 * ISSUE_UNROLL
            for u in range(ISSUE_UNROLL):                     # manual unroll: id loads,
                row = row0 + u                                # addr math and descriptor
                tok = ids_smem[base + row]                    # pushes co-issue
                pltpu.make_async_copy(wtab_hbm.at[tok], wbuf.at[row], sems.at[c]).start()
            return carry
        lax.fori_loop(0, chunk // ISSUE_UNROLL, _issue8, 0)

    # ---- position embedding while the gather DMAs land -------------------------------
    # Table is VMEM-resident and tiny; exact-f32 select-accumulate gather (pure VPU).
    pos_b = pos_ref[...]                                      # (rows, 1) int32
    P = ptab_ref.shape[0]                                     # static (max_position_size+1)
    pe = jnp.zeros((rows, H), jnp.float32)
    for p in range(P):                                        # static, small
        pe = pe + jnp.where(pos_b == p, ptab_ref[pl.ds(p, 1), :], 0.0)

    gamma = g_ref[...]
    beta = b_ref[...]

    # ---- per chunk: ONE byte-counted wait, then LayerNorm that chunk -----------------
    # (later chunks keep landing while this chunk is normalized and written back)
    for c in range(NUM_CHUNKS):                               # static Python loop
        lo = c * chunk
        # Dummy src slice: the wait only needs the semaphore + total transfer size.
        # Every copy on sems[c] moved exactly H*4 bytes; chunk of them => chunk*H*4 bytes.
        pltpu.make_async_copy(
            wtab_hbm.at[pl.ds(0, chunk)],
            wbuf.at[pl.ds(lo, chunk)],
            sems.at[c],
        ).wait()

        x = wbuf[pl.ds(lo, chunk), :] + pe[lo:lo + chunk, :]
        mu = jnp.mean(x, axis=-1, keepdims=True)
        xc = x - mu
        var = jnp.mean(xc * xc, axis=-1, keepdims=True)
        y = xc * lax.rsqrt(var + LN_EPS)
        # TODO(synk): dropout is eval-mode identity; training-mode dropout would use
        # pltpu.prng_seed + pltpu.prng_random_bits here.
        out_ref[pl.ds(lo, chunk), :] = (y * gamma + beta).astype(out_ref.dtype)


def embeddings_forward(uttr_ids, position_ids, word_table, pos_table,
                       ln_gamma, ln_beta, padding_idx,
                       rows_per_block=ROWS_PER_BLOCK):
    """Pallas forward: returns (embeddings (N, S, H) f32, padding_mask (N, S) bool)."""
    N, S = uttr_ids.shape
    V, H = word_table.shape
    P = pos_table.shape[0]
    assert rows_per_block % (NUM_CHUNKS * ISSUE_UNROLL) == 0

    T = N * S
    nblk = (T + rows_per_block - 1) // rows_per_block
    T_pad = nblk * rows_per_block

    # Flatten ids; clamp so an out-of-range id can never drive an OOB HBM DMA.
    ids_flat = jnp.clip(uttr_ids.reshape(-1).astype(jnp.int32), 0, V - 1)
    pos_flat = jnp.clip(position_ids.reshape(-1).astype(jnp.int32), 0, P - 1)
    pad = T_pad - T
    if pad:
        zeros = jnp.zeros((pad,), jnp.int32)   # pad rows gather row 0 (zeroed padding row)
        ids_flat = jnp.concatenate([ids_flat, zeros])
        pos_flat = jnp.concatenate([pos_flat, zeros])
    pos_2d = pos_flat.reshape(T_pad, 1)

    g2 = ln_gamma.reshape(1, H).astype(jnp.float32)
    b2 = ln_beta.reshape(1, H).astype(jnp.float32)
    wtab = word_table.astype(jnp.float32)
    ptab = pos_table.astype(jnp.float32)

    out = pl.pallas_call(
        _embeddings_kernel,
        out_shape=jax.ShapeDtypeStruct((T_pad, H), jnp.float32),
        grid_spec=pltpu.PrefetchScalarGridSpec(
            num_scalar_prefetch=1,
            grid=(nblk,),
            in_specs=[
                pl.BlockSpec(memory_space=pl.ANY),                          # word table: HBM
                pl.BlockSpec((P, H), lambda i, ids: (0, 0)),                # pos table: VMEM resident
                pl.BlockSpec((rows_per_block, 1), lambda i, ids: (i, 0)),   # position ids
                pl.BlockSpec((1, H), lambda i, ids: (0, 0)),                # LayerNorm gamma
                pl.BlockSpec((1, H), lambda i, ids: (0, 0)),                # LayerNorm beta
            ],
            out_specs=pl.BlockSpec((rows_per_block, H), lambda i, ids: (i, 0)),
            scratch_shapes=[
                pltpu.VMEM((rows_per_block, H), jnp.float32),               # gathered word rows
                pltpu.SemaphoreType.DMA((NUM_CHUNKS,)),                     # one sem per chunk
            ],
        ),
        compiler_params=pltpu.CompilerParams(
            dimension_semantics=("parallel",),       # blocks fully independent -> megacore-safe
            vmem_limit_bytes=32 * 1024 * 1024,       # tables never fully VMEM-resident except ptab
        ),
    )(ids_flat, wtab, ptab, pos_2d, g2, b2)

    embeddings = out[:T].reshape(N, S, H)
    padding_mask = uttr_ids == padding_idx           # trivial elementwise glue
    return embeddings, padding_mask


def preprocess_input_list(input_list, max_seq_len, padding_idx, cls_idx=101, sep_idx=102):
    """Host-side replica of the Python conversation-splitting loop in Embeddings.forward."""
    uttr_nums = [un for _idx, un in input_list]
    total = sum(uttr_nums)
    uttr_ids = np.full((total, max_seq_len), padding_idx, dtype=np.int32)
    pos_ids = np.full((total, max_seq_len), padding_idx, dtype=np.int32)
    un = 0
    for conv_ids, uttr_num in input_list:
        assert uttr_num == conv_ids.count(sep_idx)
        uttr_tmp = []
        for idx in conv_ids:
            if un < total:
                uttr_tmp.append(idx)
                if idx == sep_idx:
                    if len(uttr_tmp) > max_seq_len:
                        uttr_tmp = uttr_tmp[:max_seq_len - 1] + [sep_idx]
                    uttr_ids[un, :len(uttr_tmp)] = np.asarray(uttr_tmp, dtype=np.int32)
                    pos_ids[un, :len(uttr_tmp)] = np.arange(1, len(uttr_tmp) + 1, dtype=np.int32)
                    un += 1
                    uttr_tmp = [cls_idx]
    return uttr_ids, pos_ids


if __name__ == "__main__":
    # Small, deterministic configuration.
    hidden_size = 128
    vocab_size = 512
    max_position_size = 16          # == max_seq_len
    padding_idx = 0

    key = jax.random.PRNGKey(0)
    k_w, k_p, k_g, k_b = jax.random.split(key, 4)

    # nn.Embedding init ~ N(0,1) with padding_idx row zeroed; randomized LayerNorm affine
    # so the gamma/beta path is actually exercised.
    word_table = jax.random.normal(k_w, (vocab_size, hidden_size), dtype=jnp.float32)
    word_table = word_table.at[padding_idx].set(0.0)
    pos_table = jax.random.normal(k_p, (max_position_size + 1, hidden_size), dtype=jnp.float32)
    pos_table = pos_table.at[padding_idx].set(0.0)
    ln_gamma = 1.0 + 0.1 * jax.random.normal(k_g, (hidden_size,), dtype=jnp.float32)
    ln_beta = 0.1 * jax.random.normal(k_b, (hidden_size,), dtype=jnp.float32)

    # 12 conversations (two utterances each, sep=102, cls=101) -> 24 utterance rows
    # -> 384 flattened tokens -> 2 grid blocks of 256 rows (exercises multi-block + tail pad).
    conv1 = [101, 7, 8, 9, 102, 10, 11, 12, 13, 102]
    conv2 = [101, 20, 21, 102, 22, 23, 24, 25, 26, 27, 28, 29, 30, 31, 32, 33, 34, 102]
    input_list = [(conv1, 2), (conv2, 2)] * 6

    uttr_ids_np, pos_ids_np = preprocess_input_list(
        input_list, max_position_size, padding_idx)
    uttr_ids = jnp.asarray(uttr_ids_np)
    position_ids = jnp.asarray(pos_ids_np)

    # TODO(synk): use_pretrained BERT branch (HuggingFace forward) has no Pallas
    # equivalent and is not implemented.
    emb, mask = embeddings_forward(uttr_ids, position_ids, word_table, pos_table,
                                   ln_gamma, ln_beta, padding_idx)
    emb = jax.block_until_ready(emb)
    mask = jax.block_until_ready(mask)

    # Pure-JAX reference check.
    we_ref = jnp.take(word_table, uttr_ids, axis=0)
    pe_ref = jnp.take(pos_table, position_ids, axis=0)
    x_ref = we_ref + pe_ref
    mu = jnp.mean(x_ref, axis=-1, keepdims=True)
    var = jnp.mean(jnp.square(x_ref - mu), axis=-1, keepdims=True)
    ref = (x_ref - mu) * lax.rsqrt(var + LN_EPS) * ln_gamma + ln_beta
    mask_ref = uttr_ids == padding_idx

    n_utts = sum(un for _c, un in input_list)
    assert emb.shape == (n_utts, max_position_size, hidden_size)
    assert mask.shape == (n_utts, max_position_size)
    np.testing.assert_allclose(np.asarray(emb), np.asarray(ref), atol=1e-5, rtol=1e-5)
    np.testing.assert_array_equal(np.asarray(mask), np.asarray(mask_ref))

    print("KERNEL_OK")
</pallas_src>

<mosaic_0001>
module attributes {stable_mosaic.version = 11 : i64} {
  func.func @_embeddings_kernel(%arg0: i32, %arg1: memref<512xi32, #tpu.memory_space<smem>>, %arg2: memref<512x128xf32, #tpu.memory_space<any>>, %arg3: memref<17x128xf32, #tpu.memory_space<vmem>>, %arg4: memref<256x1xi32, #tpu.memory_space<vmem>>, %arg5: memref<1x128xf32, #tpu.memory_space<vmem>>, %arg6: memref<1x128xf32, #tpu.memory_space<vmem>>, %arg7: memref<256x128xf32, #tpu.memory_space<vmem>>, %arg8: memref<256x128xf32, #tpu.memory_space<vmem>>, %arg9: memref<4x!tpu.dma_semaphore, #tpu.memory_space<semaphore_mem>>) attributes {dimension_semantics = [#tpu.dimension_semantics<parallel>], iteration_bounds = array<i64: 2>, scalar_prefetch = 1 : i64, scratch_operands = 2 : i64, tpu.core_type = #tpu.core_type<tc>, window_params = [{}, {pipeline_mode = #tpu.pipeline_mode<synchronous>, transform_indices = @transform_1, window_bounds = array<i64: 17, 128>}, {transform_indices = @transform_2, window_bounds = array<i64: 256, 1>}, {pipeline_mode = #tpu.pipeline_mode<synchronous>, transform_indices = @transform_3, window_bounds = array<i64: 1, 128>}, {pipeline_mode = #tpu.pipeline_mode<synchronous>, transform_indices = @transform_4, window_bounds = array<i64: 1, 128>}, {transform_indices = @transform_5, window_bounds = array<i64: 256, 128>}]} {
    %c256_i32 = arith.constant 256 : i32
    %0 = arith.muli %arg0, %c256_i32 : i32
    %c0_i32 = arith.constant 0 : i32
    %c8_i32 = arith.constant 8 : i32
    %1 = arith.addi %c0_i32, %c8_i32 : i32
    %c1_i32 = arith.constant 1 : i32
    scf.for %arg10 = %c0_i32 to %1 step %c1_i32  : i32 {
      %c8_i32_106 = arith.constant 8 : i32
      %291 = arith.muli %arg10, %c8_i32_106 : i32
      %c0_i32_107 = arith.constant 0 : i32
      %292 = arith.addi %c0_i32_107, %291 : i32
      %c0_i32_108 = arith.constant 0 : i32
      %293 = arith.addi %292, %c0_i32_108 : i32
      %294 = arith.addi %0, %293 : i32
      %295 = arith.index_cast %294 : i32 to index
      %296 = memref.load %arg1[%295] : memref<512xi32, #tpu.memory_space<smem>>
      %c0_i32_109 = arith.constant 0 : i32
      %c0_i32_110 = arith.constant 0 : i32
      %297 = tpu.memref_slice %arg2[%296, %c0_i32_110] : memref<512x128xf32, #tpu.memory_space<any>> -> memref<1x128xf32, #tpu.memory_space<any>>
      %298 = tpu.memref_squeeze %297 : memref<1x128xf32, #tpu.memory_space<any>> -> memref<128xf32, #tpu.memory_space<any>>
      %c0_i32_111 = arith.constant 0 : i32
      %299 = tpu.memref_slice %arg8[%293, %c0_i32_111] : memref<256x128xf32, #tpu.memory_space<vmem>> -> memref<1x128xf32, #tpu.memory_space<vmem>>
      %300 = tpu.memref_squeeze %299 : memref<1x128xf32, #tpu.memory_space<vmem>> -> memref<128xf32, #tpu.memory_space<vmem>>
      %301 = tpu.memref_slice %arg9[%c0_i32_109] : memref<4x!tpu.dma_semaphore, #tpu.memory_space<semaphore_mem>> -> memref<1x!tpu.dma_semaphore, #tpu.memory_space<semaphore_mem>>
      %302 = tpu.memref_squeeze %301 : memref<1x!tpu.dma_semaphore, #tpu.memory_space<semaphore_mem>> -> memref<!tpu.dma_semaphore, #tpu.memory_space<semaphore_mem>>
      tpu.enqueue_dma source(%298 : memref<128xf32, #tpu.memory_space<any>>) target(%300 : memref<128xf32, #tpu.memory_space<vmem>>) target_semaphore(%302 : memref<!tpu.dma_semaphore, #tpu.memory_space<semaphore_mem>>)
      %c1_i32_112 = arith.constant 1 : i32
      %303 = arith.addi %292, %c1_i32_112 : i32
      %304 = arith.addi %0, %303 : i32
      %305 = arith.index_cast %304 : i32 to index
      %306 = memref.load %arg1[%305] : memref<512xi32, #tpu.memory_space<smem>>
      %c0_i32_113 = arith.constant 0 : i32
      %c0_i32_114 = arith.constant 0 : i32
      %307 = tpu.memref_slice %arg2[%306, %c0_i32_114] : memref<512x128xf32, #tpu.memory_space<any>> -> memref<1x128xf32, #tpu.memory_space<any>>
      %308 = tpu.memref_squeeze %307 : memref<1x128xf32, #tpu.memory_space<any>> -> memref<128xf32, #tpu.memory_space<any>>
      %c0_i32_115 = arith.constant 0 : i32
      %309 = tpu.memref_slice %arg8[%303, %c0_i32_115] : memref<256x128xf32, #tpu.memory_space<vmem>> -> memref<1x128xf32, #tpu.memory_space<vmem>>
      %310 = tpu.memref_squeeze %309 : memref<1x128xf32, #tpu.memory_space<vmem>> -> memref<128xf32, #tpu.memory_space<vmem>>
      %311 = tpu.memref_slice %arg9[%c0_i32_113] : memref<4x!tpu.dma_semaphore, #tpu.memory_space<semaphore_mem>> -> memref<1x!tpu.dma_semaphore, #tpu.memory_space<semaphore_mem>>
      %312 = tpu.memref_squeeze %311 : memref<1x!tpu.dma_semaphore, #tpu.memory_space<semaphore_mem>> -> memref<!tpu.dma_semaphore, #tpu.memory_space<semaphore_mem>>
      tpu.enqueue_dma source(%308 : memref<128xf32, #tpu.memory_space<any>>) target(%310 : memref<128xf32, #tpu.memory_space<vmem>>) target_semaphore(%312 : memref<!tpu.dma_semaphore, #tpu.memory_space<semaphore_mem>>)
      %c2_i32_116 = arith.constant 2 : i32
      %313 = arith.addi %292, %c2_i32_116 : i32
      %314 = arith.addi %0, %313 : i32
      %315 = arith.index_cast %314 : i32 to index
      %316 = memref.load %arg1[%315] : memref<512xi32, #tpu.memory_space<smem>>
      %c0_i32_117 = arith.constant 0 : i32
      %c0_i32_118 = arith.constant 0 : i32
      %317 = tpu.memref_slice %arg2[%316, %c0_i32_118] : memref<512x128xf32, #tpu.memory_space<any>> -> memref<1x128xf32, #tpu.memory_space<any>>
      %318 = tpu.memref_squeeze %317 : memref<1x128xf32, #tpu.memory_space<any>> -> memref<128xf32, #tpu.memory_space<any>>
      %c0_i32_119 = arith.constant 0 : i32
      %319 = tpu.memref_slice %arg8[%313, %c0_i32_119] : memref<256x128xf32, #tpu.memory_space<vmem>> -> memref<1x128xf32, #tpu.memory_space<vmem>>
      %320 = tpu.memref_squeeze %319 : memref<1x128xf32, #tpu.memory_space<vmem>> -> memref<128xf32, #tpu.memory_space<vmem>>
      %321 = tpu.memref_slice %arg9[%c0_i32_117] : memref<4x!tpu.dma_semaphore, #tpu.memory_space<semaphore_mem>> -> memref<1x!tpu.dma_semaphore, #tpu.memory_space<semaphore_mem>>
      %322 = tpu.memref_squeeze %321 : memref<1x!tpu.dma_semaphore, #tpu.memory_space<semaphore_mem>> -> memref<!tpu.dma_semaphore, #tpu.memory_space<semaphore_mem>>
      tpu.enqueue_dma source(%318 : memref<128xf32, #tpu.memory_space<any>>) target(%320 : memref<128xf32, #tpu.memory_space<vmem>>) target_semaphore(%322 : memref<!tpu.dma_semaphore, #tpu.memory_space<semaphore_mem>>)
      %c3_i32_120 = arith.constant 3 : i32
      %323 = arith.addi %292, %c3_i32_120 : i32
      %324 = arith.addi %0, %323 : i32
      %325 = arith.index_cast %324 : i32 to index
      %326 = memref.load %arg1[%325] : memref<512xi32, #tpu.memory_space<smem>>
      %c0_i32_121 = arith.constant 0 : i32
      %c0_i32_122 = arith.constant 0 : i32
      %327 = tpu.memref_slice %arg2[%326, %c0_i32_122] : memref<512x128xf32, #tpu.memory_space<any>> -> memref<1x128xf32, #tpu.memory_space<any>>
      %328 = tpu.memref_squeeze %327 : memref<1x128xf32, #tpu.memory_space<any>> -> memref<128xf32, #tpu.memory_space<any>>
      %c0_i32_123 = arith.constant 0 : i32
      %329 = tpu.memref_slice %arg8[%323, %c0_i32_123] : memref<256x128xf32, #tpu.memory_space<vmem>> -> memref<1x128xf32, #tpu.memory_space<vmem>>
      %330 = tpu.memref_squeeze %329 : memref<1x128xf32, #tpu.memory_space<vmem>> -> memref<128xf32, #tpu.memory_space<vmem>>
      %331 = tpu.memref_slice %arg9[%c0_i32_121] : memref<4x!tpu.dma_semaphore, #tpu.memory_space<semaphore_mem>> -> memref<1x!tpu.dma_semaphore, #tpu.memory_space<semaphore_mem>>
      %332 = tpu.memref_squeeze %331 : memref<1x!tpu.dma_semaphore, #tpu.memory_space<semaphore_mem>> -> memref<!tpu.dma_semaphore, #tpu.memory_space<semaphore_mem>>
      tpu.enqueue_dma source(%328 : memref<128xf32, #tpu.memory_space<any>>) target(%330 : memref<128xf32, #tpu.memory_space<vmem>>) target_semaphore(%332 : memref<!tpu.dma_semaphore, #tpu.memory_space<semaphore_mem>>)
      %c4_i32_124 = arith.constant 4 : i32
      %333 = arith.addi %292, %c4_i32_124 : i32
      %334 = arith.addi %0, %333 : i32
      %335 = arith.index_cast %334 : i32 to index
      %336 = memref.load %arg1[%335] : memref<512xi32, #tpu.memory_space<smem>>
      %c0_i32_125 = arith.constant 0 : i32
      %c0_i32_126 = arith.constant 0 : i32
      %337 = tpu.memref_slice %arg2[%336, %c0_i32_126] : memref<512x128xf32, #tpu.memory_space<any>> -> memref<1x128xf32, #tpu.memory_space<any>>
      %338 = tpu.memref_squeeze %337 : memref<1x128xf32, #tpu.memory_space<any>> -> memref<128xf32, #tpu.memory_space<any>>
      %c0_i32_127 = arith.constant 0 : i32
      %339 = tpu.memref_slice %arg8[%333, %c0_i32_127] : memref<256x128xf32, #tpu.memory_space<vmem>> -> memref<1x128xf32, #tpu.memory_space<vmem>>
      %340 = tpu.memref_squeeze %339 : memref<1x128xf32, #tpu.memory_space<vmem>> -> memref<128xf32, #tpu.memory_space<vmem>>
      %341 = tpu.memref_slice %arg9[%c0_i32_125] : memref<4x!tpu.dma_semaphore, #tpu.memory_space<semaphore_mem>> -> memref<1x!tpu.dma_semaphore, #tpu.memory_space<semaphore_mem>>
      %342 = tpu.memref_squeeze %341 : memref<1x!tpu.dma_semaphore, #tpu.memory_space<semaphore_mem>> -> memref<!tpu.dma_semaphore, #tpu.memory_space<semaphore_mem>>
      tpu.enqueue_dma source(%338 : memref<128xf32, #tpu.memory_space<any>>) target(%340 : memref<128xf32, #tpu.memory_space<vmem>>) target_semaphore(%342 : memref<!tpu.dma_semaphore, #tpu.memory_space<semaphore_mem>>)
      %c5_i32_128 = arith.constant 5 : i32
      %343 = arith.addi %292, %c5_i32_128 : i32
      %344 = arith.addi %0, %343 : i32
      %345 = arith.index_cast %344 : i32 to index
      %346 = memref.load %arg1[%345] : memref<512xi32, #tpu.memory_space<smem>>
      %c0_i32_129 = arith.constant 0 : i32
      %c0_i32_130 = arith.constant 0 : i32
      %347 = tpu.memref_slice %arg2[%346, %c0_i32_130] : memref<512x128xf32, #tpu.memory_space<any>> -> memref<1x128xf32, #tpu.memory_space<any>>
      %348 = tpu.memref_squeeze %347 : memref<1x128xf32, #tpu.memory_space<any>> -> memref<128xf32, #tpu.memory_space<any>>
      %c0_i32_131 = arith.constant 0 : i32
      %349 = tpu.memref_slice %arg8[%343, %c0_i32_131] : memref<256x128xf32, #tpu.memory_space<vmem>> -> memref<1x128xf32, #tpu.memory_space<vmem>>
      %350 = tpu.memref_squeeze %349 : memref<1x128xf32, #tpu.memory_space<vmem>> -> memref<128xf32, #tpu.memory_space<vmem>>
      %351 = tpu.memref_slice %arg9[%c0_i32_129] : memref<4x!tpu.dma_semaphore, #tpu.memory_space<semaphore_mem>> -> memref<1x!tpu.dma_semaphore, #tpu.memory_space<semaphore_mem>>
      %352 = tpu.memref_squeeze %351 : memref<1x!tpu.dma_semaphore, #tpu.memory_space<semaphore_mem>> -> memref<!tpu.dma_semaphore, #tpu.memory_space<semaphore_mem>>
      tpu.enqueue_dma source(%348 : memref<128xf32, #tpu.memory_space<any>>) target(%350 : memref<128xf32, #tpu.memory_space<vmem>>) target_semaphore(%352 : memref<!tpu.dma_semaphore, #tpu.memory_space<semaphore_mem>>)
      %c6_i32_132 = arith.constant 6 : i32
      %353 = arith.addi %292, %c6_i32_132 : i32
      %354 = arith.addi %0, %353 : i32
      %355 = arith.index_cast %354 : i32 to index
      %356 = memref.load %arg1[%355] : memref<512xi32, #tpu.memory_space<smem>>
      %c0_i32_133 = arith.constant 0 : i32
      %c0_i32_134 = arith.constant 0 : i32
      %357 = tpu.memref_slice %arg2[%356, %c0_i32_134] : memref<512x128xf32, #tpu.memory_space<any>> -> memref<1x128xf32, #tpu.memory_space<any>>
      %358 = tpu.memref_squeeze %357 : memref<1x128xf32, #tpu.memory_space<any>> -> memref<128xf32, #tpu.memory_space<any>>
      %c0_i32_135 = arith.constant 0 : i32
      %359 = tpu.memref_slice %arg8[%353, %c0_i32_135] : memref<256x128xf32, #tpu.memory_space<vmem>> -> memref<1x128xf32, #tpu.memory_space<vmem>>
      %360 = tpu.memref_squeeze %359 : memref<1x128xf32, #tpu.memory_space<vmem>> -> memref<128xf32, #tpu.memory_space<vmem>>
      %361 = tpu.memref_slice %arg9[%c0_i32_133] : memref<4x!tpu.dma_semaphore, #tpu.memory_space<semaphore_mem>> -> memref<1x!tpu.dma_semaphore, #tpu.memory_space<semaphore_mem>>
      %362 = tpu.memref_squeeze %361 : memref<1x!tpu.dma_semaphore, #tpu.memory_space<semaphore_mem>> -> memref<!tpu.dma_semaphore, #tpu.memory_space<semaphore_mem>>
      tpu.enqueue_dma source(%358 : memref<128xf32, #tpu.memory_space<any>>) target(%360 : memref<128xf32, #tpu.memory_space<vmem>>) target_semaphore(%362 : memref<!tpu.dma_semaphore, #tpu.memory_space<semaphore_mem>>)
      %c7_i32_136 = arith.constant 7 : i32
      %363 = arith.addi %292, %c7_i32_136 : i32
      %364 = arith.addi %0, %363 : i32
      %365 = arith.index_cast %364 : i32 to index
      %366 = memref.load %arg1[%365] : memref<512xi32, #tpu.memory_space<smem>>
      %c0_i32_137 = arith.constant 0 : i32
      %c0_i32_138 = arith.constant 0 : i32
      %367 = tpu.memref_slice %arg2[%366, %c0_i32_138] : memref<512x128xf32, #tpu.memory_space<any>> -> memref<1x128xf32, #tpu.memory_space<any>>
      %368 = tpu.memref_squeeze %367 : memref<1x128xf32, #tpu.memory_space<any>> -> memref<128xf32, #tpu.memory_space<any>>
      %c0_i32_139 = arith.constant 0 : i32
      %369 = tpu.memref_slice %arg8[%363, %c0_i32_139] : memref<256x128xf32, #tpu.memory_space<vmem>> -> memref<1x128xf32, #tpu.memory_space<vmem>>
      %370 = tpu.memref_squeeze %369 : memref<1x128xf32, #tpu.memory_space<vmem>> -> memref<128xf32, #tpu.memory_space<vmem>>
      %371 = tpu.memref_slice %arg9[%c0_i32_137] : memref<4x!tpu.dma_semaphore, #tpu.memory_space<semaphore_mem>> -> memref<1x!tpu.dma_semaphore, #tpu.memory_space<semaphore_mem>>
      %372 = tpu.memref_squeeze %371 : memref<1x!tpu.dma_semaphore, #tpu.memory_space<semaphore_mem>> -> memref<!tpu.dma_semaphore, #tpu.memory_space<semaphore_mem>>
      tpu.enqueue_dma source(%368 : memref<128xf32, #tpu.memory_space<any>>) target(%370 : memref<128xf32, #tpu.memory_space<vmem>>) target_semaphore(%372 : memref<!tpu.dma_semaphore, #tpu.memory_space<semaphore_mem>>)
    }
    %c8_i32_0 = arith.constant 8 : i32
    %c0_i32_1 = arith.constant 0 : i32
    %c8_i32_2 = arith.constant 8 : i32
    %2 = arith.addi %c0_i32_1, %c8_i32_2 : i32
    %c1_i32_3 = arith.constant 1 : i32
    scf.for %arg10 = %c0_i32_1 to %2 step %c1_i32_3  : i32 {
      %c8_i32_106 = arith.constant 8 : i32
      %291 = arith.muli %arg10, %c8_i32_106 : i32
      %c64_i32_107 = arith.constant 64 : i32
      %292 = arith.addi %c64_i32_107, %291 : i32
      %c0_i32_108 = arith.constant 0 : i32
      %293 = arith.addi %292, %c0_i32_108 : i32
      %294 = arith.addi %0, %293 : i32
      %295 = arith.index_cast %294 : i32 to index
      %296 = memref.load %arg1[%295] : memref<512xi32, #tpu.memory_space<smem>>
      %c1_i32_109 = arith.constant 1 : i32
      %c0_i32_110 = arith.constant 0 : i32
      %297 = tpu.memref_slice %arg2[%296, %c0_i32_110] : memref<512x128xf32, #tpu.memory_space<any>> -> memref<1x128xf32, #tpu.memory_space<any>>
      %298 = tpu.memref_squeeze %297 : memref<1x128xf32, #tpu.memory_space<any>> -> memref<128xf32, #tpu.memory_space<any>>
      %c0_i32_111 = arith.constant 0 : i32
      %299 = tpu.memref_slice %arg8[%293, %c0_i32_111] : memref<256x128xf32, #tpu.memory_space<vmem>> -> memref<1x128xf32, #tpu.memory_space<vmem>>
      %300 = tpu.memref_squeeze %299 : memref<1x128xf32, #tpu.memory_space<vmem>> -> memref<128xf32, #tpu.memory_space<vmem>>
      %301 = tpu.memref_slice %arg9[%c1_i32_109] : memref<4x!tpu.dma_semaphore, #tpu.memory_space<semaphore_mem>> -> memref<1x!tpu.dma_semaphore, #tpu.memory_space<semaphore_mem>>
      %302 = tpu.memref_squeeze %301 : memref<1x!tpu.dma_semaphore, #tpu.memory_space<semaphore_mem>> -> memref<!tpu.dma_semaphore, #tpu.memory_space<semaphore_mem>>
      tpu.enqueue_dma source(%298 : memref<128xf32, #tpu.memory_space<any>>) target(%300 : memref<128xf32, #tpu.memory_space<vmem>>) target_semaphore(%302 : memref<!tpu.dma_semaphore, #tpu.memory_space<semaphore_mem>>)
      %c1_i32_112 = arith.constant 1 : i32
      %303 = arith.addi %292, %c1_i32_112 : i32
      %304 = arith.addi %0, %303 : i32
      %305 = arith.index_cast %304 : i32 to index
      %306 = memref.load %arg1[%305] : memref<512xi32, #tpu.memory_space<smem>>
      %c1_i32_113 = arith.constant 1 : i32
      %c0_i32_114 = arith.constant 0 : i32
      %307 = tpu.memref_slice %arg2[%306, %c0_i32_114] : memref<512x128xf32, #tpu.memory_space<any>> -> memref<1x128xf32, #tpu.memory_space<any>>
      %308 = tpu.memref_squeeze %307 : memref<1x128xf32, #tpu.memory_space<any>> -> memref<128xf32, #tpu.memory_space<any>>
      %c0_i32_115 = arith.constant 0 : i32
      %309 = tpu.memref_slice %arg8[%303, %c0_i32_115] : memref<256x128xf32, #tpu.memory_space<vmem>> -> memref<1x128xf32, #tpu.memory_space<vmem>>
      %310 = tpu.memref_squeeze %309 : memref<1x128xf32, #tpu.memory_space<vmem>> -> memref<128xf32, #tpu.memory_space<vmem>>
      %311 = tpu.memref_slice %arg9[%c1_i32_113] : memref<4x!tpu.dma_semaphore, #tpu.memory_space<semaphore_mem>> -> memref<1x!tpu.dma_semaphore, #tpu.memory_space<semaphore_mem>>
      %312 = tpu.memref_squeeze %311 : memref<1x!tpu.dma_semaphore, #tpu.memory_space<semaphore_mem>> -> memref<!tpu.dma_semaphore, #tpu.memory_space<semaphore_mem>>
      tpu.enqueue_dma source(%308 : memref<128xf32, #tpu.memory_space<any>>) target(%310 : memref<128xf32, #tpu.memory_space<vmem>>) target_semaphore(%312 : memref<!tpu.dma_semaphore, #tpu.memory_space<semaphore_mem>>)
      %c2_i32_116 = arith.constant 2 : i32
      %313 = arith.addi %292, %c2_i32_116 : i32
      %314 = arith.addi %0, %313 : i32
      %315 = arith.index_cast %314 : i32 to index
      %316 = memref.load %arg1[%315] : memref<512xi32, #tpu.memory_space<smem>>
      %c1_i32_117 = arith.constant 1 : i32
      %c0_i32_118 = arith.constant 0 : i32
      %317 = tpu.memref_slice %arg2[%316, %c0_i32_118] : memref<512x128xf32, #tpu.memory_space<any>> -> memref<1x128xf32, #tpu.memory_space<any>>
      %318 = tpu.memref_squeeze %317 : memref<1x128xf32, #tpu.memory_space<any>> -> memref<128xf32, #tpu.memory_space<any>>
      %c0_i32_119 = arith.constant 0 : i32
      %319 = tpu.memref_slice %arg8[%313, %c0_i32_119] : memref<256x128xf32, #tpu.memory_space<vmem>> -> memref<1x128xf32, #tpu.memory_space<vmem>>
      %320 = tpu.memref_squeeze %319 : memref<1x128xf32, #tpu.memory_space<vmem>> -> memref<128xf32, #tpu.memory_space<vmem>>
      %321 = tpu.memref_slice %arg9[%c1_i32_117] : memref<4x!tpu.dma_semaphore, #tpu.memory_space<semaphore_mem>> -> memref<1x!tpu.dma_semaphore, #tpu.memory_space<semaphore_mem>>
      %322 = tpu.memref_squeeze %321 : memref<1x!tpu.dma_semaphore, #tpu.memory_space<semaphore_mem>> -> memref<!tpu.dma_semaphore, #tpu.memory_space<semaphore_mem>>
      tpu.enqueue_dma source(%318 : memref<128xf32, #tpu.memory_space<any>>) target(%320 : memref<128xf32, #tpu.memory_space<vmem>>) target_semaphore(%322 : memref<!tpu.dma_semaphore, #tpu.memory_space<semaphore_mem>>)
      %c3_i32_120 = arith.constant 3 : i32
      %323 = arith.addi %292, %c3_i32_120 : i32
      %324 = arith.addi %0, %323 : i32
      %325 = arith.index_cast %324 : i32 to index
      %326 = memref.load %arg1[%325] : memref<512xi32, #tpu.memory_space<smem>>
      %c1_i32_121 = arith.constant 1 : i32
      %c0_i32_122 = arith.constant 0 : i32
      %327 = tpu.memref_slice %arg2[%326, %c0_i32_122] : memref<512x128xf32, #tpu.memory_space<any>> -> memref<1x128xf32, #tpu.memory_space<any>>
      %328 = tpu.memref_squeeze %327 : memref<1x128xf32, #tpu.memory_space<any>> -> memref<128xf32, #tpu.memory_space<any>>
      %c0_i32_123 = arith.constant 0 : i32
      %329 = tpu.memref_slice %arg8[%323, %c0_i32_123] : memref<256x128xf32, #tpu.memory_space<vmem>> -> memref<1x128xf32, #tpu.memory_space<vmem>>
      %330 = tpu.memref_squeeze %329 : memref<1x128xf32, #tpu.memory_space<vmem>> -> memref<128xf32, #tpu.memory_space<vmem>>
      %331 = tpu.memref_slice %arg9[%c1_i32_121] : memref<4x!tpu.dma_semaphore, #tpu.memory_space<semaphore_mem>> -> memref<1x!tpu.dma_semaphore, #tpu.memory_space<semaphore_mem>>
      %332 = tpu.memref_squeeze %331 : memref<1x!tpu.dma_semaphore, #tpu.memory_space<semaphore_mem>> -> memref<!tpu.dma_semaphore, #tpu.memory_space<semaphore_mem>>
      tpu.enqueue_dma source(%328 : memref<128xf32, #tpu.memory_space<any>>) target(%330 : memref<128xf32, #tpu.memory_space<vmem>>) target_semaphore(%332 : memref<!tpu.dma_semaphore, #tpu.memory_space<semaphore_mem>>)
      %c4_i32_124 = arith.constant 4 : i32
      %333 = arith.addi %292, %c4_i32_124 : i32
      %334 = arith.addi %0, %333 : i32
      %335 = arith.index_cast %334 : i32 to index
      %336 = memref.load %arg1[%335] : memref<512xi32, #tpu.memory_space<smem>>
      %c1_i32_125 = arith.constant 1 : i32
      %c0_i32_126 = arith.constant 0 : i32
      %337 = tpu.memref_slice %arg2[%336, %c0_i32_126] : memref<512x128xf32, #tpu.memory_space<any>> -> memref<1x128xf32, #tpu.memory_space<any>>
      %338 = tpu.memref_squeeze %337 : memref<1x128xf32, #tpu.memory_space<any>> -> memref<128xf32, #tpu.memory_space<any>>
      %c0_i32_127 = arith.constant 0 : i32
      %339 = tpu.memref_slice %arg8[%333, %c0_i32_127] : memref<256x128xf32, #tpu.memory_space<vmem>> -> memref<1x128xf32, #tpu.memory_space<vmem>>
      %340 = tpu.memref_squeeze %339 : memref<1x128xf32, #tpu.memory_space<vmem>> -> memref<128xf32, #tpu.memory_space<vmem>>
      %341 = tpu.memref_slice %arg9[%c1_i32_125] : memref<4x!tpu.dma_semaphore, #tpu.memory_space<semaphore_mem>> -> memref<1x!tpu.dma_semaphore, #tpu.memory_space<semaphore_mem>>
      %342 = tpu.memref_squeeze %341 : memref<1x!tpu.dma_semaphore, #tpu.memory_space<semaphore_mem>> -> memref<!tpu.dma_semaphore, #tpu.memory_space<semaphore_mem>>
      tpu.enqueue_dma source(%338 : memref<128xf32, #tpu.memory_space<any>>) target(%340 : memref<128xf32, #tpu.memory_space<vmem>>) target_semaphore(%342 : memref<!tpu.dma_semaphore, #tpu.memory_space<semaphore_mem>>)
      %c5_i32_128 = arith.constant 5 : i32
      %343 = arith.addi %292, %c5_i32_128 : i32
      %344 = arith.addi %0, %343 : i32
      %345 = arith.index_cast %344 : i32 to index
      %346 = memref.load %arg1[%345] : memref<512xi32, #tpu.memory_space<smem>>
      %c1_i32_129 = arith.constant 1 : i32
      %c0_i32_130 = arith.constant 0 : i32
      %347 = tpu.memref_slice %arg2[%346, %c0_i32_130] : memref<512x128xf32, #tpu.memory_space<any>> -> memref<1x128xf32, #tpu.memory_space<any>>
      %348 = tpu.memref_squeeze %347 : memref<1x128xf32, #tpu.memory_space<any>> -> memref<128xf32, #tpu.memory_space<any>>
      %c0_i32_131 = arith.constant 0 : i32
      %349 = tpu.memref_slice %arg8[%343, %c0_i32_131] : memref<256x128xf32, #tpu.memory_space<vmem>> -> memref<1x128xf32, #tpu.memory_space<vmem>>
      %350 = tpu.memref_squeeze %349 : memref<1x128xf32, #tpu.memory_space<vmem>> -> memref<128xf32, #tpu.memory_space<vmem>>
      %351 = tpu.memref_slice %arg9[%c1_i32_129] : memref<4x!tpu.dma_semaphore, #tpu.memory_space<semaphore_mem>> -> memref<1x!tpu.dma_semaphore, #tpu.memory_space<semaphore_mem>>
      %352 = tpu.memref_squeeze %351 : memref<1x!tpu.dma_semaphore, #tpu.memory_space<semaphore_mem>> -> memref<!tpu.dma_semaphore, #tpu.memory_space<semaphore_mem>>
      tpu.enqueue_dma source(%348 : memref<128xf32, #tpu.memory_space<any>>) target(%350 : memref<128xf32, #tpu.memory_space<vmem>>) target_semaphore(%352 : memref<!tpu.dma_semaphore, #tpu.memory_space<semaphore_mem>>)
      %c6_i32_132 = arith.constant 6 : i32
      %353 = arith.addi %292, %c6_i32_132 : i32
      %354 = arith.addi %0, %353 : i32
      %355 = arith.index_cast %354 : i32 to index
      %356 = memref.load %arg1[%355] : memref<512xi32, #tpu.memory_space<smem>>
      %c1_i32_133 = arith.constant 1 : i32
      %c0_i32_134 = arith.constant 0 : i32
      %357 = tpu.memref_slice %arg2[%356, %c0_i32_134] : memref<512x128xf32, #tpu.memory_space<any>> -> memref<1x128xf32, #tpu.memory_space<any>>
      %358 = tpu.memref_squeeze %357 : memref<1x128xf32, #tpu.memory_space<any>> -> memref<128xf32, #tpu.memory_space<any>>
      %c0_i32_135 = arith.constant 0 : i32
      %359 = tpu.memref_slice %arg8[%353, %c0_i32_135] : memref<256x128xf32, #tpu.memory_space<vmem>> -> memref<1x128xf32, #tpu.memory_space<vmem>>
      %360 = tpu.memref_squeeze %359 : memref<1x128xf32, #tpu.memory_space<vmem>> -> memref<128xf32, #tpu.memory_space<vmem>>
      %361 = tpu.memref_slice %arg9[%c1_i32_133] : memref<4x!tpu.dma_semaphore, #tpu.memory_space<semaphore_mem>> -> memref<1x!tpu.dma_semaphore, #tpu.memory_space<semaphore_mem>>
      %362 = tpu.memref_squeeze %361 : memref<1x!tpu.dma_semaphore, #tpu.memory_space<semaphore_mem>> -> memref<!tpu.dma_semaphore, #tpu.memory_space<semaphore_mem>>
      tpu.enqueue_dma source(%358 : memref<128xf32, #tpu.memory_space<any>>) target(%360 : memref<128xf32, #tpu.memory_space<vmem>>) target_semaphore(%362 : memref<!tpu.dma_semaphore, #tpu.memory_space<semaphore_mem>>)
      %c7_i32_136 = arith.constant 7 : i32
      %363 = arith.addi %292, %c7_i32_136 : i32
      %364 = arith.addi %0, %363 : i32
      %365 = arith.index_cast %364 : i32 to index
      %366 = memref.load %arg1[%365] : memref<512xi32, #tpu.memory_space<smem>>
      %c1_i32_137 = arith.constant 1 : i32
      %c0_i32_138 = arith.constant 0 : i32
      %367 = tpu.memref_slice %arg2[%366, %c0_i32_138] : memref<512x128xf32, #tpu.memory_space<any>> -> memref<1x128xf32, #tpu.memory_space<any>>
      %368 = tpu.memref_squeeze %367 : memref<1x128xf32, #tpu.memory_space<any>> -> memref<128xf32, #tpu.memory_space<any>>
      %c0_i32_139 = arith.constant 0 : i32
      %369 = tpu.memref_slice %arg8[%363, %c0_i32_139] : memref<256x128xf32, #tpu.memory_space<vmem>> -> memref<1x128xf32, #tpu.memory_space<vmem>>
      %370 = tpu.memref_squeeze %369 : memref<1x128xf32, #tpu.memory_space<vmem>> -> memref<128xf32, #tpu.memory_space<vmem>>
      %371 = tpu.memref_slice %arg9[%c1_i32_137] : memref<4x!tpu.dma_semaphore, #tpu.memory_space<semaphore_mem>> -> memref<1x!tpu.dma_semaphore, #tpu.memory_space<semaphore_mem>>
      %372 = tpu.memref_squeeze %371 : memref<1x!tpu.dma_semaphore, #tpu.memory_space<semaphore_mem>> -> memref<!tpu.dma_semaphore, #tpu.memory_space<semaphore_mem>>
      tpu.enqueue_dma source(%368 : memref<128xf32, #tpu.memory_space<any>>) target(%370 : memref<128xf32, #tpu.memory_space<vmem>>) target_semaphore(%372 : memref<!tpu.dma_semaphore, #tpu.memory_space<semaphore_mem>>)
    }
    %c8_i32_4 = arith.constant 8 : i32
    %c0_i32_5 = arith.constant 0 : i32
    %c8_i32_6 = arith.constant 8 : i32
    %3 = arith.addi %c0_i32_5, %c8_i32_6 : i32
    %c1_i32_7 = arith.constant 1 : i32
    scf.for %arg10 = %c0_i32_5 to %3 step %c1_i32_7  : i32 {
      %c8_i32_106 = arith.constant 8 : i32
      %291 = arith.muli %arg10, %c8_i32_106 : i32
      %c128_i32_107 = arith.constant 128 : i32
      %292 = arith.addi %c128_i32_107, %291 : i32
      %c0_i32_108 = arith.constant 0 : i32
      %293 = arith.addi %292, %c0_i32_108 : i32
      %294 = arith.addi %0, %293 : i32
      %295 = arith.index_cast %294 : i32 to index
      %296 = memref.load %arg1[%295] : memref<512xi32, #tpu.memory_space<smem>>
      %c2_i32_109 = arith.constant 2 : i32
      %c0_i32_110 = arith.constant 0 : i32
      %297 = tpu.memref_slice %arg2[%296, %c0_i32_110] : memref<512x128xf32, #tpu.memory_space<any>> -> memref<1x128xf32, #tpu.memory_space<any>>
      %298 = tpu.memref_squeeze %297 : memref<1x128xf32, #tpu.memory_space<any>> -> memref<128xf32, #tpu.memory_space<any>>
      %c0_i32_111 = arith.constant 0 : i32
      %299 = tpu.memref_slice %arg8[%293, %c0_i32_111] : memref<256x128xf32, #tpu.memory_space<vmem>> -> memref<1x128xf32, #tpu.memory_space<vmem>>
      %300 = tpu.memref_squeeze %299 : memref<1x128xf32, #tpu.memory_space<vmem>> -> memref<128xf32, #tpu.memory_space<vmem>>
      %301 = tpu.memref_slice %arg9[%c2_i32_109] : memref<4x!tpu.dma_semaphore, #tpu.memory_space<semaphore_mem>> -> memref<1x!tpu.dma_semaphore, #tpu.memory_space<semaphore_mem>>
      %302 = tpu.memref_squeeze %301 : memref<1x!tpu.dma_semaphore, #tpu.memory_space<semaphore_mem>> -> memref<!tpu.dma_semaphore, #tpu.memory_space<semaphore_mem>>
      tpu.enqueue_dma source(%298 : memref<128xf32, #tpu.memory_space<any>>) target(%300 : memref<128xf32, #tpu.memory_space<vmem>>) target_semaphore(%302 : memref<!tpu.dma_semaphore, #tpu.memory_space<semaphore_mem>>)
      %c1_i32_112 = arith.constant 1 : i32
      %303 = arith.addi %292, %c1_i32_112 : i32
      %304 = arith.addi %0, %303 : i32
      %305 = arith.index_cast %304 : i32 to index
      %306 = memref.load %arg1[%305] : memref<512xi32, #tpu.memory_space<smem>>
      %c2_i32_113 = arith.constant 2 : i32
      %c0_i32_114 = arith.constant 0 : i32
      %307 = tpu.memref_slice %arg2[%306, %c0_i32_114] : memref<512x128xf32, #tpu.memory_space<any>> -> memref<1x128xf32, #tpu.memory_space<any>>
      %308 = tpu.memref_squeeze %307 : memref<1x128xf32, #tpu.memory_space<any>> -> memref<128xf32, #tpu.memory_space<any>>
      %c0_i32_115 = arith.constant 0 : i32
      %309 = tpu.memref_slice %arg8[%303, %c0_i32_115] : memref<256x128xf32, #tpu.memory_space<vmem>> -> memref<1x128xf32, #tpu.memory_space<vmem>>
      %310 = tpu.memref_squeeze %309 : memref<1x128xf32, #tpu.memory_space<vmem>> -> memref<128xf32, #tpu.memory_space<vmem>>
      %311 = tpu.memref_slice %arg9[%c2_i32_113] : memref<4x!tpu.dma_semaphore, #tpu.memory_space<semaphore_mem>> -> memref<1x!tpu.dma_semaphore, #tpu.memory_space<semaphore_mem>>
      %312 = tpu.memref_squeeze %311 : memref<1x!tpu.dma_semaphore, #tpu.memory_space<semaphore_mem>> -> memref<!tpu.dma_semaphore, #tpu.memory_space<semaphore_mem>>
      tpu.enqueue_dma source(%308 : memref<128xf32, #tpu.memory_space<any>>) target(%310 : memref<128xf32, #tpu.memory_space<vmem>>) target_semaphore(%312 : memref<!tpu.dma_semaphore, #tpu.memory_space<semaphore_mem>>)
      %c2_i32_116 = arith.constant 2 : i32
      %313 = arith.addi %292, %c2_i32_116 : i32
      %314 = arith.addi %0, %313 : i32
      %315 = arith.index_cast %314 : i32 to index
      %316 = memref.load %arg1[%315] : memref<512xi32, #tpu.memory_space<smem>>
      %c2_i32_117 = arith.constant 2 : i32
      %c0_i32_118 = arith.constant 0 : i32
      %317 = tpu.memref_slice %arg2[%316, %c0_i32_118] : memref<512x128xf32, #tpu.memory_space<any>> -> memref<1x128xf32, #tpu.memory_space<any>>
      %318 = tpu.memref_squeeze %317 : memref<1x128xf32, #tpu.memory_space<any>> -> memref<128xf32, #tpu.memory_space<any>>
      %c0_i32_119 = arith.constant 0 : i32
      %319 = tpu.memref_slice %arg8[%313, %c0_i32_119] : memref<256x128xf32, #tpu.memory_space<vmem>> -> memref<1x128xf32, #tpu.memory_space<vmem>>
      %320 = tpu.memref_squeeze %319 : memref<1x128xf32, #tpu.memory_space<vmem>> -> memref<128xf32, #tpu.memory_space<vmem>>
      %321 = tpu.memref_slice %arg9[%c2_i32_117] : memref<4x!tpu.dma_semaphore, #tpu.memory_space<semaphore_mem>> -> memref<1x!tpu.dma_semaphore, #tpu.memory_space<semaphore_mem>>
      %322 = tpu.memref_squeeze %321 : memref<1x!tpu.dma_semaphore, #tpu.memory_space<semaphore_mem>> -> memref<!tpu.dma_semaphore, #tpu.memory_space<semaphore_mem>>
      tpu.enqueue_dma source(%318 : memref<128xf32, #tpu.memory_space<any>>) target(%320 : memref<128xf32, #tpu.memory_space<vmem>>) target_semaphore(%322 : memref<!tpu.dma_semaphore, #tpu.memory_space<semaphore_mem>>)
      %c3_i32_120 = arith.constant 3 : i32
      %323 = arith.addi %292, %c3_i32_120 : i32
      %324 = arith.addi %0, %323 : i32
      %325 = arith.index_cast %324 : i32 to index
      %326 = memref.load %arg1[%325] : memref<512xi32, #tpu.memory_space<smem>>
      %c2_i32_121 = arith.constant 2 : i32
      %c0_i32_122 = arith.constant 0 : i32
      %327 = tpu.memref_slice %arg2[%326, %c0_i32_122] : memref<512x128xf32, #tpu.memory_space<any>> -> memref<1x128xf32, #tpu.memory_space<any>>
      %328 = tpu.memref_squeeze %327 : memref<1x128xf32, #tpu.memory_space<any>> -> memref<128xf32, #tpu.memory_space<any>>
      %c0_i32_123 = arith.constant 0 : i32
      %329 = tpu.memref_slice %arg8[%323, %c0_i32_123] : memref<256x128xf32, #tpu.memory_space<vmem>> -> memref<1x128xf32, #tpu.memory_space<vmem>>
      %330 = tpu.memref_squeeze %329 : memref<1x128xf32, #tpu.memory_space<vmem>> -> memref<128xf32, #tpu.memory_space<vmem>>
      %331 = tpu.memref_slice %arg9[%c2_i32_121] : memref<4x!tpu.dma_semaphore, #tpu.memory_space<semaphore_mem>> -> memref<1x!tpu.dma_semaphore, #tpu.memory_space<semaphore_mem>>
      %332 = tpu.memref_squeeze %331 : memref<1x!tpu.dma_semaphore, #tpu.memory_space<semaphore_mem>> -> memref<!tpu.dma_semaphore, #tpu.memory_space<semaphore_mem>>
      tpu.enqueue_dma source(%328 : memref<128xf32, #tpu.memory_space<any>>) target(%330 : memref<128xf32, #tpu.memory_space<vmem>>) target_semaphore(%332 : memref<!tpu.dma_semaphore, #tpu.memory_space<semaphore_mem>>)
      %c4_i32_124 = arith.constant 4 : i32
      %333 = arith.addi %292, %c4_i32_124 : i32
      %334 = arith.addi %0, %333 : i32
      %335 = arith.index_cast %334 : i32 to index
      %336 = memref.load %arg1[%335] : memref<512xi32, #tpu.memory_space<smem>>
      %c2_i32_125 = arith.constant 2 : i32
      %c0_i32_126 = arith.constant 0 : i32
      %337 = tpu.memref_slice %arg2[%336, %c0_i32_126] : memref<512x128xf32, #tpu.memory_space<any>> -> memref<1x128xf32, #tpu.memory_space<any>>
      %338 = tpu.memref_squeeze %337 : memref<1x128xf32, #tpu.memory_space<any>> -> memref<128xf32, #tpu.memory_space<any>>
      %c0_i32_127 = arith.constant 0 : i32
      %339 = tpu.memref_slice %arg8[%333, %c0_i32_127] : memref<256x128xf32, #tpu.memory_space<vmem>> -> memref<1x128xf32, #tpu.memory_space<vmem>>
      %340 = tpu.memref_squeeze %339 : memref<1x128xf32, #tpu.memory_space<vmem>> -> memref<128xf32, #tpu.memory_space<vmem>>
      %341 = tpu.memref_slice %arg9[%c2_i32_125] : memref<4x!tpu.dma_semaphore, #tpu.memory_space<semaphore_mem>> -> memref<1x!tpu.dma_semaphore, #tpu.memory_space<semaphore_mem>>
      %342 = tpu.memref_squeeze %341 : memref<1x!tpu.dma_semaphore, #tpu.memory_space<semaphore_mem>> -> memref<!tpu.dma_semaphore, #tpu.memory_space<semaphore_mem>>
      tpu.enqueue_dma source(%338 : memref<128xf32, #tpu.memory_space<any>>) target(%340 : memref<128xf32, #tpu.memory_space<vmem>>) target_semaphore(%342 : memref<!tpu.dma_semaphore, #tpu.memory_space<semaphore_mem>>)
      %c5_i32_128 = arith.constant 5 : i32
      %343 = arith.addi %292, %c5_i32_128 : i32
      %344 = arith.addi %0, %343 : i32
      %345 = arith.index_cast %344 : i32 to index
      %346 = memref.load %arg1[%345] : memref<512xi32, #tpu.memory_space<smem>>
      %c2_i32_129 = arith.constant 2 : i32
      %c0_i32_130 = arith.constant 0 : i32
      %347 = tpu.memref_slice %arg2[%346, %c0_i32_130] : memref<512x128xf32, #tpu.memory_space<any>> -> memref<1x128xf32, #tpu.memory_space<any>>
      %348 = tpu.memref_squeeze %347 : memref<1x128xf32, #tpu.memory_space<any>> -> memref<128xf32, #tpu.memory_space<any>>
      %c0_i32_131 = arith.constant 0 : i32
      %349 = tpu.memref_slice %arg8[%343, %c0_i32_131] : memref<256x128xf32, #tpu.memory_space<vmem>> -> memref<1x128xf32, #tpu.memory_space<vmem>>
      %350 = tpu.memref_squeeze %349 : memref<1x128xf32, #tpu.memory_space<vmem>> -> memref<128xf32, #tpu.memory_space<vmem>>
      %351 = tpu.memref_slice %arg9[%c2_i32_129] : memref<4x!tpu.dma_semaphore, #tpu.memory_space<semaphore_mem>> -> memref<1x!tpu.dma_semaphore, #tpu.memory_space<semaphore_mem>>
      %352 = tpu.memref_squeeze %351 : memref<1x!tpu.dma_semaphore, #tpu.memory_space<semaphore_mem>> -> memref<!tpu.dma_semaphore, #tpu.memory_space<semaphore_mem>>
      tpu.enqueue_dma source(%348 : memref<128xf32, #tpu.memory_space<any>>) target(%350 : memref<128xf32, #tpu.memory_space<vmem>>) target_semaphore(%352 : memref<!tpu.dma_semaphore, #tpu.memory_space<semaphore_mem>>)
      %c6_i32_132 = arith.constant 6 : i32
      %353 = arith.addi %292, %c6_i32_132 : i32
      %354 = arith.addi %0, %353 : i32
      %355 = arith.index_cast %354 : i32 to index
      %356 = memref.load %arg1[%355] : memref<512xi32, #tpu.memory_space<smem>>
      %c2_i32_133 = arith.constant 2 : i32
      %c0_i32_134 = arith.constant 0 : i32
      %357 = tpu.memref_slice %arg2[%356, %c0_i32_134] : memref<512x128xf32, #tpu.memory_space<any>> -> memref<1x128xf32, #tpu.memory_space<any>>
      %358 = tpu.memref_squeeze %357 : memref<1x128xf32, #tpu.memory_space<any>> -> memref<128xf32, #tpu.memory_space<any>>
      %c0_i32_135 = arith.constant 0 : i32
      %359 = tpu.memref_slice %arg8[%353, %c0_i32_135] : memref<256x128xf32, #tpu.memory_space<vmem>> -> memref<1x128xf32, #tpu.memory_space<vmem>>
      %360 = tpu.memref_squeeze %359 : memref<1x128xf32, #tpu.memory_space<vmem>> -> memref<128xf32, #tpu.memory_space<vmem>>
      %361 = tpu.memref_slice %arg9[%c2_i32_133] : memref<4x!tpu.dma_semaphore, #tpu.memory_space<semaphore_mem>> -> memref<1x!tpu.dma_semaphore, #tpu.memory_space<semaphore_mem>>
      %362 = tpu.memref_squeeze %361 : memref<1x!tpu.dma_semaphore, #tpu.memory_space<semaphore_mem>> -> memref<!tpu.dma_semaphore, #tpu.memory_space<semaphore_mem>>
      tpu.enqueue_dma source(%358 : memref<128xf32, #tpu.memory_space<any>>) target(%360 : memref<128xf32, #tpu.memory_space<vmem>>) target_semaphore(%362 : memref<!tpu.dma_semaphore, #tpu.memory_space<semaphore_mem>>)
      %c7_i32_136 = arith.constant 7 : i32
      %363 = arith.addi %292, %c7_i32_136 : i32
      %364 = arith.addi %0, %363 : i32
      %365 = arith.index_cast %364 : i32 to index
      %366 = memref.load %arg1[%365] : memref<512xi32, #tpu.memory_space<smem>>
      %c2_i32_137 = arith.constant 2 : i32
      %c0_i32_138 = arith.constant 0 : i32
      %367 = tpu.memref_slice %arg2[%366, %c0_i32_138] : memref<512x128xf32, #tpu.memory_space<any>> -> memref<1x128xf32, #tpu.memory_space<any>>
      %368 = tpu.memref_squeeze %367 : memref<1x128xf32, #tpu.memory_space<any>> -> memref<128xf32, #tpu.memory_space<any>>
      %c0_i32_139 = arith.constant 0 : i32
      %369 = tpu.memref_slice %arg8[%363, %c0_i32_139] : memref<256x128xf32, #tpu.memory_space<vmem>> -> memref<1x128xf32, #tpu.memory_space<vmem>>
      %370 = tpu.memref_squeeze %369 : memref<1x128xf32, #tpu.memory_space<vmem>> -> memref<128xf32, #tpu.memory_space<vmem>>
      %371 = tpu.memref_slice %arg9[%c2_i32_137] : memref<4x!tpu.dma_semaphore, #tpu.memory_space<semaphore_mem>> -> memref<1x!tpu.dma_semaphore, #tpu.memory_space<semaphore_mem>>
      %372 = tpu.memref_squeeze %371 : memref<1x!tpu.dma_semaphore, #tpu.memory_space<semaphore_mem>> -> memref<!tpu.dma_semaphore, #tpu.memory_space<semaphore_mem>>
      tpu.enqueue_dma source(%368 : memref<128xf32, #tpu.memory_space<any>>) target(%370 : memref<128xf32, #tpu.memory_space<vmem>>) target_semaphore(%372 : memref<!tpu.dma_semaphore, #tpu.memory_space<semaphore_mem>>)
    }
    %c8_i32_8 = arith.constant 8 : i32
    %c0_i32_9 = arith.constant 0 : i32
    %c8_i32_10 = arith.constant 8 : i32
    %4 = arith.addi %c0_i32_9, %c8_i32_10 : i32
    %c1_i32_11 = arith.constant 1 : i32
    scf.for %arg10 = %c0_i32_9 to %4 step %c1_i32_11  : i32 {
      %c8_i32_106 = arith.constant 8 : i32
      %291 = arith.muli %arg10, %c8_i32_106 : i32
      %c192_i32_107 = arith.constant 192 : i32
      %292 = arith.addi %c192_i32_107, %291 : i32
      %c0_i32_108 = arith.constant 0 : i32
      %293 = arith.addi %292, %c0_i32_108 : i32
      %294 = arith.addi %0, %293 : i32
      %295 = arith.index_cast %294 : i32 to index
      %296 = memref.load %arg1[%295] : memref<512xi32, #tpu.memory_space<smem>>
      %c3_i32_109 = arith.constant 3 : i32
      %c0_i32_110 = arith.constant 0 : i32
      %297 = tpu.memref_slice %arg2[%296, %c0_i32_110] : memref<512x128xf32, #tpu.memory_space<any>> -> memref<1x128xf32, #tpu.memory_space<any>>
      %298 = tpu.memref_squeeze %297 : memref<1x128xf32, #tpu.memory_space<any>> -> memref<128xf32, #tpu.memory_space<any>>
      %c0_i32_111 = arith.constant 0 : i32
      %299 = tpu.memref_slice %arg8[%293, %c0_i32_111] : memref<256x128xf32, #tpu.memory_space<vmem>> -> memref<1x128xf32, #tpu.memory_space<vmem>>
      %300 = tpu.memref_squeeze %299 : memref<1x128xf32, #tpu.memory_space<vmem>> -> memref<128xf32, #tpu.memory_space<vmem>>
      %301 = tpu.memref_slice %arg9[%c3_i32_109] : memref<4x!tpu.dma_semaphore, #tpu.memory_space<semaphore_mem>> -> memref<1x!tpu.dma_semaphore, #tpu.memory_space<semaphore_mem>>
      %302 = tpu.memref_squeeze %301 : memref<1x!tpu.dma_semaphore, #tpu.memory_space<semaphore_mem>> -> memref<!tpu.dma_semaphore, #tpu.memory_space<semaphore_mem>>
      tpu.enqueue_dma source(%298 : memref<128xf32, #tpu.memory_space<any>>) target(%300 : memref<128xf32, #tpu.memory_space<vmem>>) target_semaphore(%302 : memref<!tpu.dma_semaphore, #tpu.memory_space<semaphore_mem>>)
      %c1_i32_112 = arith.constant 1 : i32
      %303 = arith.addi %292, %c1_i32_112 : i32
      %304 = arith.addi %0, %303 : i32
      %305 = arith.index_cast %304 : i32 to index
      %306 = memref.load %arg1[%305] : memref<512xi32, #tpu.memory_space<smem>>
      %c3_i32_113 = arith.constant 3 : i32
      %c0_i32_114 = arith.constant 0 : i32
      %307 = tpu.memref_slice %arg2[%306, %c0_i32_114] : memref<512x128xf32, #tpu.memory_space<any>> -> memref<1x128xf32, #tpu.memory_space<any>>
      %308 = tpu.memref_squeeze %307 : memref<1x128xf32, #tpu.memory_space<any>> -> memref<128xf32, #tpu.memory_space<any>>
      %c0_i32_115 = arith.constant 0 : i32
      %309 = tpu.memref_slice %arg8[%303, %c0_i32_115] : memref<256x128xf32, #tpu.memory_space<vmem>> -> memref<1x128xf32, #tpu.memory_space<vmem>>
      %310 = tpu.memref_squeeze %309 : memref<1x128xf32, #tpu.memory_space<vmem>> -> memref<128xf32, #tpu.memory_space<vmem>>
      %311 = tpu.memref_slice %arg9[%c3_i32_113] : memref<4x!tpu.dma_semaphore, #tpu.memory_space<semaphore_mem>> -> memref<1x!tpu.dma_semaphore, #tpu.memory_space<semaphore_mem>>
      %312 = tpu.memref_squeeze %311 : memref<1x!tpu.dma_semaphore, #tpu.memory_space<semaphore_mem>> -> memref<!tpu.dma_semaphore, #tpu.memory_space<semaphore_mem>>
      tpu.enqueue_dma source(%308 : memref<128xf32, #tpu.memory_space<any>>) target(%310 : memref<128xf32, #tpu.memory_space<vmem>>) target_semaphore(%312 : memref<!tpu.dma_semaphore, #tpu.memory_space<semaphore_mem>>)
      %c2_i32_116 = arith.constant 2 : i32
      %313 = arith.addi %292, %c2_i32_116 : i32
      %314 = arith.addi %0, %313 : i32
      %315 = arith.index_cast %314 : i32 to index
      %316 = memref.load %arg1[%315] : memref<512xi32, #tpu.memory_space<smem>>
      %c3_i32_117 = arith.constant 3 : i32
      %c0_i32_118 = arith.constant 0 : i32
      %317 = tpu.memref_slice %arg2[%316, %c0_i32_118] : memref<512x128xf32, #tpu.memory_space<any>> -> memref<1x128xf32, #tpu.memory_space<any>>
      %318 = tpu.memref_squeeze %317 : memref<1x128xf32, #tpu.memory_space<any>> -> memref<128xf32, #tpu.memory_space<any>>
      %c0_i32_119 = arith.constant 0 : i32
      %319 = tpu.memref_slice %arg8[%313, %c0_i32_119] : memref<256x128xf32, #tpu.memory_space<vmem>> -> memref<1x128xf32, #tpu.memory_space<vmem>>
      %320 = tpu.memref_squeeze %319 : memref<1x128xf32, #tpu.memory_space<vmem>> -> memref<128xf32, #tpu.memory_space<vmem>>
      %321 = tpu.memref_slice %arg9[%c3_i32_117] : memref<4x!tpu.dma_semaphore, #tpu.memory_space<semaphore_mem>> -> memref<1x!tpu.dma_semaphore, #tpu.memory_space<semaphore_mem>>
      %322 = tpu.memref_squeeze %321 : memref<1x!tpu.dma_semaphore, #tpu.memory_space<semaphore_mem>> -> memref<!tpu.dma_semaphore, #tpu.memory_space<semaphore_mem>>
      tpu.enqueue_dma source(%318 : memref<128xf32, #tpu.memory_space<any>>) target(%320 : memref<128xf32, #tpu.memory_space<vmem>>) target_semaphore(%322 : memref<!tpu.dma_semaphore, #tpu.memory_space<semaphore_mem>>)
      %c3_i32_120 = arith.constant 3 : i32
      %323 = arith.addi %292, %c3_i32_120 : i32
      %324 = arith.addi %0, %323 : i32
      %325 = arith.index_cast %324 : i32 to index
      %326 = memref.load %arg1[%325] : memref<512xi32, #tpu.memory_space<smem>>
      %c3_i32_121 = arith.constant 3 : i32
      %c0_i32_122 = arith.constant 0 : i32
      %327 = tpu.memref_slice %arg2[%326, %c0_i32_122] : memref<512x128xf32, #tpu.memory_space<any>> -> memref<1x128xf32, #tpu.memory_space<any>>
      %328 = tpu.memref_squeeze %327 : memref<1x128xf32, #tpu.memory_space<any>> -> memref<128xf32, #tpu.memory_space<any>>
      %c0_i32_123 = arith.constant 0 : i32
      %329 = tpu.memref_slice %arg8[%323, %c0_i32_123] : memref<256x128xf32, #tpu.memory_space<vmem>> -> memref<1x128xf32, #tpu.memory_space<vmem>>
      %330 = tpu.memref_squeeze %329 : memref<1x128xf32, #tpu.memory_space<vmem>> -> memref<128xf32, #tpu.memory_space<vmem>>
      %331 = tpu.memref_slice %arg9[%c3_i32_121] : memref<4x!tpu.dma_semaphore, #tpu.memory_space<semaphore_mem>> -> memref<1x!tpu.dma_semaphore, #tpu.memory_space<semaphore_mem>>
      %332 = tpu.memref_squeeze %331 : memref<1x!tpu.dma_semaphore, #tpu.memory_space<semaphore_mem>> -> memref<!tpu.dma_semaphore, #tpu.memory_space<semaphore_mem>>
      tpu.enqueue_dma source(%328 : memref<128xf32, #tpu.memory_space<any>>) target(%330 : memref<128xf32, #tpu.memory_space<vmem>>) target_semaphore(%332 : memref<!tpu.dma_semaphore, #tpu.memory_space<semaphore_mem>>)
      %c4_i32_124 = arith.constant 4 : i32
      %333 = arith.addi %292, %c4_i32_124 : i32
      %334 = arith.addi %0, %333 : i32
      %335 = arith.index_cast %334 : i32 to index
      %336 = memref.load %arg1[%335] : memref<512xi32, #tpu.memory_space<smem>>
      %c3_i32_125 = arith.constant 3 : i32
      %c0_i32_126 = arith.constant 0 : i32
      %337 = tpu.memref_slice %arg2[%336, %c0_i32_126] : memref<512x128xf32, #tpu.memory_space<any>> -> memref<1x128xf32, #tpu.memory_space<any>>
      %338 = tpu.memref_squeeze %337 : memref<1x128xf32, #tpu.memory_space<any>> -> memref<128xf32, #tpu.memory_space<any>>
      %c0_i32_127 = arith.constant 0 : i32
      %339 = tpu.memref_slice %arg8[%333, %c0_i32_127] : memref<256x128xf32, #tpu.memory_space<vmem>> -> memref<1x128xf32, #tpu.memory_space<vmem>>
      %340 = tpu.memref_squeeze %339 : memref<1x128xf32, #tpu.memory_space<vmem>> -> memref<128xf32, #tpu.memory_space<vmem>>
      %341 = tpu.memref_slice %arg9[%c3_i32_125] : memref<4x!tpu.dma_semaphore, #tpu.memory_space<semaphore_mem>> -> memref<1x!tpu.dma_semaphore, #tpu.memory_space<semaphore_mem>>
      %342 = tpu.memref_squeeze %341 : memref<1x!tpu.dma_semaphore, #tpu.memory_space<semaphore_mem>> -> memref<!tpu.dma_semaphore, #tpu.memory_space<semaphore_mem>>
      tpu.enqueue_dma source(%338 : memref<128xf32, #tpu.memory_space<any>>) target(%340 : memref<128xf32, #tpu.memory_space<vmem>>) target_semaphore(%342 : memref<!tpu.dma_semaphore, #tpu.memory_space<semaphore_mem>>)
      %c5_i32_128 = arith.constant 5 : i32
      %343 = arith.addi %292, %c5_i32_128 : i32
      %344 = arith.addi %0, %343 : i32
      %345 = arith.index_cast %344 : i32 to index
      %346 = memref.load %arg1[%345] : memref<512xi32, #tpu.memory_space<smem>>
      %c3_i32_129 = arith.constant 3 : i32
      %c0_i32_130 = arith.constant 0 : i32
      %347 = tpu.memref_slice %arg2[%346, %c0_i32_130] : memref<512x128xf32, #tpu.memory_space<any>> -> memref<1x128xf32, #tpu.memory_space<any>>
      %348 = tpu.memref_squeeze %347 : memref<1x128xf32, #tpu.memory_space<any>> -> memref<128xf32, #tpu.memory_space<any>>
      %c0_i32_131 = arith.constant 0 : i32
      %349 = tpu.memref_slice %arg8[%343, %c0_i32_131] : memref<256x128xf32, #tpu.memory_space<vmem>> -> memref<1x128xf32, #tpu.memory_space<vmem>>
      %350 = tpu.memref_squeeze %349 : memref<1x128xf32, #tpu.memory_space<vmem>> -> memref<128xf32, #tpu.memory_space<vmem>>
      %351 = tpu.memref_slice %arg9[%c3_i32_129] : memref<4x!tpu.dma_semaphore, #tpu.memory_space<semaphore_mem>> -> memref<1x!tpu.dma_semaphore, #tpu.memory_space<semaphore_mem>>
      %352 = tpu.memref_squeeze %351 : memref<1x!tpu.dma_semaphore, #tpu.memory_space<semaphore_mem>> -> memref<!tpu.dma_semaphore, #tpu.memory_space<semaphore_mem>>
      tpu.enqueue_dma source(%348 : memref<128xf32, #tpu.memory_space<any>>) target(%350 : memref<128xf32, #tpu.memory_space<vmem>>) target_semaphore(%352 : memref<!tpu.dma_semaphore, #tpu.memory_space<semaphore_mem>>)
      %c6_i32_132 = arith.constant 6 : i32
      %353 = arith.addi %292, %c6_i32_132 : i32
      %354 = arith.addi %0, %353 : i32
      %355 = arith.index_cast %354 : i32 to index
      %356 = memref.load %arg1[%355] : memref<512xi32, #tpu.memory_space<smem>>
      %c3_i32_133 = arith.constant 3 : i32
      %c0_i32_134 = arith.constant 0 : i32
      %357 = tpu.memref_slice %arg2[%356, %c0_i32_134] : memref<512x128xf32, #tpu.memory_space<any>> -> memref<1x128xf32, #tpu.memory_space<any>>
      %358 = tpu.memref_squeeze %357 : memref<1x128xf32, #tpu.memory_space<any>> -> memref<128xf32, #tpu.memory_space<any>>
      %c0_i32_135 = arith.constant 0 : i32
      %359 = tpu.memref_slice %arg8[%353, %c0_i32_135] : memref<256x128xf32, #tpu.memory_space<vmem>> -> memref<1x128xf32, #tpu.memory_space<vmem>>
      %360 = tpu.memref_squeeze %359 : memref<1x128xf32, #tpu.memory_space<vmem>> -> memref<128xf32, #tpu.memory_space<vmem>>
      %361 = tpu.memref_slice %arg9[%c3_i32_133] : memref<4x!tpu.dma_semaphore, #tpu.memory_space<semaphore_mem>> -> memref<1x!tpu.dma_semaphore, #tpu.memory_space<semaphore_mem>>
      %362 = tpu.memref_squeeze %361 : memref<1x!tpu.dma_semaphore, #tpu.memory_space<semaphore_mem>> -> memref<!tpu.dma_semaphore, #tpu.memory_space<semaphore_mem>>
      tpu.enqueue_dma source(%358 : memref<128xf32, #tpu.memory_space<any>>) target(%360 : memref<128xf32, #tpu.memory_space<vmem>>) target_semaphore(%362 : memref<!tpu.dma_semaphore, #tpu.memory_space<semaphore_mem>>)
      %c7_i32_136 = arith.constant 7 : i32
      %363 = arith.addi %292, %c7_i32_136 : i32
      %364 = arith.addi %0, %363 : i32
      %365 = arith.index_cast %364 : i32 to index
      %366 = memref.load %arg1[%365] : memref<512xi32, #tpu.memory_space<smem>>
      %c3_i32_137 = arith.constant 3 : i32
      %c0_i32_138 = arith.constant 0 : i32
      %367 = tpu.memref_slice %arg2[%366, %c0_i32_138] : memref<512x128xf32, #tpu.memory_space<any>> -> memref<1x128xf32, #tpu.memory_space<any>>
      %368 = tpu.memref_squeeze %367 : memref<1x128xf32, #tpu.memory_space<any>> -> memref<128xf32, #tpu.memory_space<any>>
      %c0_i32_139 = arith.constant 0 : i32
      %369 = tpu.memref_slice %arg8[%363, %c0_i32_139] : memref<256x128xf32, #tpu.memory_space<vmem>> -> memref<1x128xf32, #tpu.memory_space<vmem>>
      %370 = tpu.memref_squeeze %369 : memref<1x128xf32, #tpu.memory_space<vmem>> -> memref<128xf32, #tpu.memory_space<vmem>>
      %371 = tpu.memref_slice %arg9[%c3_i32_137] : memref<4x!tpu.dma_semaphore, #tpu.memory_space<semaphore_mem>> -> memref<1x!tpu.dma_semaphore, #tpu.memory_space<semaphore_mem>>
      %372 = tpu.memref_squeeze %371 : memref<1x!tpu.dma_semaphore, #tpu.memory_space<semaphore_mem>> -> memref<!tpu.dma_semaphore, #tpu.memory_space<semaphore_mem>>
      tpu.enqueue_dma source(%368 : memref<128xf32, #tpu.memory_space<any>>) target(%370 : memref<128xf32, #tpu.memory_space<vmem>>) target_semaphore(%372 : memref<!tpu.dma_semaphore, #tpu.memory_space<semaphore_mem>>)
    }
    %c8_i32_12 = arith.constant 8 : i32
    %c0 = arith.constant 0 : index
    %c0_13 = arith.constant 0 : index
    %5 = vector.load %arg4[%c0, %c0_13] : memref<256x1xi32, #tpu.memory_space<vmem>>, vector<256x1xi32>
    %cst = arith.constant 0.000000e+00 : f32
    %6 = vector.broadcast %cst : f32 to vector<256x128xf32>
    %c0_i32_14 = arith.constant 0 : i32
    %7 = vector.broadcast %c0_i32_14 : i32 to vector<256x1xi32>
    %8 = arith.cmpi eq, %5, %7 : vector<256x1xi32>
    %c0_15 = arith.constant 0 : index
    %c0_16 = arith.constant 0 : index
    %9 = vector.load %arg3[%c0_15, %c0_16] : memref<17x128xf32, #tpu.memory_space<vmem>>, vector<1x128xf32>
    %cst_17 = arith.constant 0.000000e+00 : f32
    %10 = vector.shape_cast %8 : vector<256x1xi1> to vector<256x1xi1>
    %11 = vector.broadcast %10 : vector<256x1xi1> to vector<256x128xi1>
    %12 = vector.shape_cast %9 : vector<1x128xf32> to vector<1x128xf32>
    %13 = vector.broadcast %12 : vector<1x128xf32> to vector<256x128xf32>
    %14 = vector.broadcast %cst_17 : f32 to vector<256x128xf32>
    %15 = arith.select %11, %13, %14 : vector<256x128xi1>, vector<256x128xf32>
    %16 = arith.addf %6, %15 : vector<256x128xf32>
    %c1_i32_18 = arith.constant 1 : i32
    %17 = vector.broadcast %c1_i32_18 : i32 to vector<256x1xi32>
    %18 = arith.cmpi eq, %5, %17 : vector<256x1xi32>
    %c1 = arith.constant 1 : index
    %c0_19 = arith.constant 0 : index
    %19 = vector.load %arg3[%c1, %c0_19] : memref<17x128xf32, #tpu.memory_space<vmem>>, vector<1x128xf32>
    %cst_20 = arith.constant 0.000000e+00 : f32
    %20 = vector.shape_cast %18 : vector<256x1xi1> to vector<256x1xi1>
    %21 = vector.broadcast %20 : vector<256x1xi1> to vector<256x128xi1>
    %22 = vector.shape_cast %19 : vector<1x128xf32> to vector<1x128xf32>
    %23 = vector.broadcast %22 : vector<1x128xf32> to vector<256x128xf32>
    %24 = vector.broadcast %cst_20 : f32 to vector<256x128xf32>
    %25 = arith.select %21, %23, %24 : vector<256x128xi1>, vector<256x128xf32>
    %26 = arith.addf %16, %25 : vector<256x128xf32>
    %c2_i32 = arith.constant 2 : i32
    %27 = vector.broadcast %c2_i32 : i32 to vector<256x1xi32>
    %28 = arith.cmpi eq, %5, %27 : vector<256x1xi32>
    %c2 = arith.constant 2 : index
    %c0_21 = arith.constant 0 : index
    %29 = vector.load %arg3[%c2, %c0_21] : memref<17x128xf32, #tpu.memory_space<vmem>>, vector<1x128xf32>
    %cst_22 = arith.constant 0.000000e+00 : f32
    %30 = vector.shape_cast %28 : vector<256x1xi1> to vector<256x1xi1>
    %31 = vector.broadcast %30 : vector<256x1xi1> to vector<256x128xi1>
    %32 = vector.shape_cast %29 : vector<1x128xf32> to vector<1x128xf32>
    %33 = vector.broadcast %32 : vector<1x128xf32> to vector<256x128xf32>
    %34 = vector.broadcast %cst_22 : f32 to vector<256x128xf32>
    %35 = arith.select %31, %33, %34 : vector<256x128xi1>, vector<256x128xf32>
    %36 = arith.addf %26, %35 : vector<256x128xf32>
    %c3_i32 = arith.constant 3 : i32
    %37 = vector.broadcast %c3_i32 : i32 to vector<256x1xi32>
    %38 = arith.cmpi eq, %5, %37 : vector<256x1xi32>
    %c3 = arith.constant 3 : index
    %c0_23 = arith.constant 0 : index
    %39 = vector.load %arg3[%c3, %c0_23] : memref<17x128xf32, #tpu.memory_space<vmem>>, vector<1x128xf32>
    %cst_24 = arith.constant 0.000000e+00 : f32
    %40 = vector.shape_cast %38 : vector<256x1xi1> to vector<256x1xi1>
    %41 = vector.broadcast %40 : vector<256x1xi1> to vector<256x128xi1>
    %42 = vector.shape_cast %39 : vector<1x128xf32> to vector<1x128xf32>
    %43 = vector.broadcast %42 : vector<1x128xf32> to vector<256x128xf32>
    %44 = vector.broadcast %cst_24 : f32 to vector<256x128xf32>
    %45 = arith.select %41, %43, %44 : vector<256x128xi1>, vector<256x128xf32>
    %46 = arith.addf %36, %45 : vector<256x128xf32>
    %c4_i32 = arith.constant 4 : i32
    %47 = vector.broadcast %c4_i32 : i32 to vector<256x1xi32>
    %48 = arith.cmpi eq, %5, %47 : vector<256x1xi32>
    %c4 = arith.constant 4 : index
    %c0_25 = arith.constant 0 : index
    %49 = vector.load %arg3[%c4, %c0_25] : memref<17x128xf32, #tpu.memory_space<vmem>>, vector<1x128xf32>
    %cst_26 = arith.constant 0.000000e+00 : f32
    %50 = vector.shape_cast %48 : vector<256x1xi1> to vector<256x1xi1>
    %51 = vector.broadcast %50 : vector<256x1xi1> to vector<256x128xi1>
    %52 = vector.shape_cast %49 : vector<1x128xf32> to vector<1x128xf32>
    %53 = vector.broadcast %52 : vector<1x128xf32> to vector<256x128xf32>
    %54 = vector.broadcast %cst_26 : f32 to vector<256x128xf32>
    %55 = arith.select %51, %53, %54 : vector<256x128xi1>, vector<256x128xf32>
    %56 = arith.addf %46, %55 : vector<256x128xf32>
    %c5_i32 = arith.constant 5 : i32
    %57 = vector.broadcast %c5_i32 : i32 to vector<256x1xi32>
    %58 = arith.cmpi eq, %5, %57 : vector<256x1xi32>
    %c5 = arith.constant 5 : index
    %c0_27 = arith.constant 0 : index
    %59 = vector.load %arg3[%c5, %c0_27] : memref<17x128xf32, #tpu.memory_space<vmem>>, vector<1x128xf32>
    %cst_28 = arith.constant 0.000000e+00 : f32
    %60 = vector.shape_cast %58 : vector<256x1xi1> to vector<256x1xi1>
    %61 = vector.broadcast %60 : vector<256x1xi1> to vector<256x128xi1>
    %62 = vector.shape_cast %59 : vector<1x128xf32> to vector<1x128xf32>
    %63 = vector.broadcast %62 : vector<1x128xf32> to vector<256x128xf32>
    %64 = vector.broadcast %cst_28 : f32 to vector<256x128xf32>
    %65 = arith.select %61, %63, %64 : vector<256x128xi1>, vector<256x128xf32>
    %66 = arith.addf %56, %65 : vector<256x128xf32>
    %c6_i32 = arith.constant 6 : i32
    %67 = vector.broadcast %c6_i32 : i32 to vector<256x1xi32>
    %68 = arith.cmpi eq, %5, %67 : vector<256x1xi32>
    %c6 = arith.constant 6 : index
    %c0_29 = arith.constant 0 : index
    %69 = vector.load %arg3[%c6, %c0_29] : memref<17x128xf32, #tpu.memory_space<vmem>>, vector<1x128xf32>
    %cst_30 = arith.constant 0.000000e+00 : f32
    %70 = vector.shape_cast %68 : vector<256x1xi1> to vector<256x1xi1>
    %71 = vector.broadcast %70 : vector<256x1xi1> to vector<256x128xi1>
    %72 = vector.shape_cast %69 : vector<1x128xf32> to vector<1x128xf32>
    %73 = vector.broadcast %72 : vector<1x128xf32> to vector<256x128xf32>
    %74 = vector.broadcast %cst_30 : f32 to vector<256x128xf32>
    %75 = arith.select %71, %73, %74 : vector<256x128xi1>, vector<256x128xf32>
    %76 = arith.addf %66, %75 : vector<256x128xf32>
    %c7_i32 = arith.constant 7 : i32
    %77 = vector.broadcast %c7_i32 : i32 to vector<256x1xi32>
    %78 = arith.cmpi eq, %5, %77 : vector<256x1xi32>
    %c7 = arith.constant 7 : index
    %c0_31 = arith.constant 0 : index
    %79 = vector.load %arg3[%c7, %c0_31] : memref<17x128xf32, #tpu.memory_space<vmem>>, vector<1x128xf32>
    %cst_32 = arith.constant 0.000000e+00 : f32
    %80 = vector.shape_cast %78 : vector<256x1xi1> to vector<256x1xi1>
    %81 = vector.broadcast %80 : vector<256x1xi1> to vector<256x128xi1>
    %82 = vector.shape_cast %79 : vector<1x128xf32> to vector<1x128xf32>
    %83 = vector.broadcast %82 : vector<1x128xf32> to vector<256x128xf32>
    %84 = vector.broadcast %cst_32 : f32 to vector<256x128xf32>
    %85 = arith.select %81, %83, %84 : vector<256x128xi1>, vector<256x128xf32>
    %86 = arith.addf %76, %85 : vector<256x128xf32>
    %c8_i32_33 = arith.constant 8 : i32
    %87 = vector.broadcast %c8_i32_33 : i32 to vector<256x1xi32>
    %88 = arith.cmpi eq, %5, %87 : vector<256x1xi32>
    %c8 = arith.constant 8 : index
    %c0_34 = arith.constant 0 : index
    %89 = vector.load %arg3[%c8, %c0_34] : memref<17x128xf32, #tpu.memory_space<vmem>>, vector<1x128xf32>
    %cst_35 = arith.constant 0.000000e+00 : f32
    %90 = vector.shape_cast %88 : vector<256x1xi1> to vector<256x1xi1>
    %91 = vector.broadcast %90 : vector<256x1xi1> to vector<256x128xi1>
    %92 = vector.shape_cast %89 : vector<1x128xf32> to vector<1x128xf32>
    %93 = vector.broadcast %92 : vector<1x128xf32> to vector<256x128xf32>
    %94 = vector.broadcast %cst_35 : f32 to vector<256x128xf32>
    %95 = arith.select %91, %93, %94 : vector<256x128xi1>, vector<256x128xf32>
    %96 = arith.addf %86, %95 : vector<256x128xf32>
    %c9_i32 = arith.constant 9 : i32
    %97 = vector.broadcast %c9_i32 : i32 to vector<256x1xi32>
    %98 = arith.cmpi eq, %5, %97 : vector<256x1xi32>
    %c9 = arith.constant 9 : index
    %c0_36 = arith.constant 0 : index
    %99 = vector.load %arg3[%c9, %c0_36] : memref<17x128xf32, #tpu.memory_space<vmem>>, vector<1x128xf32>
    %cst_37 = arith.constant 0.000000e+00 : f32
    %100 = vector.shape_cast %98 : vector<256x1xi1> to vector<256x1xi1>
    %101 = vector.broadcast %100 : vector<256x1xi1> to vector<256x128xi1>
    %102 = vector.shape_cast %99 : vector<1x128xf32> to vector<1x128xf32>
    %103 = vector.broadcast %102 : vector<1x128xf32> to vector<256x128xf32>
    %104 = vector.broadcast %cst_37 : f32 to vector<256x128xf32>
    %105 = arith.select %101, %103, %104 : vector<256x128xi1>, vector<256x128xf32>
    %106 = arith.addf %96, %105 : vector<256x128xf32>
    %c10_i32 = arith.constant 10 : i32
    %107 = vector.broadcast %c10_i32 : i32 to vector<256x1xi32>
    %108 = arith.cmpi eq, %5, %107 : vector<256x1xi32>
    %c10 = arith.constant 10 : index
    %c0_38 = arith.constant 0 : index
    %109 = vector.load %arg3[%c10, %c0_38] : memref<17x128xf32, #tpu.memory_space<vmem>>, vector<1x128xf32>
    %cst_39 = arith.constant 0.000000e+00 : f32
    %110 = vector.shape_cast %108 : vector<256x1xi1> to vector<256x1xi1>
    %111 = vector.broadcast %110 : vector<256x1xi1> to vector<256x128xi1>
    %112 = vector.shape_cast %109 : vector<1x128xf32> to vector<1x128xf32>
    %113 = vector.broadcast %112 : vector<1x128xf32> to vector<256x128xf32>
    %114 = vector.broadcast %cst_39 : f32 to vector<256x128xf32>
    %115 = arith.select %111, %113, %114 : vector<256x128xi1>, vector<256x128xf32>
    %116 = arith.addf %106, %115 : vector<256x128xf32>
    %c11_i32 = arith.constant 11 : i32
    %117 = vector.broadcast %c11_i32 : i32 to vector<256x1xi32>
    %118 = arith.cmpi eq, %5, %117 : vector<256x1xi32>
    %c11 = arith.constant 11 : index
    %c0_40 = arith.constant 0 : index
    %119 = vector.load %arg3[%c11, %c0_40] : memref<17x128xf32, #tpu.memory_space<vmem>>, vector<1x128xf32>
    %cst_41 = arith.constant 0.000000e+00 : f32
    %120 = vector.shape_cast %118 : vector<256x1xi1> to vector<256x1xi1>
    %121 = vector.broadcast %120 : vector<256x1xi1> to vector<256x128xi1>
    %122 = vector.shape_cast %119 : vector<1x128xf32> to vector<1x128xf32>
    %123 = vector.broadcast %122 : vector<1x128xf32> to vector<256x128xf32>
    %124 = vector.broadcast %cst_41 : f32 to vector<256x128xf32>
    %125 = arith.select %121, %123, %124 : vector<256x128xi1>, vector<256x128xf32>
    %126 = arith.addf %116, %125 : vector<256x128xf32>
    %c12_i32 = arith.constant 12 : i32
    %127 = vector.broadcast %c12_i32 : i32 to vector<256x1xi32>
    %128 = arith.cmpi eq, %5, %127 : vector<256x1xi32>
    %c12 = arith.constant 12 : index
    %c0_42 = arith.constant 0 : index
    %129 = vector.load %arg3[%c12, %c0_42] : memref<17x128xf32, #tpu.memory_space<vmem>>, vector<1x128xf32>
    %cst_43 = arith.constant 0.000000e+00 : f32
    %130 = vector.shape_cast %128 : vector<256x1xi1> to vector<256x1xi1>
    %131 = vector.broadcast %130 : vector<256x1xi1> to vector<256x128xi1>
    %132 = vector.shape_cast %129 : vector<1x128xf32> to vector<1x128xf32>
    %133 = vector.broadcast %132 : vector<1x128xf32> to vector<256x128xf32>
    %134 = vector.broadcast %cst_43 : f32 to vector<256x128xf32>
    %135 = arith.select %131, %133, %134 : vector<256x128xi1>, vector<256x128xf32>
    %136 = arith.addf %126, %135 : vector<256x128xf32>
    %c13_i32 = arith.constant 13 : i32
    %137 = vector.broadcast %c13_i32 : i32 to vector<256x1xi32>
    %138 = arith.cmpi eq, %5, %137 : vector<256x1xi32>
    %c13 = arith.constant 13 : index
    %c0_44 = arith.constant 0 : index
    %139 = vector.load %arg3[%c13, %c0_44] : memref<17x128xf32, #tpu.memory_space<vmem>>, vector<1x128xf32>
    %cst_45 = arith.constant 0.000000e+00 : f32
    %140 = vector.shape_cast %138 : vector<256x1xi1> to vector<256x1xi1>
    %141 = vector.broadcast %140 : vector<256x1xi1> to vector<256x128xi1>
    %142 = vector.shape_cast %139 : vector<1x128xf32> to vector<1x128xf32>
    %143 = vector.broadcast %142 : vector<1x128xf32> to vector<256x128xf32>
    %144 = vector.broadcast %cst_45 : f32 to vector<256x128xf32>
    %145 = arith.select %141, %143, %144 : vector<256x128xi1>, vector<256x128xf32>
    %146 = arith.addf %136, %145 : vector<256x128xf32>
    %c14_i32 = arith.constant 14 : i32
    %147 = vector.broadcast %c14_i32 : i32 to vector<256x1xi32>
    %148 = arith.cmpi eq, %5, %147 : vector<256x1xi32>
    %c14 = arith.constant 14 : index
    %c0_46 = arith.constant 0 : index
    %149 = vector.load %arg3[%c14, %c0_46] : memref<17x128xf32, #tpu.memory_space<vmem>>, vector<1x128xf32>
    %cst_47 = arith.constant 0.000000e+00 : f32
    %150 = vector.shape_cast %148 : vector<256x1xi1> to vector<256x1xi1>
    %151 = vector.broadcast %150 : vector<256x1xi1> to vector<256x128xi1>
    %152 = vector.shape_cast %149 : vector<1x128xf32> to vector<1x128xf32>
    %153 = vector.broadcast %152 : vector<1x128xf32> to vector<256x128xf32>
    %154 = vector.broadcast %cst_47 : f32 to vector<256x128xf32>
    %155 = arith.select %151, %153, %154 : vector<256x128xi1>, vector<256x128xf32>
    %156 = arith.addf %146, %155 : vector<256x128xf32>
    %c15_i32 = arith.constant 15 : i32
    %157 = vector.broadcast %c15_i32 : i32 to vector<256x1xi32>
    %158 = arith.cmpi eq, %5, %157 : vector<256x1xi32>
    %c15 = arith.constant 15 : index
    %c0_48 = arith.constant 0 : index
    %159 = vector.load %arg3[%c15, %c0_48] : memref<17x128xf32, #tpu.memory_space<vmem>>, vector<1x128xf32>
    %cst_49 = arith.constant 0.000000e+00 : f32
    %160 = vector.shape_cast %158 : vector<256x1xi1> to vector<256x1xi1>
    %161 = vector.broadcast %160 : vector<256x1xi1> to vector<256x128xi1>
    %162 = vector.shape_cast %159 : vector<1x128xf32> to vector<1x128xf32>
    %163 = vector.broadcast %162 : vector<1x128xf32> to vector<256x128xf32>
    %164 = vector.broadcast %cst_49 : f32 to vector<256x128xf32>
    %165 = arith.select %161, %163, %164 : vector<256x128xi1>, vector<256x128xf32>
    %166 = arith.addf %156, %165 : vector<256x128xf32>
    %c16_i32 = arith.constant 16 : i32
    %167 = vector.broadcast %c16_i32 : i32 to vector<256x1xi32>
    %168 = arith.cmpi eq, %5, %167 : vector<256x1xi32>
    %c16 = arith.constant 16 : index
    %c0_50 = arith.constant 0 : index
    %169 = vector.load %arg3[%c16, %c0_50] : memref<17x128xf32, #tpu.memory_space<vmem>>, vector<1x128xf32>
    %cst_51 = arith.constant 0.000000e+00 : f32
    %170 = vector.shape_cast %168 : vector<256x1xi1> to vector<256x1xi1>
    %171 = vector.broadcast %170 : vector<256x1xi1> to vector<256x128xi1>
    %172 = vector.shape_cast %169 : vector<1x128xf32> to vector<1x128xf32>
    %173 = vector.broadcast %172 : vector<1x128xf32> to vector<256x128xf32>
    %174 = vector.broadcast %cst_51 : f32 to vector<256x128xf32>
    %175 = arith.select %171, %173, %174 : vector<256x128xi1>, vector<256x128xf32>
    %176 = arith.addf %166, %175 : vector<256x128xf32>
    %c0_52 = arith.constant 0 : index
    %c0_53 = arith.constant 0 : index
    %177 = vector.load %arg5[%c0_52, %c0_53] : memref<1x128xf32, #tpu.memory_space<vmem>>, vector<1x128xf32>
    %c0_54 = arith.constant 0 : index
    %c0_55 = arith.constant 0 : index
    %178 = vector.load %arg6[%c0_54, %c0_55] : memref<1x128xf32, #tpu.memory_space<vmem>>, vector<1x128xf32>
    %c0_i32_56 = arith.constant 0 : i32
    %c0_i32_57 = arith.constant 0 : i32
    %c0_i32_58 = arith.constant 0 : i32
    %179 = tpu.memref_slice %arg2[%c0_i32_57, %c0_i32_58] : memref<512x128xf32, #tpu.memory_space<any>> -> memref<64x128xf32, #tpu.memory_space<any>>
    %c0_i32_59 = arith.constant 0 : i32
    %c0_i32_60 = arith.constant 0 : i32
    %180 = tpu.memref_slice %arg8[%c0_i32_59, %c0_i32_60] : memref<256x128xf32, #tpu.memory_space<vmem>> -> memref<64x128xf32, #tpu.memory_space<vmem>>
    %181 = tpu.memref_slice %arg9[%c0_i32_56] : memref<4x!tpu.dma_semaphore, #tpu.memory_space<semaphore_mem>> -> memref<1x!tpu.dma_semaphore, #tpu.memory_space<semaphore_mem>>
    %182 = tpu.memref_squeeze %181 : memref<1x!tpu.dma_semaphore, #tpu.memory_space<semaphore_mem>> -> memref<!tpu.dma_semaphore, #tpu.memory_space<semaphore_mem>>
    tpu.wait_dma2 semaphore(%182 : memref<!tpu.dma_semaphore, #tpu.memory_space<semaphore_mem>>) src(%179 : memref<64x128xf32, #tpu.memory_space<any>>) dst(%180 : memref<64x128xf32, #tpu.memory_space<vmem>>)
    %c0_61 = arith.constant 0 : index
    %c0_62 = arith.constant 0 : index
    %183 = vector.load %arg8[%c0_61, %c0_62] : memref<256x128xf32, #tpu.memory_space<vmem>>, vector<64x128xf32>
    %184 = vector.extract_strided_slice %176 {offsets = [0, 0], sizes = [64, 128], strides = [1, 1]} : vector<256x128xf32> to vector<64x128xf32>
    %185 = arith.addf %183, %184 : vector<64x128xf32>
    %cst_63 = arith.constant dense<0.000000e+00> : vector<64xf32>
    %186 = vector.multi_reduction <add>, %185, %cst_63 [1] : vector<64x128xf32> to vector<64xf32>
    %187 = vector.shape_cast %186 : vector<64xf32> to vector<64x1xf32>
    %cst_64 = arith.constant 1.280000e+02 : f32
    %188 = vector.broadcast %cst_64 : f32 to vector<64x1xf32>
    %189 = arith.divf %187, %188 : vector<64x1xf32>
    %190 = vector.broadcast %189 : vector<64x1xf32> to vector<64x128xf32>
    %191 = arith.subf %185, %190 : vector<64x128xf32>
    %192 = arith.mulf %191, %191 : vector<64x128xf32>
    %cst_65 = arith.constant dense<0.000000e+00> : vector<64xf32>
    %193 = vector.multi_reduction <add>, %192, %cst_65 [1] : vector<64x128xf32> to vector<64xf32>
    %194 = vector.shape_cast %193 : vector<64xf32> to vector<64x1xf32>
    %cst_66 = arith.constant 1.280000e+02 : f32
    %195 = vector.broadcast %cst_66 : f32 to vector<64x1xf32>
    %196 = arith.divf %194, %195 : vector<64x1xf32>
    %cst_67 = arith.constant 9.99999974E-6 : f32
    %197 = vector.broadcast %cst_67 : f32 to vector<64x1xf32>
    %198 = arith.addf %196, %197 : vector<64x1xf32>
    %199 = math.rsqrt %198 : vector<64x1xf32>
    %200 = vector.broadcast %199 : vector<64x1xf32> to vector<64x128xf32>
    %201 = arith.mulf %191, %200 : vector<64x128xf32>
    %202 = vector.broadcast %177 : vector<1x128xf32> to vector<64x128xf32>
    %203 = arith.mulf %201, %202 : vector<64x128xf32>
    %204 = vector.broadcast %178 : vector<1x128xf32> to vector<64x128xf32>
    %205 = arith.addf %203, %204 : vector<64x128xf32>
    %c0_68 = arith.constant 0 : index
    %c0_69 = arith.constant 0 : index
    %206 = vector.load %arg7[%c0_68, %c0_69] : memref<256x128xf32, #tpu.memory_space<vmem>>, vector<64x128xf32>
    tpu.vector_store %arg7[%c0_68, %c0_69], %205 {strides = array<i32>} : memref<256x128xf32, #tpu.memory_space<vmem>>, vector<64x128xf32>,
    %c1_i32_70 = arith.constant 1 : i32
    %c0_i32_71 = arith.constant 0 : i32
    %c0_i32_72 = arith.constant 0 : i32
    %207 = tpu.memref_slice %arg2[%c0_i32_71, %c0_i32_72] : memref<512x128xf32, #tpu.memory_space<any>> -> memref<64x128xf32, #tpu.memory_space<any>>
    %c64_i32 = arith.constant 64 : i32
    %c0_i32_73 = arith.constant 0 : i32
    %208 = tpu.memref_slice %arg8[%c64_i32, %c0_i32_73] : memref<256x128xf32, #tpu.memory_space<vmem>> -> memref<64x128xf32, #tpu.memory_space<vmem>>
    %209 = tpu.memref_slice %arg9[%c1_i32_70] : memref<4x!tpu.dma_semaphore, #tpu.memory_space<semaphore_mem>> -> memref<1x!tpu.dma_semaphore, #tpu.memory_space<semaphore_mem>>
    %210 = tpu.memref_squeeze %209 : memref<1x!tpu.dma_semaphore, #tpu.memory_space<semaphore_mem>> -> memref<!tpu.dma_semaphore, #tpu.memory_space<semaphore_mem>>
    tpu.wait_dma2 semaphore(%210 : memref<!tpu.dma_semaphore, #tpu.memory_space<semaphore_mem>>) src(%207 : memref<64x128xf32, #tpu.memory_space<any>>) dst(%208 : memref<64x128xf32, #tpu.memory_space<vmem>>)
    %c64 = arith.constant 64 : index
    %c0_74 = arith.constant 0 : index
    %211 = vector.load %arg8[%c64, %c0_74] : memref<256x128xf32, #tpu.memory_space<vmem>>, vector<64x128xf32>
    %212 = vector.extract_strided_slice %176 {offsets = [64, 0], sizes = [64, 128], strides = [1, 1]} : vector<256x128xf32> to vector<64x128xf32>
    %213 = arith.addf %211, %212 : vector<64x128xf32>
    %cst_75 = arith.constant dense<0.000000e+00> : vector<64xf32>
    %214 = vector.multi_reduction <add>, %213, %cst_75 [1] : vector<64x128xf32> to vector<64xf32>
    %215 = vector.shape_cast %214 : vector<64xf32> to vector<64x1xf32>
    %cst_76 = arith.constant 1.280000e+02 : f32
    %216 = vector.broadcast %cst_76 : f32 to vector<64x1xf32>
    %217 = arith.divf %215, %216 : vector<64x1xf32>
    %218 = vector.broadcast %217 : vector<64x1xf32> to vector<64x128xf32>
    %219 = arith.subf %213, %218 : vector<64x128xf32>
    %220 = arith.mulf %219, %219 : vector<64x128xf32>
    %cst_77 = arith.constant dense<0.000000e+00> : vector<64xf32>
    %221 = vector.multi_reduction <add>, %220, %cst_77 [1] : vector<64x128xf32> to vector<64xf32>
    %222 = vector.shape_cast %221 : vector<64xf32> to vector<64x1xf32>
    %cst_78 = arith.constant 1.280000e+02 : f32
    %223 = vector.broadcast %cst_78 : f32 to vector<64x1xf32>
    %224 = arith.divf %222, %223 : vector<64x1xf32>
    %cst_79 = arith.constant 9.99999974E-6 : f32
    %225 = vector.broadcast %cst_79 : f32 to vector<64x1xf32>
    %226 = arith.addf %224, %225 : vector<64x1xf32>
    %227 = math.rsqrt %226 : vector<64x1xf32>
    %228 = vector.broadcast %227 : vector<64x1xf32> to vector<64x128xf32>
    %229 = arith.mulf %219, %228 : vector<64x128xf32>
    %230 = vector.broadcast %177 : vector<1x128xf32> to vector<64x128xf32>
    %231 = arith.mulf %229, %230 : vector<64x128xf32>
    %232 = vector.broadcast %178 : vector<1x128xf32> to vector<64x128xf32>
    %233 = arith.addf %231, %232 : vector<64x128xf32>
    %c64_80 = arith.constant 64 : index
    %c0_81 = arith.constant 0 : index
    %234 = vector.load %arg7[%c64_80, %c0_81] : memref<256x128xf32, #tpu.memory_space<vmem>>, vector<64x128xf32>
    tpu.vector_store %arg7[%c64_80, %c0_81], %233 {strides = array<i32>} : memref<256x128xf32, #tpu.memory_space<vmem>>, vector<64x128xf32>,
    %c2_i32_82 = arith.constant 2 : i32
    %c0_i32_83 = arith.constant 0 : i32
    %c0_i32_84 = arith.constant 0 : i32
    %235 = tpu.memref_slice %arg2[%c0_i32_83, %c0_i32_84] : memref<512x128xf32, #tpu.memory_space<any>> -> memref<64x128xf32, #tpu.memory_space<any>>
    %c128_i32 = arith.constant 128 : i32
    %c0_i32_85 = arith.constant 0 : i32
    %236 = tpu.memref_slice %arg8[%c128_i32, %c0_i32_85] : memref<256x128xf32, #tpu.memory_space<vmem>> -> memref<64x128xf32, #tpu.memory_space<vmem>>
    %237 = tpu.memref_slice %arg9[%c2_i32_82] : memref<4x!tpu.dma_semaphore, #tpu.memory_space<semaphore_mem>> -> memref<1x!tpu.dma_semaphore, #tpu.memory_space<semaphore_mem>>
    %238 = tpu.memref_squeeze %237 : memref<1x!tpu.dma_semaphore, #tpu.memory_space<semaphore_mem>> -> memref<!tpu.dma_semaphore, #tpu.memory_space<semaphore_mem>>
    tpu.wait_dma2 semaphore(%238 : memref<!tpu.dma_semaphore, #tpu.memory_space<semaphore_mem>>) src(%235 : memref<64x128xf32, #tpu.memory_space<any>>) dst(%236 : memref<64x128xf32, #tpu.memory_space<vmem>>)
    %c128 = arith.constant 128 : index
    %c0_86 = arith.constant 0 : index
    %239 = vector.load %arg8[%c128, %c0_86] : memref<256x128xf32, #tpu.memory_space<vmem>>, vector<64x128xf32>
    %240 = vector.extract_strided_slice %176 {offsets = [128, 0], sizes = [64, 128], strides = [1, 1]} : vector<256x128xf32> to vector<64x128xf32>
    %241 = arith.addf %239, %240 : vector<64x128xf32>
    %cst_87 = arith.constant dense<0.000000e+00> : vector<64xf32>
    %242 = vector.multi_reduction <add>, %241, %cst_87 [1] : vector<64x128xf32> to vector<64xf32>
    %243 = vector.shape_cast %242 : vector<64xf32> to vector<64x1xf32>
    %cst_88 = arith.constant 1.280000e+02 : f32
    %244 = vector.broadcast %cst_88 : f32 to vector<64x1xf32>
    %245 = arith.divf %243, %244 : vector<64x1xf32>
    %246 = vector.broadcast %245 : vector<64x1xf32> to vector<64x128xf32>
    %247 = arith.subf %241, %246 : vector<64x128xf32>
    %248 = arith.mulf %247, %247 : vector<64x128xf32>
    %cst_89 = arith.constant dense<0.000000e+00> : vector<64xf32>
    %249 = vector.multi_reduction <add>, %248, %cst_89 [1] : vector<64x128xf32> to vector<64xf32>
    %250 = vector.shape_cast %249 : vector<64xf32> to vector<64x1xf32>
    %cst_90 = arith.constant 1.280000e+02 : f32
    %251 = vector.broadcast %cst_90 : f32 to vector<64x1xf32>
    %252 = arith.divf %250, %251 : vector<64x1xf32>
    %cst_91 = arith.constant 9.99999974E-6 : f32
    %253 = vector.broadcast %cst_91 : f32 to vector<64x1xf32>
    %254 = arith.addf %252, %253 : vector<64x1xf32>
    %255 = math.rsqrt %254 : vector<64x1xf32>
    %256 = vector.broadcast %255 : vector<64x1xf32> to vector<64x128xf32>
    %257 = arith.mulf %247, %256 : vector<64x128xf32>
    %258 = vector.broadcast %177 : vector<1x128xf32> to vector<64x128xf32>
    %259 = arith.mulf %257, %258 : vector<64x128xf32>
    %260 = vector.broadcast %178 : vector<1x128xf32> to vector<64x128xf32>
    %261 = arith.addf %259, %260 : vector<64x128xf32>
    %c128_92 = arith.constant 128 : index
    %c0_93 = arith.constant 0 : index
    %262 = vector.load %arg7[%c128_92, %c0_93] : memref<256x128xf32, #tpu.memory_space<vmem>>, vector<64x128xf32>
    tpu.vector_store %arg7[%c128_92, %c0_93], %261 {strides = array<i32>} : memref<256x128xf32, #tpu.memory_space<vmem>>, vector<64x128xf32>,
    %c3_i32_94 = arith.constant 3 : i32
    %c0_i32_95 = arith.constant 0 : i32
    %c0_i32_96 = arith.constant 0 : i32
    %263 = tpu.memref_slice %arg2[%c0_i32_95, %c0_i32_96] : memref<512x128xf32, #tpu.memory_space<any>> -> memref<64x128xf32, #tpu.memory_space<any>>
    %c192_i32 = arith.constant 192 : i32
    %c0_i32_97 = arith.constant 0 : i32
    %264 = tpu.memref_slice %arg8[%c192_i32, %c0_i32_97] : memref<256x128xf32, #tpu.memory_space<vmem>> -> memref<64x128xf32, #tpu.memory_space<vmem>>
    %265 = tpu.memref_slice %arg9[%c3_i32_94] : memref<4x!tpu.dma_semaphore, #tpu.memory_space<semaphore_mem>> -> memref<1x!tpu.dma_semaphore, #tpu.memory_space<semaphore_mem>>
    %266 = tpu.memref_squeeze %265 : memref<1x!tpu.dma_semaphore, #tpu.memory_space<semaphore_mem>> -> memref<!tpu.dma_semaphore, #tpu.memory_space<semaphore_mem>>
    tpu.wait_dma2 semaphore(%266 : memref<!tpu.dma_semaphore, #tpu.memory_space<semaphore_mem>>) src(%263 : memref<64x128xf32, #tpu.memory_space<any>>) dst(%264 : memref<64x128xf32, #tpu.memory_space<vmem>>)
    %c192 = arith.constant 192 : index
    %c0_98 = arith.constant 0 : index
    %267 = vector.load %arg8[%c192, %c0_98] : memref<256x128xf32, #tpu.memory_space<vmem>>, vector<64x128xf32>
    %268 = vector.extract_strided_slice %176 {offsets = [192, 0], sizes = [64, 128], strides = [1, 1]} : vector<256x128xf32> to vector<64x128xf32>
    %269 = arith.addf %267, %268 : vector<64x128xf32>
    %cst_99 = arith.constant dense<0.000000e+00> : vector<64xf32>
    %270 = vector.multi_reduction <add>, %269, %cst_99 [1] : vector<64x128xf32> to vector<64xf32>
    %271 = vector.shape_cast %270 : vector<64xf32> to vector<64x1xf32>
    %cst_100 = arith.constant 1.280000e+02 : f32
    %272 = vector.broadcast %cst_100 : f32 to vector<64x1xf32>
    %273 = arith.divf %271, %272 : vector<64x1xf32>
    %274 = vector.broadcast %273 : vector<64x1xf32> to vector<64x128xf32>
    %275 = arith.subf %269, %274 : vector<64x128xf32>
    %276 = arith.mulf %275, %275 : vector<64x128xf32>
    %cst_101 = arith.constant dense<0.000000e+00> : vector<64xf32>
    %277 = vector.multi_reduction <add>, %276, %cst_101 [1] : vector<64x128xf32> to vector<64xf32>
    %278 = vector.shape_cast %277 : vector<64xf32> to vector<64x1xf32>
    %cst_102 = arith.constant 1.280000e+02 : f32
    %279 = vector.broadcast %cst_102 : f32 to vector<64x1xf32>
    %280 = arith.divf %278, %279 : vector<64x1xf32>
    %cst_103 = arith.constant 9.99999974E-6 : f32
    %281 = vector.broadcast %cst_103 : f32 to vector<64x1xf32>
    %282 = arith.addf %280, %281 : vector<64x1xf32>
    %283 = math.rsqrt %282 : vector<64x1xf32>
    %284 = vector.broadcast %283 : vector<64x1xf32> to vector<64x128xf32>
    %285 = arith.mulf %275, %284 : vector<64x128xf32>
    %286 = vector.broadcast %177 : vector<1x128xf32> to vector<64x128xf32>
    %287 = arith.mulf %285, %286 : vector<64x128xf32>
    %288 = vector.broadcast %178 : vector<1x128xf32> to vector<64x128xf32>
    %289 = arith.addf %287, %288 : vector<64x128xf32>
    %c192_104 = arith.constant 192 : index
    %c0_105 = arith.constant 0 : index
    %290 = vector.load %arg7[%c192_104, %c0_105] : memref<256x128xf32, #tpu.memory_space<vmem>>, vector<64x128xf32>
    tpu.vector_store %arg7[%c192_104, %c0_105], %289 {strides = array<i32>} : memref<256x128xf32, #tpu.memory_space<vmem>>, vector<64x128xf32>,
    return
  }
  func.func @transform_1(%arg0: i32, %arg1: memref<512xi32, #tpu.memory_space<smem>>) -> (i32, i32) {
    %c0_i32 = arith.constant 0 : i32
    %c0_i32_0 = arith.constant 0 : i32
    %c0_i32_1 = arith.constant 0 : i32
    return %c0_i32, %c0_i32_0 : i32, i32
  }
  func.func @transform_2(%arg0: i32, %arg1: memref<512xi32, #tpu.memory_space<smem>>) -> (i32, i32) {
    %c0_i32 = arith.constant 0 : i32
    %c0_i32_0 = arith.constant 0 : i32
    return %arg0, %c0_i32 : i32, i32
  }
  func.func @transform_3(%arg0: i32, %arg1: memref<512xi32, #tpu.memory_space<smem>>) -> (i32, i32) {
    %c0_i32 = arith.constant 0 : i32
    %c0_i32_0 = arith.constant 0 : i32
    %c0_i32_1 = arith.constant 0 : i32
    return %c0_i32, %c0_i32_0 : i32, i32
  }
  func.func @transform_4(%arg0: i32, %arg1: memref<512xi32, #tpu.memory_space<smem>>) -> (i32, i32) {
    %c0_i32 = arith.constant 0 : i32
    %c0_i32_0 = arith.constant 0 : i32
    %c0_i32_1 = arith.constant 0 : i32
    return %c0_i32, %c0_i32_0 : i32, i32
  }
  func.func @transform_5(%arg0: i32, %arg1: memref<512xi32, #tpu.memory_space<smem>>) -> (i32, i32) {
    %c0_i32 = arith.constant 0 : i32
    %c0_i32_0 = arith.constant 0 : i32
    return %arg0, %c0_i32 : i32, i32
  }
}

</mosaic_0001>

<bundles_post_ra>
// kernel: tpu_custom_call.1
= control target key start
LH: loop header
LB: loop body
LE: loop exit
PB: predicated region body
PF: predicated region fallthrough
CT: control target
= control target key end

     0   :  { %s7852_s24 = smov [#allocation5]   ;;  %s14131_s0 = inlined_call_operand.vmem [shape: s32[512], index: 0, kind: input, shape index: {}]   ;;  %s14132_s1 = inlined_call_operand.vmem [shape: f32[512,128], index: 1, kind: input, shape index: {}]   ;;  %s14133_s2 = inlined_call_operand.hbm [shape: f32[17,128], index: 2, kind: input, shape index: {}]   ;;  %s14134_s3 = inlined_call_operand.vmem [shape: s32[512,1], index: 3, kind: input, shape index: {}]   ;;  %s14135_s4 = inlined_call_operand.hbm [shape: f32[1,128], index: 4, kind: input, shape index: {}]   ;;  %s14136_s5 = inlined_call_operand.hbm [shape: f32[1,128], index: 5, kind: input, shape index: {}]   ;;  %s14137_s6 = inlined_call_operand.hbm [shape: f32[512,128], index: 6, kind: output, shape index: {}]  }
   0x1   :  { %14439 = sst [smem:[#allocation350_spill]] %s14133_s2  ;;  %s12_s23 = sshll.u32 %s14131_s0, 4  ;;  %s13_s23 = int_to_ptr.vmem [resolvable:$true] %s12_s23 }
   0x2   :  { %15 = dma.vmem_to_smem %s13_s23, 64, %s7852_s24, [#allocation4] }
   0x3   :  { %7798 = dma.done.wait [#allocation4], 64 }
   0x4   :  { %7799 = vsyncadd [#allocation4], 4294967232 }
   0x5   :  { %18 = sfence }
   0x6   :  { %19 = vsyncpa [#allocation7], 0 }
   0x7   :  { %20 = vsyncpa [#allocation10], 0 }
   0x8   :  { %21 = vsyncpa [#allocation8], 0 }
   0x9   :  { %23 = vsyncpa [#allocation8 + $0x1], 0  ;;  %s7900_s25 = smov 0   ;;  %s7902_s26 = smov 0  }
   0xa   :  { %s7904_s27 = smov 0   ;;  %s7906_s28 = smov 0  }
   0xb LB: > { %s7921_s0 = sadd.s32 4294967295, %s7834_s28   ;;  %s7190_s29 = sadd.s32 4294967294, %s7834_s28   ;;  %s7834_s28 = sphi %s7906_s28, %s15344_s28   ;;  %s7830_s27 = sphi %s7904_s27, %s15343_s27   ;;  %s7826_s26 = sphi %s7902_s26, %s15342_s26   ;;  %s7822_s25 = sphi %s7900_s25, %s15341_s25  }
   0xc   : > { %s7925_s30 = sadd.s32 1, %s7834_s28   ;;  %s125_s7 = sadd.s32 1, %s7830_s27 }
   0xd   : > { %s122_s8 = ssub.s32 %s7834_s28, %s7925_s30  ;;  %p135_p0 = scmp.ne.s32.totalorder %s7830_s27, %s7826_s26 }
   0xe   : > { %p123_p1 = scmp.eq.s32.totalorder %s122_s8, 0  ;;  %p136_p2 = scmp.eq.s32.totalorder %s7921_s0, 1 }
   0xf   : > { %p141_p3 = scmp.ne.s32.totalorder %s7826_s26, %s7822_s25  ;;  %p142_p4 = scmp.eq.s32.totalorder %s7190_s29, 1 }
  0x10   : > { %s7936_s9 = scalar_select %p123_p1, %s7830_s27, %s125_s7  }
  0x11   : > { %p7938_p5 = por %p136_p2, %p135_p0  ;;  %p7942_p6 = por %p142_p4, %p141_p3 }
  0x12   : > { %p7191_p7 = scmp.ge.s32.totalorder %s7834_s28, 1  ;;  %p149_p8 = scmp.lt.s32.totalorder %s7834_s28, 3 }
  0x13   : > { %p7308_p9 = scmp.eq.s32.totalorder %s7921_s0, 0  ;;  %s175_s15 = sshll.u32 %s14135_s4, 4  ;;  %s176_s15 = int_to_ptr.hbm [resolvable:$true] %s175_s15 }
  0x14   : > { %p7949_p10 = pnand %p7191_p7, %p149_p8  ;;  %s7853_s16 = smov [#allocation9]  }
  0x15   : > { %s177_s17 = sshll.u32 %s7853_s16, 4  ;;  %s14443_s2 = sld [smem:[#allocation350_spill]]  ;;  %s178_s17 = int_to_ptr.vmem [resolvable:$true] %s177_s17 }
  0x16   : > { %p7294_p11 = pneg %p7949_p10  ;;  %s7854_s22 = smov [#allocation6]  }
  0x17   : > { %s162_s23 = sshll.u32 %s7854_s22, 4  ;;  %s7855_s24 = smov 128   ;;  %s163_s23 = int_to_ptr.vmem [resolvable:$true] %s162_s23 }
  0x18   : > { %p7963_p12 = pnand %p7308_p9, %p7294_p11  ;;  %s7856_s29 = smov 8  }
  0x19   : > { %s187_s13 = sshll.u32 %s14136_s5, 4  ;;  %s7857_s14 = smov [#allocation11]   ;;  %s188_s13 = int_to_ptr.hbm [resolvable:$true] %s187_s13 }
  0x1a   : > { %7300 = dma.hbm_to_vmem [thread:$0]  (!%p7963_p12), %s176_s15, 16, %s178_s17, [#allocation10]  }
  0x1b   : > { %s160_s20 = sshll.u32 %s14443_s2, 4  ;;  %s189_s16 = sshll.u32 %s7857_s14, 4  ;;  %s161_s20 = int_to_ptr.hbm [resolvable:$true] %s160_s20  ;;  %s190_s16 = int_to_ptr.vmem [resolvable:$true] %s189_s16 }
  0x1c   : > { %7297 = dma.hbm_to_vmem [thread:$0]  (!%p7963_p12), %s161_s20, 384, %s163_s23, [#allocation7], %s7855_s24, %s7855_s24, %s7856_s29  }
  0x1d   : > { %7303 = dma.hbm_to_vmem [thread:$0]  (!%p7963_p12), %s188_s13, 16, %s190_s16, [#allocation10]  }
  0x1e   : > { %211 = sbr.rel (%p7949_p10) target bundleno = 3183 (0xc6f), region = 36 }
  0x23   : > { %7801 = dma.done.wait (%p7308_p9), [#allocation7], 384  }
  0x24   : > { %7803 = vsyncadd (%p7308_p9), [#allocation7], 4294966912 }
  0x25   : > { %7805 = dma.done.wait (%p7308_p9), [#allocation10], 32  }
  0x26   : > { %7807 = vsyncadd (%p7308_p9), [#allocation10], 4294967264  ;;  %s14138_s15 = sand.u32 1, %s7826_s26   ;;  %s7201_s17 = sshll.u32 %s7921_s0, 5 }
  0x27   : > { %s7200_s12 = sshll.u32 %s14138_s15, 8  ;;  %p249_p13 = scmp.lt.s32.totalorder %s7201_s17, 63 }
  0x28   : > { %s7991_s18 = sshll.u32 %s7921_s0, 8  ;;  %s7998_s23 = scalar_lea.vmem [#allocation12], %s7200_s12 }
  0x29   : > { %s15346_s17 = smov (!%p249_p13, %s7201_s17), 63  ;;  %s8000_s24 = smov 0  }
  0x2a   : > { %s7202_s19 = sshll.u32 %s15346_s17, 3 }
  0x2b   : > { %s7996_s22 = scalar_lea.vmem %s14134_s3, %s7202_s19 }
  0x2c LB: >> { %s8006_s0 = sshll.u32 %s7838_s24, 3  ;;  %s7838_s24 = sphi %s8000_s24, %s261_s24  }
  0x2d   : >> { %s263_s29 = sadd.s32 %s8006_s0, %s7991_s18  ;;  %s8014_s16 = scalar_lea.vmem [#allocation2], %s8006_s0 }
  0x2e   : >> { %s264_s7 = sld [smem:[#allocation5 + %s263_s29]] }
  0x34   : >> { %s265_s14 = scalar_lea.vmem %s14132_s1, %s264_s7 }
  0x35   : >> { %v281_v0 = vld [vmem:[%s265_s14] sm:$0x1] }
  0x36   : >> { %282 = vst [vmem:[%s8014_s16] sm:$0x1] %v281_v0 }
  0x37   : >> { %300 = vsyncadd [#allocation3], 16  ;;  %s301_s17 = sadd.s32 1, %s8006_s0 }
  0x38   : >> { %s302_s12 = sadd.s32 %s7991_s18, %s301_s17 }
  0x39   : >> { %s303_s19 = sld [smem:[#allocation5 + %s302_s12]] }
  0x3f   : >> { %s304_s29 = scalar_lea.vmem %s14132_s1, %s303_s19 }
  0x40   : >> { %v320_v1 = vld [vmem:[%s304_s29] sm:$0x1] }
  0x41   : >> { %7206 = vst [vmem:[%s8014_s16 + $0x1] sm:$0x1] %v320_v1 }
  0x42   : >> { %339 = vsyncadd [#allocation3], 16  ;;  %s340_s7 = sadd.s32 2, %s8006_s0 }
  0x43   : >> { %s341_s8 = sadd.s32 %s7991_s18, %s340_s7 }
  0x44   : >> { %s342_s13 = sld [smem:[#allocation5 + %s341_s8]] }
  0x4a   : >> { %s343_s2 = scalar_lea.vmem %s14132_s1, %s342_s13 }
  0x4b   : >> { %v359_v2 = vld [vmem:[%s343_s2] sm:$0x1] }
  0x4c   : >> { %7208 = vst [vmem:[%s8014_s16 + $0x2] sm:$0x1] %v359_v2 }
  0x4d   : >> { %378 = vsyncadd [#allocation3], 16  ;;  %s379_s17 = sadd.s32 3, %s8006_s0 }
  0x4e   : >> { %s380_s12 = sadd.s32 %s7991_s18, %s379_s17 }
  0x4f   : >> { %s381_s19 = sld [smem:[#allocation5 + %s380_s12]] }
  0x55   : >> { %s382_s29 = scalar_lea.vmem %s14132_s1, %s381_s19 }
  0x56   : >> { %v398_v3 = vld [vmem:[%s382_s29] sm:$0x1] }
  0x57   : >> { %7210 = vst [vmem:[%s8014_s16 + $0x3] sm:$0x1] %v398_v3 }
  0x58   : >> { %417 = vsyncadd [#allocation3], 16  ;;  %s418_s15 = sadd.s32 4, %s8006_s0 }
  0x59   : >> { %s419_s2 = sadd.s32 %s7991_s18, %s418_s15 }
  0x5a   : >> { %s420_s7 = sld [smem:[#allocation5 + %s419_s2]] }
  0x60   : >> { %s421_s14 = scalar_lea.vmem %s14132_s1, %s420_s7 }
  0x61   : >> { %v437_v4 = vld [vmem:[%s421_s14] sm:$0x1] }
  0x62   : >> { %7212 = vst [vmem:[%s8014_s16 + $0x4] sm:$0x1] %v437_v4 }
  0x63   : >> { %456 = vsyncadd [#allocation3], 16  ;;  %s457_s17 = sadd.s32 5, %s8006_s0 }
  0x64   : >> { %s458_s12 = sadd.s32 %s7991_s18, %s457_s17 }
  0x65   : >> { %s459_s19 = sld [smem:[#allocation5 + %s458_s12]] }
  0x6b   : >> { %s460_s29 = scalar_lea.vmem %s14132_s1, %s459_s19 }
  0x6c   : >> { %v476_v5 = vld [vmem:[%s460_s29] sm:$0x1] }
  0x6d   : >> { %7214 = vst [vmem:[%s8014_s16 + $0x5] sm:$0x1] %v476_v5 }
  0x6e   : >> { %495 = vsyncadd [#allocation3], 16  ;;  %s496_s15 = sadd.s32 6, %s8006_s0 }
  0x6f   : >> { %s497_s2 = sadd.s32 %s7991_s18, %s496_s15 }
  0x70   : >> { %s498_s7 = sld [smem:[#allocation5 + %s497_s2]] }
  0x76   : >> { %s499_s14 = scalar_lea.vmem %s14132_s1, %s498_s7 }
  0x77   : >> { %v515_v6 = vld [vmem:[%s499_s14] sm:$0x1] }
  0x78   : >> { %7216 = vst [vmem:[%s8014_s16 + $0x6] sm:$0x1] %v515_v6 }
  0x79   : >> { %534 = vsyncadd [#allocation3], 16  ;;  %s535_s17 = sadd.s32 7, %s8006_s0 }
  0x7a   : >> { %s536_s12 = sadd.s32 %s7991_s18, %s535_s17 }
  0x7b   : >> { %s537_s19 = sld [smem:[#allocation5 + %s536_s12]] }
  0x81   : >> { %s538_s29 = scalar_lea.vmem %s14132_s1, %s537_s19 }
  0x82   : >> { %v554_v7 = vld [vmem:[%s538_s29] sm:$0x1] }
  0x83   : >> { %7218 = vst [vmem:[%s8014_s16 + $0x7] sm:$0x1] %v554_v7 }
  0x84   : >> { %573 = vsyncadd [#allocation3], 16  ;;  %s261_s24 = sadd.s32 1, %s7838_s24  }
  0x85   : >> { %p258_p0 = scmp.ge.s32.totalorder %s261_s24, 8  }
  0x86   : > { %s8062_s15 = smov (%p258_p0), 0  }
  0x87   : > { %260 = sbr.rel (!%p258_p0) target bundleno = 44 (0x2c), region = 1273 }
  0x8c LB: >> { %s8068_s0 = sshll.u32 %s7842_s15, 3  ;;  %s7842_s15 = sphi %s8062_s15, %s579_s15  }
  0x8d   : >> { %s581_s16 = sadd.s32 64, %s8068_s0  ;;  %s8076_s14 = scalar_lea.vmem [#allocation2], %s8068_s0 }
  0x8e   : >> { %s582_s2 = sadd.s32 %s7991_s18, %s581_s16 }
  0x8f   : >> { %s583_s7 = sld [smem:[#allocation5 + %s582_s2]] }
  0x95   : >> { %s584_s24 = scalar_lea.vmem %s14132_s1, %s583_s7 }
  0x96   : >> { %v601_v8 = vld [vmem:[%s584_s24] sm:$0x1] }
  0x97   : >> { %7221 = vst [vmem:[%s8076_s14 + $0x40] sm:$0x1] %v601_v8 }
  0x98   : >> { %620 = vsyncadd [#allocation3 + $0x1], 16  ;;  %s621_s17 = sadd.s32 65, %s8068_s0 }
  0x99   : >> { %s622_s12 = sadd.s32 %s7991_s18, %s621_s17 }
  0x9a   : >> { %s623_s19 = sld [smem:[#allocation5 + %s622_s12]] }
  0xa0   : >> { %s624_s29 = scalar_lea.vmem %s14132_s1, %s623_s19 }
  0xa1   : >> { %v640_v9 = vld [vmem:[%s624_s29] sm:$0x1] }
  0xa2   : >> { %7223 = vst [vmem:[%s8076_s14 + $0x41] sm:$0x1] %v640_v9 }
  0xa3   : >> { %659 = vsyncadd [#allocation3 + $0x1], 16  ;;  %s660_s16 = sadd.s32 66, %s8068_s0 }
  0xa4   : >> { %s661_s2 = sadd.s32 %s7991_s18, %s660_s16 }
  0xa5   : >> { %s662_s7 = sld [smem:[#allocation5 + %s661_s2]] }
  0xab   : >> { %s663_s24 = scalar_lea.vmem %s14132_s1, %s662_s7 }
  0xac   : >> { %v679_v10 = vld [vmem:[%s663_s24] sm:$0x1] }
  0xad   : >> { %7225 = vst [vmem:[%s8076_s14 + $0x42] sm:$0x1] %v679_v10 }
  0xae   : >> { %698 = vsyncadd [#allocation3 + $0x1], 16  ;;  %s699_s17 = sadd.s32 67, %s8068_s0 }
  0xaf   : >> { %s700_s12 = sadd.s32 %s7991_s18, %s699_s17 }
  0xb0   : >> { %s701_s19 = sld [smem:[#allocation5 + %s700_s12]] }
  0xb6   : >> { %s702_s29 = scalar_lea.vmem %s14132_s1, %s701_s19 }
  0xb7   : >> { %v718_v11 = vld [vmem:[%s702_s29] sm:$0x1] }
  0xb8   : >> { %7227 = vst [vmem:[%s8076_s14 + $0x43] sm:$0x1] %v718_v11 }
  0xb9   : >> { %737 = vsyncadd [#allocation3 + $0x1], 16  ;;  %s738_s16 = sadd.s32 68, %s8068_s0 }
  0xba   : >> { %s739_s2 = sadd.s32 %s7991_s18, %s738_s16 }
  0xbb   : >> { %s740_s7 = sld [smem:[#allocation5 + %s739_s2]] }
  0xc1   : >> { %s741_s24 = scalar_lea.vmem %s14132_s1, %s740_s7 }
  0xc2   : >> { %v757_v12 = vld [vmem:[%s741_s24] sm:$0x1] }
  0xc3   : >> { %7229 = vst [vmem:[%s8076_s14 + $0x44] sm:$0x1] %v757_v12 }
  0xc4   : >> { %776 = vsyncadd [#allocation3 + $0x1], 16  ;;  %s777_s17 = sadd.s32 69, %s8068_s0 }
  0xc5   : >> { %s778_s12 = sadd.s32 %s7991_s18, %s777_s17 }
  0xc6   : >> { %s779_s19 = sld [smem:[#allocation5 + %s778_s12]] }
  0xcc   : >> { %s780_s29 = scalar_lea.vmem %s14132_s1, %s779_s19 }
  0xcd   : >> { %v796_v13 = vld [vmem:[%s780_s29] sm:$0x1] }
  0xce   : >> { %7231 = vst [vmem:[%s8076_s14 + $0x45] sm:$0x1] %v796_v13 }
  0xcf   : >> { %815 = vsyncadd [#allocation3 + $0x1], 16  ;;  %s816_s16 = sadd.s32 70, %s8068_s0 }
  0xd0   : >> { %s817_s2 = sadd.s32 %s7991_s18, %s816_s16 }
  0xd1   : >> { %s818_s7 = sld [smem:[#allocation5 + %s817_s2]] }
  0xd7   : >> { %s819_s24 = scalar_lea.vmem %s14132_s1, %s818_s7 }
  0xd8   : >> { %v835_v14 = vld [vmem:[%s819_s24] sm:$0x1] }
  0xd9   : >> { %7233 = vst [vmem:[%s8076_s14 + $0x46] sm:$0x1] %v835_v14 }
  0xda   : >> { %854 = vsyncadd [#allocation3 + $0x1], 16  ;;  %s855_s17 = sadd.s32 71, %s8068_s0 }
  0xdb   : >> { %s856_s12 = sadd.s32 %s7991_s18, %s855_s17 }
  0xdc   : >> { %s857_s19 = sld [smem:[#allocation5 + %s856_s12]] }
  0xe2   : >> { %s858_s29 = scalar_lea.vmem %s14132_s1, %s857_s19 }
  0xe3   : >> { %v874_v15 = vld [vmem:[%s858_s29] sm:$0x1] }
  0xe4   : >> { %7235 = vst [vmem:[%s8076_s14 + $0x47] sm:$0x1] %v874_v15 }
  0xe5   : >> { %893 = vsyncadd [#allocation3 + $0x1], 16  ;;  %s579_s15 = sadd.s32 1, %s7842_s15  }
  0xe6   : >> { %p576_p1 = scmp.ge.s32.totalorder %s579_s15, 8  }
  0xe7   : > { %s8124_s16 = smov (%p576_p1), 0  }
  0xe8   : > { %578 = sbr.rel (!%p576_p1) target bundleno = 140 (0x8c), region = 1284 }
  0xed LB: >> { %s8130_s0 = sshll.u32 %s7846_s16, 3  ;;  %s7846_s16 = sphi %s8124_s16, %s899_s16  }
  0xee   : >> { %s901_s14 = sadd.s32 128, %s8130_s0  ;;  %s8138_s24 = scalar_lea.vmem [#allocation2], %s8130_s0 }
  0xef   : >> { %s902_s2 = sadd.s32 %s7991_s18, %s901_s14 }
  0xf0   : >> { %s903_s7 = sld [smem:[#allocation5 + %s902_s2]] }
  0xf6   : >> { %s904_s15 = scalar_lea.vmem %s14132_s1, %s903_s7 }
  0xf7   : >> { %v921_v16 = vld [vmem:[%s904_s15] sm:$0x1] }
  0xf8   : >> { %7238 = vst [vmem:[%s8138_s24 + $0x80] sm:$0x1] %v921_v16 }
  0xf9   : >> { %940 = vsyncadd [#allocation3 + $0x2], 16  ;;  %s941_s17 = sadd.s32 129, %s8130_s0 }
  0xfa   : >> { %s942_s12 = sadd.s32 %s7991_s18, %s941_s17 }
  0xfb   : >> { %s943_s19 = sld [smem:[#allocation5 + %s942_s12]] }
 0x101   : >> { %s944_s29 = scalar_lea.vmem %s14132_s1, %s943_s19 }
 0x102   : >> { %v960_v17 = vld [vmem:[%s944_s29] sm:$0x1] }
 0x103   : >> { %7240 = vst [vmem:[%s8138_s24 + $0x81] sm:$0x1] %v960_v17 }
 0x104   : >> { %979 = vsyncadd [#allocation3 + $0x2], 16  ;;  %s980_s14 = sadd.s32 130, %s8130_s0 }
 0x105   : >> { %s981_s2 = sadd.s32 %s7991_s18, %s980_s14 }
 0x106   : >> { %s982_s7 = sld [smem:[#allocation5 + %s981_s2]] }
 0x10c   : >> { %s983_s15 = scalar_lea.vmem %s14132_s1, %s982_s7 }
 0x10d   : >> { %v999_v18 = vld [vmem:[%s983_s15] sm:$0x1] }
 0x10e   : >> { %7242 = vst [vmem:[%s8138_s24 + $0x82] sm:$0x1] %v999_v18 }
 0x10f   : >> { %1018 = vsyncadd [#allocation3 + $0x2], 16  ;;  %s1019_s17 = sadd.s32 131, %s8130_s0 }
 0x110   : >> { %s1020_s12 = sadd.s32 %s7991_s18, %s1019_s17 }
 0x111   : >> { %s1021_s19 = sld [smem:[#allocation5 + %s1020_s12]] }
 0x117   : >> { %s1022_s29 = scalar_lea.vmem %s14132_s1, %s1021_s19 }
 0x118   : >> { %v1038_v19 = vld [vmem:[%s1022_s29] sm:$0x1] }
 0x119   : >> { %7244 = vst [vmem:[%s8138_s24 + $0x83] sm:$0x1] %v1038_v19 }
 0x11a   : >> { %1057 = vsyncadd [#allocation3 + $0x2], 16  ;;  %s1058_s14 = sadd.s32 132, %s8130_s0 }
 0x11b   : >> { %s1059_s2 = sadd.s32 %s7991_s18, %s1058_s14 }
 0x11c   : >> { %s1060_s7 = sld [smem:[#allocation5 + %s1059_s2]] }
 0x122   : >> { %s1061_s15 = scalar_lea.vmem %s14132_s1, %s1060_s7 }
 0x123   : >> { %v1077_v20 = vld [vmem:[%s1061_s15] sm:$0x1] }
 0x124   : >> { %7246 = vst [vmem:[%s8138_s24 + $0x84] sm:$0x1] %v1077_v20 }
 0x125   : >> { %1096 = vsyncadd [#allocation3 + $0x2], 16  ;;  %s1097_s17 = sadd.s32 133, %s8130_s0 }
 0x126   : >> { %s1098_s12 = sadd.s32 %s7991_s18, %s1097_s17 }
 0x127   : >> { %s1099_s19 = sld [smem:[#allocation5 + %s1098_s12]] }
 0x12d   : >> { %s1100_s29 = scalar_lea.vmem %s14132_s1, %s1099_s19 }
 0x12e   : >> { %v1116_v21 = vld [vmem:[%s1100_s29] sm:$0x1] }
 0x12f   : >> { %7248 = vst [vmem:[%s8138_s24 + $0x85] sm:$0x1] %v1116_v21 }
 0x130   : >> { %1135 = vsyncadd [#allocation3 + $0x2], 16  ;;  %s1136_s14 = sadd.s32 134, %s8130_s0 }
 0x131   : >> { %s1137_s2 = sadd.s32 %s7991_s18, %s1136_s14 }
 0x132   : >> { %s1138_s7 = sld [smem:[#allocation5 + %s1137_s2]] }
 0x138   : >> { %s1139_s15 = scalar_lea.vmem %s14132_s1, %s1138_s7 }
 0x139   : >> { %v1155_v22 = vld [vmem:[%s1139_s15] sm:$0x1] }
 0x13a   : >> { %7250 = vst [vmem:[%s8138_s24 + $0x86] sm:$0x1] %v1155_v22 }
 0x13b   : >> { %1174 = vsyncadd [#allocation3 + $0x2], 16  ;;  %s1175_s17 = sadd.s32 135, %s8130_s0 }
 0x13c   : >> { %s1176_s12 = sadd.s32 %s7991_s18, %s1175_s17 }
 0x13d   : >> { %s1177_s19 = sld [smem:[#allocation5 + %s1176_s12]] }
 0x143   : >> { %s1178_s29 = scalar_lea.vmem %s14132_s1, %s1177_s19 }
 0x144   : >> { %v1194_v23 = vld [vmem:[%s1178_s29] sm:$0x1] }
 0x145   : >> { %7252 = vst [vmem:[%s8138_s24 + $0x87] sm:$0x1] %v1194_v23 }
 0x146   : >> { %1213 = vsyncadd [#allocation3 + $0x2], 16  ;;  %s899_s16 = sadd.s32 1, %s7846_s16  }
 0x147   : >> { %p896_p2 = scmp.ge.s32.totalorder %s899_s16, 8  }
 0x148   : > { %s8186_s14 = smov (%p896_p2), 0  }
 0x149   : > { %898 = sbr.rel (!%p896_p2) target bundleno = 237 (0xed), region = 1295 }
 0x14e LB: >> { %s8192_s0 = sshll.u32 %s7850_s14, 3  ;;  %s7850_s14 = sphi %s8186_s14, %s1219_s14  }
 0x14f   : >> { %s1221_s24 = sadd.s32 192, %s8192_s0  ;;  %s8200_s15 = scalar_lea.vmem [#allocation2], %s8192_s0 }
 0x150   : >> { %s1222_s2 = sadd.s32 %s7991_s18, %s1221_s24 }
 0x151   : >> { %s1223_s7 = sld [smem:[#allocation5 + %s1222_s2]] }
 0x157   : >> { %s1224_s16 = scalar_lea.vmem %s14132_s1, %s1223_s7 }
 0x158   : >> { %v1241_v24 = vld [vmem:[%s1224_s16] sm:$0x1] }
 0x159   : >> { %7255 = vst [vmem:[%s8200_s15 + $0xc0] sm:$0x1] %v1241_v24 }
 0x15a   : >> { %1260 = vsyncadd [#allocation3 + $0x3], 16  ;;  %s1261_s17 = sadd.s32 193, %s8192_s0 }
 0x15b   : >> { %s1262_s12 = sadd.s32 %s7991_s18, %s1261_s17 }
 0x15c   : >> { %s1263_s19 = sld [smem:[#allocation5 + %s1262_s12]] }
 0x162   : >> { %s1264_s29 = scalar_lea.vmem %s14132_s1, %s1263_s19 }
 0x163   : >> { %v1280_v25 = vld [vmem:[%s1264_s29] sm:$0x1] }
 0x164   : >> { %7257 = vst [vmem:[%s8200_s15 + $0xc1] sm:$0x1] %v1280_v25 }
 0x165   : >> { %1299 = vsyncadd [#allocation3 + $0x3], 16  ;;  %s1300_s24 = sadd.s32 194, %s8192_s0 }
 0x166   : >> { %s1301_s2 = sadd.s32 %s7991_s18, %s1300_s24 }
 0x167   : >> { %s1302_s7 = sld [smem:[#allocation5 + %s1301_s2]] }
 0x16d   : >> { %s1303_s16 = scalar_lea.vmem %s14132_s1, %s1302_s7 }
 0x16e   : >> { %v1319_v26 = vld [vmem:[%s1303_s16] sm:$0x1] }
 0x16f   : >> { %7259 = vst [vmem:[%s8200_s15 + $0xc2] sm:$0x1] %v1319_v26 }
 0x170   : >> { %1338 = vsyncadd [#allocation3 + $0x3], 16  ;;  %s1339_s17 = sadd.s32 195, %s8192_s0 }
 0x171   : >> { %s1340_s12 = sadd.s32 %s7991_s18, %s1339_s17 }
 0x172   : >> { %s1341_s19 = sld [smem:[#allocation5 + %s1340_s12]] }
 0x178   : >> { %s1342_s29 = scalar_lea.vmem %s14132_s1, %s1341_s19 }
 0x179   : >> { %v1358_v27 = vld [vmem:[%s1342_s29] sm:$0x1] }
 0x17a   : >> { %7261 = vst [vmem:[%s8200_s15 + $0xc3] sm:$0x1] %v1358_v27 }
 0x17b   : >> { %1377 = vsyncadd [#allocation3 + $0x3], 16  ;;  %s1378_s24 = sadd.s32 196, %s8192_s0 }
 0x17c   : >> { %s1379_s2 = sadd.s32 %s7991_s18, %s1378_s24 }
 0x17d   : >> { %s1380_s7 = sld [smem:[#allocation5 + %s1379_s2]] }
 0x183   : >> { %s1381_s16 = scalar_lea.vmem %s14132_s1, %s1380_s7 }
 0x184   : >> { %v1397_v28 = vld [vmem:[%s1381_s16] sm:$0x1] }
 0x185   : >> { %7263 = vst [vmem:[%s8200_s15 + $0xc4] sm:$0x1] %v1397_v28 }
 0x186   : >> { %1416 = vsyncadd [#allocation3 + $0x3], 16  ;;  %s1417_s17 = sadd.s32 197, %s8192_s0 }
 0x187   : >> { %s1418_s12 = sadd.s32 %s7991_s18, %s1417_s17 }
 0x188   : >> { %s1419_s19 = sld [smem:[#allocation5 + %s1418_s12]] }
 0x18e   : >> { %s1420_s29 = scalar_lea.vmem %s14132_s1, %s1419_s19 }
 0x18f   : >> { %v1436_v29 = vld [vmem:[%s1420_s29] sm:$0x1] }
 0x190   : >> { %7265 = vst [vmem:[%s8200_s15 + $0xc5] sm:$0x1] %v1436_v29 }
 0x191   : >> { %1455 = vsyncadd [#allocation3 + $0x3], 16  ;;  %s1456_s24 = sadd.s32 198, %s8192_s0 }
 0x192   : >> { %s1457_s2 = sadd.s32 %s7991_s18, %s1456_s24 }
 0x193   : >> { %s1458_s7 = sld [smem:[#allocation5 + %s1457_s2]] }
 0x199   : >> { %s1459_s16 = scalar_lea.vmem %s14132_s1, %s1458_s7 }
 0x19a   : >> { %v1475_v30 = vld [vmem:[%s1459_s16] sm:$0x1] }
 0x19b   : >> { %7267 = vst [vmem:[%s8200_s15 + $0xc6] sm:$0x1] %v1475_v30 }
 0x19c   : >> { %1494 = vsyncadd [#allocation3 + $0x3], 16  ;;  %s1495_s17 = sadd.s32 199, %s8192_s0 }
 0x19d   : >> { %s1496_s12 = sadd.s32 %s7991_s18, %s1495_s17 }
 0x19e   : >> { %s1497_s19 = sld [smem:[#allocation5 + %s1496_s12]] }
 0x1a4   : >> { %s1498_s29 = scalar_lea.vmem %s14132_s1, %s1497_s19 }
 0x1a5   : >> { %v1514_v31 = vld [vmem:[%s1498_s29] sm:$0x1] }
 0x1a6   : >> { %7269 = vst [vmem:[%s8200_s15 + $0xc7] sm:$0x1] %v1514_v31 }
 0x1a7   : >> { %1533 = vsyncadd [#allocation3 + $0x3], 16  ;;  %s1219_s14 = sadd.s32 1, %s7850_s14  }
 0x1a8   : >> { %p1216_p3 = scmp.ge.s32.totalorder %s1219_s14, 8  }
 0x1a9   : > { %v8249_v32 = vld [vmem:[%s7996_s22 + $0x20] sm:$0xff] (%p1216_p3)  ;;  %v8252_v33 = vld [vmem:[%s7996_s22 + $0x10] sm:$0xff] (%p1216_p3)  ;;  %v14157_v35 = vmov (%p1216_p3), 0   ;;  %v8267_v39 = vld [vmem:[%s7996_s22 + $0x28] sm:$0xff] (%p1216_p3) }
 0x1aa   : > { %1218 = sbr.rel (!%p1216_p3) target bundleno = 334 (0x14e), region = 1306  ;;  %v8255_v34 = vld [vmem:[%s7996_s22] sm:$0xff] (%p1216_p3)  ;;  %7391 = vset.pattern.permute.xlu2 (%p1216_p3), %v14157_v35  ;;  %7390 = vset.pattern.permute.xlu1 (%p1216_p3), %v14157_v35  ;;  %vm1570_vm0 = vcmp.eq.s32.totalorder (%p1216_p3), %v8249_v32, 0  ;;  %vm1568_vm1 = vcmp.eq.s32.totalorder (%p1216_p3), %v8252_v33, 0  ;;  %v8270_v40 = vld [vmem:[%s7996_s22 + $0x18] sm:$0xff] (%p1216_p3)  ;;  %v8273_v41 = vld [vmem:[%s7996_s22 + $0x8] sm:$0xff] (%p1216_p3) }
 0x1ab   : > { %vm1566_vm2 = vcmp.eq.s32.totalorder (%p1216_p3), %v8255_v34, 0  ;;  %7389 = vset.pattern.permute.xlu0 (%p1216_p3), %v14157_v35  ;;  %v1603_v36 = vsel (%p1216_p3), %vm1570_vm0, 1, %v14157_v35  ;;  %v1601_v37 = vsel (%p1216_p3), %vm1568_vm1, 1, %v14157_v35  ;;  %vm1571_vm3 = vcmp.eq.s32.totalorder (%p1216_p3), %v8267_v39, 0  ;;  %v8282_v45 = vld [vmem:[%s7996_s22 + $0x40] sm:$0xff] (%p1216_p3)  ;;  %v8285_v46 = vld [vmem:[%s7996_s22 + $0x38] sm:$0xff] (%p1216_p3) }
 0x1ac   : > { %v1599_v38 = vsel (%p1216_p3), %vm1566_vm2, 1, %v14157_v35  ;;  %1644 = vperm.xlu2 (%p1216_p3), %7391, %v1603_v36   ;;  %1638 = vperm.xlu1 (%p1216_p3), %7390, %v1601_v37   ;;  %vm1569_vm4 = vcmp.eq.s32.totalorder (%p1216_p3), %v8270_v40, 0  ;;  %vm1567_vm5 = vcmp.eq.s32.totalorder (%p1216_p3), %v8273_v41, 0  ;;  %v1604_v42 = vsel (%p1216_p3), %vm1571_vm3, 1, %v14157_v35  ;;  %v8288_v47 = vld [vmem:[%s7996_s22 + $0x30] sm:$0xff] (%p1216_p3)  ;;  %v8297_v51 = vld [vmem:[%s7996_s22 + $0x58] sm:$0xff] (%p1216_p3) }
 0x1ad   : > { %1632 = vperm.xlu0 (%p1216_p3), %7389, %v1599_v38   ;;  %v1602_v43 = vsel (%p1216_p3), %vm1569_vm4, 1, %v14157_v35  ;;  %v1600_v44 = vsel (%p1216_p3), %vm1567_vm5, 1, %v14157_v35  ;;  %vm1574_vm6 = vcmp.eq.s32.totalorder (%p1216_p3), %v8282_v45, 0  ;;  %vm1573_vm7 = vcmp.eq.s32.totalorder (%p1216_p3), %v8285_v46, 0  ;;  %v8300_v52 = vld [vmem:[%s7996_s22 + $0x50] sm:$0xff] (%p1216_p3)  ;;  %v8303_v53 = vld [vmem:[%s7996_s22 + $0x48] sm:$0xff] (%p1216_p3) }
 0x1ae   : > { %vm1572_vm8 = vcmp.eq.s32.totalorder (%p1216_p3), %v8288_v47, 0  ;;  %v1607_v48 = vsel (%p1216_p3), %vm1574_vm6, 1, %v14157_v35  ;;  %v1606_v49 = vsel (%p1216_p3), %vm1573_vm7, 1, %v14157_v35  ;;  %vm1577_vm9 = vcmp.eq.s32.totalorder (%p1216_p3), %v8297_v51, 0  ;;  %v8312_v57 = vld [vmem:[%s7996_s22 + $0x70] sm:$0xff] (%p1216_p3)  ;;  %v8315_v58 = vld [vmem:[%s7996_s22 + $0x68] sm:$0xff] (%p1216_p3) }
 0x1af   : > { %v1605_v50 = vsel %vm1572_vm8, 1, %v14157_v35  ;;  %vm1576_vm10 = vcmp.eq.s32.totalorder %v8300_v52, 0  ;;  %vm1575_vm11 = vcmp.eq.s32.totalorder %v8303_v53, 0  ;;  %v1610_v54 = vsel %vm1577_vm9, 1, %v14157_v35  ;;  %v8318_v59 = vld [vmem:[%s7996_s22 + $0x60] sm:$0xff]  ;;  %v8327_v63 = vld [vmem:[%s7996_s22 + $0x88] sm:$0xff] }
 0x1b0   : > { %v1609_v55 = vsel %vm1576_vm10, 1, %v14157_v35  ;;  %v1608_v56 = vsel %vm1575_vm11, 1, %v14157_v35  ;;  %vm1580_vm12 = vcmp.eq.s32.totalorder %v8312_v57, 0  ;;  %vm1579_vm13 = vcmp.eq.s32.totalorder %v8315_v58, 0  ;;  %v8330_v0 = vld [vmem:[%s7996_s22 + $0x80] sm:$0xff]  ;;  %v8333_v1 = vld [vmem:[%s7996_s22 + $0x78] sm:$0xff] }
 0x1b1   : > { %vm1578_vm14 = vcmp.eq.s32.totalorder %v8318_v59, 0  ;;  %v1613_v60 = vsel %vm1580_vm12, 1, %v14157_v35  ;;  %v1612_v61 = vsel %vm1579_vm13, 1, %v14157_v35  ;;  %vm1583_vm15 = vcmp.eq.s32.totalorder %v8327_v63, 0  ;;  %v8342_v5 = vld [vmem:[%s7996_s22 + $0xa0] sm:$0xff]  ;;  %v8345_v6 = vld [vmem:[%s7996_s22 + $0x98] sm:$0xff] }
 0x1b2   : > { %v1611_v62 = vsel %vm1578_vm14, 1, %v14157_v35  ;;  %vm1582_vm0 = vcmp.eq.s32.totalorder %v8330_v0, 0  ;;  %vm1581_vm1 = vcmp.eq.s32.totalorder %v8333_v1, 0  ;;  %v1616_v2 = vsel %vm1583_vm15, 1, %v14157_v35  ;;  %v8348_v7 = vld [vmem:[%s7996_s22 + $0x90] sm:$0xff]  ;;  %v8357_v11 = vld [vmem:[%s7996_s22 + $0xb8] sm:$0xff] }
 0x1b3   : > { %v1615_v3 = vsel %vm1582_vm0, 1, %v14157_v35  ;;  %v1614_v4 = vsel %vm1581_vm1, 1, %v14157_v35  ;;  %vm1586_vm2 = vcmp.eq.s32.totalorder %v8342_v5, 0  ;;  %vm1585_vm3 = vcmp.eq.s32.totalorder %v8345_v6, 0  ;;  %v8360_v12 = vld [vmem:[%s7996_s22 + $0xb0] sm:$0xff]  ;;  %v8363_v13 = vld [vmem:[%s7996_s22 + $0xa8] sm:$0xff] }
 0x1b4   : > { %1647 = vperm.xlu2 %7391, %v1604_v42   ;;  %1641 = vperm.xlu1 %7390, %v1602_v43   ;;  %vm1584_vm4 = vcmp.eq.s32.totalorder %v8348_v7, 0  ;;  %v1619_v8 = vsel %vm1586_vm2, 1, %v14157_v35  ;;  %v1618_v9 = vsel %vm1585_vm3, 1, %v14157_v35  ;;  %vm1589_vm5 = vcmp.eq.s32.totalorder %v8357_v11, 0  ;;  %v8372_v17 = vld [vmem:[%s7996_s22 + $0xd0] sm:$0xff]  ;;  %v8375_v18 = vld [vmem:[%s7996_s22 + $0xc8] sm:$0xff] }
 0x1b5   : > { %1635 = vperm.xlu0 %7389, %v1600_v44   ;;  %v1617_v10 = vsel %vm1584_vm4, 1, %v14157_v35  ;;  %vm1588_vm6 = vcmp.eq.s32.totalorder %v8360_v12, 0  ;;  %vm1587_vm7 = vcmp.eq.s32.totalorder %v8363_v13, 0  ;;  %v1622_v14 = vsel %vm1589_vm5, 1, %v14157_v35  ;;  %v8378_v19 = vld [vmem:[%s7996_s22 + $0xc0] sm:$0xff]  ;;  %v8387_v23 = vld [vmem:[%s7996_s22 + $0xe8] sm:$0xff] }
 0x1b6   : > { %v1621_v15 = vsel %vm1588_vm6, 1, %v14157_v35  ;;  %v1620_v16 = vsel %vm1587_vm7, 1, %v14157_v35  ;;  %vm1592_vm8 = vcmp.eq.s32.totalorder %v8372_v17, 0  ;;  %vm1591_vm9 = vcmp.eq.s32.totalorder %v8375_v18, 0  ;;  %v8390_v24 = vld [vmem:[%s7996_s22 + $0xe0] sm:$0xff]  ;;  %v8393_v25 = vld [vmem:[%s7996_s22 + $0xd8] sm:$0xff] }
 0x1b7   : > { %vm1590_vm10 = vcmp.eq.s32.totalorder %v8378_v19, 0  ;;  %v1625_v20 = vsel %vm1592_vm8, 1, %v14157_v35  ;;  %v1624_v21 = vsel %vm1591_vm9, 1, %v14157_v35  ;;  %vm1595_vm11 = vcmp.eq.s32.totalorder %v8387_v23, 0  ;;  %v8402_v29 = vld [vmem:[%s7996_s22 + $0xf8] sm:$0xff]  ;;  %v8405_v30 = vld [vmem:[%s7996_s22 + $0xf0] sm:$0xff] }
 0x1b8   : > { %v1623_v22 = vsel %vm1590_vm10, 1, %v14157_v35  ;;  %vm1594_vm12 = vcmp.eq.s32.totalorder %v8390_v24, 0  ;;  %vm1593_vm13 = vcmp.eq.s32.totalorder %v8393_v25, 0  ;;  %v1628_v26 = vsel %vm1595_vm11, 1, %v14157_v35 }
 0x1b9   : > { %v1627_v27 = vsel %vm1594_vm12, 1, %v14157_v35  ;;  %v1626_v28 = vsel %vm1593_vm13, 1, %v14157_v35  ;;  %vm1597_vm14 = vcmp.eq.s32.totalorder %v8402_v29, 0  ;;  %vm1824_vm15 = vcmp.eq.s32.totalorder %v8255_v34, 1 }
 0x1ba   : > { %vm1596_vm0 = vcmp.eq.s32.totalorder %v8405_v30, 0  ;;  %v1630_v31 = vsel %vm1597_vm14, 1, %v14157_v35  ;;  %v1857_v36 = vsel %vm1824_vm15, 1, %v14157_v35  ;;  %vm1826_vm1 = vcmp.eq.s32.totalorder %v8252_v33, 1 }
 0x1bb   : > { %v1629_v37 = vsel %vm1596_vm0, 1, %v14157_v35  ;;  %vm1827_vm2 = vcmp.eq.s32.totalorder %v8270_v40, 1  ;;  %vm1825_vm3 = vcmp.eq.s32.totalorder %v8273_v41, 1  ;;  %v1859_v38 = vsel %vm1826_vm1, 1, %v14157_v35 }
 0x1bc   : > { %1656 = vperm.xlu2 %7391, %v1607_v48   ;;  %1653 = vperm.xlu1 %7390, %v1606_v49   ;;  %v1860_v42 = vsel %vm1827_vm2, 1, %v14157_v35  ;;  %v1858_v43 = vsel %vm1825_vm3, 1, %v14157_v35  ;;  %vm1829_vm4 = vcmp.eq.s32.totalorder %v8267_v39, 1  ;;  %vm1830_vm5 = vcmp.eq.s32.totalorder %v8288_v47, 1 }
 0x1bd   : > { %1650 = vperm.xlu0 %7389, %v1605_v50   ;;  %vm1828_vm6 = vcmp.eq.s32.totalorder %v8249_v32, 1  ;;  %v1862_v48 = vsel %vm1829_vm4, 1, %v14157_v35  ;;  %v1863_v49 = vsel %vm1830_vm5, 1, %v14157_v35  ;;  %vm1832_vm7 = vcmp.eq.s32.totalorder %v8282_v45, 1 }
 0x1be   : > { %v1861_v50 = vsel %vm1828_vm6, 1, %v14157_v35  ;;  %vm1833_vm8 = vcmp.eq.s32.totalorder %v8303_v53, 1  ;;  %vm1831_vm9 = vcmp.eq.s32.totalorder %v8285_v46, 1  ;;  %vm1835_vm10 = vcmp.eq.s32.totalorder %v8297_v51, 1 }
 0x1bf   : > { %vm1836_vm11 = vcmp.eq.s32.totalorder %v8318_v59, 1  ;;  %vm1834_vm12 = vcmp.eq.s32.totalorder %v8300_v52, 1  ;;  %vm1838_vm13 = vcmp.eq.s32.totalorder %v8312_v57, 1  ;;  %vm1839_vm14 = vcmp.eq.s32.totalorder %v8333_v1, 1 }
 0x1c0   : > { %vm1837_vm15 = vcmp.eq.s32.totalorder %v8315_v58, 1  ;;  %vm1841_vm0 = vcmp.eq.s32.totalorder %v8327_v63, 1  ;;  %vm1842_vm1 = vcmp.eq.s32.totalorder %v8348_v7, 1  ;;  %vm1840_vm2 = vcmp.eq.s32.totalorder %v8330_v0, 1 }
 0x1c1   : > { %vm1844_vm3 = vcmp.eq.s32.totalorder %v8342_v5, 1  ;;  %vm1845_vm4 = vcmp.eq.s32.totalorder %v8363_v13, 1  ;;  %vm1843_vm5 = vcmp.eq.s32.totalorder %v8345_v6, 1  ;;  %vm1847_vm6 = vcmp.eq.s32.totalorder %v8357_v11, 1 }
 0x1c4   : > { %1665 = vperm.xlu2 %7391, %v1610_v54   ;;  %1662 = vperm.xlu1 %7390, %v1609_v55   ;;  %v1865_v55 = vsel %vm1832_vm7, 1, %v14157_v35  ;;  %vm1848_vm7 = vcmp.eq.s32.totalorder %v8378_v19, 1 }
 0x1c5   : > { %1659 = vperm.xlu0 %7389, %v1608_v56   ;;  %v1866_v56 = vsel %vm1833_vm8, 1, %v14157_v35  ;;  %vm1846_vm8 = vcmp.eq.s32.totalorder %v8360_v12, 1 }
 0x1cc   : > { %1674 = vperm.xlu2 %7391, %v1613_v60   ;;  %1671 = vperm.xlu1 %7390, %v1612_v61   ;;  %v1864_v60 = vsel %vm1831_vm9, 1, %v14157_v35  ;;  %vm1850_vm9 = vcmp.eq.s32.totalorder %v8372_v17, 1 }
 0x1cd   : > { %1668 = vperm.xlu0 %7389, %v1611_v62   ;;  %v1868_v62 = vsel %vm1835_vm10, 1, %v14157_v35  ;;  %vm1851_vm10 = vcmp.eq.s32.totalorder %v8393_v25, 1 }
 0x1d4   : > { %1683 = vperm.xlu2 %7391, %v1616_v2   ;;  %1680 = vperm.xlu1 %7390, %v1615_v3   ;;  %v1869_v2 = vsel %vm1836_vm11, 1, %v14157_v35  ;;  %v1867_v3 = vsel %vm1834_vm12, 1, %v14157_v35  ;;  %vm1849_vm11 = vcmp.eq.s32.totalorder %v8375_v18, 1  ;;  %vm1853_vm12 = vcmp.eq.s32.totalorder %v8387_v23, 1 }
 0x1d5   : > { %1677 = vperm.xlu0 %7389, %v1614_v4  }
 0x1dc   : > { %1692 = vperm.xlu2 %7391, %v1619_v8   ;;  %1689 = vperm.xlu1 %7390, %v1618_v9  }
 0x1dd   : > { %1686 = vperm.xlu0 %7389, %v1617_v10   ;;  %v1871_v10 = vsel %vm1838_vm13, 1, %v14157_v35  ;;  %vm1854_vm13 = vcmp.eq.s32.totalorder %v8405_v30, 1 }
 0x1e4   : > { %1701 = vperm.xlu2 %7391, %v1622_v14   ;;  %1698 = vperm.xlu1 %7390, %v1621_v15   ;;  %v1872_v14 = vsel %vm1839_vm14, 1, %v14157_v35  ;;  %v1870_v15 = vsel %vm1837_vm15, 1, %v14157_v35  ;;  %vm1852_vm14 = vcmp.eq.s32.totalorder %v8390_v24, 1  ;;  %vm2082_vm15 = vcmp.eq.s32.totalorder %v8255_v34, 2 }
 0x1e5   : > { %1695 = vperm.xlu0 %7389, %v1620_v16  }
 0x1ec   : > { %1710 = vperm.xlu2 %7391, %v1625_v20   ;;  %1707 = vperm.xlu1 %7390, %v1624_v21  }
 0x1ed   : > { %1704 = vperm.xlu0 %7389, %v1623_v22   ;;  %v1874_v22 = vsel %vm1841_vm0, 1, %v14157_v35  ;;  %vm2083_vm0 = vcmp.eq.s32.totalorder %v8273_v41, 2 }
 0x1f4   : > { %1719 = vperm.xlu2 %7391, %v1628_v26   ;;  %1716 = vperm.xlu1 %7390, %v1627_v27   ;;  %v1875_v26 = vsel %vm1842_vm1, 1, %v14157_v35  ;;  %v1873_v27 = vsel %vm1840_vm2, 1, %v14157_v35  ;;  %vm1855_vm1 = vcmp.eq.s32.totalorder %v8402_v29, 1  ;;  %vm2085_vm2 = vcmp.eq.s32.totalorder %v8270_v40, 2 }
 0x1f5   : > { %1713 = vperm.xlu0 %7389, %v1626_v28  }
 0x1fc   : > { %1725 = vperm.xlu1 %7390, %v1630_v31   ;;  %1890 = vperm.xlu2 %7391, %v1857_v36  }
 0x1fd   : > { %1722 = vperm.xlu0 %7389, %v1629_v37   ;;  %v1877_v37 = vsel %vm1844_vm3, 1, %v14157_v35  ;;  %vm2086_vm3 = vcmp.eq.s32.totalorder %v8249_v32, 2 }
 0x204   : > { %1896 = vperm.xlu1 %7390, %v1859_v38   ;;  %1899 = vperm.xlu2 %7391, %v1860_v42   ;;  %v1878_v38 = vsel %vm1845_vm4, 1, %v14157_v35  ;;  %v1876_v42 = vsel %vm1843_vm5, 1, %v14157_v35  ;;  %vm2084_vm4 = vcmp.eq.s32.totalorder %v8252_v33, 2  ;;  %vm2088_vm5 = vcmp.eq.s32.totalorder %v8288_v47, 2 }
 0x205   : > { %1893 = vperm.xlu0 %7389, %v1858_v43  }
 0x206   : > { %v8419_v44 = vpop.permute.xlu2 %1644 }
 0x20c   : > { %1905 = vperm.xlu1 %7390, %v1862_v48   ;;  %1908 = vperm.xlu2 %7391, %v1863_v49  }
 0x20d   : > { %1902 = vperm.xlu0 %7389, %v1861_v50   ;;  %v1880_v50 = vsel %vm1847_vm6, 1, %v14157_v35  ;;  %vm2089_vm6 = vcmp.eq.s32.totalorder %v8285_v46, 2 }
 0x20e   : > { %v8427_v54 = vpop.permute.xlu2 %1647 }
 0x214   : > { %1914 = vperm.xlu1 %7390, %v1865_v55   ;;  %1917 = vperm.xlu2 %7391, %v1866_v56   ;;  %v1881_v55 = vsel %vm1848_vm7, 1, %v14157_v35  ;;  %v1879_v56 = vsel %vm1846_vm8, 1, %v14157_v35  ;;  %vm2087_vm7 = vcmp.eq.s32.totalorder %v8267_v39, 2  ;;  %vm2091_vm8 = vcmp.eq.s32.totalorder %v8303_v53, 2 }
 0x215   : > { %1911 = vperm.xlu0 %7389, %v1864_v60  }
 0x216   : > { %v8435_v61 = vpop.permute.xlu2 %1656 }
 0x21c   : > { %1923 = vperm.xlu1 %7390, %v1868_v62   ;;  %1926 = vperm.xlu2 %7391, %v1869_v2  }
 0x21d   : > { %1920 = vperm.xlu0 %7389, %v1867_v3   ;;  %v1883_v3 = vsel %vm1850_vm9, 1, %v14157_v35  ;;  %vm2092_vm9 = vcmp.eq.s32.totalorder %v8300_v52, 2 }
 0x21e   : > { %v8443_v4 = vpop.permute.xlu2 %1665  ;;  %v8445_v8 = vpop.permute.xlu1 %1638 }
 0x21f   : > { %v8449_v9 = vpop.permute.xlu0 %1632 }
 0x224   : > { %1932 = vperm.xlu1 %7390, %v1871_v10   ;;  %1935 = vperm.xlu2 %7391, %v1872_v14   ;;  %v1884_v10 = vsel %vm1851_vm10, 1, %v14157_v35  ;;  %v1882_v14 = vsel %vm1849_vm11, 1, %v14157_v35  ;;  %vm2090_vm10 = vcmp.eq.s32.totalorder %v8282_v45, 2  ;;  %vm2094_vm11 = vcmp.eq.s32.totalorder %v8318_v59, 2 }
 0x225   : > { %1929 = vperm.xlu0 %7389, %v1870_v15  }
 0x226   : > { %v8455_v16 = vpop.permute.xlu2 %1674  ;;  %v8457_v20 = vpop.permute.xlu1 %1641 }
 0x227   : > { %v8461_v21 = vpop.permute.xlu0 %1635 }
 0x22c   : > { %1941 = vperm.xlu1 %7390, %v1874_v22   ;;  %1944 = vperm.xlu2 %7391, %v1875_v26  }
 0x22d   : > { %1938 = vperm.xlu0 %7389, %v1873_v27   ;;  %v1886_v27 = vsel %vm1853_vm12, 1, %v14157_v35  ;;  %vm2095_vm12 = vcmp.eq.s32.totalorder %v8315_v58, 2 }
 0x22e   : > { %v8467_v28 = vpop.permute.xlu2 %1683  ;;  %v8469_v31 = vpop.permute.xlu1 %1653 }
 0x22f   : > { %v8473_v36 = vpop.permute.xlu0 %1650 }
 0x234   : > { %1950 = vperm.xlu1 %7390, %v1877_v37   ;;  %1953 = vperm.xlu2 %7391, %v1878_v38   ;;  %v1887_v37 = vsel %vm1854_vm13, 1, %v14157_v35  ;;  %v1885_v38 = vsel %vm1852_vm14, 1, %v14157_v35  ;;  %vm2093_vm13 = vcmp.eq.s32.totalorder %v8297_v51, 2  ;;  %vm2097_vm14 = vcmp.eq.s32.totalorder %v8333_v1, 2 }
 0x235   : > { %1947 = vperm.xlu0 %7389, %v1876_v42  }
 0x236   : > { %v8479_v43 = vpop.permute.xlu2 %1692  ;;  %v8481_v48 = vpop.permute.xlu1 %1662 }
 0x237   : > { %v8485_v49 = vpop.permute.xlu0 %1659 }
 0x23c   : > { %1959 = vperm.xlu1 %7390, %v1880_v50   ;;  %1962 = vperm.xlu2 %7391, %v1881_v55  }
 0x23d   : > { %1956 = vperm.xlu0 %7389, %v1879_v56   ;;  %v2115_v56 = vsel %vm2082_vm15, 1, %v14157_v35  ;;  %vm2098_vm15 = vcmp.eq.s32.totalorder %v8330_v0, 2 }
 0x23e   : > { %v8491_v60 = vpop.permute.xlu2 %1701  ;;  %v8493_v62 = vpop.permute.xlu1 %1671 }
 0x23f   : > { %v8497_v2 = vpop.permute.xlu0 %1668 }
 0x244   : > { %1968 = vperm.xlu1 %7390, %v1883_v3   ;;  %1971 = vperm.xlu2 %7391, %v1884_v10   ;;  %v2116_v3 = vsel %vm2083_vm0, 1, %v14157_v35  ;;  %v1888_v10 = vsel %vm1855_vm1, 1, %v14157_v35  ;;  %vm2096_vm0 = vcmp.eq.s32.totalorder %v8312_v57, 2  ;;  %vm2100_vm1 = vcmp.eq.s32.totalorder %v8348_v7, 2 }
 0x245   : > { %1965 = vperm.xlu0 %7389, %v1882_v14  }
 0x246   : > { %v8503_v15 = vpop.permute.xlu2 %1710  ;;  %v8505_v22 = vpop.permute.xlu1 %1680 }
 0x247   : > { %v8509_v26 = vpop.permute.xlu0 %1677 }
 0x24c   : > { %1977 = vperm.xlu1 %7390, %v1886_v27   ;;  %1980 = vperm.xlu2 %7391, %v1887_v37  }
 0x24d   : > { %1974 = vperm.xlu0 %7389, %v1885_v38   ;;  %v2118_v38 = vsel %vm2085_vm2, 1, %v14157_v35  ;;  %vm2101_vm2 = vcmp.eq.s32.totalorder %v8345_v6, 2 }
 0x24e   : > { %v8515_v42 = vpop.permute.xlu2 %1719  ;;  %v8517_v50 = vpop.permute.xlu1 %1689 }
 0x24f   : > { %14445 = vst [vmem:[#allocation53_spill] sm:$0xff] %v8517_v50  ;;  %v8521_v55 = vpop.permute.xlu0 %1686  ;;  %v2122_v50 = vsel %vm2089_vm6, 1, %v14157_v35  ;;  %vm2102_vm6 = vcmp.eq.s32.totalorder %v8342_v5, 2 }
 0x250   : > { %14446 = vst [vmem:[#allocation54_spill] sm:$0xff] %v8521_v55  ;;  %v2119_v55 = vsel %vm2086_vm3, 1, %v14157_v35  ;;  %vm2099_vm3 = vcmp.eq.s32.totalorder %v8327_v63, 2 }
 0x254   : > { %2148 = vperm.xlu1 %7390, %v2115_v56   ;;  %2151 = vperm.xlu2 %7391, %v2116_v3   ;;  %v2117_v56 = vsel %vm2084_vm4, 1, %v14157_v35  ;;  %vm2103_vm4 = vcmp.eq.s32.totalorder %v8363_v13, 2 }
 0x255   : > { %1983 = vperm.xlu0 %7389, %v1888_v10  }
 0x256   : > { %v8527_v14 = vpop.permute.xlu1 %1698  ;;  %v8529_v27 = vpop.permute.xlu2 %1890 }
 0x257   : > { %14447 = vst [vmem:[#allocation55_spill] sm:$0xff] %v8527_v14  ;;  %v8533_v37 = vpop.permute.xlu0 %1695  ;;  %v2121_v14 = vsel %vm2088_vm5, 1, %v14157_v35  ;;  %vm2104_vm5 = vcmp.eq.s32.totalorder %v8360_v12, 2 }
 0x258   : > { %14448 = vst [vmem:[#allocation56_spill] sm:$0xff] %v8533_v37 }
 0x25c   : > { %2157 = vperm.xlu1 %7390, %v2118_v38   ;;  %2160 = vperm.xlu2 %7391, %v2119_v55   ;;  %v2120_v38 = vsel %vm2087_vm7, 1, %v14157_v35  ;;  %vm2106_vm7 = vcmp.eq.s32.totalorder %v8378_v19, 2 }
 0x25d   : > { %2154 = vperm.xlu0 %7389, %v2117_v56  }
 0x25e   : > { %v8539_v3 = vpop.permute.xlu1 %1707  ;;  %v8541_v10 = vpop.permute.xlu2 %1899 }
 0x25f   : > { %14449 = vst [vmem:[#allocation57_spill] sm:$0xff] %v8539_v3  ;;  %v8545_v37 = vpop.permute.xlu0 %1704  ;;  %v2124_v3 = vsel %vm2091_vm8, 1, %v14157_v35  ;;  %vm2107_vm8 = vcmp.eq.s32.totalorder %v8375_v18, 2 }
 0x260   : > { %14450 = vst [vmem:[#allocation58_spill] sm:$0xff] %v8541_v10  ;;  %v2125_v10 = vsel %vm2092_vm9, 1, %v14157_v35  ;;  %vm2105_vm9 = vcmp.eq.s32.totalorder %v8357_v11, 2 }
 0x261   : > { %14451 = vst [vmem:[#allocation59_spill] sm:$0xff] %v8545_v37 }
 0x264   : > { %2166 = vperm.xlu1 %7390, %v2121_v14   ;;  %2169 = vperm.xlu2 %7391, %v2122_v50   ;;  %v2123_v14 = vsel %vm2090_vm10, 1, %v14157_v35  ;;  %vm2109_vm10 = vcmp.eq.s32.totalorder %v8393_v25, 2 }
 0x265   : > { %2163 = vperm.xlu0 %7389, %v2120_v38  }
 0x266   : > { %v8551_v55 = vpop.permute.xlu1 %1716  ;;  %v8553_v56 = vpop.permute.xlu2 %1908 }
 0x267   : > { %14452 = vst [vmem:[#allocation60_spill] sm:$0xff] %v8551_v55  ;;  %v8557_v37 = vpop.permute.xlu0 %1713  ;;  %v2127_v55 = vsel %vm2094_vm11, 1, %v14157_v35  ;;  %vm2110_vm11 = vcmp.eq.s32.totalorder %v8390_v24, 2 }
 0x268   : > { %14453 = vst [vmem:[#allocation61_spill] sm:$0xff] %v8553_v56  ;;  %v2128_v56 = vsel %vm2095_vm12, 1, %v14157_v35  ;;  %vm2108_vm12 = vcmp.eq.s32.totalorder %v8372_v17, 2 }
 0x269   : > { %14454 = vst [vmem:[#allocation62_spill] sm:$0xff] %v8557_v37 }
 0x26c   : > { %2175 = vperm.xlu1 %7390, %v2124_v3   ;;  %2178 = vperm.xlu2 %7391, %v2125_v10   ;;  %v2126_v3 = vsel %vm2093_vm13, 1, %v14157_v35  ;;  %vm2112_vm13 = vcmp.eq.s32.totalorder %v8405_v30, 2 }
 0x26d   : > { %2172 = vperm.xlu0 %7389, %v2123_v14  }
 0x26e   : > { %v8563_v50 = vpop.permute.xlu1 %1725  ;;  %v8565_v38 = vpop.permute.xlu2 %1917 }
 0x26f   : > { %14455 = vst [vmem:[#allocation63_spill] sm:$0xff] %v8563_v50  ;;  %v8569_v37 = vpop.permute.xlu0 %1722  ;;  %v2130_v50 = vsel %vm2097_vm14, 1, %v14157_v35  ;;  %vm2113_vm14 = vcmp.eq.s32.totalorder %v8402_v29, 2 }
 0x270   : > { %14456 = vst [vmem:[#allocation64_spill] sm:$0xff] %v8565_v38  ;;  %v2131_v38 = vsel %vm2098_vm15, 1, %v14157_v35  ;;  %vm2111_vm15 = vcmp.eq.s32.totalorder %v8387_v23, 2 }
 0x271   : > { %14457 = vst [vmem:[#allocation65_spill] sm:$0xff] %v8569_v37 }
 0x274   : > { %2184 = vperm.xlu1 %7390, %v2127_v55   ;;  %2187 = vperm.xlu2 %7391, %v2128_v56   ;;  %v2129_v55 = vsel %vm2096_vm0, 1, %v14157_v35  ;;  %vm2341_vm0 = vcmp.eq.s32.totalorder %v8273_v41, 3 }
 0x275   : > { %2181 = vperm.xlu0 %7389, %v2126_v3  }
 0x276   : > { %v8575_v10 = vpop.permute.xlu1 %1896  ;;  %v8577_v14 = vpop.permute.xlu2 %1926 }
 0x277   : > { %14458 = vst [vmem:[#allocation66_spill] sm:$0xff] %v8575_v10  ;;  %v8581_v37 = vpop.permute.xlu0 %1893  ;;  %v2134_v10 = vsel %vm2101_vm2, 1, %v14157_v35  ;;  %vm2340_vm2 = vcmp.eq.s32.totalorder %v8255_v34, 3 }
 0x278   : > { %14459 = vst [vmem:[#allocation67_spill] sm:$0xff] %v8577_v14  ;;  %v2133_v14 = vsel %vm2100_vm1, 1, %v14157_v35  ;;  %vm2342_vm1 = vcmp.eq.s32.totalorder %v8252_v33, 3 }
 0x279   : > { %14460 = vst [vmem:[#allocation68_spill] sm:$0xff] %v8581_v37 }
 0x27c   : > { %2193 = vperm.xlu1 %7390, %v2130_v50   ;;  %2196 = vperm.xlu2 %7391, %v2131_v38   ;;  %v2132_v50 = vsel %vm2099_vm3, 1, %v14157_v35  ;;  %vm2344_vm3 = vcmp.eq.s32.totalorder %v8249_v32, 3 }
 0x27d   : > { %2190 = vperm.xlu0 %7389, %v2129_v55   ;;  %v2377_v34 = vsel %vm2344_vm3, 1, %v14157_v35  ;;  %vm2360_vm3 = vcmp.eq.s32.totalorder %v8342_v5, 3 }
 0x27e   : > { %v8587_v56 = vpop.permute.xlu1 %1905  ;;  %v8589_v3 = vpop.permute.xlu2 %1935 }
 0x27f   : > { %14461 = vst [vmem:[#allocation69_spill] sm:$0xff] %v8587_v56  ;;  %v8593_v37 = vpop.permute.xlu0 %1902  ;;  %v2137_v56 = vsel %vm2104_vm5, 1, %v14157_v35  ;;  %vm2343_vm5 = vcmp.eq.s32.totalorder %v8270_v40, 3 }
 0x280   : > { %14462 = vst [vmem:[#allocation70_spill] sm:$0xff] %v8589_v3  ;;  %v2136_v3 = vsel %vm2103_vm4, 1, %v14157_v35  ;;  %vm2345_vm4 = vcmp.eq.s32.totalorder %v8267_v39, 3 }
 0x281   : > { %14463 = vst [vmem:[#allocation71_spill] sm:$0xff] %v8593_v37  ;;  %v2378_v41 = vsel %vm2345_vm4, 1, %v14157_v35  ;;  %vm2358_vm4 = vcmp.eq.s32.totalorder %v8348_v7, 3 }
 0x284   : > { %2202 = vperm.xlu1 %7390, %v2133_v14   ;;  %2205 = vperm.xlu2 %7391, %v2134_v10   ;;  %v2135_v14 = vsel %vm2102_vm6, 1, %v14157_v35  ;;  %vm2347_vm6 = vcmp.eq.s32.totalorder %v8285_v46, 3 }
 0x285   : > { %2199 = vperm.xlu0 %7389, %v2132_v50   ;;  %v2380_v39 = vsel %vm2347_vm6, 1, %v14157_v35  ;;  %vm2363_vm6 = vcmp.eq.s32.totalorder %v8357_v11, 3 }
 0x286   : > { %v8599_v38 = vpop.permute.xlu1 %1914  ;;  %v8601_v55 = vpop.permute.xlu2 %1944 }
 0x287   : > { %14464 = vst [vmem:[#allocation72_spill] sm:$0xff] %v8599_v38  ;;  %v8605_v37 = vpop.permute.xlu0 %1911  ;;  %v2140_v38 = vsel %vm2107_vm8, 1, %v14157_v35  ;;  %vm2346_vm8 = vcmp.eq.s32.totalorder %v8288_v47, 3 }
 0x288   : > { %14465 = vst [vmem:[#allocation73_spill] sm:$0xff] %v8601_v55  ;;  %v2139_v55 = vsel %vm2106_vm7, 1, %v14157_v35  ;;  %vm2348_vm7 = vcmp.eq.s32.totalorder %v8282_v45, 3 }
 0x289   : > { %14466 = vst [vmem:[#allocation74_spill] sm:$0xff] %v8605_v37  ;;  %v2381_v40 = vsel %vm2348_vm7, 1, %v14157_v35  ;;  %vm2361_vm7 = vcmp.eq.s32.totalorder %v8363_v13, 3 }
 0x28c   : > { %2211 = vperm.xlu1 %7390, %v2136_v3   ;;  %2214 = vperm.xlu2 %7391, %v2137_v56   ;;  %v2138_v3 = vsel %vm2105_vm9, 1, %v14157_v35  ;;  %vm2350_vm9 = vcmp.eq.s32.totalorder %v8300_v52, 3 }
 0x28d   : > { %2208 = vperm.xlu0 %7389, %v2135_v14   ;;  %v2383_v46 = vsel %vm2350_vm9, 1, %v14157_v35  ;;  %vm2366_vm9 = vcmp.eq.s32.totalorder %v8372_v17, 3 }
 0x28e   : > { %v8611_v10 = vpop.permute.xlu1 %1923  ;;  %v8613_v50 = vpop.permute.xlu2 %1953 }
 0x28f   : > { %14467 = vst [vmem:[#allocation75_spill] sm:$0xff] %v8611_v10  ;;  %v8617_v37 = vpop.permute.xlu0 %1920  ;;  %v2143_v10 = vsel %vm2110_vm11, 1, %v14157_v35  ;;  %vm2349_vm11 = vcmp.eq.s32.totalorder %v8303_v53, 3 }
 0x290   : > { %14468 = vst [vmem:[#allocation76_spill] sm:$0xff] %v8613_v50  ;;  %v2142_v50 = vsel %vm2109_vm10, 1, %v14157_v35  ;;  %vm2351_vm10 = vcmp.eq.s32.totalorder %v8297_v51, 3 }
 0x291   : > { %14469 = vst [vmem:[#allocation77_spill] sm:$0xff] %v8617_v37 }
 0x294   : > { %2220 = vperm.xlu1 %7390, %v2139_v55   ;;  %2223 = vperm.xlu2 %7391, %v2140_v38   ;;  %v2141_v55 = vsel %vm2108_vm12, 1, %v14157_v35  ;;  %vm2353_vm12 = vcmp.eq.s32.totalorder %v8315_v58, 3 }
 0x295   : > { %2217 = vperm.xlu0 %7389, %v2138_v3  }
 0x296   : > { %v8623_v56 = vpop.permute.xlu1 %1932  ;;  %v8625_v14 = vpop.permute.xlu2 %1962 }
 0x297   : > { %14470 = vst [vmem:[#allocation78_spill] sm:$0xff] %v8623_v56  ;;  %v8629_v37 = vpop.permute.xlu0 %1929  ;;  %v2146_v56 = vsel %vm2113_vm14, 1, %v14157_v35  ;;  %vm2352_vm14 = vcmp.eq.s32.totalorder %v8318_v59, 3 }
 0x298   : > { %14471 = vst [vmem:[#allocation79_spill] sm:$0xff] %v8625_v14  ;;  %v2145_v14 = vsel %vm2112_vm13, 1, %v14157_v35  ;;  %vm2354_vm13 = vcmp.eq.s32.totalorder %v8312_v57, 3 }
 0x299   : > { %14472 = vst [vmem:[#allocation80_spill] sm:$0xff] %v8629_v37 }
 0x29c   : > { %2229 = vperm.xlu1 %7390, %v2142_v50   ;;  %2232 = vperm.xlu2 %7391, %v2143_v10   ;;  %v2144_v50 = vsel %vm2111_vm15, 1, %v14157_v35  ;;  %vm2356_vm15 = vcmp.eq.s32.totalorder %v8330_v0, 3 }
 0x29d   : > { %2226 = vperm.xlu0 %7389, %v2141_v55  }
 0x29e   : > { %v8635_v38 = vpop.permute.xlu1 %1941  ;;  %v8637_v3 = vpop.permute.xlu2 %1971 }
 0x29f   : > { %14473 = vst [vmem:[#allocation81_spill] sm:$0xff] %v8635_v38  ;;  %v8641_v37 = vpop.permute.xlu0 %1938  ;;  %v2375_v38 = vsel %vm2342_vm1, 1, %v14157_v35  ;;  %vm2355_vm1 = vcmp.eq.s32.totalorder %v8333_v1, 3 }
 0x2a0   : > { %14474 = vst [vmem:[#allocation82_spill] sm:$0xff] %v8637_v3  ;;  %v2374_v3 = vsel %vm2341_vm0, 1, %v14157_v35  ;;  %vm2357_vm0 = vcmp.eq.s32.totalorder %v8327_v63, 3 }
 0x2a1   : > { %14475 = vst [vmem:[#allocation83_spill] sm:$0xff] %v8641_v37 }
 0x2a4   : > { %2238 = vperm.xlu1 %7390, %v2145_v14   ;;  %2241 = vperm.xlu2 %7391, %v2146_v56   ;;  %v2373_v14 = vsel %vm2340_vm2, 1, %v14157_v35  ;;  %vm2359_vm2 = vcmp.eq.s32.totalorder %v8345_v6, 3 }
 0x2a5   : > { %2235 = vperm.xlu0 %7389, %v2144_v50  }
 0x2a6   : > { %v8647_v10 = vpop.permute.xlu1 %1950  ;;  %v8649_v55 = vpop.permute.xlu2 %1980 }
 0x2a7   : > { %14476 = vst [vmem:[#allocation84_spill] sm:$0xff] %v8647_v10  ;;  %v8653_v37 = vpop.permute.xlu0 %1947 }
 0x2a8   : > { %14477 = vst [vmem:[#allocation85_spill] sm:$0xff] %v8649_v55 }
 0x2a9   : > { %14478 = vst [vmem:[#allocation86_spill] sm:$0xff] %v8653_v37  ;;  %v9121_v37 = vld [vmem:[%s7996_s22 + $0xe8] sm:$0xff] }
 0x2ac   : > { %2409 = vperm.xlu1 %7390, %v2374_v3   ;;  %2412 = vperm.xlu2 %7391, %v2375_v38   ;;  %v2376_v3 = vsel %vm2343_vm5, 1, %v14157_v35  ;;  %vm2362_vm5 = vcmp.eq.s32.totalorder %v8360_v12, 3 }
 0x2ad   : > { %2406 = vperm.xlu0 %7389, %v2373_v14  }
 0x2ae   : > { %v8659_v56 = vpop.permute.xlu1 %1959  ;;  %v8661_v50 = vpop.permute.xlu2 %2151 }
 0x2af   : > { %14479 = vst [vmem:[#allocation87_spill] sm:$0xff] %v8659_v56  ;;  %v8665_v33 = vpop.permute.xlu0 %1956  ;;  %v9114_v56 = vld [vmem:[%s7996_s22 + $0xf0] sm:$0xff] }
 0x2b0   : > { %14480 = vst [vmem:[#allocation88_spill] sm:$0xff] %v8661_v50  ;;  %v9103_v50 = vld [vmem:[%s7996_s22 + $0xd0] sm:$0xff] }
 0x2b1   : > { %14481 = vst [vmem:[#allocation89_spill] sm:$0xff] %v8665_v33  ;;  %v9096_v33 = vld [vmem:[%s7996_s22 + $0xd8] sm:$0xff] }
 0x2b4   : > { %2418 = vperm.xlu1 %7390, %v2377_v34   ;;  %2421 = vperm.xlu2 %7391, %v2378_v41   ;;  %v2379_v34 = vsel %vm2346_vm8, 1, %v14157_v35  ;;  %vm2365_vm8 = vcmp.eq.s32.totalorder %v8375_v18, 3 }
 0x2b5   : > { %2415 = vperm.xlu0 %7389, %v2376_v3  }
 0x2b6   : > { %v8671_v38 = vpop.permute.xlu1 %1968  ;;  %v8673_v14 = vpop.permute.xlu2 %2160 }
 0x2b7   : > { %14482 = vst [vmem:[#allocation90_spill] sm:$0xff] %v8671_v38  ;;  %v8677_v32 = vpop.permute.xlu0 %1965  ;;  %v9085_v38 = vld [vmem:[%s7996_s22 + $0xb8] sm:$0xff] }
 0x2b8   : > { %14483 = vst [vmem:[#allocation91_spill] sm:$0xff] %v8673_v14  ;;  %v9078_v14 = vld [vmem:[%s7996_s22 + $0xc0] sm:$0xff] }
 0x2b9   : > { %14484 = vst [vmem:[#allocation92_spill] sm:$0xff] %v8677_v32  ;;  %v2384_v32 = vsel %vm2351_vm10, 1, %v14157_v35  ;;  %vm2364_vm10 = vcmp.eq.s32.totalorder %v8378_v19, 3 }
 0x2bc   : > { %2427 = vperm.xlu1 %7390, %v2380_v39   ;;  %2430 = vperm.xlu2 %7391, %v2381_v40   ;;  %v2382_v39 = vsel %vm2349_vm11, 1, %v14157_v35  ;;  %vm2368_vm11 = vcmp.eq.s32.totalorder %v8390_v24, 3  ;;  %v8773_v24 = vld [vmem:[%s7996_s22] sm:$0xff] }
 0x2bd   : > { %2424 = vperm.xlu0 %7389, %v2379_v34  }
 0x2be   : > { %v8683_v41 = vpop.permute.xlu1 %1977  ;;  %v8685_v3 = vpop.permute.xlu2 %2169 }
 0x2bf   : > { %14485 = vst [vmem:[#allocation93_spill] sm:$0xff] %v8683_v41  ;;  %v8689_v45 = vpop.permute.xlu0 %1974  ;;  %v9067_v41 = vld [vmem:[%s7996_s22 + $0xa0] sm:$0xff] }
 0x2c0   : > { %14486 = vst [vmem:[#allocation94_spill] sm:$0xff] %v8685_v3  ;;  %v2387_v3 = vsel %vm2354_vm13, 1, %v14157_v35  ;;  %vm2367_vm13 = vcmp.eq.s32.totalorder %v8393_v25, 3 }
 0x2c1   : > { %14487 = vst [vmem:[#allocation95_spill] sm:$0xff] %v8689_v45  ;;  %v2386_v45 = vsel %vm2353_vm12, 1, %v14157_v35  ;;  %vm2369_vm12 = vcmp.eq.s32.totalorder %v8387_v23, 3 }
 0x2c4   : > { %2436 = vperm.xlu1 %7390, %v2383_v46   ;;  %2439 = vperm.xlu2 %7391, %v2384_v32   ;;  %v2385_v46 = vsel %vm2352_vm14, 1, %v14157_v35  ;;  %vm2371_vm14 = vcmp.eq.s32.totalorder %v8402_v29, 3 }
 0x2c5   : > { %2433 = vperm.xlu0 %7389, %v2382_v39  }
 0x2c6   : > { %v8695_v40 = vpop.permute.xlu1 %2148  ;;  %v8697_v34 = vpop.permute.xlu2 %2178 }
 0x2c7   : > { %14488 = vst [vmem:[#allocation96_spill] sm:$0xff] %v8695_v40  ;;  %v8701_v52 = vpop.permute.xlu0 %1983  ;;  %v9060_v40 = vld [vmem:[%s7996_s22 + $0xa8] sm:$0xff] }
 0x2c8   : > { %14489 = vst [vmem:[#allocation97_spill] sm:$0xff] %v8697_v34  ;;  %v2390_v34 = vsel %vm2357_vm0, 1, %v14157_v35  ;;  %vm2370_vm0 = vcmp.eq.s32.totalorder %v8405_v30, 3 }
 0x2c9   : > { %14490 = vst [vmem:[#allocation98_spill] sm:$0xff] %v8701_v52  ;;  %v2389_v52 = vsel %vm2356_vm15, 1, %v14157_v35  ;;  %vm2598_vm15 = vcmp.eq.s32.totalorder %v8773_v24, 4 }
 0x2cc   : > { %2445 = vperm.xlu1 %7390, %v2386_v45   ;;  %2448 = vperm.xlu2 %7391, %v2387_v3   ;;  %v2388_v45 = vsel %vm2355_vm1, 1, %v14157_v35 }
 0x2cd   : > { %2442 = vperm.xlu0 %7389, %v2385_v46  }
 0x2ce   : > { %v8707_v32 = vpop.permute.xlu1 %2157  ;;  %v8709_v39 = vpop.permute.xlu2 %2187 }
 0x2cf   : > { %14491 = vst [vmem:[#allocation99_spill] sm:$0xff] %v8707_v32  ;;  %v8713_v58 = vpop.permute.xlu0 %2154 }
 0x2d0   : > { %14492 = vst [vmem:[#allocation100_spill] sm:$0xff] %v8709_v39  ;;  %v2393_v39 = vsel %vm2360_vm3, 1, %v14157_v35 }
 0x2d1   : > { %14493 = vst [vmem:[#allocation101_spill] sm:$0xff] %v8713_v58  ;;  %v2392_v58 = vsel %vm2359_vm2, 1, %v14157_v35 }
 0x2d4   : > { %2454 = vperm.xlu1 %7390, %v2389_v52   ;;  %2457 = vperm.xlu2 %7391, %v2390_v34   ;;  %v2391_v52 = vsel %vm2358_vm4, 1, %v14157_v35 }
 0x2d5   : > { %2451 = vperm.xlu0 %7389, %v2388_v45  }
 0x2d6   : > { %v8719_v3 = vpop.permute.xlu1 %2166  ;;  %v8721_v46 = vpop.permute.xlu2 %2196 }
 0x2d7   : > { %14494 = vst [vmem:[#allocation102_spill] sm:$0xff] %v8719_v3  ;;  %v8725_v0 = vpop.permute.xlu0 %2163  ;;  %v8833_v3 = vld [vmem:[%s7996_s22 + $0x38] sm:$0xff] }
 0x2d8   : > { %14495 = vst [vmem:[#allocation103_spill] sm:$0xff] %v8721_v46  ;;  %v2396_v46 = vsel %vm2363_vm6, 1, %v14157_v35 }
 0x2d9   : > { %14496 = vst [vmem:[#allocation104_spill] sm:$0xff] %v8725_v0  ;;  %v2395_v0 = vsel %vm2362_vm5, 1, %v14157_v35  ;;  %vm2604_vm5 = vcmp.eq.s32.totalorder %v8288_v47, 4  ;;  %v8826_v47 = vld [vmem:[%s7996_s22 + $0x40] sm:$0xff] }
 0x2dc   : > { %2463 = vperm.xlu1 %7390, %v2392_v58   ;;  %2466 = vperm.xlu2 %7391, %v2393_v39   ;;  %v2394_v58 = vsel %vm2361_vm7, 1, %v14157_v35  ;;  %vm2606_vm7 = vcmp.eq.s32.totalorder %v8826_v47, 4 }
 0x2dd   : > { %2460 = vperm.xlu0 %7389, %v2391_v52  }
 0x2de   : > { %v8731_v34 = vpop.permute.xlu1 %2175  ;;  %v8733_v45 = vpop.permute.xlu2 %2205 }
 0x2df   : > { %14497 = vst [vmem:[#allocation105_spill] sm:$0xff] %v8731_v34  ;;  %v8737_v6 = vpop.permute.xlu0 %2172  ;;  %v8815_v34 = vld [vmem:[%s7996_s22 + $0x20] sm:$0xff] }
 0x2e0   : > { %14498 = vst [vmem:[#allocation106_spill] sm:$0xff] %v8733_v45  ;;  %v2399_v45 = vsel %vm2366_vm9, 1, %v14157_v35  ;;  %vm2602_vm6 = vcmp.eq.s32.totalorder %v8815_v34, 4  ;;  %vm2605_vm9 = vcmp.eq.s32.totalorder %v8833_v3, 4 }
 0x2e1   : > { %14499 = vst [vmem:[#allocation107_spill] sm:$0xff] %v8737_v6  ;;  %v2398_v6 = vsel %vm2365_vm8, 1, %v14157_v35  ;;  %vm2607_vm8 = vcmp.eq.s32.totalorder %v8303_v53, 4 }
 0x2e4   : > { %2472 = vperm.xlu1 %7390, %v2395_v0   ;;  %2475 = vperm.xlu2 %7391, %v2396_v46   ;;  %v2397_v0 = vsel %vm2364_vm10, 1, %v14157_v35  ;;  %vm2609_vm10 = vcmp.eq.s32.totalorder %v8297_v51, 4 }
 0x2e5   : > { %2469 = vperm.xlu0 %7389, %v2394_v58  }
 0x2e6   : > { %v8743_v39 = vpop.permute.xlu1 %2184  ;;  %v8745_v52 = vpop.permute.xlu2 %2214 }
 0x2e7   : > { %14500 = vst [vmem:[#allocation108_spill] sm:$0xff] %v8743_v39  ;;  %v8749_v12 = vpop.permute.xlu0 %2181  ;;  %v8808_v39 = vld [vmem:[%s7996_s22 + $0x28] sm:$0xff] }
 0x2e8   : > { %14501 = vst [vmem:[#allocation109_spill] sm:$0xff] %v8745_v52  ;;  %v2402_v52 = vsel %vm2369_vm12, 1, %v14157_v35  ;;  %vm2603_vm4 = vcmp.eq.s32.totalorder %v8808_v39, 4 }
 0x2e9   : > { %14502 = vst [vmem:[#allocation110_spill] sm:$0xff] %v8749_v12  ;;  %v2401_v12 = vsel %vm2368_vm11, 1, %v14157_v35  ;;  %vm2610_vm11 = vcmp.eq.s32.totalorder %v8318_v59, 4 }
 0x2ec   : > { %2481 = vperm.xlu1 %7390, %v2398_v6   ;;  %2484 = vperm.xlu2 %7391, %v2399_v45   ;;  %v2400_v45 = vsel %vm2367_vm13, 1, %v14157_v35  ;;  %vm2612_vm13 = vcmp.eq.s32.totalorder %v8312_v57, 4 }
 0x2ed   : > { %2478 = vperm.xlu0 %7389, %v2397_v0  }
 0x2ee   : > { %v8755_v46 = vpop.permute.xlu1 %2193  ;;  %v8757_v58 = vpop.permute.xlu2 %2223 }
 0x2ef   : > { %14503 = vst [vmem:[#allocation111_spill] sm:$0xff] %v8755_v46  ;;  %v8761_v18 = vpop.permute.xlu0 %2190 }
 0x2f0   : > { %14504 = vst [vmem:[#allocation112_spill] sm:$0xff] %v8757_v58 }
 0x2f1   : > { %14505 = vst [vmem:[#allocation113_spill] sm:$0xff] %v8761_v18 }
 0x2f4   : > { %2490 = vperm.xlu1 %7390, %v2401_v12   ;;  %2493 = vperm.xlu2 %7391, %v2402_v52   ;;  %v2404_v52 = vsel %vm2371_vm14, 1, %v14157_v35  ;;  %v2631_v12 = vsel %vm2598_vm15, 1, %v14157_v35  ;;  %vm2613_vm14 = vcmp.eq.s32.totalorder %v8333_v1, 4 }
 0x2f5   : > { %2487 = vperm.xlu0 %7389, %v2400_v45   ;;  %v2403_v45 = vsel %vm2370_vm0, 1, %v14157_v35  ;;  %v8797_v35 = vld [vmem:[%s7996_s22 + $0x8] sm:$0xff]  ;;  %vm2615_vm0 = vcmp.eq.s32.totalorder %v8327_v63, 4 }
 0x2f6   : > { %v8767_v6 = vpop.permute.xlu1 %2202  ;;  %v8769_v0 = vpop.permute.xlu2 %2232  ;;  %vm2599_vm3 = vcmp.eq.s32.totalorder %v8797_v35, 4 }
 0x2f7   : > { %14506 = vst [vmem:[#allocation114_spill] sm:$0xff] %v8767_v6  ;;  %v8776_v18 = vpop.permute.xlu0 %2199  ;;  %v8787_v6 = vld [vmem:[%s7996_s22 + $0x10] sm:$0xff] }
 0x2f8   : > { %14507 = vst [vmem:[#allocation115_spill] sm:$0xff] %v8769_v0  ;;  %vm2600_vm1 = vcmp.eq.s32.totalorder %v8787_v6, 4 }
 0x2f9   : > { %14508 = vst [vmem:[#allocation116_spill] sm:$0xff] %v8776_v18  ;;  %v8791_v18 = vld [vmem:[%s7996_s22 + $0x18] sm:$0xff] }
 0x2fa   : > { %vm2601_vm2 = vcmp.eq.s32.totalorder %v8791_v18, 4 }
 0x2fc   : > { %2499 = vperm.xlu1 %7390, %v2404_v52   ;;  %2664 = vperm.xlu2 %7391, %v2631_v12   ;;  %v14512_v52 = vmov 0  }
 0x2fd   : > { %2496 = vperm.xlu0 %7389, %v2403_v45   ;;  %v2633_v12 = vsel %vm2600_vm1, 1, %v14512_v52  ;;  %v2634_v45 = vsel %vm2601_vm2, 1, %v14512_v52  ;;  %v2642_v32 = vsel %vm2609_vm10, 1, %v14512_v52  ;;  %vm2616_vm1 = vcmp.eq.s32.totalorder %v8348_v7, 4 }
 0x2fe   : > { %v8782_v0 = vpop.permute.xlu1 %2211  ;;  %v8784_v29 = vpop.permute.xlu2 %2241  ;;  %vm2625_vm10 = vcmp.eq.s32.totalorder %v8393_v25, 4 }
 0x2ff   : > { %14509 = vst [vmem:[#allocation117_spill] sm:$0xff] %v8782_v0  ;;  %v8794_v58 = vpop.permute.xlu0 %2208 }
 0x300   : > { %14510 = vst [vmem:[#allocation118_spill] sm:$0xff] %v8784_v29  ;;  %v2632_v29 = vsel %vm2599_vm3, 1, %v14512_v52  ;;  %vm2618_vm3 = vcmp.eq.s32.totalorder %v8342_v5, 4 }
 0x301   : > { %14511 = vst [vmem:[#allocation119_spill] sm:$0xff] %v8794_v58 }
 0x304   : > { %2670 = vperm.xlu1 %7390, %v2633_v12   ;;  %2673 = vperm.xlu2 %7391, %v2634_v45   ;;  %v2637_v12 = vsel %vm2604_vm5, 1, %v14512_v52  ;;  %v2635_v45 = vsel %vm2602_vm6, 1, %v14512_v52  ;;  %vm2621_vm6 = vcmp.eq.s32.totalorder %v8357_v11, 4 }
 0x305   : > { %2667 = vperm.xlu0 %7389, %v2632_v29   ;;  %v2636_v29 = vsel %vm2603_vm4, 1, %v14512_v52  ;;  %vm2619_vm4 = vcmp.eq.s32.totalorder %v8363_v13, 4 }
 0x306   : > { %v8803_v0 = vpop.permute.xlu1 %2220  ;;  %v8805_v46 = vpop.permute.xlu2 %2412 }
 0x307   : > { %14513 = vst [vmem:[#allocation120_spill] sm:$0xff] %v8803_v0  ;;  %v8812_v58 = vpop.permute.xlu0 %2217 }
 0x308   : > { %14514 = vst [vmem:[#allocation121_spill] sm:$0xff] %v8805_v46 }
 0x309   : > { %14515 = vst [vmem:[#allocation122_spill] sm:$0xff] %v8812_v58 }
 0x30c   : > { %2679 = vperm.xlu1 %7390, %v2636_v29   ;;  %2682 = vperm.xlu2 %7391, %v2637_v12   ;;  %v2639_v29 = vsel %vm2606_vm7, 1, %v14512_v52  ;;  %v2640_v12 = vsel %vm2607_vm8, 1, %v14512_v52  ;;  %vm2622_vm7 = vcmp.eq.s32.totalorder %v8378_v19, 4 }
 0x30d   : > { %2676 = vperm.xlu0 %7389, %v2635_v45   ;;  %v2638_v45 = vsel %vm2605_vm9, 1, %v14512_v52  ;;  %vm2624_vm9 = vcmp.eq.s32.totalorder %v8372_v17, 4 }
 0x30e   : > { %v8821_v46 = vpop.permute.xlu1 %2229  ;;  %v8823_v0 = vpop.permute.xlu2 %2421 }
 0x30f   : > { %14516 = vst [vmem:[#allocation123_spill] sm:$0xff] %v8821_v46  ;;  %v8830_v58 = vpop.permute.xlu0 %2226 }
 0x310   : > { %14517 = vst [vmem:[#allocation124_spill] sm:$0xff] %v8823_v0 }
 0x311   : > { %14518 = vst [vmem:[#allocation125_spill] sm:$0xff] %v8830_v58  ;;  %v8848_v58 = vld [vmem:[%s7996_s22 + $0x50] sm:$0xff] }
 0x312   : > { %vm2608_vm12 = vcmp.eq.s32.totalorder %v8848_v58, 4 }
 0x314   : > { %2688 = vperm.xlu1 %7390, %v2639_v29   ;;  %2691 = vperm.xlu2 %7391, %v2640_v12   ;;  %v2643_v29 = vsel %vm2610_vm11, 1, %v14512_v52  ;;  %v2641_v12 = vsel %vm2608_vm12, 1, %v14512_v52  ;;  %vm2627_vm12 = vcmp.eq.s32.totalorder %v8387_v23, 4 }
 0x315   : > { %2685 = vperm.xlu0 %7389, %v2638_v45  }
 0x316   : > { %v8839_v0 = vpop.permute.xlu1 %2238  ;;  %v8841_v46 = vpop.permute.xlu2 %2430 }
 0x317   : > { %14519 = vst [vmem:[#allocation126_spill] sm:$0xff] %v8839_v0  ;;  %v8845_v53 = vpop.permute.xlu0 %2235  ;;  %v9049_v0 = vld [vmem:[%s7996_s22 + $0x88] sm:$0xff] }
 0x318   : > { %14520 = vst [vmem:[#allocation127_spill] sm:$0xff] %v8841_v46  ;;  %v2645_v46 = vsel %vm2612_vm13, 1, %v14512_v52  ;;  %vm2628_vm13 = vcmp.eq.s32.totalorder %v8405_v30, 4 }
 0x319   : > { %14521 = vst [vmem:[#allocation128_spill] sm:$0xff] %v8845_v53  ;;  %v8863_v53 = vld [vmem:[%s7996_s22 + $0x68] sm:$0xff] }
 0x31a   : > { %vm2611_vm15 = vcmp.eq.s32.totalorder %v8863_v53, 4 }
 0x31c   : > { %2697 = vperm.xlu1 %7390, %v2642_v32   ;;  %2700 = vperm.xlu2 %7391, %v2643_v29   ;;  %v2646_v32 = vsel %vm2613_vm14, 1, %v14512_v52  ;;  %v2644_v29 = vsel %vm2611_vm15, 1, %v14512_v52  ;;  %vm2856_vm15 = vcmp.eq.s32.totalorder %v8773_v24, 5 }
 0x31d   : > { %2694 = vperm.xlu0 %7389, %v2641_v12  }
 0x31e   : > { %v8854_v45 = vpop.permute.xlu1 %2409  ;;  %v8856_v51 = vpop.permute.xlu2 %2439 }
 0x31f   : > { %14522 = vst [vmem:[#allocation129_spill] sm:$0xff] %v8854_v45  ;;  %v8860_v59 = vpop.permute.xlu0 %2406  ;;  %v9042_v45 = vld [vmem:[%s7996_s22 + $0x90] sm:$0xff] }
 0x320   : > { %14523 = vst [vmem:[#allocation130_spill] sm:$0xff] %v8856_v51  ;;  %v2648_v51 = vsel %vm2615_vm0, 1, %v14512_v52  ;;  %vm2857_vm0 = vcmp.eq.s32.totalorder %v8797_v35, 5 }
 0x321   : > { %14524 = vst [vmem:[#allocation131_spill] sm:$0xff] %v8860_v59  ;;  %v8878_v59 = vld [vmem:[%s7996_s22 + $0x80] sm:$0xff] }
 0x322   : > { %vm2614_vm2 = vcmp.eq.s32.totalorder %v8878_v59, 4 }
 0x324   : > { %2706 = vperm.xlu1 %7390, %v2645_v46   ;;  %2709 = vperm.xlu2 %7391, %v2646_v32   ;;  %v2649_v46 = vsel %vm2616_vm1, 1, %v14512_v52  ;;  %v2647_v32 = vsel %vm2614_vm2, 1, %v14512_v52  ;;  %vm2859_vm2 = vcmp.eq.s32.totalorder %v8791_v18, 5 }
 0x325   : > { %2703 = vperm.xlu0 %7389, %v2644_v29  }
 0x326   : > { %v8869_v12 = vpop.permute.xlu1 %2418  ;;  %v8871_v57 = vpop.permute.xlu2 %2448 }
 0x327   : > { %14525 = vst [vmem:[#allocation132_spill] sm:$0xff] %v8869_v12  ;;  %v8875_v1 = vpop.permute.xlu0 %2415  ;;  %v9031_v12 = vld [vmem:[%s7996_s22 + $0x70] sm:$0xff] }
 0x328   : > { %14526 = vst [vmem:[#allocation133_spill] sm:$0xff] %v8871_v57  ;;  %v2651_v57 = vsel %vm2618_vm3, 1, %v14512_v52  ;;  %vm2860_vm3 = vcmp.eq.s32.totalorder %v8815_v34, 5 }
 0x329   : > { %14527 = vst [vmem:[#allocation134_spill] sm:$0xff] %v8875_v1  ;;  %v8893_v1 = vld [vmem:[%s7996_s22 + $0x98] sm:$0xff] }
 0x32a   : > { %vm2617_vm5 = vcmp.eq.s32.totalorder %v8893_v1, 4 }
 0x32c   : > { %2715 = vperm.xlu1 %7390, %v2648_v51   ;;  %2718 = vperm.xlu2 %7391, %v2649_v46   ;;  %v2652_v51 = vsel %vm2619_vm4, 1, %v14512_v52  ;;  %v2650_v46 = vsel %vm2617_vm5, 1, %v14512_v52  ;;  %vm2858_vm4 = vcmp.eq.s32.totalorder %v8787_v6, 5 }
 0x32d   : > { %2712 = vperm.xlu0 %7389, %v2647_v32  }
 0x32e   : > { %v8884_v29 = vpop.permute.xlu1 %2427  ;;  %v8886_v63 = vpop.permute.xlu2 %2457 }
 0x32f   : > { %14528 = vst [vmem:[#allocation135_spill] sm:$0xff] %v8884_v29  ;;  %v8890_v7 = vpop.permute.xlu0 %2424  ;;  %v9024_v29 = vld [vmem:[%s7996_s22 + $0x78] sm:$0xff] }
 0x330   : > { %14529 = vst [vmem:[#allocation136_spill] sm:$0xff] %v8886_v63  ;;  %v2654_v63 = vsel %vm2621_vm6, 1, %v14512_v52  ;;  %vm2863_vm6 = vcmp.eq.s32.totalorder %v8833_v3, 5 }
 0x331   : > { %14530 = vst [vmem:[#allocation137_spill] sm:$0xff] %v8890_v7  ;;  %v8908_v7 = vld [vmem:[%s7996_s22 + $0xb0] sm:$0xff] }
 0x332   : > { %vm2620_vm8 = vcmp.eq.s32.totalorder %v8908_v7, 4 }
 0x334   : > { %2724 = vperm.xlu1 %7390, %v2651_v57   ;;  %2727 = vperm.xlu2 %7391, %v2652_v51   ;;  %v2655_v57 = vsel %vm2622_vm7, 1, %v14512_v52  ;;  %v2653_v51 = vsel %vm2620_vm8, 1, %v14512_v52  ;;  %vm2861_vm7 = vcmp.eq.s32.totalorder %v8808_v39, 5 }
 0x335   : > { %2721 = vperm.xlu0 %7389, %v2650_v46  }
 0x336   : > { %v8899_v32 = vpop.permute.xlu1 %2436  ;;  %v8901_v5 = vpop.permute.xlu2 %2466 }
 0x337   : > { %14531 = vst [vmem:[#allocation138_spill] sm:$0xff] %v8899_v32  ;;  %v8905_v13 = vpop.permute.xlu0 %2433  ;;  %v9013_v32 = vld [vmem:[%s7996_s22 + $0x58] sm:$0xff] }
 0x338   : > { %14532 = vst [vmem:[#allocation139_spill] sm:$0xff] %v8901_v5  ;;  %v2657_v5 = vsel %vm2624_vm9, 1, %v14512_v52  ;;  %vm2866_vm9 = vcmp.eq.s32.totalorder %v8848_v58, 5 }
 0x339   : > { %14533 = vst [vmem:[#allocation140_spill] sm:$0xff] %v8905_v13  ;;  %v8923_v13 = vld [vmem:[%s7996_s22 + $0xc8] sm:$0xff] }
 0x33a   : > { %vm2623_vm11 = vcmp.eq.s32.totalorder %v8923_v13, 4 }
 0x33c   : > { %2733 = vperm.xlu1 %7390, %v2654_v63   ;;  %2736 = vperm.xlu2 %7391, %v2655_v57   ;;  %v2658_v63 = vsel %vm2625_vm10, 1, %v14512_v52  ;;  %v2656_v57 = vsel %vm2623_vm11, 1, %v14512_v52  ;;  %vm2864_vm10 = vcmp.eq.s32.totalorder %v8826_v47, 5 }
 0x33d   : > { %2730 = vperm.xlu0 %7389, %v2653_v51  }
 0x33e   : > { %v8914_v46 = vpop.permute.xlu1 %2445  ;;  %v8916_v11 = vpop.permute.xlu2 %2475 }
 0x33f   : > { %14534 = vst [vmem:[#allocation141_spill] sm:$0xff] %v8914_v46  ;;  %v8920_v19 = vpop.permute.xlu0 %2442  ;;  %v9006_v46 = vld [vmem:[%s7996_s22 + $0x60] sm:$0xff] }
 0x340   : > { %14535 = vst [vmem:[#allocation142_spill] sm:$0xff] %v8916_v11  ;;  %v2660_v11 = vsel %vm2627_vm12, 1, %v14512_v52  ;;  %vm2868_vm11 = vcmp.eq.s32.totalorder %v9006_v46, 5  ;;  %vm2869_vm12 = vcmp.eq.s32.totalorder %v8863_v53, 5 }
 0x341   : > { %14536 = vst [vmem:[#allocation143_spill] sm:$0xff] %v8920_v19  ;;  %v8938_v19 = vld [vmem:[%s7996_s22 + $0xe0] sm:$0xff] }
 0x342   : > { %vm2626_vm14 = vcmp.eq.s32.totalorder %v8938_v19, 4 }
 0x344   : > { %2742 = vperm.xlu1 %7390, %v2657_v5   ;;  %2745 = vperm.xlu2 %7391, %v2658_v63   ;;  %v2661_v5 = vsel %vm2628_vm13, 1, %v14512_v52  ;;  %v2659_v63 = vsel %vm2626_vm14, 1, %v14512_v52  ;;  %vm2867_vm13 = vcmp.eq.s32.totalorder %v9013_v32, 5  ;;  %vm2871_vm14 = vcmp.eq.s32.totalorder %v9024_v29, 5 }
 0x345   : > { %2739 = vperm.xlu0 %7389, %v2656_v57  }
 0x346   : > { %v8929_v51 = vpop.permute.xlu1 %2454  ;;  %v8931_v17 = vpop.permute.xlu2 %2484 }
 0x347   : > { %14537 = vst [vmem:[#allocation144_spill] sm:$0xff] %v8929_v51  ;;  %v8935_v25 = vpop.permute.xlu0 %2451  ;;  %v2893_v51 = vsel %vm2860_vm3, 1, %v14512_v52  ;;  %vm2873_vm3 = vcmp.eq.s32.totalorder %v9049_v0, 5 }
 0x348   : > { %14538 = vst [vmem:[#allocation145_spill] sm:$0xff] %v8931_v17  ;;  %v2889_v17 = vsel %vm2856_vm15, 1, %v14512_v52  ;;  %vm2872_vm15 = vcmp.eq.s32.totalorder %v8878_v59, 5 }
 0x349   : > { %14539 = vst [vmem:[#allocation146_spill] sm:$0xff] %v8935_v25  ;;  %v8953_v25 = vld [vmem:[%s7996_s22 + $0xf8] sm:$0xff] }
 0x34a   : > { %vm2629_vm1 = vcmp.eq.s32.totalorder %v8953_v25, 4 }
 0x34c   : > { %2751 = vperm.xlu1 %7390, %v2660_v11   ;;  %2754 = vperm.xlu2 %7391, %v2661_v5   ;;  %v2890_v11 = vsel %vm2857_vm0, 1, %v14512_v52  ;;  %v2662_v5 = vsel %vm2629_vm1, 1, %v14512_v52  ;;  %vm2870_vm0 = vcmp.eq.s32.totalorder %v9031_v12, 5  ;;  %vm2874_vm1 = vcmp.eq.s32.totalorder %v9042_v45, 5 }
 0x34d   : > { %2748 = vperm.xlu0 %7389, %v2659_v63  }
 0x34e   : > { %v8944_v57 = vpop.permute.xlu1 %2463  ;;  %v8946_v23 = vpop.permute.xlu2 %2493 }
 0x34f   : > { %14540 = vst [vmem:[#allocation147_spill] sm:$0xff] %v8944_v57  ;;  %v8950_v30 = vpop.permute.xlu0 %2460  ;;  %v2892_v57 = vsel %vm2859_vm2, 1, %v14512_v52  ;;  %vm2875_vm2 = vcmp.eq.s32.totalorder %v8893_v1, 5 }
 0x350   : > { %14541 = vst [vmem:[#allocation148_spill] sm:$0xff] %v8946_v23 }
 0x351   : > { %14542 = vst [vmem:[#allocation149_spill] sm:$0xff] %v8950_v30 }
 0x354   : > { %2922 = vperm.xlu1 %7390, %v2889_v17   ;;  %2925 = vperm.xlu2 %7391, %v2890_v11   ;;  %v2891_v17 = vsel %vm2858_vm4, 1, %v14512_v52  ;;  %vm2877_vm4 = vcmp.eq.s32.totalorder %v9060_v40, 5 }
 0x355   : > { %2757 = vperm.xlu0 %7389, %v2662_v5  }
 0x356   : > { %v8959_v63 = vpop.permute.xlu1 %2472  ;;  %v8961_v23 = vpop.permute.xlu2 %2664 }
 0x357   : > { %14543 = vst [vmem:[#allocation150_spill] sm:$0xff] %v8959_v63  ;;  %v8965_v30 = vpop.permute.xlu0 %2469 }
 0x358   : > { %14544 = vst [vmem:[#allocation151_spill] sm:$0xff] %v8961_v23  ;;  %v8976_v23 = vld [vmem:[%s7996_s22 + $0x30] sm:$0xff] }
 0x359   : > { %14545 = vst [vmem:[#allocation152_spill] sm:$0xff] %v8965_v30  ;;  %vm2862_vm5 = vcmp.eq.s32.totalorder %v8976_v23, 5 }
 0x35a   : > { %v2895_v63 = vsel %vm2862_vm5, 1, %v14512_v52  ;;  %vm2878_vm5 = vcmp.eq.s32.totalorder %v8908_v7, 5 }
 0x35c   : > { %2931 = vperm.xlu1 %7390, %v2892_v57   ;;  %2934 = vperm.xlu2 %7391, %v2893_v51   ;;  %v2896_v51 = vsel %vm2863_vm6, 1, %v14512_v52  ;;  %v2894_v57 = vsel %vm2861_vm7, 1, %v14512_v52  ;;  %vm2876_vm6 = vcmp.eq.s32.totalorder %v9067_v41, 5  ;;  %vm2880_vm7 = vcmp.eq.s32.totalorder %v9078_v14, 5 }
 0x35d   : > { %2928 = vperm.xlu0 %7389, %v2891_v17  }
 0x35e   : > { %v8971_v11 = vpop.permute.xlu1 %2481  ;;  %v8973_v5 = vpop.permute.xlu2 %2673 }
 0x35f   : > { %14546 = vst [vmem:[#allocation153_spill] sm:$0xff] %v8971_v11  ;;  %v8980_v30 = vpop.permute.xlu0 %2478  ;;  %v8991_v11 = vld [vmem:[%s7996_s22 + $0x48] sm:$0xff] }
 0x360   : > { %14547 = vst [vmem:[#allocation154_spill] sm:$0xff] %v8973_v5  ;;  %vm2865_vm8 = vcmp.eq.s32.totalorder %v8991_v11, 5 }
 0x361   : > { %14548 = vst [vmem:[#allocation155_spill] sm:$0xff] %v8980_v30 }
 0x364   : > { %2940 = vperm.xlu1 %7390, %v2895_v63   ;;  %2943 = vperm.xlu2 %7391, %v2896_v51   ;;  %v2898_v63 = vsel %vm2865_vm8, 1, %v14512_v52  ;;  %v2899_v51 = vsel %vm2866_vm9, 1, %v14512_v52  ;;  %vm2881_vm8 = vcmp.eq.s32.totalorder %v8923_v13, 5  ;;  %vm2879_vm9 = vcmp.eq.s32.totalorder %v9085_v38, 5 }
 0x365   : > { %2937 = vperm.xlu0 %7389, %v2894_v57   ;;  %v2897_v57 = vsel %vm2864_vm10, 1, %v14512_v52  ;;  %vm2883_vm10 = vcmp.eq.s32.totalorder %v9096_v33, 5 }
 0x366   : > { %v8986_v17 = vpop.permute.xlu1 %2490  ;;  %v8988_v5 = vpop.permute.xlu2 %2682 }
 0x367   : > { %14549 = vst [vmem:[#allocation156_spill] sm:$0xff] %v8986_v17  ;;  %v8995_v30 = vpop.permute.xlu0 %2487 }
 0x368   : > { %14550 = vst [vmem:[#allocation157_spill] sm:$0xff] %v8988_v5 }
 0x369   : > { %14551 = vst [vmem:[#allocation158_spill] sm:$0xff] %v8995_v30 }
 0x36c   : > { %2949 = vperm.xlu1 %7390, %v2898_v63   ;;  %2952 = vperm.xlu2 %7391, %v2899_v51   ;;  %v2901_v63 = vsel %vm2868_vm11, 1, %v14512_v52  ;;  %v2902_v51 = vsel %vm2869_vm12, 1, %v14512_v52  ;;  %vm2884_vm11 = vcmp.eq.s32.totalorder %v8938_v19, 5  ;;  %vm2882_vm12 = vcmp.eq.s32.totalorder %v9103_v50, 5 }
 0x36d   : > { %2946 = vperm.xlu0 %7389, %v2897_v57   ;;  %v2900_v57 = vsel %vm2867_vm13, 1, %v14512_v52  ;;  %vm2886_vm13 = vcmp.eq.s32.totalorder %v9114_v56, 5 }
 0x36e   : > { %v9001_v5 = vpop.permute.xlu1 %2499  ;;  %v9003_v17 = vpop.permute.xlu2 %2691 }
 0x36f   : > { %14552 = vst [vmem:[#allocation159_spill] sm:$0xff] %v9001_v5  ;;  %v9010_v30 = vpop.permute.xlu0 %2496 }
 0x370   : > { %14553 = vst [vmem:[#allocation160_spill] sm:$0xff] %v9003_v17 }
 0x371   : > { %14554 = vst [vmem:[#allocation161_spill] sm:$0xff] %v9010_v30 }
 0x374   : > { %2958 = vperm.xlu1 %7390, %v2901_v63   ;;  %2961 = vperm.xlu2 %7391, %v2902_v51   ;;  %v2904_v63 = vsel %vm2871_vm14, 1, %v14512_v52  ;;  %v2905_v51 = vsel %vm2872_vm15, 1, %v14512_v52  ;;  %vm2887_vm14 = vcmp.eq.s32.totalorder %v8953_v25, 5  ;;  %vm2885_vm15 = vcmp.eq.s32.totalorder %v9121_v37, 5 }
 0x375   : > { %2955 = vperm.xlu0 %7389, %v2900_v57   ;;  %v2903_v57 = vsel %vm2870_vm0, 1, %v14512_v52  ;;  %vm3115_vm0 = vcmp.eq.s32.totalorder %v8797_v35, 6 }
 0x376   : > { %v9019_v17 = vpop.permute.xlu1 %2670  ;;  %v9021_v5 = vpop.permute.xlu2 %2700  ;;  %v3148_v55 = vsel %vm3115_vm0, 1, %v14512_v52  ;;  %vm3131_vm0 = vcmp.eq.s32.totalorder %v9049_v0, 6 }
 0x377   : > { %14555 = vst [vmem:[#allocation162_spill] sm:$0xff] %v9019_v17  ;;  %v9028_v30 = vpop.permute.xlu0 %2667 }
 0x378   : > { %14556 = vst [vmem:[#allocation163_spill] sm:$0xff] %v9021_v5 }
 0x379   : > { %14557 = vst [vmem:[#allocation164_spill] sm:$0xff] %v9028_v30 }
 0x37c   : > { %2967 = vperm.xlu1 %7390, %v2904_v63   ;;  %2970 = vperm.xlu2 %7391, %v2905_v51   ;;  %v2907_v63 = vsel %vm2874_vm1, 1, %v14512_v52  ;;  %v2908_v51 = vsel %vm2875_vm2, 1, %v14512_v52  ;;  %vm3116_vm1 = vcmp.eq.s32.totalorder %v8787_v6, 6  ;;  %vm3114_vm2 = vcmp.eq.s32.totalorder %v8773_v24, 6 }
 0x37d   : > { %2964 = vperm.xlu0 %7389, %v2903_v57   ;;  %v2906_v57 = vsel %vm2873_vm3, 1, %v14512_v52  ;;  %v3149_v10 = vsel %vm3116_vm1, 1, %v14512_v52  ;;  %vm3118_vm3 = vcmp.eq.s32.totalorder %v8815_v34, 6  ;;  %vm3129_vm1 = vcmp.eq.s32.totalorder %v9024_v29, 6 }
 0x37e   : > { %v9037_v5 = vpop.permute.xlu1 %2679  ;;  %v9039_v17 = vpop.permute.xlu2 %2709 }
 0x37f   : > { %14558 = vst [vmem:[#allocation165_spill] sm:$0xff] %v9037_v5  ;;  %v9046_v30 = vpop.permute.xlu0 %2676 }
 0x380   : > { %14559 = vst [vmem:[#allocation166_spill] sm:$0xff] %v9039_v17 }
 0x381   : > { %14560 = vst [vmem:[#allocation167_spill] sm:$0xff] %v9046_v30 }
 0x384   : > { %2976 = vperm.xlu1 %7390, %v2907_v63   ;;  %2979 = vperm.xlu2 %7391, %v2908_v51   ;;  %v2910_v63 = vsel %vm2877_vm4, 1, %v14512_v52  ;;  %v2911_v51 = vsel %vm2878_vm5, 1, %v14512_v52  ;;  %vm3119_vm4 = vcmp.eq.s32.totalorder %v8808_v39, 6  ;;  %vm3117_vm5 = vcmp.eq.s32.totalorder %v8791_v18, 6 }
 0x385   : > { %2973 = vperm.xlu0 %7389, %v2906_v57   ;;  %v2909_v57 = vsel %vm2876_vm6, 1, %v14512_v52  ;;  %vm3121_vm6 = vcmp.eq.s32.totalorder %v8833_v3, 6 }
 0x386   : > { %v9055_v17 = vpop.permute.xlu1 %2688  ;;  %v9057_v5 = vpop.permute.xlu2 %2718 }
 0x387   : > { %14561 = vst [vmem:[#allocation168_spill] sm:$0xff] %v9055_v17  ;;  %v9064_v30 = vpop.permute.xlu0 %2685 }
 0x388   : > { %14562 = vst [vmem:[#allocation169_spill] sm:$0xff] %v9057_v5 }
 0x389   : > { %14563 = vst [vmem:[#allocation170_spill] sm:$0xff] %v9064_v30 }
 0x38c   : > { %2985 = vperm.xlu1 %7390, %v2910_v63   ;;  %2988 = vperm.xlu2 %7391, %v2911_v51   ;;  %v2913_v63 = vsel %vm2880_vm7, 1, %v14512_v52  ;;  %v2914_v51 = vsel %vm2881_vm8, 1, %v14512_v52  ;;  %vm3122_vm7 = vcmp.eq.s32.totalorder %v8826_v47, 6  ;;  %vm3120_vm8 = vcmp.eq.s32.totalorder %v8976_v23, 6 }
 0x38d   : > { %2982 = vperm.xlu0 %7389, %v2909_v57   ;;  %v2912_v57 = vsel %vm2879_vm9, 1, %v14512_v52  ;;  %vm3124_vm9 = vcmp.eq.s32.totalorder %v8848_v58, 6 }
 0x38e   : > { %v9073_v5 = vpop.permute.xlu1 %2697  ;;  %v9075_v17 = vpop.permute.xlu2 %2727 }
 0x38f   : > { %14564 = vst [vmem:[#allocation171_spill] sm:$0xff] %v9073_v5  ;;  %v9082_v30 = vpop.permute.xlu0 %2694 }
 0x390   : > { %14565 = vst [vmem:[#allocation172_spill] sm:$0xff] %v9075_v17 }
 0x391   : > { %14566 = vst [vmem:[#allocation173_spill] sm:$0xff] %v9082_v30 }
 0x394   : > { %2994 = vperm.xlu1 %7390, %v2913_v63   ;;  %2997 = vperm.xlu2 %7391, %v2914_v51   ;;  %v2916_v63 = vsel %vm2883_vm10, 1, %v14512_v52  ;;  %v2917_v51 = vsel %vm2884_vm11, 1, %v14512_v52  ;;  %vm3125_vm10 = vcmp.eq.s32.totalorder %v9013_v32, 6  ;;  %vm3123_vm11 = vcmp.eq.s32.totalorder %v8991_v11, 6 }
 0x395   : > { %2991 = vperm.xlu0 %7389, %v2912_v57   ;;  %v2915_v57 = vsel %vm2882_vm12, 1, %v14512_v52  ;;  %vm3127_vm12 = vcmp.eq.s32.totalorder %v8863_v53, 6 }
 0x396   : > { %v9091_v17 = vpop.permute.xlu1 %2706  ;;  %v9093_v5 = vpop.permute.xlu2 %2736 }
 0x397   : > { %14567 = vst [vmem:[#allocation174_spill] sm:$0xff] %v9091_v17  ;;  %v9100_v30 = vpop.permute.xlu0 %2703 }
 0x398   : > { %14568 = vst [vmem:[#allocation175_spill] sm:$0xff] %v9093_v5 }
 0x399   : > { %14569 = vst [vmem:[#allocation176_spill] sm:$0xff] %v9100_v30 }
 0x39c   : > { %3003 = vperm.xlu1 %7390, %v2916_v63   ;;  %3006 = vperm.xlu2 %7391, %v2917_v51   ;;  %v2919_v63 = vsel %vm2886_vm13, 1, %v14512_v52  ;;  %v2920_v51 = vsel %vm2887_vm14, 1, %v14512_v52  ;;  %vm3128_vm13 = vcmp.eq.s32.totalorder %v9031_v12, 6  ;;  %vm3126_vm14 = vcmp.eq.s32.totalorder %v9006_v46, 6 }
 0x39d   : > { %3000 = vperm.xlu0 %7389, %v2915_v57   ;;  %v2918_v57 = vsel %vm2885_vm15, 1, %v14512_v52  ;;  %vm3130_vm15 = vcmp.eq.s32.totalorder %v8878_v59, 6 }
 0x39e   : > { %v9109_v5 = vpop.permute.xlu1 %2715  ;;  %v9111_v17 = vpop.permute.xlu2 %2745 }
 0x39f   : > { %14570 = vst [vmem:[#allocation177_spill] sm:$0xff] %v9109_v5  ;;  %v9118_v30 = vpop.permute.xlu0 %2712 }
 0x3a0   : > { %14571 = vst [vmem:[#allocation178_spill] sm:$0xff] %v9111_v17 }
 0x3a1   : > { %14572 = vst [vmem:[#allocation179_spill] sm:$0xff] %v9118_v30 }
 0x3a4   : > { %3012 = vperm.xlu1 %7390, %v2919_v63   ;;  %3015 = vperm.xlu2 %7391, %v2920_v51   ;;  %v3147_v63 = vsel %vm3114_vm2, 1, %v14512_v52  ;;  %vm3133_vm2 = vcmp.eq.s32.totalorder %v8893_v1, 6 }
 0x3a5   : > { %3009 = vperm.xlu0 %7389, %v2918_v57  }
 0x3a6   : > { %v9127_v17 = vpop.permute.xlu1 %2724  ;;  %v9129_v5 = vpop.permute.xlu2 %2754 }
 0x3a7   : > { %14573 = vst [vmem:[#allocation180_spill] sm:$0xff] %v9127_v17  ;;  %v9133_v30 = vpop.permute.xlu0 %2721  ;;  %v3152_v17 = vsel %vm3119_vm4, 1, %v14512_v52  ;;  %vm3132_vm4 = vcmp.eq.s32.totalorder %v9042_v45, 6 }
 0x3a8   : > { %14574 = vst [vmem:[#allocation181_spill] sm:$0xff] %v9129_v5  ;;  %v3151_v5 = vsel %vm3118_vm3, 1, %v14512_v52  ;;  %vm3134_vm3 = vcmp.eq.s32.totalorder %v9067_v41, 6 }
 0x3a9   : > { %14575 = vst [vmem:[#allocation182_spill] sm:$0xff] %v9133_v30 }
 0x3ac   : > { %3183 = vperm.xlu1 %7390, %v3148_v55   ;;  %3186 = vperm.xlu2 %7391, %v3149_v10   ;;  %v3150_v55 = vsel %vm3117_vm5, 1, %v14512_v52  ;;  %vm3136_vm5 = vcmp.eq.s32.totalorder %v8908_v7, 6 }
 0x3ad   : > { %3180 = vperm.xlu0 %7389, %v3147_v63  }
 0x3ae   : > { %v9139_v51 = vpop.permute.xlu1 %2733  ;;  %v9141_v57 = vpop.permute.xlu2 %2925 }
 0x3af   : > { %14576 = vst [vmem:[#allocation183_spill] sm:$0xff] %v9139_v51  ;;  %v9145_v30 = vpop.permute.xlu0 %2730  ;;  %v3155_v51 = vsel %vm3122_vm7, 1, %v14512_v52  ;;  %vm3135_vm7 = vcmp.eq.s32.totalorder %v9060_v40, 6 }
 0x3b0   : > { %14577 = vst [vmem:[#allocation184_spill] sm:$0xff] %v9141_v57  ;;  %v3154_v57 = vsel %vm3121_vm6, 1, %v14512_v52  ;;  %vm3137_vm6 = vcmp.eq.s32.totalorder %v9085_v38, 6 }
 0x3b1   : > { %14578 = vst [vmem:[#allocation185_spill] sm:$0xff] %v9145_v30 }
 0x3b4   : > { %3192 = vperm.xlu1 %7390, %v3151_v5   ;;  %3195 = vperm.xlu2 %7391, %v3152_v17   ;;  %v3153_v5 = vsel %vm3120_vm8, 1, %v14512_v52  ;;  %vm3139_vm8 = vcmp.eq.s32.totalorder %v8923_v13, 6 }
 0x3b5   : > { %3189 = vperm.xlu0 %7389, %v3150_v55  }
 0x3b6   : > { %v9151_v10 = vpop.permute.xlu1 %2742  ;;  %v9153_v63 = vpop.permute.xlu2 %2934 }
 0x3b7   : > { %14579 = vst [vmem:[#allocation186_spill] sm:$0xff] %v9151_v10  ;;  %v9157_v30 = vpop.permute.xlu0 %2739  ;;  %v3158_v10 = vsel %vm3125_vm10, 1, %v14512_v52  ;;  %vm3138_vm10 = vcmp.eq.s32.totalorder %v9078_v14, 6 }
 0x3b8   : > { %14580 = vst [vmem:[#allocation187_spill] sm:$0xff] %v9153_v63  ;;  %v3157_v63 = vsel %vm3124_vm9, 1, %v14512_v52  ;;  %vm3140_vm9 = vcmp.eq.s32.totalorder %v9103_v50, 6 }
 0x3b9   : > { %14581 = vst [vmem:[#allocation188_spill] sm:$0xff] %v9157_v30 }
 0x3bc   : > { %3201 = vperm.xlu1 %7390, %v3154_v57   ;;  %3204 = vperm.xlu2 %7391, %v3155_v51   ;;  %v3156_v57 = vsel %vm3123_vm11, 1, %v14512_v52  ;;  %vm3142_vm11 = vcmp.eq.s32.totalorder %v8938_v19, 6 }
 0x3bd   : > { %3198 = vperm.xlu0 %7389, %v3153_v5  }
 0x3be   : > { %v9163_v17 = vpop.permute.xlu1 %2751  ;;  %v9165_v55 = vpop.permute.xlu2 %2943 }
 0x3bf   : > { %14582 = vst [vmem:[#allocation189_spill] sm:$0xff] %v9163_v17  ;;  %v9169_v30 = vpop.permute.xlu0 %2748  ;;  %v3161_v17 = vsel %vm3128_vm13, 1, %v14512_v52  ;;  %vm3141_vm13 = vcmp.eq.s32.totalorder %v9096_v33, 6 }
 0x3c0   : > { %14583 = vst [vmem:[#allocation190_spill] sm:$0xff] %v9165_v55  ;;  %v3160_v55 = vsel %vm3127_vm12, 1, %v14512_v52  ;;  %vm3143_vm12 = vcmp.eq.s32.totalorder %v9121_v37, 6 }
 0x3c1   : > { %14584 = vst [vmem:[#allocation191_spill] sm:$0xff] %v9169_v30 }
 0x3c4   : > { %3210 = vperm.xlu1 %7390, %v3157_v63   ;;  %3213 = vperm.xlu2 %7391, %v3158_v10   ;;  %v3159_v63 = vsel %vm3126_vm14, 1, %v14512_v52  ;;  %vm3145_vm14 = vcmp.eq.s32.totalorder %v8953_v25, 6 }
 0x3c5   : > { %3207 = vperm.xlu0 %7389, %v3156_v57  }
 0x3c6   : > { %v9175_v51 = vpop.permute.xlu1 %2922  ;;  %v9177_v5 = vpop.permute.xlu2 %2952 }
 0x3c7   : > { %14585 = vst [vmem:[#allocation192_spill] sm:$0xff] %v9175_v51  ;;  %v9181_v30 = vpop.permute.xlu0 %2757  ;;  %v3164_v51 = vsel %vm3131_vm0, 1, %v14512_v52  ;;  %vm3144_vm0 = vcmp.eq.s32.totalorder %v9114_v56, 6 }
 0x3c8   : > { %14586 = vst [vmem:[#allocation193_spill] sm:$0xff] %v9177_v5  ;;  %v3163_v5 = vsel %vm3130_vm15, 1, %v14512_v52  ;;  %vm3372_vm15 = vcmp.eq.s32.totalorder %v8773_v24, 7 }
 0x3c9   : > { %14587 = vst [vmem:[#allocation194_spill] sm:$0xff] %v9181_v30 }
 0x3cc   : > { %3219 = vperm.xlu1 %7390, %v3160_v55   ;;  %3222 = vperm.xlu2 %7391, %v3161_v17   ;;  %v3162_v55 = vsel %vm3129_vm1, 1, %v14512_v52  ;;  %vm3374_vm1 = vcmp.eq.s32.totalorder %v8787_v6, 7 }
 0x3cd   : > { %3216 = vperm.xlu0 %7389, %v3159_v63  }
 0x3ce   : > { %v9187_v10 = vpop.permute.xlu1 %2931  ;;  %v9189_v57 = vpop.permute.xlu2 %2961 }
 0x3cf   : > { %14588 = vst [vmem:[#allocation195_spill] sm:$0xff] %v9187_v10  ;;  %v9193_v30 = vpop.permute.xlu0 %2928  ;;  %v3167_v10 = vsel %vm3134_vm3, 1, %v14512_v52  ;;  %vm3373_vm3 = vcmp.eq.s32.totalorder %v8797_v35, 7 }
 0x3d0   : > { %14589 = vst [vmem:[#allocation196_spill] sm:$0xff] %v9189_v57  ;;  %v3166_v57 = vsel %vm3133_vm2, 1, %v14512_v52  ;;  %vm3375_vm2 = vcmp.eq.s32.totalorder %v8791_v18, 7 }
 0x3d1   : > { %14590 = vst [vmem:[#allocation197_spill] sm:$0xff] %v9193_v30 }
 0x3d4   : > { %3228 = vperm.xlu1 %7390, %v3163_v5   ;;  %3231 = vperm.xlu2 %7391, %v3164_v51   ;;  %v3165_v5 = vsel %vm3132_vm4, 1, %v14512_v52  ;;  %vm3377_vm4 = vcmp.eq.s32.totalorder %v8808_v39, 7 }
 0x3d5   : > { %3225 = vperm.xlu0 %7389, %v3162_v55   ;;  %v3410_v6 = vsel %vm3377_vm4, 1, %v14512_v52  ;;  %vm3393_vm4 = vcmp.eq.s32.totalorder %v9060_v40, 7 }
 0x3d6   : > { %v9199_v17 = vpop.permute.xlu1 %2940  ;;  %v9201_v63 = vpop.permute.xlu2 %2970 }
 0x3d7   : > { %14591 = vst [vmem:[#allocation198_spill] sm:$0xff] %v9199_v17  ;;  %v9205_v30 = vpop.permute.xlu0 %2937  ;;  %v3170_v17 = vsel %vm3137_vm6, 1, %v14512_v52  ;;  %vm3376_vm6 = vcmp.eq.s32.totalorder %v8815_v34, 7 }
 0x3d8   : > { %14592 = vst [vmem:[#allocation199_spill] sm:$0xff] %v9201_v63  ;;  %v3169_v63 = vsel %vm3136_vm5, 1, %v14512_v52  ;;  %vm3378_vm5 = vcmp.eq.s32.totalorder %v8976_v23, 7 }
 0x3d9   : > { %14593 = vst [vmem:[#allocation200_spill] sm:$0xff] %v9205_v30 }
 0x3dc   : > { %3237 = vperm.xlu1 %7390, %v3166_v57   ;;  %3240 = vperm.xlu2 %7391, %v3167_v10   ;;  %v3168_v57 = vsel %vm3135_vm7, 1, %v14512_v52  ;;  %vm3380_vm7 = vcmp.eq.s32.totalorder %v8826_v47, 7 }
 0x3dd   : > { %3234 = vperm.xlu0 %7389, %v3165_v5  }
 0x3de   : > { %v9211_v51 = vpop.permute.xlu1 %2949  ;;  %v9213_v55 = vpop.permute.xlu2 %2979 }
 0x3df   : > { %14594 = vst [vmem:[#allocation201_spill] sm:$0xff] %v9211_v51  ;;  %v9217_v30 = vpop.permute.xlu0 %2946  ;;  %v3173_v51 = vsel %vm3140_vm9, 1, %v14512_v52  ;;  %vm3379_vm9 = vcmp.eq.s32.totalorder %v8833_v3, 7 }
 0x3e0   : > { %14595 = vst [vmem:[#allocation202_spill] sm:$0xff] %v9213_v55  ;;  %v3172_v55 = vsel %vm3139_vm8, 1, %v14512_v52  ;;  %vm3381_vm8 = vcmp.eq.s32.totalorder %v8991_v11, 7 }
 0x3e1   : > { %14596 = vst [vmem:[#allocation203_spill] sm:$0xff] %v9217_v30 }
 0x3e4   : > { %3246 = vperm.xlu1 %7390, %v3169_v63   ;;  %3249 = vperm.xlu2 %7391, %v3170_v17   ;;  %v3171_v63 = vsel %vm3138_vm10, 1, %v14512_v52  ;;  %vm3383_vm10 = vcmp.eq.s32.totalorder %v9013_v32, 7 }
 0x3e5   : > { %3243 = vperm.xlu0 %7389, %v3168_v57  }
 0x3e6   : > { %v9223_v10 = vpop.permute.xlu1 %2958  ;;  %v9225_v5 = vpop.permute.xlu2 %2988 }
 0x3e7   : > { %14597 = vst [vmem:[#allocation204_spill] sm:$0xff] %v9223_v10  ;;  %v9229_v30 = vpop.permute.xlu0 %2955  ;;  %v3176_v10 = vsel %vm3143_vm12, 1, %v14512_v52  ;;  %vm3382_vm12 = vcmp.eq.s32.totalorder %v8848_v58, 7 }
 0x3e8   : > { %14598 = vst [vmem:[#allocation205_spill] sm:$0xff] %v9225_v5  ;;  %v3175_v5 = vsel %vm3142_vm11, 1, %v14512_v52  ;;  %vm3384_vm11 = vcmp.eq.s32.totalorder %v9006_v46, 7 }
 0x3e9   : > { %14599 = vst [vmem:[#allocation206_spill] sm:$0xff] %v9229_v30 }
 0x3ec   : > { %3255 = vperm.xlu1 %7390, %v3172_v55   ;;  %3258 = vperm.xlu2 %7391, %v3173_v51   ;;  %v3174_v55 = vsel %vm3141_vm13, 1, %v14512_v52  ;;  %vm3386_vm13 = vcmp.eq.s32.totalorder %v9031_v12, 7 }
 0x3ed   : > { %3252 = vperm.xlu0 %7389, %v3171_v63  }
 0x3ee   : > { %v9235_v17 = vpop.permute.xlu1 %2967  ;;  %v9237_v57 = vpop.permute.xlu2 %2997 }
 0x3ef   : > { %14600 = vst [vmem:[#allocation207_spill] sm:$0xff] %v9235_v17  ;;  %v9241_v30 = vpop.permute.xlu0 %2964  ;;  %v3405_v17 = vsel %vm3372_vm15, 1, %v14512_v52  ;;  %vm3385_vm15 = vcmp.eq.s32.totalorder %v8863_v53, 7 }
 0x3f0   : > { %14601 = vst [vmem:[#allocation208_spill] sm:$0xff] %v9237_v57  ;;  %v3178_v57 = vsel %vm3145_vm14, 1, %v14512_v52  ;;  %vm3387_vm14 = vcmp.eq.s32.totalorder %v9024_v29, 7 }
 0x3f1   : > { %14602 = vst [vmem:[#allocation209_spill] sm:$0xff] %v9241_v30 }
 0x3f4   : > { %3264 = vperm.xlu1 %7390, %v3175_v5   ;;  %3267 = vperm.xlu2 %7391, %v3176_v10   ;;  %v3177_v5 = vsel %vm3144_vm0, 1, %v14512_v52  ;;  %vm3389_vm0 = vcmp.eq.s32.totalorder %v9049_v0, 7 }
 0x3f5   : > { %3261 = vperm.xlu0 %7389, %v3174_v55  }
 0x3f6   : > { %v9247_v51 = vpop.permute.xlu1 %2976  ;;  %v9249_v63 = vpop.permute.xlu2 %3006 }
 0x3f7   : > { %14603 = vst [vmem:[#allocation210_spill] sm:$0xff] %v9247_v51  ;;  %v9253_v30 = vpop.permute.xlu0 %2973 }
 0x3f8   : > { %14604 = vst [vmem:[#allocation211_spill] sm:$0xff] %v9249_v63  ;;  %v3408_v63 = vsel %vm3375_vm2, 1, %v14512_v52  ;;  %vm3388_vm2 = vcmp.eq.s32.totalorder %v8878_v59, 7 }
 0x3f9   : > { %14605 = vst [vmem:[#allocation212_spill] sm:$0xff] %v9253_v30  ;;  %v3407_v30 = vsel %vm3374_vm1, 1, %v14512_v52  ;;  %vm3390_vm1 = vcmp.eq.s32.totalorder %v9042_v45, 7 }
 0x3fc   : > { %3273 = vperm.xlu1 %7390, %v3178_v57   ;;  %3438 = vperm.xlu2 %7391, %v3405_v17   ;;  %v3406_v57 = vsel %vm3373_vm3, 1, %v14512_v52  ;;  %vm3392_vm3 = vcmp.eq.s32.totalorder %v9067_v41, 7 }
 0x3fd   : > { %3270 = vperm.xlu0 %7389, %v3177_v5  }
 0x3fe   : > { %v9259_v10 = vpop.permute.xlu1 %2985  ;;  %v9261_v55 = vpop.permute.xlu2 %3015 }
 0x3ff   : > { %14606 = vst [vmem:[#allocation213_spill] sm:$0xff] %v9259_v10  ;;  %v9265_v24 = vpop.permute.xlu0 %2982 }
 0x400   : > { %14607 = vst [vmem:[#allocation214_spill] sm:$0xff] %v9261_v55 }
 0x401   : > { %14608 = vst [vmem:[#allocation215_spill] sm:$0xff] %v9265_v24  ;;  %v3411_v24 = vsel %vm3378_vm5, 1, %v14512_v52  ;;  %vm3391_vm5 = vcmp.eq.s32.totalorder %v8893_v1, 7 }
 0x404   : > { %3444 = vperm.xlu1 %7390, %v3407_v30   ;;  %3447 = vperm.xlu2 %7391, %v3408_v63   ;;  %v3409_v30 = vsel %vm3376_vm6, 1, %v14512_v52  ;;  %vm3395_vm6 = vcmp.eq.s32.totalorder %v9085_v38, 7 }
 0x405   : > { %3441 = vperm.xlu0 %7389, %v3406_v57  }
 0x406   : > { %v9271_v17 = vpop.permute.xlu1 %2994  ;;  %v9273_v5 = vpop.permute.xlu2 %3186 }
 0x407   : > { %14609 = vst [vmem:[#allocation216_spill] sm:$0xff] %v9271_v17  ;;  %v9277_v18 = vpop.permute.xlu0 %2991 }
 0x408   : > { %14610 = vst [vmem:[#allocation217_spill] sm:$0xff] %v9273_v5  ;;  %v3414_v5 = vsel %vm3381_vm8, 1, %v14512_v52  ;;  %vm3394_vm8 = vcmp.eq.s32.totalorder %v8908_v7, 7 }
 0x409   : > { %14611 = vst [vmem:[#allocation218_spill] sm:$0xff] %v9277_v18  ;;  %v3413_v18 = vsel %vm3380_vm7, 1, %v14512_v52  ;;  %vm3396_vm7 = vcmp.eq.s32.totalorder %v9078_v14, 7 }
 0x40c   : > { %3453 = vperm.xlu1 %7390, %v3410_v6   ;;  %3456 = vperm.xlu2 %7391, %v3411_v24   ;;  %v3412_v6 = vsel %vm3379_vm9, 1, %v14512_v52  ;;  %vm3398_vm9 = vcmp.eq.s32.totalorder %v9103_v50, 7 }
 0x40d   : > { %3450 = vperm.xlu0 %7389, %v3409_v30  }
 0x40e   : > { %v9283_v63 = vpop.permute.xlu1 %3003  ;;  %v9285_v57 = vpop.permute.xlu2 %3195 }
 0x40f   : > { %14612 = vst [vmem:[#allocation219_spill] sm:$0xff] %v9283_v63  ;;  %v9289_v39 = vpop.permute.xlu0 %3000 }
 0x410   : > { %14613 = vst [vmem:[#allocation220_spill] sm:$0xff] %v9285_v57  ;;  %v3417_v57 = vsel %vm3384_vm11, 1, %v14512_v52  ;;  %vm3397_vm11 = vcmp.eq.s32.totalorder %v8923_v13, 7 }
 0x411   : > { %14614 = vst [vmem:[#allocation221_spill] sm:$0xff] %v9289_v39  ;;  %v3416_v39 = vsel %vm3383_vm10, 1, %v14512_v52  ;;  %vm3399_vm10 = vcmp.eq.s32.totalorder %v9096_v33, 7 }
 0x414   : > { %3462 = vperm.xlu1 %7390, %v3413_v18   ;;  %3465 = vperm.xlu2 %7391, %v3414_v5   ;;  %v3415_v18 = vsel %vm3382_vm12, 1, %v14512_v52  ;;  %vm3401_vm12 = vcmp.eq.s32.totalorder %v9121_v37, 7 }
 0x415   : > { %3459 = vperm.xlu0 %7389, %v3412_v6  }
 0x416   : > { %v9295_v24 = vpop.permute.xlu1 %3012  ;;  %v9297_v30 = vpop.permute.xlu2 %3204 }
 0x417   : > { %14615 = vst [vmem:[#allocation222_spill] sm:$0xff] %v9295_v24  ;;  %v9301_v47 = vpop.permute.xlu0 %3009  ;;  %v3420_v24 = vsel %vm3387_vm14, 1, %v14512_v52  ;;  %vm3400_vm14 = vcmp.eq.s32.totalorder %v8938_v19, 7 }
 0x418   : > { %14616 = vst [vmem:[#allocation223_spill] sm:$0xff] %v9297_v30  ;;  %v3419_v30 = vsel %vm3386_vm13, 1, %v14512_v52  ;;  %vm3402_vm13 = vcmp.eq.s32.totalorder %v9114_v56, 7 }
 0x419   : > { %14617 = vst [vmem:[#allocation224_spill] sm:$0xff] %v9301_v47 }
 0x41c   : > { %3471 = vperm.xlu1 %7390, %v3416_v39   ;;  %3474 = vperm.xlu2 %7391, %v3417_v57   ;;  %v3418_v39 = vsel %vm3385_vm15, 1, %v14512_v52 }
 0x41d   : > { %3468 = vperm.xlu0 %7389, %v3415_v18  }
 0x41e   : > { %v9307_v5 = vpop.permute.xlu1 %3183  ;;  %v9309_v6 = vpop.permute.xlu2 %3213 }
 0x41f   : > { %14618 = vst [vmem:[#allocation225_spill] sm:$0xff] %v9307_v5  ;;  %v9313_v47 = vpop.permute.xlu0 %3180  ;;  %v3423_v5 = vsel %vm3390_vm1, 1, %v14512_v52  ;;  %vm3403_vm1 = vcmp.eq.s32.totalorder %v8953_v25, 7 }
 0x420   : > { %14619 = vst [vmem:[#allocation226_spill] sm:$0xff] %v9309_v6  ;;  %v3422_v6 = vsel %vm3389_vm0, 1, %v14512_v52  ;;  %vm3631_vm0 = vcmp.eq.s32.totalorder %v8797_v35, 8 }
 0x421   : > { %14620 = vst [vmem:[#allocation227_spill] sm:$0xff] %v9313_v47 }
 0x424   : > { %3480 = vperm.xlu1 %7390, %v3419_v30   ;;  %3483 = vperm.xlu2 %7391, %v3420_v24   ;;  %v3421_v30 = vsel %vm3388_vm2, 1, %v14512_v52 }
 0x425   : > { %3477 = vperm.xlu0 %7389, %v3418_v39  }
 0x426   : > { %v9319_v57 = vpop.permute.xlu1 %3192  ;;  %v9321_v18 = vpop.permute.xlu2 %3222 }
 0x427   : > { %14621 = vst [vmem:[#allocation228_spill] sm:$0xff] %v9319_v57  ;;  %v9325_v47 = vpop.permute.xlu0 %3189  ;;  %v3426_v57 = vsel %vm3393_vm4, 1, %v14512_v52 }
 0x428   : > { %14622 = vst [vmem:[#allocation229_spill] sm:$0xff] %v9321_v18  ;;  %v3425_v18 = vsel %vm3392_vm3, 1, %v14512_v52  ;;  %vm3634_vm3 = vcmp.eq.s32.totalorder %v8815_v34, 8 }
 0x429   : > { %14623 = vst [vmem:[#allocation230_spill] sm:$0xff] %v9325_v47 }
 0x42c   : > { %3489 = vperm.xlu1 %7390, %v3422_v6   ;;  %3492 = vperm.xlu2 %7391, %v3423_v5   ;;  %v3424_v6 = vsel %vm3391_vm5, 1, %v14512_v52  ;;  %vm3636_vm5 = vcmp.eq.s32.totalorder %v8976_v23, 8 }
 0x42d   : > { %3486 = vperm.xlu0 %7389, %v3421_v30   ;;  %v3669_v63 = vsel %vm3636_vm5, 1, %v14512_v52  ;;  %vm3652_vm5 = vcmp.eq.s32.totalorder %v8908_v7, 8 }
 0x42e   : > { %v9331_v24 = vpop.permute.xlu1 %3201  ;;  %v9333_v39 = vpop.permute.xlu2 %3231 }
 0x42f   : > { %14624 = vst [vmem:[#allocation231_spill] sm:$0xff] %v9331_v24  ;;  %v9337_v47 = vpop.permute.xlu0 %3198  ;;  %v3429_v24 = vsel %vm3396_vm7, 1, %v14512_v52 }
 0x430   : > { %14625 = vst [vmem:[#allocation232_spill] sm:$0xff] %v9333_v39  ;;  %v3428_v39 = vsel %vm3395_vm6, 1, %v14512_v52  ;;  %vm3637_vm6 = vcmp.eq.s32.totalorder %v8833_v3, 8 }
 0x431   : > { %14626 = vst [vmem:[#allocation233_spill] sm:$0xff] %v9337_v47 }
 0x434   : > { %3498 = vperm.xlu1 %7390, %v3425_v18   ;;  %3501 = vperm.xlu2 %7391, %v3426_v57   ;;  %v3427_v18 = vsel %vm3394_vm8, 1, %v14512_v52  ;;  %vm3639_vm8 = vcmp.eq.s32.totalorder %v8991_v11, 8 }
 0x435   : > { %3495 = vperm.xlu0 %7389, %v3424_v6  }
 0x436   : > { %v9343_v5 = vpop.permute.xlu1 %3210  ;;  %v9345_v30 = vpop.permute.xlu2 %3240 }
 0x437   : > { %14627 = vst [vmem:[#allocation234_spill] sm:$0xff] %v9343_v5  ;;  %v9349_v47 = vpop.permute.xlu0 %3207  ;;  %v3432_v5 = vsel %vm3399_vm10, 1, %v14512_v52 }
 0x438   : > { %14628 = vst [vmem:[#allocation235_spill] sm:$0xff] %v9345_v30  ;;  %v3431_v30 = vsel %vm3398_vm9, 1, %v14512_v52  ;;  %vm3640_vm9 = vcmp.eq.s32.totalorder %v8848_v58, 8 }
 0x439   : > { %14629 = vst [vmem:[#allocation236_spill] sm:$0xff] %v9349_v47 }
 0x43c   : > { %3507 = vperm.xlu1 %7390, %v3428_v39   ;;  %3510 = vperm.xlu2 %7391, %v3429_v24   ;;  %v3430_v39 = vsel %vm3397_vm11, 1, %v14512_v52  ;;  %vm3642_vm11 = vcmp.eq.s32.totalorder %v9006_v46, 8 }
 0x43d   : > { %3504 = vperm.xlu0 %7389, %v3427_v18  }
 0x43e   : > { %v9355_v57 = vpop.permute.xlu1 %3219  ;;  %v9357_v6 = vpop.permute.xlu2 %3249 }
 0x43f   : > { %14630 = vst [vmem:[#allocation237_spill] sm:$0xff] %v9355_v57  ;;  %v9361_v47 = vpop.permute.xlu0 %3216  ;;  %v3435_v57 = vsel %vm3402_vm13, 1, %v14512_v52  ;;  %vm3641_vm13 = vcmp.eq.s32.totalorder %v9013_v32, 8 }
 0x440   : > { %14631 = vst [vmem:[#allocation238_spill] sm:$0xff] %v9357_v6  ;;  %v3434_v6 = vsel %vm3401_vm12, 1, %v14512_v52  ;;  %vm3643_vm12 = vcmp.eq.s32.totalorder %v8863_v53, 8 }
 0x441   : > { %14632 = vst [vmem:[#allocation239_spill] sm:$0xff] %v9361_v47 }
 0x444   : > { %3516 = vperm.xlu1 %7390, %v3431_v30   ;;  %3519 = vperm.xlu2 %7391, %v3432_v5   ;;  %v3433_v5 = vsel %vm3400_vm14, 1, %v14512_v52  ;;  %vm3645_vm14 = vcmp.eq.s32.totalorder %v9024_v29, 8 }
 0x445   : > { %3513 = vperm.xlu0 %7389, %v3430_v39   ;;  %v3678_v46 = vsel %vm3645_vm14, 1, %v14512_v52  ;;  %vm3661_vm14 = vcmp.eq.s32.totalorder %v8953_v25, 8 }
 0x446   : > { %v9367_v24 = vpop.permute.xlu1 %3228  ;;  %v9369_v18 = vpop.permute.xlu2 %3258 }
 0x447   : > { %14633 = vst [vmem:[#allocation240_spill] sm:$0xff] %v9367_v24  ;;  %v9373_v47 = vpop.permute.xlu0 %3225  ;;  %v9399_v24 = vld [vmem:[%s7996_s22 + $0x18] sm:$0xff] }
 0x448   : > { %14634 = vst [vmem:[#allocation241_spill] sm:$0xff] %v9369_v18  ;;  %v9384_v18 = vld [vmem:[%s7996_s22] sm:$0xff]  ;;  %vm3633_vm2 = vcmp.eq.s32.totalorder %v9399_v24, 8 }
 0x449   : > { %14635 = vst [vmem:[#allocation242_spill] sm:$0xff] %v9373_v47  ;;  %vm3630_vm15 = vcmp.eq.s32.totalorder %v9384_v18, 8 }
 0x44c   : > { %3525 = vperm.xlu1 %7390, %v3434_v6   ;;  %3528 = vperm.xlu2 %7391, %v3435_v57   ;;  %v3663_v6 = vsel %vm3630_vm15, 1, %v14512_v52  ;;  %v3664_v57 = vsel %vm3631_vm0, 1, %v14512_v52  ;;  %vm3646_vm15 = vcmp.eq.s32.totalorder %v8878_v59, 8  ;;  %vm3644_vm0 = vcmp.eq.s32.totalorder %v9031_v12, 8 }
 0x44d   : > { %3522 = vperm.xlu0 %7389, %v3433_v5   ;;  %v3436_v5 = vsel %vm3403_vm1, 1, %v14512_v52  ;;  %vm3648_vm1 = vcmp.eq.s32.totalorder %v9042_v45, 8 }
 0x44e   : > { %v9379_v30 = vpop.permute.xlu1 %3237  ;;  %v9381_v39 = vpop.permute.xlu2 %3267  ;;  %v3681_v29 = vsel %vm3648_vm1, 1, %v14512_v52 }
 0x44f   : > { %14636 = vst [vmem:[#allocation243_spill] sm:$0xff] %v9379_v30  ;;  %v9388_v47 = vpop.permute.xlu0 %3234 }
 0x450   : > { %14637 = vst [vmem:[#allocation244_spill] sm:$0xff] %v9381_v39 }
 0x451   : > { %14638 = vst [vmem:[#allocation245_spill] sm:$0xff] %v9388_v47  ;;  %v9406_v47 = vld [vmem:[%s7996_s22 + $0x10] sm:$0xff] }
 0x452   : > { %vm3632_vm4 = vcmp.eq.s32.totalorder %v9406_v47, 8  ;;  %vm3890_vm1 = vcmp.eq.s32.totalorder %v9406_v47, 9 }
 0x454   : > { %3696 = vperm.xlu1 %7390, %v3663_v6   ;;  %3699 = vperm.xlu2 %7391, %v3664_v57   ;;  %v3666_v6 = vsel %vm3633_vm2, 1, %v14512_v52  ;;  %v3667_v57 = vsel %vm3634_vm3, 1, %v14512_v52  ;;  %vm3649_vm2 = vcmp.eq.s32.totalorder %v8893_v1, 8  ;;  %vm3647_vm3 = vcmp.eq.s32.totalorder %v9049_v0, 8 }
 0x455   : > { %3531 = vperm.xlu0 %7389, %v3436_v5   ;;  %v3665_v5 = vsel %vm3632_vm4, 1, %v14512_v52  ;;  %vm3651_vm4 = vcmp.eq.s32.totalorder %v9060_v40, 8 }
 0x456   : > { %v9394_v39 = vpop.permute.xlu1 %3246  ;;  %v9396_v30 = vpop.permute.xlu2 %3438  ;;  %v3684_v1 = vsel %vm3651_vm4, 1, %v14512_v52 }
 0x457   : > { %14639 = vst [vmem:[#allocation246_spill] sm:$0xff] %v9394_v39  ;;  %v9403_v35 = vpop.permute.xlu0 %3243 }
 0x458   : > { %14640 = vst [vmem:[#allocation247_spill] sm:$0xff] %v9396_v30 }
 0x459   : > { %14641 = vst [vmem:[#allocation248_spill] sm:$0xff] %v9403_v35  ;;  %v9421_v35 = vld [vmem:[%s7996_s22 + $0x28] sm:$0xff] }
 0x45a   : > { %vm3635_vm7 = vcmp.eq.s32.totalorder %v9421_v35, 8  ;;  %vm3893_vm4 = vcmp.eq.s32.totalorder %v9421_v35, 9 }
 0x45c   : > { %3705 = vperm.xlu1 %7390, %v3666_v6   ;;  %3708 = vperm.xlu2 %7391, %v3667_v57   ;;  %v3670_v6 = vsel %vm3637_vm6, 1, %v14512_v52  ;;  %v3668_v57 = vsel %vm3635_vm7, 1, %v14512_v52  ;;  %vm3650_vm6 = vcmp.eq.s32.totalorder %v9067_v41, 8  ;;  %vm3654_vm7 = vcmp.eq.s32.totalorder %v9078_v14, 8 }
 0x45d   : > { %3702 = vperm.xlu0 %7389, %v3665_v5   ;;  %v3687_v7 = vsel %vm3654_vm7, 1, %v14512_v52 }
 0x45e   : > { %v9412_v30 = vpop.permute.xlu1 %3255  ;;  %v9414_v39 = vpop.permute.xlu2 %3447 }
 0x45f   : > { %14642 = vst [vmem:[#allocation249_spill] sm:$0xff] %v9412_v30  ;;  %v9418_v34 = vpop.permute.xlu0 %3252 }
 0x460   : > { %14643 = vst [vmem:[#allocation250_spill] sm:$0xff] %v9414_v39  ;;  %v3672_v39 = vsel %vm3639_vm8, 1, %v14512_v52  ;;  %vm3655_vm8 = vcmp.eq.s32.totalorder %v8923_v13, 8 }
 0x461   : > { %14644 = vst [vmem:[#allocation251_spill] sm:$0xff] %v9418_v34  ;;  %v9436_v34 = vld [vmem:[%s7996_s22 + $0x40] sm:$0xff] }
 0x462   : > { %vm3638_vm10 = vcmp.eq.s32.totalorder %v9436_v34, 8  ;;  %vm3896_vm7 = vcmp.eq.s32.totalorder %v9436_v34, 9 }
 0x464   : > { %3714 = vperm.xlu1 %7390, %v3669_v63   ;;  %3717 = vperm.xlu2 %7391, %v3670_v6   ;;  %v3673_v63 = vsel %vm3640_vm9, 1, %v14512_v52  ;;  %v3671_v6 = vsel %vm3638_vm10, 1, %v14512_v52  ;;  %vm3653_vm9 = vcmp.eq.s32.totalorder %v9085_v38, 8  ;;  %vm3657_vm10 = vcmp.eq.s32.totalorder %v9096_v33, 8 }
 0x465   : > { %3711 = vperm.xlu0 %7389, %v3668_v57   ;;  %v3690_v13 = vsel %vm3657_vm10, 1, %v14512_v52  ;;  %vm3899_vm10 = vcmp.eq.s32.totalorder %v9013_v32, 9 }
 0x466   : > { %v9427_v5 = vpop.permute.xlu1 %3264  ;;  %v9429_v23 = vpop.permute.xlu2 %3456 }
 0x467   : > { %14645 = vst [vmem:[#allocation252_spill] sm:$0xff] %v9427_v5  ;;  %v9433_v3 = vpop.permute.xlu0 %3261 }
 0x468   : > { %14646 = vst [vmem:[#allocation253_spill] sm:$0xff] %v9429_v23  ;;  %v3676_v23 = vsel %vm3643_vm12, 1, %v14512_v52  ;;  %vm3656_vm12 = vcmp.eq.s32.totalorder %v9103_v50, 8 }
 0x469   : > { %14647 = vst [vmem:[#allocation254_spill] sm:$0xff] %v9433_v3  ;;  %v3675_v3 = vsel %vm3642_vm11, 1, %v14512_v52  ;;  %vm3658_vm11 = vcmp.eq.s32.totalorder %v8938_v19, 8 }
 0x46c   : > { %3723 = vperm.xlu1 %7390, %v3672_v39   ;;  %3726 = vperm.xlu2 %7391, %v3673_v63   ;;  %v3674_v39 = vsel %vm3641_vm13, 1, %v14512_v52  ;;  %vm3660_vm13 = vcmp.eq.s32.totalorder %v9114_v56, 8  ;;  %v9531_v56 = vld [vmem:[%s7996_s22 + $0x8] sm:$0xff] }
 0x46d   : > { %3720 = vperm.xlu0 %7389, %v3671_v6   ;;  %v3693_v19 = vsel %vm3660_vm13, 1, %v14512_v52  ;;  %vm3902_vm13 = vcmp.eq.s32.totalorder %v9031_v12, 9 }
 0x46e   : > { %v9442_v57 = vpop.permute.xlu1 %3273  ;;  %v9444_v11 = vpop.permute.xlu2 %3465 }
 0x46f   : > { %14648 = vst [vmem:[#allocation255_spill] sm:$0xff] %v9442_v57  ;;  %v9448_v58 = vpop.permute.xlu0 %3270 }
 0x470   : > { %14649 = vst [vmem:[#allocation256_spill] sm:$0xff] %v9444_v11 }
 0x471   : > { %14650 = vst [vmem:[#allocation257_spill] sm:$0xff] %v9448_v58  ;;  %v3679_v58 = vsel %vm3646_vm15, 1, %v14512_v52  ;;  %vm3659_vm15 = vcmp.eq.s32.totalorder %v9121_v37, 8 }
 0x474   : > { %3732 = vperm.xlu1 %7390, %v3675_v3   ;;  %3735 = vperm.xlu2 %7391, %v3676_v23   ;;  %v3677_v3 = vsel %vm3644_vm0, 1, %v14512_v52  ;;  %vm3889_vm0 = vcmp.eq.s32.totalorder %v9531_v56, 9 }
 0x475   : > { %3729 = vperm.xlu0 %7389, %v3674_v39  }
 0x476   : > { %v9454_v63 = vpop.permute.xlu1 %3444  ;;  %v9456_v6 = vpop.permute.xlu2 %3474 }
 0x477   : > { %14651 = vst [vmem:[#allocation258_spill] sm:$0xff] %v9454_v63  ;;  %v9460_v53 = vpop.permute.xlu0 %3441 }
 0x478   : > { %14652 = vst [vmem:[#allocation259_spill] sm:$0xff] %v9456_v6  ;;  %v9712_v6 = vld [vmem:[%s7996_s22 + $0xf0] sm:$0xff] }
 0x479   : > { %14653 = vst [vmem:[#allocation260_spill] sm:$0xff] %v9460_v53  ;;  %v3682_v53 = vsel %vm3649_vm2, 1, %v14512_v52  ;;  %vm3888_vm2 = vcmp.eq.s32.totalorder %v9384_v18, 9 }
 0x47c   : > { %3741 = vperm.xlu1 %7390, %v3678_v46   ;;  %3744 = vperm.xlu2 %7391, %v3679_v58   ;;  %v3680_v46 = vsel %vm3647_vm3, 1, %v14512_v52 }
 0x47d   : > { %3738 = vperm.xlu0 %7389, %v3677_v3  }
 0x47e   : > { %v9466_v23 = vpop.permute.xlu1 %3453  ;;  %v9468_v39 = vpop.permute.xlu2 %3483 }
 0x47f   : > { %14654 = vst [vmem:[#allocation261_spill] sm:$0xff] %v9466_v23  ;;  %v9472_v59 = vpop.permute.xlu0 %3450  ;;  %v9694_v23 = vld [vmem:[%s7996_s22 + $0xd8] sm:$0xff] }
 0x480   : > { %14655 = vst [vmem:[#allocation262_spill] sm:$0xff] %v9468_v39  ;;  %v9676_v39 = vld [vmem:[%s7996_s22 + $0xc0] sm:$0xff] }
 0x481   : > { %14656 = vst [vmem:[#allocation263_spill] sm:$0xff] %v9472_v59  ;;  %v3685_v59 = vsel %vm3652_vm5, 1, %v14512_v52  ;;  %vm3891_vm5 = vcmp.eq.s32.totalorder %v9399_v24, 9 }
 0x482   : > { %14699 = vst [vmem:[#allocation306_spill] sm:$0xff] %v9676_v39 }
 0x484   : > { %3750 = vperm.xlu1 %7390, %v3681_v29   ;;  %3753 = vperm.xlu2 %7391, %v3682_v53   ;;  %v3683_v29 = vsel %vm3650_vm6, 1, %v14512_v52 }
 0x485   : > { %3747 = vperm.xlu0 %7389, %v3680_v46  }
 0x486   : > { %v9478_v58 = vpop.permute.xlu1 %3462  ;;  %v9480_v3 = vpop.permute.xlu2 %3492 }
 0x487   : > { %14657 = vst [vmem:[#allocation264_spill] sm:$0xff] %v9478_v58  ;;  %v9484_v45 = vpop.permute.xlu0 %3459  ;;  %v9658_v58 = vld [vmem:[%s7996_s22 + $0xa8] sm:$0xff] }
 0x488   : > { %14658 = vst [vmem:[#allocation265_spill] sm:$0xff] %v9480_v3  ;;  %v9640_v3 = vld [vmem:[%s7996_s22 + $0x90] sm:$0xff] }
 0x489   : > { %14659 = vst [vmem:[#allocation266_spill] sm:$0xff] %v9484_v45  ;;  %v3688_v45 = vsel %vm3655_vm8, 1, %v14512_v52 }
 0x48a   : > { %14694 = vst [vmem:[#allocation301_spill] sm:$0xff] %v9658_v58 }
 0x48c   : > { %3759 = vperm.xlu1 %7390, %v3684_v1   ;;  %3762 = vperm.xlu2 %7391, %v3685_v59   ;;  %v3686_v1 = vsel %vm3653_vm9, 1, %v14512_v52 }
 0x48d   : > { %3756 = vperm.xlu0 %7389, %v3683_v29  }
 0x48e   : > { %v9490_v53 = vpop.permute.xlu1 %3471  ;;  %v9492_v46 = vpop.permute.xlu2 %3501 }
 0x48f   : > { %14660 = vst [vmem:[#allocation267_spill] sm:$0xff] %v9490_v53  ;;  %v9496_v40 = vpop.permute.xlu0 %3468  ;;  %v9622_v53 = vld [vmem:[%s7996_s22 + $0x78] sm:$0xff] }
 0x490   : > { %14661 = vst [vmem:[#allocation268_spill] sm:$0xff] %v9492_v46  ;;  %v9604_v46 = vld [vmem:[%s7996_s22 + $0x60] sm:$0xff] }
 0x491   : > { %14662 = vst [vmem:[#allocation269_spill] sm:$0xff] %v9496_v40  ;;  %v3691_v40 = vsel %vm3658_vm11, 1, %v14512_v52 }
 0x494   : > { %3768 = vperm.xlu1 %7390, %v3687_v7   ;;  %3771 = vperm.xlu2 %7391, %v3688_v45   ;;  %v3689_v7 = vsel %vm3656_vm12, 1, %v14512_v52 }
 0x495   : > { %3765 = vperm.xlu0 %7389, %v3686_v1  }
 0x496   : > { %v9502_v59 = vpop.permute.xlu1 %3480  ;;  %v9504_v29 = vpop.permute.xlu2 %3510 }
 0x497   : > { %14663 = vst [vmem:[#allocation270_spill] sm:$0xff] %v9502_v59  ;;  %v9508_v14 = vpop.permute.xlu0 %3477  ;;  %v9586_v59 = vld [vmem:[%s7996_s22 + $0x48] sm:$0xff] }
 0x498   : > { %14664 = vst [vmem:[#allocation271_spill] sm:$0xff] %v9504_v29  ;;  %v9579_v29 = vld [vmem:[%s7996_s22 + $0x50] sm:$0xff]  ;;  %vm3897_vm11 = vcmp.eq.s32.totalorder %v9586_v59, 9 }
 0x499   : > { %14665 = vst [vmem:[#allocation272_spill] sm:$0xff] %v9508_v14  ;;  %v3694_v14 = vsel %vm3661_vm14, 1, %v14512_v52  ;;  %vm3898_vm9 = vcmp.eq.s32.totalorder %v9579_v29, 9  ;;  %vm3900_vm14 = vcmp.eq.s32.totalorder %v9604_v46, 9 }
 0x49c   : > { %3777 = vperm.xlu1 %7390, %v3690_v13   ;;  %3780 = vperm.xlu2 %7391, %v3691_v40   ;;  %v3692_v40 = vsel %vm3659_vm15, 1, %v14512_v52 }
 0x49d   : > { %3774 = vperm.xlu0 %7389, %v3689_v7  }
 0x49e   : > { %v9514_v45 = vpop.permute.xlu1 %3489  ;;  %v9516_v1 = vpop.permute.xlu2 %3519 }
 0x49f   : > { %14666 = vst [vmem:[#allocation273_spill] sm:$0xff] %v9514_v45  ;;  %v9520_v33 = vpop.permute.xlu0 %3486  ;;  %v9568_v45 = vld [vmem:[%s7996_s22 + $0x30] sm:$0xff] }
 0x4a0   : > { %14667 = vst [vmem:[#allocation274_spill] sm:$0xff] %v9516_v1  ;;  %v9561_v1 = vld [vmem:[%s7996_s22 + $0x38] sm:$0xff]  ;;  %vm3894_vm8 = vcmp.eq.s32.totalorder %v9568_v45, 9 }
 0x4a1   : > { %14668 = vst [vmem:[#allocation275_spill] sm:$0xff] %v9520_v33  ;;  %v3922_v33 = vsel %vm3889_vm0, 1, %v14512_v52  ;;  %vm3895_vm6 = vcmp.eq.s32.totalorder %v9561_v1, 9  ;;  %vm3905_vm0 = vcmp.eq.s32.totalorder %v9049_v0, 9 }
 0x4a4   : > { %3786 = vperm.xlu1 %7390, %v3693_v19   ;;  %3789 = vperm.xlu2 %7391, %v3694_v14   ;;  %v3923_v14 = vsel %vm3890_vm1, 1, %v14512_v52  ;;  %v3921_v19 = vsel %vm3888_vm2, 1, %v14512_v52  ;;  %vm3903_vm1 = vcmp.eq.s32.totalorder %v9622_v53, 9 }
 0x4a5   : > { %3783 = vperm.xlu0 %7389, %v3692_v40  }
 0x4a6   : > { %v9526_v13 = vpop.permute.xlu1 %3498  ;;  %v9528_v7 = vpop.permute.xlu2 %3528 }
 0x4a7   : > { %14669 = vst [vmem:[#allocation276_spill] sm:$0xff] %v9526_v13  ;;  %v9535_v25 = vpop.permute.xlu0 %3495  ;;  %v9546_v13 = vld [vmem:[%s7996_s22 + $0x20] sm:$0xff] }
 0x4a8   : > { %14670 = vst [vmem:[#allocation277_spill] sm:$0xff] %v9528_v7  ;;  %vm3892_vm3 = vcmp.eq.s32.totalorder %v9546_v13, 9 }
 0x4a9   : > { %14671 = vst [vmem:[#allocation278_spill] sm:$0xff] %v9535_v25 }
 0x4ac   : > { %3957 = vperm.xlu1 %7390, %v3922_v33   ;;  %3960 = vperm.xlu2 %7391, %v3923_v14   ;;  %v3925_v33 = vsel %vm3892_vm3, 1, %v14512_v52  ;;  %v3926_v14 = vsel %vm3893_vm4, 1, %v14512_v52  ;;  %vm3908_vm3 = vcmp.eq.s32.totalorder %v9067_v41, 9  ;;  %vm3906_vm4 = vcmp.eq.s32.totalorder %v9640_v3, 9 }
 0x4ad   : > { %3954 = vperm.xlu0 %7389, %v3921_v19   ;;  %v3924_v19 = vsel %vm3891_vm5, 1, %v14512_v52 }
 0x4ae   : > { %v9541_v40 = vpop.permute.xlu1 %3507  ;;  %v9543_v7 = vpop.permute.xlu2 %3699 }
 0x4af   : > { %14672 = vst [vmem:[#allocation279_spill] sm:$0xff] %v9541_v40  ;;  %v9550_v25 = vpop.permute.xlu0 %3504 }
 0x4b0   : > { %14673 = vst [vmem:[#allocation280_spill] sm:$0xff] %v9543_v7 }
 0x4b1   : > { %14674 = vst [vmem:[#allocation281_spill] sm:$0xff] %v9550_v25 }
 0x4b4   : > { %3966 = vperm.xlu1 %7390, %v3925_v33   ;;  %3969 = vperm.xlu2 %7391, %v3926_v14   ;;  %v3928_v33 = vsel %vm3895_vm6, 1, %v14512_v52  ;;  %v3929_v14 = vsel %vm3896_vm7, 1, %v14512_v52  ;;  %vm3911_vm6 = vcmp.eq.s32.totalorder %v9085_v38, 9  ;;  %vm3909_vm7 = vcmp.eq.s32.totalorder %v9658_v58, 9 }
 0x4b5   : > { %3963 = vperm.xlu0 %7389, %v3924_v19   ;;  %v3927_v19 = vsel %vm3894_vm8, 1, %v14512_v52 }
 0x4b6   : > { %v9556_v7 = vpop.permute.xlu1 %3516  ;;  %v9558_v40 = vpop.permute.xlu2 %3708 }
 0x4b7   : > { %14675 = vst [vmem:[#allocation282_spill] sm:$0xff] %v9556_v7  ;;  %v9565_v25 = vpop.permute.xlu0 %3513 }
 0x4b8   : > { %14676 = vst [vmem:[#allocation283_spill] sm:$0xff] %v9558_v40 }
 0x4b9   : > { %14677 = vst [vmem:[#allocation284_spill] sm:$0xff] %v9565_v25 }
 0x4bc   : > { %3975 = vperm.xlu1 %7390, %v3928_v33   ;;  %3978 = vperm.xlu2 %7391, %v3929_v14   ;;  %v3931_v33 = vsel %vm3898_vm9, 1, %v14512_v52  ;;  %v3932_v14 = vsel %vm3899_vm10, 1, %v14512_v52  ;;  %vm3914_vm9 = vcmp.eq.s32.totalorder %v9103_v50, 9  ;;  %vm3912_vm10 = vcmp.eq.s32.totalorder %v9676_v39, 9 }
 0x4bd   : > { %3972 = vperm.xlu0 %7389, %v3927_v19   ;;  %v3930_v19 = vsel %vm3897_vm11, 1, %v14512_v52 }
 0x4be   : > { %v9574_v40 = vpop.permute.xlu1 %3525  ;;  %v9576_v7 = vpop.permute.xlu2 %3717 }
 0x4bf   : > { %14678 = vst [vmem:[#allocation285_spill] sm:$0xff] %v9574_v40  ;;  %v9583_v25 = vpop.permute.xlu0 %3522  ;;  %v9597_v40 = vld [vmem:[%s7996_s22 + $0x68] sm:$0xff] }
 0x4c0   : > { %14679 = vst [vmem:[#allocation286_spill] sm:$0xff] %v9576_v7  ;;  %vm3901_vm12 = vcmp.eq.s32.totalorder %v9597_v40, 9 }
 0x4c1   : > { %14680 = vst [vmem:[#allocation287_spill] sm:$0xff] %v9583_v25 }
 0x4c4   : > { %3984 = vperm.xlu1 %7390, %v3931_v33   ;;  %3987 = vperm.xlu2 %7391, %v3932_v14   ;;  %v3934_v33 = vsel %vm3901_vm12, 1, %v14512_v52  ;;  %v3935_v14 = vsel %vm3902_vm13, 1, %v14512_v52  ;;  %vm3917_vm12 = vcmp.eq.s32.totalorder %v9121_v37, 9  ;;  %vm3915_vm13 = vcmp.eq.s32.totalorder %v9694_v23, 9  ;;  %v9705_v37 = vld [vmem:[%s7996_s22 + $0xf8] sm:$0xff] }
 0x4c5   : > { %3981 = vperm.xlu0 %7389, %v3930_v19   ;;  %v3933_v19 = vsel %vm3900_vm14, 1, %v14512_v52  ;;  %vm3919_vm14 = vcmp.eq.s32.totalorder %v9705_v37, 9 }
 0x4c6   : > { %v9592_v7 = vpop.permute.xlu1 %3696  ;;  %v9594_v32 = vpop.permute.xlu2 %3726 }
 0x4c7   : > { %14681 = vst [vmem:[#allocation288_spill] sm:$0xff] %v9592_v7  ;;  %v9601_v25 = vpop.permute.xlu0 %3531  ;;  %v9615_v7 = vld [vmem:[%s7996_s22 + $0x80] sm:$0xff] }
 0x4c8   : > { %14682 = vst [vmem:[#allocation289_spill] sm:$0xff] %v9594_v32  ;;  %vm3904_vm15 = vcmp.eq.s32.totalorder %v9615_v7, 9 }
 0x4c9   : > { %14683 = vst [vmem:[#allocation290_spill] sm:$0xff] %v9601_v25 }
 0x4cc   : > { %3993 = vperm.xlu1 %7390, %v3934_v33   ;;  %3996 = vperm.xlu2 %7391, %v3935_v14   ;;  %v3937_v33 = vsel %vm3904_vm15, 1, %v14512_v52  ;;  %v3938_v14 = vsel %vm3905_vm0, 1, %v14512_v52  ;;  %vm4146_vm15 = vcmp.eq.s32.totalorder %v9384_v18, 10  ;;  %vm3918_vm0 = vcmp.eq.s32.totalorder %v9712_v6, 9 }
 0x4cd   : > { %3990 = vperm.xlu0 %7389, %v3933_v19   ;;  %v3936_v19 = vsel %vm3903_vm1, 1, %v14512_v52  ;;  %vm4148_vm1 = vcmp.eq.s32.totalorder %v9406_v47, 10 }
 0x4ce   : > { %v9610_v32 = vpop.permute.xlu1 %3705  ;;  %v9612_v12 = vpop.permute.xlu2 %3735  ;;  %v4181_v63 = vsel %vm4148_vm1, 1, %v14512_v52  ;;  %vm4164_vm1 = vcmp.eq.s32.totalorder %v9640_v3, 10 }
 0x4cf   : > { %14684 = vst [vmem:[#allocation291_spill] sm:$0xff] %v9610_v32  ;;  %v9619_v25 = vpop.permute.xlu0 %3702  ;;  %v9633_v32 = vld [vmem:[%s7996_s22 + $0x98] sm:$0xff] }
 0x4d0   : > { %14685 = vst [vmem:[#allocation292_spill] sm:$0xff] %v9612_v12  ;;  %vm3907_vm2 = vcmp.eq.s32.totalorder %v9633_v32, 9 }
 0x4d1   : > { %14686 = vst [vmem:[#allocation293_spill] sm:$0xff] %v9619_v25 }
 0x4d4   : > { %4002 = vperm.xlu1 %7390, %v3937_v33   ;;  %4005 = vperm.xlu2 %7391, %v3938_v14   ;;  %v3940_v33 = vsel %vm3907_vm2, 1, %v14512_v52  ;;  %v3941_v14 = vsel %vm3908_vm3, 1, %v14512_v52  ;;  %vm4149_vm2 = vcmp.eq.s32.totalorder %v9399_v24, 10  ;;  %vm4147_vm3 = vcmp.eq.s32.totalorder %v9531_v56, 10 }
 0x4d5   : > { %3999 = vperm.xlu0 %7389, %v3936_v19   ;;  %v3939_v19 = vsel %vm3906_vm4, 1, %v14512_v52  ;;  %v4182_v11 = vsel %vm4149_vm2, 1, %v14512_v52  ;;  %vm4151_vm4 = vcmp.eq.s32.totalorder %v9421_v35, 10  ;;  %vm4162_vm2 = vcmp.eq.s32.totalorder %v9615_v7, 10 }
 0x4d6   : > { %v9628_v12 = vpop.permute.xlu1 %3714  ;;  %v9630_v0 = vpop.permute.xlu2 %3744 }
 0x4d7   : > { %14687 = vst [vmem:[#allocation294_spill] sm:$0xff] %v9628_v12  ;;  %v9637_v25 = vpop.permute.xlu0 %3711  ;;  %v9651_v12 = vld [vmem:[%s7996_s22 + $0xb0] sm:$0xff] }
 0x4d8   : > { %14688 = vst [vmem:[#allocation295_spill] sm:$0xff] %v9630_v0  ;;  %vm3910_vm5 = vcmp.eq.s32.totalorder %v9651_v12, 9 }
 0x4d9   : > { %14689 = vst [vmem:[#allocation296_spill] sm:$0xff] %v9637_v25 }
 0x4da   : > { %14692 = vst [vmem:[#allocation299_spill] sm:$0xff] %v9651_v12 }
 0x4dc   : > { %4011 = vperm.xlu1 %7390, %v3940_v33   ;;  %4014 = vperm.xlu2 %7391, %v3941_v14   ;;  %v3943_v33 = vsel %vm3910_vm5, 1, %v14512_v52  ;;  %v3944_v14 = vsel %vm3911_vm6, 1, %v14512_v52  ;;  %vm4152_vm5 = vcmp.eq.s32.totalorder %v9568_v45, 10  ;;  %vm4150_vm6 = vcmp.eq.s32.totalorder %v9546_v13, 10 }
 0x4dd   : > { %4008 = vperm.xlu0 %7389, %v3939_v19   ;;  %v3942_v19 = vsel %vm3909_vm7, 1, %v14512_v52  ;;  %vm4154_vm7 = vcmp.eq.s32.totalorder %v9436_v34, 10 }
 0x4de   : > { %v9646_v0 = vpop.permute.xlu1 %3723  ;;  %v9648_v41 = vpop.permute.xlu2 %3753 }
 0x4df   : > { %14690 = vst [vmem:[#allocation297_spill] sm:$0xff] %v9646_v0  ;;  %v9655_v25 = vpop.permute.xlu0 %3720  ;;  %v9669_v0 = vld [vmem:[%s7996_s22 + $0xc8] sm:$0xff] }
 0x4e0   : > { %14691 = vst [vmem:[#allocation298_spill] sm:$0xff] %v9648_v41  ;;  %vm3913_vm8 = vcmp.eq.s32.totalorder %v9669_v0, 9 }
 0x4e1   : > { %14693 = vst [vmem:[#allocation300_spill] sm:$0xff] %v9655_v25 }
 0x4e2   : > { %14697 = vst [vmem:[#allocation304_spill] sm:$0xff] %v9669_v0 }
 0x4e4   : > { %4020 = vperm.xlu1 %7390, %v3943_v33   ;;  %4023 = vperm.xlu2 %7391, %v3944_v14   ;;  %v3946_v33 = vsel %vm3913_vm8, 1, %v14512_v52  ;;  %v3947_v14 = vsel %vm3914_vm9, 1, %v14512_v52  ;;  %vm4155_vm8 = vcmp.eq.s32.totalorder %v9586_v59, 10  ;;  %vm4153_vm9 = vcmp.eq.s32.totalorder %v9561_v1, 10 }
 0x4e5   : > { %4017 = vperm.xlu0 %7389, %v3942_v19   ;;  %v3945_v19 = vsel %vm3912_vm10, 1, %v14512_v52 }
 0x4e6   : > { %v9664_v41 = vpop.permute.xlu1 %3732  ;;  %v9666_v38 = vpop.permute.xlu2 %3762 }
 0x4e7   : > { %14695 = vst [vmem:[#allocation302_spill] sm:$0xff] %v9664_v41  ;;  %v9673_v25 = vpop.permute.xlu0 %3729  ;;  %v9687_v41 = vld [vmem:[%s7996_s22 + $0xe0] sm:$0xff] }
 0x4e8   : > { %14696 = vst [vmem:[#allocation303_spill] sm:$0xff] %v9666_v38  ;;  %vm3916_vm11 = vcmp.eq.s32.totalorder %v9687_v41, 9 }
 0x4e9   : > { %14698 = vst [vmem:[#allocation305_spill] sm:$0xff] %v9673_v25 }
 0x4ec   : > { %4029 = vperm.xlu1 %7390, %v3946_v33   ;;  %4032 = vperm.xlu2 %7391, %v3947_v14   ;;  %v3949_v33 = vsel %vm3916_vm11, 1, %v14512_v52  ;;  %v3950_v14 = vsel %vm3917_vm12, 1, %v14512_v52  ;;  %vm4158_vm11 = vcmp.eq.s32.totalorder %v9604_v46, 10  ;;  %vm4156_vm12 = vcmp.eq.s32.totalorder %v9579_v29, 10 }
 0x4ed   : > { %4026 = vperm.xlu0 %7389, %v3945_v19   ;;  %v3948_v19 = vsel %vm3915_vm13, 1, %v14512_v52 }
 0x4ee   : > { %v9682_v38 = vpop.permute.xlu1 %3741  ;;  %v9684_v50 = vpop.permute.xlu2 %3771 }
 0x4ef   : > { %14700 = vst [vmem:[#allocation307_spill] sm:$0xff] %v9682_v38  ;;  %v9691_v25 = vpop.permute.xlu0 %3738 }
 0x4f0   : > { %14701 = vst [vmem:[#allocation308_spill] sm:$0xff] %v9684_v50 }
 0x4f1   : > { %14702 = vst [vmem:[#allocation309_spill] sm:$0xff] %v9691_v25 }
 0x4f4   : > { %4038 = vperm.xlu1 %7390, %v3949_v33   ;;  %4041 = vperm.xlu2 %7391, %v3950_v14   ;;  %v3952_v33 = vsel %vm3919_vm14, 1, %v14512_v52  ;;  %v4179_v14 = vsel %vm4146_vm15, 1, %v14512_v52  ;;  %vm4161_vm14 = vcmp.eq.s32.totalorder %v9622_v53, 10  ;;  %vm4159_vm15 = vcmp.eq.s32.totalorder %v9597_v40, 10 }
 0x4f5   : > { %4035 = vperm.xlu0 %7389, %v3948_v19   ;;  %v3951_v19 = vsel %vm3918_vm0, 1, %v14512_v52 }
 0x4f6   : > { %v9700_v50 = vpop.permute.xlu1 %3750  ;;  %v9702_v38 = vpop.permute.xlu2 %3780 }
 0x4f7   : > { %14703 = vst [vmem:[#allocation310_spill] sm:$0xff] %v9700_v50  ;;  %v9709_v25 = vpop.permute.xlu0 %3747 }
 0x4f8   : > { %14704 = vst [vmem:[#allocation311_spill] sm:$0xff] %v9702_v38 }
 0x4f9   : > { %14705 = vst [vmem:[#allocation312_spill] sm:$0xff] %v9709_v25 }
 0x4fc   : > { %4047 = vperm.xlu1 %7390, %v3952_v33   ;;  %4212 = vperm.xlu2 %7391, %v4179_v14   ;;  %v4180_v33 = vsel %vm4147_vm3, 1, %v14512_v52 }
 0x4fd   : > { %4044 = vperm.xlu0 %7389, %v3951_v19  }
 0x4fe   : > { %v9718_v38 = vpop.permute.xlu1 %3759  ;;  %v9720_v50 = vpop.permute.xlu2 %3789 }
 0x4ff   : > { %14706 = vst [vmem:[#allocation313_spill] sm:$0xff] %v9718_v38  ;;  %v9724_v25 = vpop.permute.xlu0 %3756  ;;  %v4185_v38 = vsel %vm4152_vm5, 1, %v14512_v52  ;;  %vm4165_vm5 = vcmp.eq.s32.totalorder %v9633_v32, 10 }
 0x500   : > { %14707 = vst [vmem:[#allocation314_spill] sm:$0xff] %v9720_v50  ;;  %v4184_v50 = vsel %vm4151_vm4, 1, %v14512_v52  ;;  %vm4167_vm4 = vcmp.eq.s32.totalorder %v9658_v58, 10  ;;  %v14771_v58 = vld [vmem:[#allocation75_spill] sm:$0xff] }
 0x501   : > { %14708 = vst [vmem:[#allocation315_spill] sm:$0xff] %v9724_v25 }
 0x504   : > { %4218 = vperm.xlu1 %7390, %v4181_v63   ;;  %4221 = vperm.xlu2 %7391, %v4182_v11   ;;  %v4183_v63 = vsel %vm4150_vm6, 1, %v14512_v52 }
 0x505   : > { %4215 = vperm.xlu0 %7389, %v4180_v33  }
 0x506   : > { %v9730_v14 = vpop.permute.xlu1 %3768  ;;  %v9732_v19 = vpop.permute.xlu2 %3960 }
 0x507   : > { %14709 = vst [vmem:[#allocation316_spill] sm:$0xff] %v9730_v14  ;;  %v9736_v25 = vpop.permute.xlu0 %3765  ;;  %v4188_v14 = vsel %vm4155_vm8, 1, %v14512_v52  ;;  %vm4168_vm8 = vcmp.eq.s32.totalorder %v9651_v12, 10 }
 0x508   : > { %14710 = vst [vmem:[#allocation317_spill] sm:$0xff] %v9732_v19  ;;  %v4187_v19 = vsel %vm4154_vm7, 1, %v14512_v52  ;;  %vm4170_vm7 = vcmp.eq.s32.totalorder %v9676_v39, 10  ;;  %v14764_v39 = vld [vmem:[#allocation71_spill] sm:$0xff] }
 0x509   : > { %14711 = vst [vmem:[#allocation318_spill] sm:$0xff] %v9736_v25 }
 0x50c   : > { %4227 = vperm.xlu1 %7390, %v4184_v50   ;;  %4230 = vperm.xlu2 %7391, %v4185_v38   ;;  %v4186_v38 = vsel %vm4153_vm9, 1, %v14512_v52 }
 0x50d   : > { %4224 = vperm.xlu0 %7389, %v4183_v63  }
 0x50e   : > { %v9742_v11 = vpop.permute.xlu1 %3777  ;;  %v9744_v33 = vpop.permute.xlu2 %3969 }
 0x50f   : > { %14712 = vst [vmem:[#allocation319_spill] sm:$0xff] %v9742_v11  ;;  %v9748_v25 = vpop.permute.xlu0 %3774 }
 0x510   : > { %14713 = vst [vmem:[#allocation320_spill] sm:$0xff] %v9744_v33  ;;  %v9759_v33 = vld [vmem:[%s7996_s22 + $0x58] sm:$0xff] }
 0x511   : > { %14714 = vst [vmem:[#allocation321_spill] sm:$0xff] %v9748_v25  ;;  %vm4157_vm10 = vcmp.eq.s32.totalorder %v9759_v33, 10 }
 0x512   : > { %v4190_v11 = vsel %vm4157_vm10, 1, %v14512_v52  ;;  %vm4173_vm10 = vcmp.eq.s32.totalorder %v9694_v23, 10 }
 0x514   : > { %4236 = vperm.xlu1 %7390, %v4187_v19   ;;  %4239 = vperm.xlu2 %7391, %v4188_v14   ;;  %v4191_v14 = vsel %vm4158_vm11, 1, %v14512_v52  ;;  %v4189_v19 = vsel %vm4156_vm12, 1, %v14512_v52  ;;  %vm4171_vm11 = vcmp.eq.s32.totalorder %v9669_v0, 10  ;;  %vm1731_vm12 = vcmp.eq.s32.totalorder %v8419_v44, 1  ;;  %v14762_v0 = vld [vmem:[#allocation69_spill] sm:$0xff] }
 0x515   : > { %4233 = vperm.xlu0 %7389, %v4186_v38  }
 0x516   : > { %v9754_v50 = vpop.permute.xlu1 %3786  ;;  %v9756_v63 = vpop.permute.xlu2 %3978 }
 0x517   : > { %14715 = vst [vmem:[#allocation322_spill] sm:$0xff] %v9754_v50  ;;  %v9763_v25 = vpop.permute.xlu0 %3783  ;;  %v9774_v50 = vld [vmem:[%s7996_s22 + $0x70] sm:$0xff] }
 0x518   : > { %14716 = vst [vmem:[#allocation323_spill] sm:$0xff] %v9756_v63  ;;  %vm4160_vm13 = vcmp.eq.s32.totalorder %v9774_v50, 10 }
 0x519   : > { %14717 = vst [vmem:[#allocation324_spill] sm:$0xff] %v9763_v25  ;;  %v4193_v57 = vsel %vm4160_vm13, 1, %v14512_v52  ;;  %vm1732_vm13 = vcmp.eq.s32.totalorder %v8427_v54, 1 }
 0x51c   : > { %4245 = vperm.xlu1 %7390, %v4190_v11   ;;  %4248 = vperm.xlu2 %7391, %v4191_v14   ;;  %v4194_v11 = vsel %vm4161_vm14, 1, %v14512_v52  ;;  %v4192_v14 = vsel %vm4159_vm15, 1, %v14512_v52  ;;  %vm1735_vm14 = vcmp.eq.s32.totalorder %v8435_v61, 1  ;;  %vm1738_vm15 = vcmp.eq.s32.totalorder %v8443_v4, 1  ;;  %v9863_v61 = vld [vmem:[%s7996_s22 + $0xe8] sm:$0xff] }
 0x51d   : > { %4242 = vperm.xlu0 %7389, %v4189_v19   ;;  %14738 = vst [vmem:[#allocation345_spill] sm:$0xff] %v9863_v61 }
 0x51e   : > { %v9769_v38 = vpop.permute.xlu1 %3957  ;;  %v9771_v63 = vpop.permute.xlu2 %3987 }
 0x51f   : > { %14718 = vst [vmem:[#allocation325_spill] sm:$0xff] %v9769_v38  ;;  %v9778_v25 = vpop.permute.xlu0 %3954  ;;  %v9789_v38 = vld [vmem:[%s7996_s22 + $0x88] sm:$0xff] }
 0x520   : > { %14719 = vst [vmem:[#allocation326_spill] sm:$0xff] %v9771_v63  ;;  %vm4163_vm0 = vcmp.eq.s32.totalorder %v9789_v38, 10 }
 0x521   : > { %14720 = vst [vmem:[#allocation327_spill] sm:$0xff] %v9778_v25  ;;  %v4196_v5 = vsel %vm4163_vm0, 1, %v14512_v52  ;;  %vm1729_vm0 = vcmp.eq.s32.totalorder %v8445_v8, 1 }
 0x524   : > { %4254 = vperm.xlu1 %7390, %v4193_v57   ;;  %4257 = vperm.xlu2 %7391, %v4194_v11   ;;  %v4197_v57 = vsel %vm4164_vm1, 1, %v14512_v52  ;;  %v4195_v11 = vsel %vm4162_vm2, 1, %v14512_v52  ;;  %vm1727_vm1 = vcmp.eq.s32.totalorder %v8449_v9, 1  ;;  %vm4175_vm2 = vcmp.eq.s32.totalorder %v9863_v61, 10 }
 0x525   : > { %4251 = vperm.xlu0 %7389, %v4192_v14  }
 0x526   : > { %v9784_v19 = vpop.permute.xlu1 %3966  ;;  %v9786_v63 = vpop.permute.xlu2 %3996 }
 0x527   : > { %14721 = vst [vmem:[#allocation328_spill] sm:$0xff] %v9784_v19  ;;  %v9793_v25 = vpop.permute.xlu0 %3963  ;;  %v9804_v19 = vld [vmem:[%s7996_s22 + $0xa0] sm:$0xff] }
 0x528   : > { %14722 = vst [vmem:[#allocation329_spill] sm:$0xff] %v9786_v63  ;;  %vm4166_vm3 = vcmp.eq.s32.totalorder %v9804_v19, 10 }
 0x529   : > { %14723 = vst [vmem:[#allocation330_spill] sm:$0xff] %v9793_v25  ;;  %v4199_v30 = vsel %vm4166_vm3, 1, %v14512_v52  ;;  %vm4176_vm3 = vcmp.eq.s32.totalorder %v9712_v6, 10  ;;  %v4208_v6 = vsel %vm4175_vm2, 1, %v14512_v52  ;;  %vm4405_vm2 = vcmp.eq.s32.totalorder %v9531_v56, 11  ;;  %v14744_v56 = vld [vmem:[#allocation54_spill] sm:$0xff] }
 0x52a   : > { %14726 = vst [vmem:[#allocation333_spill] sm:$0xff] %v9804_v19  ;;  %v14765_v19 = vld [vmem:[#allocation72_spill] sm:$0xff] }
 0x52c   : > { %4263 = vperm.xlu1 %7390, %v4196_v5   ;;  %4266 = vperm.xlu2 %7391, %v4197_v57   ;;  %v4200_v5 = vsel %vm4167_vm4, 1, %v14512_v52  ;;  %v4198_v57 = vsel %vm4165_vm5, 1, %v14512_v52  ;;  %vm4174_vm4 = vcmp.eq.s32.totalorder %v9687_v41, 10  ;;  %vm1741_vm5 = vcmp.eq.s32.totalorder %v8455_v16, 1 }
 0x52d   : > { %4260 = vperm.xlu0 %7389, %v4195_v11   ;;  %v4207_v16 = vsel %vm4174_vm4, 1, %v14512_v52  ;;  %vm1985_vm4 = vcmp.eq.s32.totalorder %v8529_v27, 1  ;;  %v4438_v27 = vsel %vm4405_vm2, 1, %v14512_v52  ;;  %vm4408_vm2 = vcmp.eq.s32.totalorder %v9546_v13, 11 }
 0x52e   : > { %v9799_v14 = vpop.permute.xlu1 %3975  ;;  %v9801_v63 = vpop.permute.xlu2 %4005 }
 0x52f   : > { %14724 = vst [vmem:[#allocation331_spill] sm:$0xff] %v9799_v14  ;;  %v9808_v25 = vpop.permute.xlu0 %3972  ;;  %v9819_v14 = vld [vmem:[%s7996_s22 + $0xb8] sm:$0xff] }
 0x530   : > { %14725 = vst [vmem:[#allocation332_spill] sm:$0xff] %v9801_v63  ;;  %vm4169_vm6 = vcmp.eq.s32.totalorder %v9819_v14, 10 }
 0x531   : > { %14727 = vst [vmem:[#allocation334_spill] sm:$0xff] %v9808_v25  ;;  %v4202_v17 = vsel %vm4169_vm6, 1, %v14512_v52  ;;  %vm1730_vm6 = vcmp.eq.s32.totalorder %v8457_v20, 1 }
 0x532   : > { %14730 = vst [vmem:[#allocation337_spill] sm:$0xff] %v9819_v14  ;;  %v14760_v14 = vld [vmem:[#allocation67_spill] sm:$0xff] }
 0x534   : > { %4272 = vperm.xlu1 %7390, %v4199_v30   ;;  %4275 = vperm.xlu2 %7391, %v4200_v5   ;;  %v4203_v30 = vsel %vm4170_vm7, 1, %v14512_v52  ;;  %v4201_v5 = vsel %vm4168_vm8, 1, %v14512_v52  ;;  %vm1728_vm7 = vcmp.eq.s32.totalorder %v8461_v21, 1  ;;  %vm1744_vm8 = vcmp.eq.s32.totalorder %v8467_v28, 1 }
 0x535   : > { %4269 = vperm.xlu0 %7389, %v4198_v57  }
 0x536   : > { %v9814_v11 = vpop.permute.xlu1 %3984  ;;  %v9816_v63 = vpop.permute.xlu2 %4014 }
 0x537   : > { %14728 = vst [vmem:[#allocation335_spill] sm:$0xff] %v9814_v11  ;;  %v9823_v25 = vpop.permute.xlu0 %3981  ;;  %v9834_v11 = vld [vmem:[%s7996_s22 + $0xd0] sm:$0xff] }
 0x538   : > { %14729 = vst [vmem:[#allocation336_spill] sm:$0xff] %v9816_v63  ;;  %vm4172_vm9 = vcmp.eq.s32.totalorder %v9834_v11, 10 }
 0x539   : > { %14731 = vst [vmem:[#allocation338_spill] sm:$0xff] %v9823_v25  ;;  %v4205_v55 = vsel %vm4172_vm9, 1, %v14512_v52  ;;  %vm1734_vm9 = vcmp.eq.s32.totalorder %v8469_v31, 1 }
 0x53a   : > { %14734 = vst [vmem:[#allocation341_spill] sm:$0xff] %v9834_v11 }
 0x53c   : > { %4281 = vperm.xlu1 %7390, %v4202_v17   ;;  %4284 = vperm.xlu2 %7391, %v4203_v30   ;;  %v4206_v17 = vsel %vm4173_vm10, 1, %v14512_v52  ;;  %v4204_v30 = vsel %vm4171_vm11, 1, %v14512_v52  ;;  %vm1733_vm10 = vcmp.eq.s32.totalorder %v8473_v36, 1  ;;  %vm1747_vm11 = vcmp.eq.s32.totalorder %v8479_v43, 1 }
 0x53d   : > { %4278 = vperm.xlu0 %7389, %v4201_v5   ;;  %v9846_v5 = vld [vmem:[#allocation6] ss:$0 sm:$0xff] }
 0x53e   : > { %v9829_v57 = vpop.permute.xlu1 %3993  ;;  %v9831_v63 = vpop.permute.xlu2 %4023  ;;  %v9853_v23 = vsel %vm1731_vm12, %v9846_v5, 0.0  ;;  %v9856_v44 = vsel %vm1732_vm13, %v9846_v5, 0.0  ;;  %v9868_v4 = vsel %vm1735_vm14, %v9846_v5, 0.0  ;;  %v9871_v8 = vsel %vm1738_vm15, %v9846_v5, 0.0 }
 0x53f   : > { %14732 = vst [vmem:[#allocation339_spill] sm:$0xff] %v9829_v57  ;;  %v9838_v25 = vpop.permute.xlu0 %3990  ;;  %v9874_v9 = vsel %vm1729_vm0, %v9846_v5, 0.0  ;;  %vm1737_vm12 = vcmp.eq.s32.totalorder %v8481_v48, 1  ;;  %v9892_v20 = vsel %vm1741_vm5, %v9846_v5, 0.0  ;;  %v9895_v21 = vsel %vm1730_vm6, %v9846_v5, 0.0 }
 0x540   : > { %14733 = vst [vmem:[#allocation340_spill] sm:$0xff] %v9831_v63  ;;  %vm1736_vm13 = vcmp.eq.s32.totalorder %v8485_v49, 1  ;;  %vm1750_vm14 = vcmp.eq.s32.totalorder %v8491_v60, 1  ;;  %v9900_v28 = vsel %vm1728_vm7, %v9846_v5, 0.0  ;;  %v9903_v31 = vsel %vm1744_vm8, %v9846_v5, 0.0 }
 0x541   : > { %14735 = vst [vmem:[#allocation342_spill] sm:$0xff] %v9838_v25  ;;  %v9906_v36 = vsel %vm1734_vm9, %v9846_v5, 0.0  ;;  %vm1740_vm15 = vcmp.eq.s32.totalorder %v8493_v62, 1  ;;  %v9910_v43 = vsel %vm1733_vm10, %v9846_v5, 0.0  ;;  %v9913_v48 = vsel %vm1747_vm11, %v9846_v5, 0.0 }
 0x542   : > { %v9916_v49 = vsel %vm1737_vm12, %v9846_v5, 0.0  ;;  %vm1739_vm0 = vcmp.eq.s32.totalorder %v8497_v2, 1  ;;  %v9920_v60 = vsel %vm1736_vm13, %v9846_v5, 0.0  ;;  %v9923_v41 = vsel %vm1750_vm14, %v9846_v5, 0.0  ;;  %v9925_v62 = vld [vmem:[#allocation6 + $0x1] ss:$0 sm:$0xff] }
 0x543   : > { %vm4177_vm5 = vcmp.eq.s32.totalorder %v9705_v37, 10  ;;  %vm1743_vm6 = vcmp.eq.s32.totalorder %v8505_v22, 1  ;;  %vm1742_vm7 = vcmp.eq.s32.totalorder %v8509_v26, 1  ;;  %vm1756_vm8 = vcmp.eq.s32.totalorder %v8515_v42, 1  ;;  %v14745_v37 = vld [vmem:[#allocation55_spill] sm:$0xff] }
 0x544   : > { %4290 = vperm.xlu1 %7390, %v4205_v55   ;;  %4293 = vperm.xlu2 %7391, %v4206_v17   ;;  %v1760_v17 = vsel %vm1727_vm1, %v9846_v5, 0.0  ;;  %vm4404_vm1 = vcmp.eq.s32.totalorder %v9384_v18, 11  ;;  %v14743_v18 = vld [vmem:[#allocation53_spill] sm:$0xff]  ;;  %vm1745_vm10 = vcmp.eq.s32.totalorder %v14744_v56, 1  ;;  %vm1749_vm11 = vcmp.eq.s32.totalorder %v14745_v37, 1  ;;  %v14747_v56 = vld [vmem:[#allocation58_spill] sm:$0xff] }
 0x545   : > { %4287 = vperm.xlu0 %7389, %v4204_v30   ;;  %v4209_v30 = vsel %vm4176_vm3, 1, %v14512_v52  ;;  %vm1753_vm3 = vcmp.eq.s32.totalorder %v8503_v15, 1  ;;  %vm1746_vm9 = vcmp.eq.s32.totalorder %v14743_v18, 1  ;;  %v4437_v15 = vsel %vm4404_vm1, 1, %v14512_v52  ;;  %v14746_v18 = vld [vmem:[#allocation56_spill] sm:$0xff] }
 0x546   : > { %v9858_v54 = vpop.permute.xlu1 %4002  ;;  %v9860_v25 = vpop.permute.xlu2 %4032  ;;  %v4210_v22 = vsel %vm4177_vm5, 1, %v14512_v52  ;;  %v9958_v26 = vsel %vm1743_vm6, %v9846_v5, 0.0  ;;  %v9961_v42 = vsel %vm1742_vm7, %v9846_v5, 0.0  ;;  %vm1748_vm12 = vcmp.eq.s32.totalorder %v14746_v18, 1  ;;  %v14749_v18 = vld [vmem:[#allocation61_spill] sm:$0xff] }
 0x547   : > { %14736 = vst [vmem:[#allocation343_spill] sm:$0xff] %v9858_v54  ;;  %v9876_v55 = vpop.permute.xlu0 %3999  ;;  %vm1988_vm13 = vcmp.eq.s32.totalorder %v14747_v56, 1  ;;  %v9972_v37 = vsel %vm1745_vm10, %v9846_v5, 0.0  ;;  %v14748_v54 = vld [vmem:[#allocation57_spill] sm:$0xff]  ;;  %v9976_v63 = vsel %vm1749_vm11, %v9846_v5, 0.0  ;;  %v14750_v56 = vld [vmem:[#allocation64_spill] sm:$0xff] }
 0x548   : > { %14737 = vst [vmem:[#allocation344_spill] sm:$0xff] %v9860_v25  ;;  %v9969_v25 = vsel %vm1746_vm9, %v9846_v5, 0.0  ;;  %vm1752_vm14 = vcmp.eq.s32.totalorder %v14748_v54, 1  ;;  %v9983_v10 = vsel %vm1748_vm12, %v9846_v5, 0.0  ;;  %v2021_v51 = vsel %vm1988_vm13, %v9925_v62, 0.0 }
 0x549   : > { %14739 = vst [vmem:[#allocation346_spill] sm:$0xff] %v9876_v55  ;;  %v9934_v55 = vsel %vm1740_vm15, %v9846_v5, 0.0  ;;  %vm1991_vm15 = vcmp.eq.s32.totalorder %v14749_v18, 1  ;;  %vm4407_vm1 = vcmp.eq.s32.totalorder %v9399_v24, 11  ;;  %vm4406_vm5 = vcmp.eq.s32.totalorder %v9406_v47, 11  ;;  %v14756_v18 = vld [vmem:[#allocation62_spill] sm:$0xff] }
 0x54a   : > { %vm1754_vm6 = vcmp.eq.s32.totalorder %v14756_v18, 1  ;;  %v10007_v13 = vadd.f32 %v2021_v51, %v9895_v21  ;;  %vm1997_vm10 = vcmp.eq.s32.totalorder %v14760_v14, 1  ;;  %vm1990_vm12 = vcmp.eq.s32.totalorder %v14762_v0, 1 }
 0x54b   : > { %v10024_v51 = vsel %vm1754_vm6, %v9846_v5, 0.0 }
 0x54c   : > { %4299 = vperm.xlu1 %7390, %v4208_v6   ;;  %4302 = vperm.xlu2 %7391, %v4209_v30  }
 0x54d   : > { %4296 = vperm.xlu0 %7389, %v4207_v16   ;;  %v9942_v16 = vsel %vm1739_vm0, %v9846_v5, 0.0  ;;  %vm1994_vm0 = vcmp.eq.s32.totalorder %v14750_v56, 1  ;;  %v4439_v56 = vsel %vm4406_vm5, 1, %v14512_v52  ;;  %vm1996_vm5 = vcmp.eq.s32.totalorder %v14771_v58, 1 }
 0x54e   : > { %v9927_v6 = vpop.permute.xlu1 %4011  ;;  %v9929_v30 = vpop.permute.xlu2 %4041  ;;  %v2027_v24 = vsel %vm1994_vm0, %v9925_v62, 0.0  ;;  %v2029_v58 = vsel %vm1996_vm5, %v9925_v62, 0.0 }
 0x54f   : > { %14740 = vst [vmem:[#allocation347_spill] sm:$0xff] %v9927_v6  ;;  %v9938_v2 = vpop.permute.xlu0 %4008  ;;  %v9966_v6 = vsel %vm1756_vm8, %v9846_v5, 0.0 }
 0x550   : > { %14741 = vst [vmem:[#allocation348_spill] sm:$0xff] %v9929_v30  ;;  %v2018_v30 = vsel %vm1985_vm4, %v9925_v62, 0.0 }
 0x551   : > { %14742 = vst [vmem:[#allocation349_spill] sm:$0xff] %v9938_v2  ;;  %v9952_v2 = vsel %vm1753_vm3, %v9846_v5, 0.0  ;;  %v9978_v57 = vadd.f32 %v2018_v30, %v1760_v17  ;;  %v9993_v17 = vsel %vm1752_vm14, %v9846_v5, 0.0  ;;  %v14753_v30 = vld [vmem:[#allocation59_spill] sm:$0xff]  ;;  %vm1989_vm14 = vcmp.eq.s32.totalorder %v14764_v39, 1 }
 0x552   : > { %vm1751_vm3 = vcmp.eq.s32.totalorder %v14753_v30, 1  ;;  %v14758_v30 = vld [vmem:[#allocation65_spill] sm:$0xff]  ;;  %v2022_v14 = vsel %vm1989_vm14, %v9925_v62, 0.0  ;;  %vm4414_vm14 = vcmp.eq.s32.totalorder %v9579_v29, 11 }
 0x553   : > { %vm1757_vm8 = vcmp.eq.s32.totalorder %v14758_v30, 1  ;;  %v10013_v47 = vsel %vm1751_vm3, %v9846_v5, 0.0  ;;  %v10030_v30 = vadd.f32 %v2027_v24, %v9920_v60  ;;  %v14766_v60 = vld [vmem:[#allocation73_spill] sm:$0xff]  ;;  %vm4411_vm3 = vcmp.eq.s32.totalorder %v9561_v1, 11 }
 0x554   : > { %4470 = vperm.xlu1 %7390, %v4437_v15   ;;  %4473 = vperm.xlu2 %7391, %v4438_v27   ;;  %v14754_v15 = vld [vmem:[#allocation60_spill] sm:$0xff]  ;;  %v10033_v11 = vsel %vm1757_vm8, %v9846_v5, 0.0  ;;  %vm2003_vm0 = vcmp.eq.s32.totalorder %v14766_v60, 1 }
 0x555   : > { %4305 = vperm.xlu0 %7389, %v4210_v22   ;;  %vm1755_vm4 = vcmp.eq.s32.totalorder %v14754_v15, 1  ;;  %v2024_v22 = vsel %vm1991_vm15, %v9925_v62, 0.0  ;;  %v4440_v15 = vsel %vm4407_vm1, 1, %v14512_v52  ;;  %vm1993_vm15 = vcmp.eq.s32.totalorder %v14765_v19, 1 }
 0x556   : > { %v9986_v61 = vpop.permute.xlu1 %4020  ;;  %v9988_v54 = vpop.permute.xlu2 %4212  ;;  %v10016_v18 = vsel %vm1755_vm4, %v9846_v5, 0.0  ;;  %vm4409_vm4 = vcmp.eq.s32.totalorder %v9421_v35, 11  ;;  %v2026_v0 = vsel %vm1993_vm15, %v9925_v62, 0.0 }
 0x557   : > { %14751 = vst [vmem:[#allocation53_spill] sm:$0xff] %v9986_v61  ;;  %v9997_v27 = vpop.permute.xlu0 %4017  ;;  %v10021_v61 = vadd.f32 %v2024_v22, %v9910_v43  ;;  %v14763_v22 = vld [vmem:[#allocation70_spill] sm:$0xff]  ;;  %v4442_v19 = vsel %vm4409_vm4, 1, %v14512_v52 }
 0x558   : > { %14752 = vst [vmem:[#allocation54_spill] sm:$0xff] %v9988_v54  ;;  %v14757_v54 = vld [vmem:[#allocation63_spill] sm:$0xff]  ;;  %vm2000_vm13 = vcmp.eq.s32.totalorder %v14763_v22, 1 }
 0x559   : > { %14755 = vst [vmem:[#allocation55_spill] sm:$0xff] %v9997_v27  ;;  %vm1758_vm7 = vcmp.eq.s32.totalorder %v14757_v54, 1  ;;  %v4441_v27 = vsel %vm4408_vm2, 1, %v14512_v52  ;;  %v14759_v54 = vld [vmem:[#allocation66_spill] sm:$0xff]  ;;  %vm4410_vm2 = vcmp.eq.s32.totalorder %v9568_v45, 11  ;;  %v2033_v1 = vsel %vm2000_vm13, %v9925_v62, 0.0 }
 0x55a   : > { %vm1987_vm9 = vcmp.eq.s32.totalorder %v14759_v54, 1  ;;  %v10027_v21 = vsel %vm1758_vm7, %v9846_v5, 0.0  ;;  %v14761_v54 = vld [vmem:[#allocation68_spill] sm:$0xff]  ;;  %v14767_v5 = vld [vmem:[#allocation74_spill] sm:$0xff]  ;;  %v4443_v35 = vsel %vm4410_vm2, 1, %v14512_v52  ;;  %vm4413_vm13 = vcmp.eq.s32.totalorder %v9586_v59, 11 }
 0x55b   : > { %vm1986_vm11 = vcmp.eq.s32.totalorder %v14761_v54, 1  ;;  %v2020_v43 = vsel %vm1987_vm9, %v9925_v62, 0.0  ;;  %vm1992_vm1 = vcmp.eq.s32.totalorder %v14767_v5, 1  ;;  %v2036_v54 = vsel %vm2003_vm0, %v9925_v62, 0.0 }
 0x55c   : > { %4479 = vperm.xlu1 %7390, %v4440_v15   ;;  %4482 = vperm.xlu2 %7391, %v4441_v27   ;;  %v2030_v27 = vsel %vm1997_vm10, %v9925_v62, 0.0  ;;  %v2019_v15 = vsel %vm1986_vm11, %v9925_v62, 0.0  ;;  %v10063_v45 = vadd.f32 %v2020_v43, %v9874_v9  ;;  %v2025_v5 = vsel %vm1992_vm1, %v9925_v62, 0.0 }
 0x55d   : > { %4476 = vperm.xlu0 %7389, %v4439_v56   ;;  %v2023_v56 = vsel %vm1990_vm12, %v9925_v62, 0.0  ;;  %v4444_v9 = vsel %vm4411_vm3, 1, %v14512_v52  ;;  %v10079_v43 = vadd.f32 %v2030_v27, %v9942_v16  ;;  %v10082_v22 = vadd.f32 %v2019_v15, %v9900_v28  ;;  %v14773_v27 = vld [vmem:[#allocation77_spill] sm:$0xff] }
 0x55e   : > { %v10044_v24 = vpop.permute.xlu1 %4029  ;;  %v10046_v12 = vpop.permute.xlu2 %4221  ;;  %v10085_v39 = vadd.f32 %v2023_v56, %v9856_v44  ;;  %v10099_v16 = vadd.f32 %v2036_v54, %v9972_v37  ;;  %v10102_v28 = vadd.f32 %v2025_v5, %v9906_v36  ;;  %v14772_v44 = vld [vmem:[#allocation76_spill] sm:$0xff]  ;;  %vm1995_vm7 = vcmp.eq.s32.totalorder %v14773_v27, 1  ;;  %v14777_v15 = vld [vmem:[#allocation81_spill] sm:$0xff]  ;;  %v14778_v37 = vld [vmem:[#allocation82_spill] sm:$0xff] }
 0x55f   : > { %14768 = vst [vmem:[#allocation56_spill] sm:$0xff] %v10044_v24  ;;  %v10059_v60 = vpop.permute.xlu0 %4026  ;;  %v10095_v24 = vadd.f32 %v2026_v0, %v9868_v4  ;;  %vm2006_vm6 = vcmp.eq.s32.totalorder %v14772_v44, 1  ;;  %v14776_v4 = vld [vmem:[#allocation80_spill] sm:$0xff]  ;;  %vm2002_vm11 = vcmp.eq.s32.totalorder %v14777_v15, 1  ;;  %vm2012_vm12 = vcmp.eq.s32.totalorder %v14778_v37, 1  ;;  %v14781_v0 = vld [vmem:[#allocation83_spill] sm:$0xff] }
 0x560   : > { %14769 = vst [vmem:[#allocation58_spill] sm:$0xff] %v10046_v12  ;;  %v10092_v12 = vadd.f32 %v2022_v14, %v9853_v23  ;;  %v14775_v23 = vld [vmem:[#allocation79_spill] sm:$0xff]  ;;  %vm1998_vm10 = vcmp.eq.s32.totalorder %v14776_v4, 1  ;;  %v2028_v14 = vsel %vm1995_vm7, %v9925_v62, 0.0  ;;  %vm2001_vm15 = vcmp.eq.s32.totalorder %v14781_v0, 1  ;;  %v14788_v0 = vld [vmem:[#allocation89_spill] sm:$0xff] }
 0x561   : > { %14770 = vst [vmem:[#allocation57_spill] sm:$0xff] %v10059_v60  ;;  %v10089_v60 = vadd.f32 %v2033_v1, %v9961_v42  ;;  %v14774_v42 = vld [vmem:[#allocation78_spill] sm:$0xff]  ;;  %vm2009_vm9 = vcmp.eq.s32.totalorder %v14775_v23, 1  ;;  %v2039_v1 = vsel %vm2006_vm6, %v9925_v62, 0.0  ;;  %vm4412_vm0 = vcmp.eq.s32.totalorder %v9436_v34, 11 }
 0x562   : > { %vm1999_vm8 = vcmp.eq.s32.totalorder %v14774_v42, 1  ;;  %v2042_v59 = vsel %vm2009_vm9, %v9925_v62, 0.0  ;;  %v2031_v29 = vsel %vm1998_vm10, %v9925_v62, 0.0  ;;  %v2045_v34 = vsel %vm2012_vm12, %v9925_v62, 0.0 }
 0x563   : > { %v2032_v5 = vsel %vm1999_vm8, %v9925_v62, 0.0  ;;  %v4447_v44 = vsel %vm4414_vm14, 1, %v14512_v52  ;;  %v10143_v27 = vadd.f32 %v2039_v1, %v9983_v10  ;;  %v10146_v42 = vadd.f32 %v2028_v14, %v9916_v49  ;;  %v14783_v49 = vld [vmem:[#allocation84_spill] sm:$0xff]  ;;  %v14784_v1 = vld [vmem:[#allocation85_spill] sm:$0xff]  ;;  %v14785_v14 = vld [vmem:[#allocation86_spill] sm:$0xff] }
 0x564   : > { %4488 = vperm.xlu1 %7390, %v4443_v35   ;;  %4491 = vperm.xlu2 %7391, %v4444_v9   ;;  %v2035_v35 = vsel %vm2002_vm11, %v9925_v62, 0.0  ;;  %v10137_v9 = vadd.f32 %v2029_v58, %v9871_v8  ;;  %v2034_v23 = vsel %vm2001_vm15, %v9925_v62, 0.0  ;;  %v4445_v4 = vsel %vm4412_vm0, 1, %v14512_v52 }
 0x565   : > { %4485 = vperm.xlu0 %7389, %v4442_v19   ;;  %v4446_v19 = vsel %vm4413_vm13, 1, %v14512_v52  ;;  %v10151_v15 = vadd.f32 %v2032_v5, %v9892_v20  ;;  %v10154_v8 = vadd.f32 %v2042_v59, %v10013_v47  ;;  %v10157_v58 = vadd.f32 %v2031_v29, %v9934_v55  ;;  %v10168_v20 = vld [vmem:[#allocation6 + $0x2] ss:$0 sm:$0xff]  ;;  %v14786_v55 = vld [vmem:[#allocation87_spill] sm:$0xff] }
 0x566   : > { %v10112_v36 = vpop.permute.xlu1 %4038  ;;  %v10114_v56 = vpop.permute.xlu2 %4230  ;;  %v10160_v37 = vadd.f32 %v2035_v35, %v9903_v31  ;;  %v10163_v10 = vadd.f32 %v2045_v34, %v10024_v51  ;;  %vm2005_vm1 = vcmp.eq.s32.totalorder %v14783_v49, 1  ;;  %vm2015_vm2 = vcmp.eq.s32.totalorder %v14784_v1, 1  ;;  %v14787_v31 = vld [vmem:[#allocation88_spill] sm:$0xff]  ;;  %v14789_v51 = vld [vmem:[#allocation90_spill] sm:$0xff]  ;;  %v14790_v5 = vld [vmem:[#allocation91_spill] sm:$0xff] }
 0x567   : > { %14779 = vst [vmem:[#allocation61_spill] sm:$0xff] %v10112_v36  ;;  %v10121_v54 = vpop.permute.xlu0 %4035  ;;  %vm2004_vm3 = vcmp.eq.s32.totalorder %v14785_v14, 1  ;;  %v10171_v47 = vadd.f32 %v2034_v23, %v9958_v26  ;;  %vm2008_vm4 = vcmp.eq.s32.totalorder %v14786_v55, 1  ;;  %vm2244_vm5 = vcmp.eq.s32.totalorder %v14787_v31, 1  ;;  %v14794_v23 = vld [vmem:[#allocation92_spill] sm:$0xff] }
 0x568   : > { %14780 = vst [vmem:[#allocation64_spill] sm:$0xff] %v10114_v56  ;;  %vm2007_vm6 = vcmp.eq.s32.totalorder %v14788_v0, 1  ;;  %vm2011_vm7 = vcmp.eq.s32.totalorder %v14789_v51, 1  ;;  %vm2247_vm8 = vcmp.eq.s32.totalorder %v14790_v5, 1  ;;  %vm4416_vm9 = vcmp.eq.s32.totalorder %v9604_v46, 11 }
 0x569   : > { %14782 = vst [vmem:[#allocation59_spill] sm:$0xff] %v10121_v54  ;;  %vm4417_vm10 = vcmp.eq.s32.totalorder %v9597_v40, 11  ;;  %v2038_v26 = vsel %vm2005_vm1, %v9925_v62, 0.0  ;;  %v2048_v35 = vsel %vm2015_vm2, %v9925_v62, 0.0  ;;  %v2037_v34 = vsel %vm2004_vm3, %v9925_v62, 0.0 }
 0x56a   : > { %vm4415_vm11 = vcmp.eq.s32.totalorder %v9759_v33, 11  ;;  %v2041_v46 = vsel %vm2008_vm4, %v9925_v62, 0.0  ;;  %v2277_v40 = vsel %vm2244_vm5, %v10168_v20, 0.0  ;;  %vm2010_vm12 = vcmp.eq.s32.totalorder %v14794_v23, 1 }
 0x56b   : > { %v2280_v49 = vsel %vm2247_vm8, %v10168_v20, 0.0  ;;  %v4449_v1 = vsel %vm4416_vm9, 1, %v14512_v52  ;;  %v4450_v14 = vsel %vm4417_vm10, 1, %v14512_v52  ;;  %v10205_v55 = vadd.f32 %v2038_v26, %v9913_v48 }
 0x56c   : > { %4497 = vperm.xlu1 %7390, %v4446_v19   ;;  %4500 = vperm.xlu2 %7391, %v4447_v44   ;;  %v2040_v44 = vsel %vm2007_vm6, %v9925_v62, 0.0  ;;  %v10208_v33 = vadd.f32 %v2048_v35, %v10033_v11  ;;  %v10211_v31 = vadd.f32 %v2037_v34, %v9969_v25  ;;  %v4448_v0 = vsel %vm4415_vm11, 1, %v14512_v52  ;;  %v14795_v25 = vld [vmem:[#allocation93_spill] sm:$0xff]  ;;  %v14796_v35 = vld [vmem:[#allocation94_spill] sm:$0xff] }
 0x56d   : > { %4494 = vperm.xlu0 %7389, %v4445_v4   ;;  %v2044_v4 = vsel %vm2011_vm7, %v9925_v62, 0.0  ;;  %v10215_v51 = vadd.f32 %v2041_v46, %v9923_v41  ;;  %v10218_v5 = vadd.f32 %v2277_v40, %v10082_v22  ;;  %v10221_v23 = vadd.f32 %v2040_v44, %v9976_v63  ;;  %v14797_v41 = vld [vmem:[#allocation95_spill] sm:$0xff]  ;;  %v14798_v22 = vld [vmem:[#allocation96_spill] sm:$0xff]  ;;  %v14799_v63 = vld [vmem:[#allocation97_spill] sm:$0xff] }
 0x56e   : > { %v10178_v59 = vpop.permute.xlu1 %4047  ;;  %v10180_v29 = vpop.permute.xlu2 %4239  ;;  %v2043_v48 = vsel %vm2010_vm12, %v9925_v62, 0.0  ;;  %v10225_v26 = vadd.f32 %v2044_v4, %v9952_v2  ;;  %v10228_v11 = vadd.f32 %v2280_v49, %v10092_v12  ;;  %vm2014_vm13 = vcmp.eq.s32.totalorder %v14795_v25, 1  ;;  %v14800_v34 = vld [vmem:[#allocation98_spill] sm:$0xff]  ;;  %v14801_v12 = vld [vmem:[#allocation99_spill] sm:$0xff]  ;;  %v14804_v49 = vld [vmem:[#allocation100_spill] sm:$0xff] }
 0x56f   : > { %14791 = vst [vmem:[#allocation60_spill] sm:$0xff] %v10178_v59  ;;  %v10193_v19 = vpop.permute.xlu0 %4044  ;;  %vm2250_vm14 = vcmp.eq.s32.totalorder %v14796_v35, 1  ;;  %vm2013_vm15 = vcmp.eq.s32.totalorder %v14797_v41, 1  ;;  %vm2243_vm0 = vcmp.eq.s32.totalorder %v14798_v22, 1  ;;  %vm2253_vm1 = vcmp.eq.s32.totalorder %v14799_v63, 1 }
 0x570   : > { %14792 = vst [vmem:[#allocation62_spill] sm:$0xff] %v10180_v29  ;;  %vm2016_vm2 = vcmp.eq.s32.totalorder %v14800_v34, 1  ;;  %v10237_v2 = vadd.f32 %v2043_v48, %v9993_v17  ;;  %vm2246_vm3 = vcmp.eq.s32.totalorder %v14801_v12, 1  ;;  %vm4419_vm4 = vcmp.eq.s32.totalorder %v9622_v53, 11  ;;  %v14806_v48 = vld [vmem:[#allocation101_spill] sm:$0xff] }
 0x571   : > { %14793 = vst [vmem:[#allocation63_spill] sm:$0xff] %v10193_v19  ;;  %vm4420_vm5 = vcmp.eq.s32.totalorder %v9615_v7, 11  ;;  %v2047_v44 = vsel %vm2014_vm13, %v9925_v62, 0.0  ;;  %v2283_v4 = vsel %vm2250_vm14, %v10168_v20, 0.0  ;;  %vm2256_vm6 = vcmp.eq.s32.totalorder %v14804_v49, 1  ;;  %v14884_v29 = vld [vmem:[#allocation153_spill] sm:$0xff] }
 0x572   : > { %vm4418_vm7 = vcmp.eq.s32.totalorder %v9774_v50, 11  ;;  %v2046_v17 = vsel %vm2013_vm15, %v9925_v62, 0.0  ;;  %v2276_v53 = vsel %vm2243_vm0, %v10168_v20, 0.0  ;;  %v2286_v7 = vsel %vm2253_vm1, %v10168_v20, 0.0 }
 0x573   : > { %vm2245_vm8 = vcmp.eq.s32.totalorder %v14806_v48, 1  ;;  %v4452_v50 = vsel %vm4419_vm4, 1, %v14512_v52  ;;  %v4453_v25 = vsel %vm4420_vm5, 1, %v14512_v52  ;;  %v10269_v35 = vadd.f32 %v2047_v44, %v9966_v6  ;;  %v14807_v44 = vld [vmem:[#allocation102_spill] sm:$0xff] }
 0x574   : > { %4506 = vperm.xlu1 %7390, %v4449_v1   ;;  %4509 = vperm.xlu2 %7391, %v4450_v14   ;;  %v2049_v14 = vsel %vm2016_vm2, %v9925_v62, 0.0  ;;  %v10272_v41 = vadd.f32 %v2283_v4, %v10102_v28  ;;  %v2289_v22 = vsel %vm2256_vm6, %v10168_v20, 0.0  ;;  %v4451_v63 = vsel %vm4418_vm7, 1, %v14512_v52  ;;  %v14808_v4 = vld [vmem:[#allocation103_spill] sm:$0xff] }
 0x575   : > { %4503 = vperm.xlu0 %7389, %v4448_v0   ;;  %v2279_v0 = vsel %vm2246_vm3, %v10168_v20, 0.0  ;;  %v10277_v62 = vadd.f32 %v2046_v17, %v10016_v18  ;;  %v10280_v34 = vadd.f32 %v2276_v53, %v9978_v57  ;;  %v10283_v12 = vadd.f32 %v2286_v7, %v10146_v42  ;;  %v14809_v18 = vld [vmem:[#allocation104_spill] sm:$0xff]  ;;  %v14810_v42 = vld [vmem:[#allocation105_spill] sm:$0xff] }
 0x576   : > { %v10240_v46 = vpop.permute.xlu1 %4218  ;;  %v10242_v40 = vpop.permute.xlu2 %4248  ;;  %v10286_v49 = vadd.f32 %v2049_v14, %v10027_v21  ;;  %v10289_v6 = vadd.f32 %v2279_v0, %v10007_v13  ;;  %v2278_v28 = vsel %vm2245_vm8, %v10168_v20, 0.0  ;;  %vm2249_vm9 = vcmp.eq.s32.totalorder %v14807_v44, 1  ;;  %v14811_v21 = vld [vmem:[#allocation106_spill] sm:$0xff]  ;;  %v14812_v13 = vld [vmem:[#allocation107_spill] sm:$0xff]  ;;  %v14813_v17 = vld [vmem:[#allocation108_spill] sm:$0xff] }
 0x577   : > { %14802 = vst [vmem:[#allocation65_spill] sm:$0xff] %v10240_v46  ;;  %v10249_v1 = vpop.permute.xlu0 %4215  ;;  %vm2259_vm10 = vcmp.eq.s32.totalorder %v14808_v4, 1  ;;  %v10295_v57 = vadd.f32 %v2289_v22, %v10157_v58  ;;  %vm2248_vm11 = vcmp.eq.s32.totalorder %v14809_v18, 1  ;;  %vm2252_vm12 = vcmp.eq.s32.totalorder %v14810_v42, 1  ;;  %v14818_v4 = vld [vmem:[#allocation110_spill] sm:$0xff] }
 0x578   : > { %14803 = vst [vmem:[#allocation66_spill] sm:$0xff] %v10242_v40  ;;  %vm2262_vm13 = vcmp.eq.s32.totalorder %v14811_v21, 1  ;;  %vm2251_vm14 = vcmp.eq.s32.totalorder %v14812_v13, 1  ;;  %vm2255_vm15 = vcmp.eq.s32.totalorder %v14813_v17, 1  ;;  %vm4422_vm0 = vcmp.eq.s32.totalorder %v9640_v3, 11  ;;  %v14833_v40 = vld [vmem:[#allocation119_spill] sm:$0xff] }
 0x579   : > { %14805 = vst [vmem:[#allocation67_spill] sm:$0xff] %v10249_v1  ;;  %vm4423_vm1 = vcmp.eq.s32.totalorder %v9633_v32, 11  ;;  %v10309_v58 = vadd.f32 %v2278_v28, %v10063_v45  ;;  %v2282_v14 = vsel %vm2249_vm9, %v10168_v20, 0.0  ;;  %v2292_v0 = vsel %vm2259_vm10, %v10168_v20, 0.0  ;;  %v14817_v45 = vld [vmem:[#allocation109_spill] sm:$0xff] }
 0x57a   : > { %vm4421_vm2 = vcmp.eq.s32.totalorder %v9789_v38, 11  ;;  %v2285_v3 = vsel %vm2252_vm12, %v10168_v20, 0.0  ;;  %v2295_v32 = vsel %vm2262_vm13, %v10168_v20, 0.0  ;;  %vm2265_vm3 = vcmp.eq.s32.totalorder %v14817_v45, 1  ;;  %v14827_v45 = vld [vmem:[#allocation301_spill] sm:$0xff] }
 0x57b   : > { %v2288_v22 = vsel %vm2255_vm15, %v10168_v20, 0.0  ;;  %v4456_v28 = vsel %vm4423_vm1, 1, %v14512_v52  ;;  %v10329_v44 = vadd.f32 %v2282_v14, %v10021_v61  ;;  %v10332_v38 = vadd.f32 %v2292_v0, %v10171_v47  ;;  %v14819_v14 = vld [vmem:[#allocation111_spill] sm:$0xff]  ;;  %v14820_v0 = vld [vmem:[#allocation112_spill] sm:$0xff] }
 0x57c   : > { %4515 = vperm.xlu1 %7390, %v4452_v50   ;;  %4518 = vperm.xlu2 %7391, %v4453_v25   ;;  %v2281_v50 = vsel %vm2248_vm11, %v10168_v20, 0.0  ;;  %v2284_v25 = vsel %vm2251_vm14, %v10168_v20, 0.0  ;;  %vm2254_vm4 = vcmp.eq.s32.totalorder %v14818_v4, 1  ;;  %v4454_v18 = vsel %vm4421_vm2, 1, %v14512_v52 }
 0x57d   : > { %4512 = vperm.xlu0 %7389, %v4451_v63   ;;  %v4455_v63 = vsel %vm4422_vm0, 1, %v14512_v52  ;;  %v10337_v42 = vadd.f32 %v2281_v50, %v10085_v39  ;;  %v10340_v21 = vadd.f32 %v2285_v3, %v10030_v30  ;;  %v10343_v13 = vadd.f32 %v2295_v32, %v10211_v31  ;;  %v14821_v39 = vld [vmem:[#allocation113_spill] sm:$0xff]  ;;  %v14822_v31 = vld [vmem:[#allocation114_spill] sm:$0xff]  ;;  %v14823_v50 = vld [vmem:[#allocation115_spill] sm:$0xff] }
 0x57e   : > { %v10302_v53 = vpop.permute.xlu1 %4227  ;;  %v10304_v7 = vpop.permute.xlu2 %4257  ;;  %v2298_v17 = vsel %vm2265_vm3, %v10168_v20, 0.0  ;;  %v10347_v61 = vadd.f32 %v2284_v25, %v10095_v24  ;;  %v10350_v47 = vadd.f32 %v2288_v22, %v10079_v43  ;;  %vm2258_vm5 = vcmp.eq.s32.totalorder %v14819_v14, 1  ;;  %v14824_v43 = vld [vmem:[#allocation116_spill] sm:$0xff]  ;;  %v14828_v25 = vld [vmem:[#allocation299_spill] sm:$0xff] }
 0x57f   : > { %14814 = vst [vmem:[#allocation68_spill] sm:$0xff] %v10302_v53  ;;  %v10317_v48 = vpop.permute.xlu0 %4224  ;;  %vm2268_vm6 = vcmp.eq.s32.totalorder %v14820_v0, 1  ;;  %v2287_v30 = vsel %vm2254_vm4, %v10168_v20, 0.0  ;;  %vm2257_vm7 = vcmp.eq.s32.totalorder %v14821_v39, 1  ;;  %vm2261_vm8 = vcmp.eq.s32.totalorder %v14822_v31, 1 }
 0x580   : > { %14815 = vst [vmem:[#allocation69_spill] sm:$0xff] %v10304_v7  ;;  %vm2271_vm9 = vcmp.eq.s32.totalorder %v14823_v50, 1  ;;  %v10359_v24 = vadd.f32 %v2298_v17, %v10221_v23  ;;  %vm2260_vm10 = vcmp.eq.s32.totalorder %v14824_v43, 1  ;;  %vm4425_vm11 = vcmp.eq.s32.totalorder %v14827_v45, 11  ;;  %v14831_v23 = vld [vmem:[#allocation333_spill] sm:$0xff]  ;;  %v14832_v45 = vld [vmem:[#allocation118_spill] sm:$0xff] }
 0x581   : > { %14816 = vst [vmem:[#allocation70_spill] sm:$0xff] %v10317_v48  ;;  %vm4426_vm12 = vcmp.eq.s32.totalorder %v14828_v25, 11  ;;  %v2291_v22 = vsel %vm2258_vm5, %v10168_v20, 0.0  ;;  %vm4424_vm14 = vcmp.eq.s32.totalorder %v14831_v23, 11  ;;  %v2290_v17 = vsel %vm2257_vm7, %v10168_v20, 0.0  ;;  %v14872_v48 = vld [vmem:[#allocation144_spill] sm:$0xff] }
 0x582   : > { %v2294_v14 = vsel %vm2261_vm8, %v10168_v20, 0.0  ;;  %v2304_v0 = vsel %vm2271_vm9, %v10168_v20, 0.0  ;;  %v2293_v43 = vsel %vm2260_vm10, %v10168_v20, 0.0  ;;  %vm2274_vm15 = vcmp.eq.s32.totalorder %v14832_v45, 1 }
 0x583   : > { %v4458_v25 = vsel %vm4425_vm11, 1, %v14512_v52  ;;  %v10399_v50 = vadd.f32 %v2290_v17, %v10151_v15  ;;  %v10402_v23 = vadd.f32 %v2294_v14, %v10099_v16  ;;  %v10405_v45 = vadd.f32 %v2304_v0, %v10277_v62  ;;  %v14836_v15 = vld [vmem:[#allocation122_spill] sm:$0xff]  ;;  %v14837_v62 = vld [vmem:[#allocation123_spill] sm:$0xff]  ;;  %v14839_v17 = vld [vmem:[#allocation125_spill] sm:$0xff] }
 0x584   : > { %4524 = vperm.xlu1 %7390, %v4455_v63   ;;  %4527 = vperm.xlu2 %7391, %v4456_v28   ;;  %v2301_v63 = vsel %vm2268_vm6, %v10168_v20, 0.0  ;;  %v14829_v28 = vld [vmem:[#allocation117_spill] sm:$0xff]  ;;  %vm2263_vm0 = vcmp.eq.s32.totalorder %v14833_v40, 1  ;;  %vm2266_vm3 = vcmp.eq.s32.totalorder %v14836_v15, 1  ;;  %vm2270_vm4 = vcmp.eq.s32.totalorder %v14837_v62, 1  ;;  %v14838_v40 = vld [vmem:[#allocation124_spill] sm:$0xff] }
 0x585   : > { %4521 = vperm.xlu0 %7389, %v4454_v18   ;;  %vm2264_vm13 = vcmp.eq.s32.totalorder %v14829_v28, 1  ;;  %v10375_v18 = vadd.f32 %v2287_v30, %v10137_v9  ;;  %v4459_v9 = vsel %vm4426_vm12, 1, %v14512_v52  ;;  %v10391_v30 = vadd.f32 %v2291_v22, %v10089_v60  ;;  %v10408_v60 = vld [vmem:[#allocation6 + $0x3] ss:$0 sm:$0xff] }
 0x586   : > { %v10362_v3 = vpop.permute.xlu1 %4236  ;;  %v10364_v32 = vpop.permute.xlu2 %4266  ;;  %v10394_v39 = vadd.f32 %v2301_v63, %v10237_v2  ;;  %v2297_v31 = vsel %vm2264_vm13, %v10168_v20, 0.0  ;;  %v4457_v28 = vsel %vm4424_vm14, 1, %v14512_v52  ;;  %v10411_v2 = vadd.f32 %v2293_v43, %v10160_v37  ;;  %v14834_v63 = vld [vmem:[#allocation120_spill] sm:$0xff]  ;;  %v14842_v43 = vld [vmem:[#allocation306_spill] sm:$0xff]  ;;  %v14845_v15 = vld [vmem:[#allocation337_spill] sm:$0xff] }
 0x587   : > { %14825 = vst [vmem:[#allocation71_spill] sm:$0xff] %v10362_v3  ;;  %v10371_v4 = vpop.permute.xlu0 %4233  ;;  %v2307_v22 = vsel %vm2274_vm15, %v10168_v20, 0.0  ;;  %vm2267_vm1 = vcmp.eq.s32.totalorder %v14834_v63, 1  ;;  %v10417_v16 = vadd.f32 %v2297_v31, %v10143_v27  ;;  %vm2506_vm5 = vcmp.eq.s32.totalorder %v14838_v40, 1  ;;  %v14860_v3 = vld [vmem:[#allocation136_spill] sm:$0xff] }
 0x588   : > { %14826 = vst [vmem:[#allocation72_spill] sm:$0xff] %v10364_v32  ;;  %v2296_v37 = vsel %vm2263_vm0, %v10168_v20, 0.0  ;;  %vm2269_vm6 = vcmp.eq.s32.totalorder %v14839_v17, 1  ;;  %vm4428_vm7 = vcmp.eq.s32.totalorder %v14842_v43, 11  ;;  %v10431_v27 = vadd.f32 %v2307_v22, %v10286_v49  ;;  %v14846_v49 = vld [vmem:[#allocation126_spill] sm:$0xff] }
 0x589   : > { %14830 = vst [vmem:[#allocation73_spill] sm:$0xff] %v10371_v4  ;;  %v14835_v4 = vld [vmem:[#allocation121_spill] sm:$0xff]  ;;  %vm4427_vm9 = vcmp.eq.s32.totalorder %v14845_v15, 11  ;;  %v2299_v62 = vsel %vm2266_vm3, %v10168_v20, 0.0  ;;  %v2303_v40 = vsel %vm2270_vm4, %v10168_v20, 0.0  ;;  %v2539_v17 = vsel %vm2506_vm5, %v10408_v60, 0.0 }
 0x58a   : > { %vm2503_vm2 = vcmp.eq.s32.totalorder %v14835_v4, 1  ;;  %vm2273_vm10 = vcmp.eq.s32.totalorder %v14846_v49, 1  ;;  %v10447_v22 = vadd.f32 %v2296_v37, %v10205_v55  ;;  %v2302_v63 = vsel %vm2269_vm6, %v10168_v20, 0.0 }
 0x58b   : > { %v2536_v31 = vsel %vm2503_vm2, %v10408_v60, 0.0  ;;  %v4461_v4 = vsel %vm4428_vm7, 1, %v14512_v52  ;;  %v10461_v49 = vadd.f32 %v2299_v62, %v10215_v51  ;;  %v10464_v55 = vadd.f32 %v2303_v40, %v10163_v10  ;;  %v14851_v51 = vld [vmem:[#allocation131_spill] sm:$0xff]  ;;  %v14854_v62 = vld [vmem:[#allocation134_spill] sm:$0xff] }
 0x58c   : > { %4533 = vperm.xlu1 %7390, %v4458_v25   ;;  %4536 = vperm.xlu2 %7391, %v4459_v9   ;;  %v14843_v25 = vld [vmem:[#allocation304_spill] sm:$0xff]  ;;  %v2300_v9 = vsel %vm2267_vm1, %v10168_v20, 0.0  ;;  %v10456_v15 = vadd.f32 %v2536_v31, %v10309_v58  ;;  %v10467_v37 = vadd.f32 %v2539_v17, %v10337_v42  ;;  %vm2501_vm15 = vcmp.eq.s32.totalorder %v14851_v51, 1  ;;  %v14853_v31 = vld [vmem:[#allocation133_spill] sm:$0xff] }
 0x58d   : > { %4530 = vperm.xlu0 %7389, %v4457_v28   ;;  %vm4429_vm8 = vcmp.eq.s32.totalorder %v14843_v25, 11  ;;  %v10453_v25 = vadd.f32 %v2300_v9, %v10154_v8  ;;  %v10471_v8 = vadd.f32 %v2302_v63, %v10225_v26  ;;  %v14848_v58 = vld [vmem:[#allocation128_spill] sm:$0xff]  ;;  %v14850_v9 = vld [vmem:[#allocation130_spill] sm:$0xff]  ;;  %vm2515_vm1 = vcmp.eq.s32.totalorder %v14853_v31, 1 }
 0x58e   : > { %v10424_v14 = vpop.permute.xlu1 %4245  ;;  %v10426_v0 = vpop.permute.xlu2 %4275  ;;  %v4462_v43 = vsel %vm4429_vm8, 1, %v14512_v52  ;;  %vm2272_vm12 = vcmp.eq.s32.totalorder %v14848_v58, 1  ;;  %vm2512_vm14 = vcmp.eq.s32.totalorder %v14850_v9, 1  ;;  %v14852_v42 = vld [vmem:[#allocation132_spill] sm:$0xff]  ;;  %vm2504_vm2 = vcmp.eq.s32.totalorder %v14854_v62, 1 }
 0x58f   : > { %14840 = vst [vmem:[#allocation74_spill] sm:$0xff] %v10424_v14  ;;  %v10439_v28 = vpop.permute.xlu0 %4242  ;;  %v14847_v14 = vld [vmem:[#allocation127_spill] sm:$0xff]  ;;  %vm2505_vm0 = vcmp.eq.s32.totalorder %v14852_v42, 1  ;;  %v10489_v63 = vld [vmem:[%s7996_s22 + $0xd8] sm:$0xff]  ;;  %v2534_v58 = vsel %vm2501_vm15, %v10408_v60, 0.0  ;;  %v2537_v9 = vsel %vm2504_vm2, %v10408_v60, 0.0 }
 0x590   : > { %14841 = vst [vmem:[#allocation75_spill] sm:$0xff] %v10426_v0  ;;  %vm2509_vm11 = vcmp.eq.s32.totalorder %v14847_v14, 1  ;;  %v2306_v0 = vsel %vm2273_vm10, %v10168_v20, 0.0  ;;  %v14849_v14 = vld [vmem:[#allocation129_spill] sm:$0xff]  ;;  %vm4431_vm3 = vcmp.eq.s32.totalorder %v10489_v63, 11  ;;  %v10537_v62 = vadd.f32 %v2534_v58, %v10280_v34  ;;  %v14864_v34 = vld [vmem:[#allocation140_spill] sm:$0xff] }
 0x591   : > { %14844 = vst [vmem:[#allocation76_spill] sm:$0xff] %v10439_v28  ;;  %v4460_v28 = vsel %vm4427_vm9, 1, %v14512_v52  ;;  %vm2502_vm13 = vcmp.eq.s32.totalorder %v14849_v14, 1  ;;  %v2542_v10 = vsel %vm2509_vm11, %v10408_v60, 0.0  ;;  %v10481_v26 = vadd.f32 %v2306_v0, %v10208_v33 }
 0x592   : > { %v2535_v33 = vsel %vm2502_vm13, %v10408_v60, 0.0  ;;  %v2545_v0 = vsel %vm2512_vm14, %v10408_v60, 0.0  ;;  %v2548_v14 = vsel %vm2515_vm1, %v10408_v60, 0.0  ;;  %vm2518_vm7 = vcmp.eq.s32.totalorder %v14860_v3, 1  ;;  %v14866_v3 = vld [vmem:[#allocation142_spill] sm:$0xff] }
 0x593   : > { %v10530_v42 = vadd.f32 %v2535_v33, %v10218_v5  ;;  %v10543_v32 = vadd.f32 %v2548_v14, %v10399_v50  ;;  %v10547_v5 = vadd.f32 %v2537_v9, %v10289_v6  ;;  %vm2510_vm11 = vcmp.eq.s32.totalorder %v14864_v34, 1  ;;  %v14865_v50 = vld [vmem:[#allocation141_spill] sm:$0xff]  ;;  %v14867_v33 = vld [vmem:[#allocation143_spill] sm:$0xff] }
 0x594   : > { %4542 = vperm.xlu1 %7390, %v4461_v4   ;;  %4545 = vperm.xlu2 %7391, %v4462_v43   ;;  %v10493_v4 = vld [vmem:[%s7996_s22 + $0xe0] sm:$0xff]  ;;  %vm2524_vm13 = vcmp.eq.s32.totalorder %v14866_v3, 1  ;;  %v2551_v6 = vsel %vm2518_vm7, %v10408_v60, 0.0  ;;  %vm2513_vm14 = vcmp.eq.s32.totalorder %v14867_v33, 1  ;;  %v10567_v14 = vld [vmem:[%s7996_s22 + $0xf8] sm:$0xff]  ;;  %vm2517_vm2 = vcmp.eq.s32.totalorder %v14872_v48, 1 }
 0x595   : > { %4539 = vperm.xlu0 %7389, %v4460_v28   ;;  %vm4432_vm4 = vcmp.eq.s32.totalorder %v10493_v4, 11  ;;  %v2305_v28 = vsel %vm2272_vm12, %v10168_v20, 0.0  ;;  %v2538_v20 = vsel %vm2505_vm0, %v10408_v60, 0.0  ;;  %vm2514_vm12 = vcmp.eq.s32.totalorder %v14865_v50, 1  ;;  %v14874_v48 = vld [vmem:[#allocation146_spill] sm:$0xff] }
 0x596   : > { %v10484_v40 = vpop.permute.xlu1 %4254  ;;  %v10486_v17 = vpop.permute.xlu2 %4284  ;;  %v10527_v51 = vadd.f32 %v2305_v28, %v10269_v35  ;;  %v14862_v28 = vld [vmem:[#allocation138_spill] sm:$0xff]  ;;  %vm4435_vm0 = vcmp.eq.s32.totalorder %v10567_v14, 11 }
 0x597   : > { %14855 = vst [vmem:[#allocation77_spill] sm:$0xff] %v10484_v40  ;;  %v10505_v43 = vpop.permute.xlu0 %4251  ;;  %v10509_v40 = vadd.f32 %v2542_v10, %v10347_v61  ;;  %v4464_v61 = vsel %vm4431_vm3, 1, %v14512_v52  ;;  %v4465_v10 = vsel %vm4432_vm4, 1, %v14512_v52  ;;  %vm2511_vm9 = vcmp.eq.s32.totalorder %v14862_v28, 1 }
 0x598   : > { %14856 = vst [vmem:[#allocation78_spill] sm:$0xff] %v10486_v17  ;;  %v14858_v17 = vld [vmem:[#allocation341_spill] sm:$0xff]  ;;  %v10595_v28 = vadd.f32 %v2551_v6, %v10411_v2  ;;  %v4468_v34 = vsel %vm4435_vm0, 1, %v14512_v52  ;;  %vm2516_vm4 = vcmp.eq.s32.totalorder %v14874_v48, 1 }
 0x599   : > { %14857 = vst [vmem:[#allocation79_spill] sm:$0xff] %v10505_v43  ;;  %vm4430_vm5 = vcmp.eq.s32.totalorder %v14858_v17, 11  ;;  %v14859_v17 = vld [vmem:[#allocation135_spill] sm:$0xff]  ;;  %v10533_v43 = vadd.f32 %v2545_v0, %v10375_v18  ;;  %v14861_v18 = vld [vmem:[#allocation137_spill] sm:$0xff] }
 0x59a   : > { %vm2508_vm6 = vcmp.eq.s32.totalorder %v14859_v17, 1  ;;  %v4463_v31 = vsel %vm4430_vm5, 1, %v14512_v52  ;;  %v10540_v17 = vadd.f32 %v2538_v20, %v10228_v11  ;;  %vm2507_vm8 = vcmp.eq.s32.totalorder %v14861_v18, 1  ;;  %v14863_v11 = vld [vmem:[#allocation139_spill] sm:$0xff] }
 0x59b   : > { %v2541_v35 = vsel %vm2508_vm6, %v10408_v60, 0.0  ;;  %vm2521_vm10 = vcmp.eq.s32.totalorder %v14863_v11, 1  ;;  %v10563_v20 = vld [vmem:[%s7996_s22 + $0xf0] sm:$0xff]  ;;  %v2557_v18 = vsel %vm2524_vm13, %v10408_v60, 0.0  ;;  %v2546_v11 = vsel %vm2513_vm14, %v10408_v60, 0.0 }
 0x59c   : > { %4551 = vperm.xlu1 %7390, %v4464_v61   ;;  %4554 = vperm.xlu2 %7391, %v4465_v10   ;;  %vm4434_vm15 = vcmp.eq.s32.totalorder %v10563_v20, 11  ;;  %v10571_v9 = vadd.f32 %v2541_v35, %v10272_v41  ;;  %v2540_v61 = vsel %vm2507_vm8, %v10408_v60, 0.0  ;;  %v2544_v10 = vsel %vm2511_vm9, %v10408_v60, 0.0 }
 0x59d   : > { %4548 = vperm.xlu0 %7389, %v4463_v31   ;;  %v2543_v41 = vsel %vm2510_vm11, %v10408_v60, 0.0  ;;  %v2547_v35 = vsel %vm2514_vm12, %v10408_v60, 0.0  ;;  %v10606_v50 = vadd.f32 %v2544_v10, %v10283_v12  ;;  %v10620_v7 = vadd.f32 %v2557_v18, %v10461_v49  ;;  %v14873_v12 = vld [vmem:[#allocation145_spill] sm:$0xff]  ;;  %v14878_v49 = vld [vmem:[#allocation150_spill] sm:$0xff]  ;;  %v14880_v10 = vld [vmem:[#allocation152_spill] sm:$0xff] }
 0x59e   : > { %v10558_v0 = vpop.permute.xlu1 %4263  ;;  %v10560_v58 = vpop.permute.xlu2 %4293  ;;  %v10614_v6 = vadd.f32 %v2543_v41, %v10340_v21  ;;  %v10617_v33 = vadd.f32 %v2547_v35, %v10295_v57  ;;  %vm2527_vm3 = vcmp.eq.s32.totalorder %v14873_v12, 1  ;;  %v2550_v21 = vsel %vm2517_vm2, %v10408_v60, 0.0  ;;  %v14876_v57 = vld [vmem:[#allocation148_spill] sm:$0xff]  ;;  %v10641_v18 = vld [vmem:[%s7996_s22 + $0x8] sm:$0xff] }
 0x59f   : > { %14868 = vst [vmem:[#allocation80_spill] sm:$0xff] %v10558_v0  ;;  %v10579_v31 = vpop.permute.xlu0 %4260  ;;  %v2554_v0 = vsel %vm2521_vm10, %v10408_v60, 0.0  ;;  %vm2530_vm6 = vcmp.eq.s32.totalorder %v14876_v57, 1  ;;  %vm2523_vm8 = vcmp.eq.s32.totalorder %v14878_v49, 1  ;;  %vm2522_vm10 = vcmp.eq.s32.totalorder %v14880_v10, 1 }
 0x5a0   : > { %14869 = vst [vmem:[#allocation81_spill] sm:$0xff] %v10560_v58  ;;  %v14871_v58 = vld [vmem:[#allocation345_spill] sm:$0xff]  ;;  %v10611_v2 = vadd.f32 %v2554_v0, %v10447_v22  ;;  %v14879_v0 = vld [vmem:[#allocation151_spill] sm:$0xff]  ;;  %vm4663_vm11 = vcmp.eq.s32.totalorder %v10641_v18, 12  ;;  %v10664_v53 = vadd.f32 %v2550_v21, %v10332_v38  ;;  %v2563_v12 = vsel %vm2530_vm6, %v10408_v60, 0.0 }
 0x5a1   : > { %14870 = vst [vmem:[#allocation82_spill] sm:$0xff] %v10579_v31  ;;  %vm4433_vm1 = vcmp.eq.s32.totalorder %v14871_v58, 11  ;;  %v4467_v58 = vsel %vm4434_vm15, 1, %v14512_v52  ;;  %v10603_v31 = vadd.f32 %v2540_v61, %v10329_v44  ;;  %v10623_v44 = vadd.f32 %v2546_v11, %v10350_v47  ;;  %v14875_v61 = vld [vmem:[#allocation147_spill] sm:$0xff]  ;;  %v14877_v22 = vld [vmem:[#allocation149_spill] sm:$0xff] }
 0x5a2   : > { %v4466_v3 = vsel %vm4433_vm1, 1, %v14512_v52  ;;  %vm2520_vm5 = vcmp.eq.s32.totalorder %v14875_v61, 1  ;;  %vm2519_vm7 = vcmp.eq.s32.totalorder %v14877_v22, 1  ;;  %v10632_v47 = vld [vmem:[#allocation6 + $0x4] ss:$0 sm:$0xff]  ;;  %vm2759_vm9 = vcmp.eq.s32.totalorder %v14879_v0, 1 }
 0x5a3   : > { %v10645_v11 = vld [vmem:[%s7996_s22 + $0x10] sm:$0xff]  ;;  %v2552_v48 = vsel %vm2519_vm7, %v10408_v60, 0.0  ;;  %v2556_v61 = vsel %vm2523_vm8, %v10408_v60, 0.0  ;;  %v2555_v38 = vsel %vm2522_vm10, %v10408_v60, 0.0  ;;  %v4696_v21 = vsel %vm4663_vm11, 1, %v14512_v52 }
 0x5a4   : > { %4560 = vperm.xlu1 %7390, %v4467_v58   ;;  %4563 = vperm.xlu2 %7391, %v4468_v34   ;;  %vm4664_vm12 = vcmp.eq.s32.totalorder %v10645_v11, 12  ;;  %v2560_v58 = vsel %vm2527_vm3, %v10408_v60, 0.0  ;;  %v2549_v34 = vsel %vm2516_vm4, %v10408_v60, 0.0  ;;  %v10694_v46 = vadd.f32 %v2563_v12, %v10527_v51  ;;  %v14886_v51 = vld [vmem:[#allocation155_spill] sm:$0xff] }
 0x5a5   : > { %4557 = vperm.xlu0 %7389, %v4466_v3   ;;  %v2553_v3 = vsel %vm2520_vm5, %v10408_v60, 0.0  ;;  %v4697_v57 = vsel %vm4664_vm12, 1, %v14512_v52  ;;  %v10684_v1 = vadd.f32 %v2560_v58, %v10471_v8  ;;  %v10687_v22 = vadd.f32 %v2549_v34, %v10391_v30  ;;  %v14885_v8 = vld [vmem:[#allocation154_spill] sm:$0xff] }
 0x5a6   : > { %v10636_v41 = vpop.permute.xlu1 %4272  ;;  %v10638_v35 = vpop.permute.xlu2 %4302  ;;  %v10690_v49 = vadd.f32 %v2553_v3, %v10343_v13  ;;  %v10697_v10 = vadd.f32 %v2552_v48, %v10402_v23  ;;  %v10700_v19 = vadd.f32 %v2556_v61, %v10359_v24  ;;  %vm2526_vm14 = vcmp.eq.s32.totalorder %v14884_v29, 1  ;;  %v14887_v23 = vld [vmem:[#allocation156_spill] sm:$0xff]  ;;  %v14888_v24 = vld [vmem:[#allocation157_spill] sm:$0xff]  ;;  %v14889_v58 = vld [vmem:[#allocation158_spill] sm:$0xff] }
 0x5a7   : > { %14881 = vst [vmem:[#allocation83_spill] sm:$0xff] %v10636_v41  ;;  %v10660_v41 = vld [vmem:[%s7996_s22] sm:$0xff]  ;;  %v10707_v13 = vadd.f32 %v2555_v38, %v10417_v16  ;;  %vm2762_vm15 = vcmp.eq.s32.totalorder %v14885_v8, 1  ;;  %vm2525_vm0 = vcmp.eq.s32.totalorder %v14886_v51, 1  ;;  %vm2529_vm1 = vcmp.eq.s32.totalorder %v14887_v23, 1  ;;  %v14890_v29 = vld [vmem:[#allocation159_spill] sm:$0xff] }
 0x5a8   : > { %14882 = vst [vmem:[#allocation84_spill] sm:$0xff] %v10638_v35  ;;  %v10657_v35 = vpop.permute.xlu0 %4269  ;;  %vm4662_vm13 = vcmp.eq.s32.totalorder %v10660_v41, 12  ;;  %vm2765_vm2 = vcmp.eq.s32.totalorder %v14888_v24, 1  ;;  %vm2528_vm3 = vcmp.eq.s32.totalorder %v14889_v58, 1  ;;  %vm2532_vm4 = vcmp.eq.s32.totalorder %v14890_v29, 1  ;;  %v10722_v3 = vld [vmem:[%s7996_s22 + $0x20] sm:$0xff] }
 0x5a9   : > { %14883 = vst [vmem:[#allocation85_spill] sm:$0xff] %v10657_v35  ;;  %v2792_v35 = vsel %vm2759_vm9, %v10632_v47, 0.0  ;;  %v4695_v0 = vsel %vm4662_vm13, 1, %v14512_v52  ;;  %v2559_v16 = vsel %vm2526_vm14, %v10408_v60, 0.0  ;;  %vm4666_vm6 = vcmp.eq.s32.totalorder %v10722_v3, 12  ;;  %v10726_v12 = vld [vmem:[%s7996_s22 + $0x28] sm:$0xff] }
 0x5aa   : > { %v10704_v30 = vadd.f32 %v2792_v35, %v10537_v62  ;;  %v14891_v62 = vld [vmem:[#allocation160_spill] sm:$0xff]  ;;  %vm4667_vm7 = vcmp.eq.s32.totalorder %v10726_v12, 12  ;;  %v2795_v48 = vsel %vm2762_vm15, %v10632_v47, 0.0  ;;  %v2558_v61 = vsel %vm2525_vm0, %v10408_v60, 0.0  ;;  %v14894_v38 = vld [vmem:[#allocation161_spill] sm:$0xff] }
 0x5ab   : > { %vm2768_vm5 = vcmp.eq.s32.totalorder %v14891_v62, 1  ;;  %vm2531_vm8 = vcmp.eq.s32.totalorder %v14894_v38, 1  ;;  %v2798_v8 = vsel %vm2765_vm2, %v10632_v47, 0.0  ;;  %v2561_v51 = vsel %vm2528_vm3, %v10408_v60, 0.0 }
 0x5ac   : > { %4731 = vperm.xlu1 %7390, %v4696_v21   ;;  %4734 = vperm.xlu2 %7391, %v4697_v57   ;;  %v10739_v57 = vld [vmem:[%s7996_s22 + $0x18] sm:$0xff]  ;;  %v2565_v38 = vsel %vm2532_vm4, %v10408_v60, 0.0  ;;  %v2801_v23 = vsel %vm2768_vm5, %v10632_v47, 0.0  ;;  %v4700_v24 = vsel %vm4667_vm7, 1, %v14512_v52  ;;  %v10766_v58 = vadd.f32 %v2558_v61, %v10453_v25 }
 0x5ad   : > { %4728 = vperm.xlu0 %7389, %v4695_v0   ;;  %vm4665_vm9 = vcmp.eq.s32.totalorder %v10739_v57, 12  ;;  %v2562_v0 = vsel %vm2529_vm1, %v10408_v60, 0.0  ;;  %v2564_v29 = vsel %vm2531_vm8, %v10408_v60, 0.0  ;;  %v10777_v62 = vadd.f32 %v2561_v51, %v10464_v55  ;;  %v14897_v60 = vld [vmem:[#allocation163_spill] sm:$0xff]  ;;  %v14899_v55 = vld [vmem:[#allocation165_spill] sm:$0xff] }
 0x5ae   : > { %v10717_v35 = vpop.permute.xlu1 %4281  ;;  %v10719_v34 = vpop.permute.xlu2 %4473  ;;  %v4698_v59 = vsel %vm4665_vm9, 1, %v14512_v52  ;;  %v10780_v54 = vadd.f32 %v2565_v38, %v10431_v27  ;;  %v10783_v25 = vadd.f32 %v2801_v23, %v10614_v6  ;;  %vm2771_vm11 = vcmp.eq.s32.totalorder %v14897_v60, 1  ;;  %v14900_v27 = vld [vmem:[#allocation166_spill] sm:$0xff]  ;;  %v14902_v6 = vld [vmem:[#allocation168_spill] sm:$0xff]  ;;  %v14903_v61 = vld [vmem:[#allocation169_spill] sm:$0xff] }
 0x5af   : > { %14892 = vst [vmem:[#allocation86_spill] sm:$0xff] %v10717_v35  ;;  %v10763_v35 = vadd.f32 %v2795_v48, %v10547_v5  ;;  %v14896_v5 = vld [vmem:[#allocation162_spill] sm:$0xff]  ;;  %vm2764_vm13 = vcmp.eq.s32.totalorder %v14899_v55, 1  ;;  %vm2774_vm14 = vcmp.eq.s32.totalorder %v14900_v27, 1  ;;  %v14901_v48 = vld [vmem:[#allocation167_spill] sm:$0xff]  ;;  %vm2767_vm0 = vcmp.eq.s32.totalorder %v14902_v6, 1 }
 0x5b0   : > { %14893 = vst [vmem:[#allocation87_spill] sm:$0xff] %v10719_v34  ;;  %v10736_v21 = vpop.permute.xlu0 %4278  ;;  %v4699_v34 = vsel %vm4666_vm6, 1, %v14512_v52  ;;  %vm2761_vm10 = vcmp.eq.s32.totalorder %v14896_v5, 1  ;;  %vm2763_vm15 = vcmp.eq.s32.totalorder %v14901_v48, 1  ;;  %vm2777_vm1 = vcmp.eq.s32.totalorder %v14903_v61, 1 }
 0x5b1   : > { %14895 = vst [vmem:[#allocation88_spill] sm:$0xff] %v10736_v21  ;;  %v10755_v21 = vadd.f32 %v2559_v16, %v10394_v39  ;;  %v10771_v39 = vadd.f32 %v2562_v0, %v10405_v45  ;;  %v10774_v16 = vadd.f32 %v2798_v8, %v10603_v31  ;;  %v14898_v45 = vld [vmem:[#allocation164_spill] sm:$0xff]  ;;  %v10789_v31 = vadd.f32 %v2564_v29, %v10481_v26  ;;  %v10805_v26 = vld [vmem:[%s7996_s22 + $0x40] sm:$0xff] }
 0x5b2   : > { %vm2760_vm12 = vcmp.eq.s32.totalorder %v14898_v45, 1  ;;  %vm4670_vm3 = vcmp.eq.s32.totalorder %v10805_v26, 12  ;;  %v2804_v51 = vsel %vm2771_vm11, %v10632_v47, 0.0  ;;  %v2797_v29 = vsel %vm2764_vm13, %v10632_v47, 0.0  ;;  %v14908_v45 = vld [vmem:[#allocation170_spill] sm:$0xff] }
 0x5b3   : > { %v2793_v38 = vsel %vm2760_vm12, %v10632_v47, 0.0  ;;  %v2807_v5 = vsel %vm2774_vm14, %v10632_v47, 0.0  ;;  %v2796_v60 = vsel %vm2763_vm15, %v10632_v47, 0.0  ;;  %vm2766_vm5 = vcmp.eq.s32.totalorder %v14908_v45, 1 }
 0x5b4   : > { %4740 = vperm.xlu1 %7390, %v4699_v34   ;;  %4743 = vperm.xlu2 %7391, %v4700_v24   ;;  %v10801_v34 = vld [vmem:[%s7996_s22 + $0x38] sm:$0xff]  ;;  %v10820_v24 = vld [vmem:[%s7996_s22 + $0x30] sm:$0xff]  ;;  %v10845_v48 = vadd.f32 %v2804_v51, %v10623_v44  ;;  %v10848_v45 = vadd.f32 %v2793_v38, %v10530_v42  ;;  %v10852_v56 = vadd.f32 %v2797_v29, %v10467_v37 }
 0x5b5   : > { %4737 = vperm.xlu0 %7389, %v4698_v59   ;;  %14906 = vst [vmem:[#allocation91_spill] sm:$0xff] %v10801_v34  ;;  %vm4669_vm2 = vcmp.eq.s32.totalorder %v10801_v34, 12  ;;  %v2794_v59 = vsel %vm2761_vm10, %v10632_v47, 0.0  ;;  %vm4668_vm4 = vcmp.eq.s32.totalorder %v10820_v24, 12  ;;  %v10855_v61 = vadd.f32 %v2807_v5, %v10687_v22  ;;  %v14910_v37 = vld [vmem:[#allocation172_spill] sm:$0xff]  ;;  %v14911_v22 = vld [vmem:[#allocation173_spill] sm:$0xff] }
 0x5b6   : > { %v10796_v0 = vpop.permute.xlu1 %4290  ;;  %v10798_v8 = vpop.permute.xlu2 %4482  ;;  %v4702_v55 = vsel %vm4669_vm2, 1, %v14512_v52  ;;  %v10842_v27 = vadd.f32 %v2794_v59, %v10456_v15  ;;  %v4701_v6 = vsel %vm4668_vm4, 1, %v14512_v52  ;;  %v10858_v36 = vadd.f32 %v2796_v60, %v10540_v17  ;;  %v14909_v59 = vld [vmem:[#allocation171_spill] sm:$0xff]  ;;  %v14912_v17 = vld [vmem:[#allocation174_spill] sm:$0xff]  ;;  %v14914_v38 = vld [vmem:[#allocation176_spill] sm:$0xff] }
 0x5b7   : > { %14904 = vst [vmem:[#allocation89_spill] sm:$0xff] %v10796_v0  ;;  %v4703_v0 = vsel %vm4670_vm3, 1, %v14512_v52  ;;  %v2799_v15 = vsel %vm2766_vm5, %v10632_v47, 0.0  ;;  %vm2770_vm6 = vcmp.eq.s32.totalorder %v14909_v59, 1  ;;  %vm2780_vm7 = vcmp.eq.s32.totalorder %v14910_v37, 1  ;;  %v14913_v51 = vld [vmem:[#allocation175_spill] sm:$0xff] }
 0x5b8   : > { %14905 = vst [vmem:[#allocation90_spill] sm:$0xff] %v10798_v8  ;;  %v10817_v23 = vpop.permute.xlu0 %4287  ;;  %v2810_v8 = vsel %vm2777_vm1, %v10632_v47, 0.0  ;;  %vm2769_vm8 = vcmp.eq.s32.totalorder %v14911_v22, 1  ;;  %vm2773_vm9 = vcmp.eq.s32.totalorder %v14912_v17, 1  ;;  %vm2783_vm10 = vcmp.eq.s32.totalorder %v14913_v51, 1  ;;  %v10886_v29 = vld [vmem:[%s7996_s22 + $0x58] sm:$0xff] }
 0x5b9   : > { %14907 = vst [vmem:[#allocation92_spill] sm:$0xff] %v10817_v23  ;;  %v2800_v23 = vsel %vm2767_vm0, %v10632_v47, 0.0  ;;  %v10865_v42 = vadd.f32 %v2810_v8, %v10697_v10  ;;  %vm2772_vm11 = vcmp.eq.s32.totalorder %v14914_v38, 1  ;;  %v14915_v10 = vld [vmem:[#allocation177_spill] sm:$0xff]  ;;  %vm4673_vm14 = vcmp.eq.s32.totalorder %v10886_v29, 12  ;;  %v14920_v60 = vld [vmem:[#allocation178_spill] sm:$0xff] }
 0x5ba   : > { %v10862_v44 = vadd.f32 %v2800_v23, %v10509_v40  ;;  %v10874_v40 = vadd.f32 %v2799_v15, %v10571_v9  ;;  %vm2776_vm12 = vcmp.eq.s32.totalorder %v14915_v10, 1  ;;  %14919 = vst [vmem:[#allocation96_spill] sm:$0xff] %v10886_v29  ;;  %v2803_v5 = vsel %vm2770_vm6, %v10632_v47, 0.0 }
 0x5bb   : > { %v2813_v9 = vsel %vm2780_vm7, %v10632_v47, 0.0  ;;  %vm2786_vm15 = vcmp.eq.s32.totalorder %v14920_v60, 1  ;;  %v2802_v15 = vsel %vm2769_vm8, %v10632_v47, 0.0  ;;  %v2806_v59 = vsel %vm2773_vm9, %v10632_v47, 0.0 }
 0x5bc   : > { %4749 = vperm.xlu1 %7390, %v4702_v55   ;;  %4752 = vperm.xlu2 %7391, %v4703_v0   ;;  %v10882_v0 = vld [vmem:[%s7996_s22 + $0x50] sm:$0xff]  ;;  %v2816_v37 = vsel %vm2783_vm10, %v10632_v47, 0.0  ;;  %v2805_v60 = vsel %vm2772_vm11, %v10632_v47, 0.0  ;;  %v10921_v17 = vadd.f32 %v2803_v5, %v10533_v43  ;;  %v10924_v51 = vadd.f32 %v2813_v9, %v10707_v13  ;;  %v14925_v9 = vld [vmem:[#allocation181_spill] sm:$0xff] }
 0x5bd   : > { %4746 = vperm.xlu0 %7389, %v4701_v6   ;;  %14918 = vst [vmem:[#allocation95_spill] sm:$0xff] %v10882_v0  ;;  %vm4672_vm13 = vcmp.eq.s32.totalorder %v10882_v0, 12  ;;  %v10899_v6 = vld [vmem:[%s7996_s22 + $0x48] sm:$0xff]  ;;  %v2819_v0 = vsel %vm2786_vm15, %v10632_v47, 0.0  ;;  %v10929_v29 = vadd.f32 %v2802_v15, %v10606_v50  ;;  %v10932_v10 = vadd.f32 %v2806_v59, %v10543_v32  ;;  %v14924_v5 = vld [vmem:[#allocation180_spill] sm:$0xff] }
 0x5be   : > { %v10877_v8 = vpop.permute.xlu1 %4299  ;;  %v10879_v23 = vpop.permute.xlu2 %4491  ;;  %14922 = vst [vmem:[#allocation98_spill] sm:$0xff] %v10899_v6  ;;  %vm4671_vm0 = vcmp.eq.s32.totalorder %v10899_v6, 12  ;;  %v4705_v22 = vsel %vm4672_vm13, 1, %v14512_v52  ;;  %v10938_v34 = vadd.f32 %v2805_v60, %v10617_v33  ;;  %vm2779_vm2 = vcmp.eq.s32.totalorder %v14924_v5, 1  ;;  %v10946_v50 = vld [vmem:[#allocation6 + $0x5] ss:$0 sm:$0xff] }
 0x5bf   : > { %14916 = vst [vmem:[#allocation93_spill] sm:$0xff] %v10877_v8  ;;  %v4706_v8 = vsel %vm4673_vm14, 1, %v14512_v52  ;;  %v4704_v38 = vsel %vm4671_vm0, 1, %v14512_v52  ;;  %vm2789_vm3 = vcmp.eq.s32.totalorder %v14925_v9, 1  ;;  %v10949_v32 = vadd.f32 %v2819_v0, %v10777_v62  ;;  %v14926_v33 = vld [vmem:[#allocation182_spill] sm:$0xff]  ;;  %v10965_v62 = vld [vmem:[%s7996_s22 + $0x70] sm:$0xff] }
 0x5c0   : > { %14917 = vst [vmem:[#allocation94_spill] sm:$0xff] %v10879_v23  ;;  %v10896_v55 = vpop.permute.xlu0 %4296  ;;  %v14923_v23 = vld [vmem:[#allocation179_spill] sm:$0xff]  ;;  %vm2778_vm4 = vcmp.eq.s32.totalorder %v14926_v33, 1  ;;  %v14930_v15 = vld [vmem:[#allocation186_spill] sm:$0xff]  ;;  %vm4676_vm10 = vcmp.eq.s32.totalorder %v10965_v62, 12  ;;  %v2812_v60 = vsel %vm2779_vm2, %v10632_v47, 0.0 }
 0x5c1   : > { %14921 = vst [vmem:[#allocation97_spill] sm:$0xff] %v10896_v55  ;;  %v2809_v55 = vsel %vm2776_vm12, %v10632_v47, 0.0  ;;  %vm2775_vm1 = vcmp.eq.s32.totalorder %v14923_v23, 1  ;;  %v10935_v23 = vadd.f32 %v2816_v37, %v10766_v58  ;;  %v14927_v58 = vld [vmem:[#allocation183_spill] sm:$0xff]  ;;  %vm2785_vm8 = vcmp.eq.s32.totalorder %v14930_v15, 1 }
 0x5c2   : > { %v10941_v43 = vadd.f32 %v2809_v55, %v10595_v28  ;;  %v2808_v13 = vsel %vm2775_vm1, %v10632_v47, 0.0  ;;  %vm2782_vm5 = vcmp.eq.s32.totalorder %v14927_v58, 1  ;;  %v14928_v28 = vld [vmem:[#allocation184_spill] sm:$0xff]  ;;  %v14929_v55 = vld [vmem:[#allocation185_spill] sm:$0xff]  ;;  %14934 = vst [vmem:[#allocation102_spill] sm:$0xff] %v10965_v62  ;;  %v14937_v5 = vld [vmem:[#allocation187_spill] sm:$0xff]  ;;  %v11002_v58 = vadd.f32 %v2812_v60, %v10611_v2 }
 0x5c3   : > { %vm3018_vm6 = vcmp.eq.s32.totalorder %v14928_v28, 1  ;;  %vm2781_vm7 = vcmp.eq.s32.totalorder %v14929_v55, 1  ;;  %v10969_v0 = vadd.f32 %v2808_v13, %v10664_v53  ;;  %v2815_v53 = vsel %vm2782_vm5, %v10632_v47, 0.0  ;;  %v14938_v62 = vld [vmem:[#allocation188_spill] sm:$0xff]  ;;  %v14943_v60 = vld [vmem:[#allocation193_spill] sm:$0xff] }
 0x5c4   : > { %4758 = vperm.xlu1 %7390, %v4705_v22   ;;  %4761 = vperm.xlu2 %7391, %v4706_v8   ;;  %v10961_v8 = vld [vmem:[%s7996_s22 + $0x68] sm:$0xff]  ;;  %v2822_v22 = vsel %vm2789_vm3, %v10632_v47, 0.0  ;;  %v3051_v13 = vsel %vm3018_vm6, %v10946_v50, 0.0  ;;  %vm3021_vm12 = vcmp.eq.s32.totalorder %v14937_v5, 1  ;;  %v2814_v9 = vsel %vm2781_vm7, %v10632_v47, 0.0 }
 0x5c5   : > { %4755 = vperm.xlu0 %7389, %v4704_v38   ;;  %14933 = vst [vmem:[#allocation101_spill] sm:$0xff] %v10961_v8  ;;  %vm4675_vm9 = vcmp.eq.s32.totalorder %v10961_v8, 12  ;;  %v4709_v8 = vsel %vm4676_vm10, 1, %v14512_v52  ;;  %v11005_v28 = vadd.f32 %v2822_v22, %v10789_v31  ;;  %vm2784_vm13 = vcmp.eq.s32.totalorder %v14938_v62, 1  ;;  %v14939_v62 = vld [vmem:[#allocation189_spill] sm:$0xff] }
 0x5c6   : > { %v10956_v59 = vpop.permute.xlu1 %4470  ;;  %v10958_v37 = vpop.permute.xlu2 %4500  ;;  %v4708_v33 = vsel %vm4675_vm9, 1, %v14512_v52  ;;  %v11013_v15 = vadd.f32 %v2815_v53, %v10620_v7  ;;  %v3054_v6 = vsel %vm3021_vm12, %v10946_v50, 0.0  ;;  %v11020_v2 = vadd.f32 %v2814_v9, %v10700_v19  ;;  %v11044_v53 = vld [vmem:[%s7996_s22 + $0x88] sm:$0xff] }
 0x5c7   : > { %14931 = vst [vmem:[#allocation99_spill] sm:$0xff] %v10956_v59  ;;  %v2811_v59 = vsel %vm2778_vm4, %v10632_v47, 0.0  ;;  %vm2788_vm14 = vcmp.eq.s32.totalorder %v14939_v62, 1  ;;  %v2817_v7 = vsel %vm2784_vm13, %v10632_v47, 0.0  ;;  %vm3027_vm2 = vcmp.eq.s32.totalorder %v14943_v60, 1 }
 0x5c8   : > { %14932 = vst [vmem:[#allocation100_spill] sm:$0xff] %v10958_v37  ;;  %v10977_v38 = vpop.permute.xlu0 %4305  ;;  %v10980_v37 = vld [vmem:[%s7996_s22 + $0x60] sm:$0xff]  ;;  %v11010_v55 = vadd.f32 %v2811_v59, %v10690_v49  ;;  %v14942_v59 = vld [vmem:[#allocation192_spill] sm:$0xff]  ;;  %v11032_v19 = vadd.f32 %v3054_v6, %v10858_v36  ;;  %vm4679_vm5 = vcmp.eq.s32.totalorder %v11044_v53, 12  ;;  %v14949_v6 = vld [vmem:[#allocation195_spill] sm:$0xff] }
 0x5c9   : > { %14935 = vst [vmem:[#allocation103_spill] sm:$0xff] %v10977_v38  ;;  %vm4674_vm11 = vcmp.eq.s32.totalorder %v10980_v37, 12  ;;  %v2818_v38 = vsel %vm2785_vm8, %v10632_v47, 0.0  ;;  %v14940_v49 = vld [vmem:[#allocation190_spill] sm:$0xff]  ;;  %vm3017_vm1 = vcmp.eq.s32.totalorder %v14942_v59, 1  ;;  %vm3020_vm6 = vcmp.eq.s32.totalorder %v14949_v6, 1 }
 0x5ca   : > { %14936 = vst [vmem:[#allocation104_spill] sm:$0xff] %v10980_v37  ;;  %v4707_v5 = vsel %vm4674_vm11, 1, %v14512_v52  ;;  %v11016_v37 = vadd.f32 %v3051_v13, %v10848_v45  ;;  %v11023_v31 = vadd.f32 %v2818_v38, %v10684_v1  ;;  %vm3024_vm15 = vcmp.eq.s32.totalorder %v14940_v49, 1  ;;  %v14941_v45 = vld [vmem:[#allocation191_spill] sm:$0xff]  ;;  %v14944_v1 = vld [vmem:[#allocation194_spill] sm:$0xff] }
 0x5cb   : > { %vm2787_vm0 = vcmp.eq.s32.totalorder %v14941_v45, 1  ;;  %vm2790_vm3 = vcmp.eq.s32.totalorder %v14944_v1, 1  ;;  %14948 = vst [vmem:[#allocation108_spill] sm:$0xff] %v11044_v53  ;;  %v2821_v13 = vsel %vm2788_vm14, %v10632_v47, 0.0  ;;  %v3057_v36 = vsel %vm3024_vm15, %v10946_v50, 0.0  ;;  %v14982_v53 = vld [vmem:[#allocation214_spill] sm:$0xff] }
 0x5cc   : > { %4767 = vperm.xlu1 %7390, %v4708_v33   ;;  %4770 = vperm.xlu2 %7391, %v4709_v8   ;;  %v11040_v8 = vld [vmem:[%s7996_s22 + $0x80] sm:$0xff]  ;;  %v11057_v33 = vld [vmem:[%s7996_s22 + $0x78] sm:$0xff]  ;;  %v2820_v62 = vsel %vm2787_vm0, %v10632_v47, 0.0  ;;  %v3050_v49 = vsel %vm3017_vm1, %v10946_v50, 0.0  ;;  %v3060_v6 = vsel %vm3027_vm2, %v10946_v50, 0.0  ;;  %v11079_v45 = vadd.f32 %v2821_v13, %v10694_v46 }
 0x5cd   : > { %4764 = vperm.xlu0 %7389, %v4707_v5   ;;  %14947 = vst [vmem:[#allocation107_spill] sm:$0xff] %v11040_v8  ;;  %vm4678_vm4 = vcmp.eq.s32.totalorder %v11040_v8, 12  ;;  %vm4677_vm7 = vcmp.eq.s32.totalorder %v11057_v33, 12  ;;  %v11061_v5 = vadd.f32 %v2817_v7, %v10755_v21  ;;  %v4712_v7 = vsel %vm4679_vm5, 1, %v14512_v52  ;;  %v14954_v13 = vld [vmem:[#allocation198_spill] sm:$0xff] }
 0x5ce   : > { %v11035_v22 = vpop.permute.xlu1 %4479  ;;  %v11037_v38 = vpop.permute.xlu2 %4509  ;;  %14951 = vst [vmem:[#allocation110_spill] sm:$0xff] %v11057_v33  ;;  %v4711_v21 = vsel %vm4678_vm4, 1, %v14512_v52  ;;  %v11082_v59 = vadd.f32 %v3057_v36, %v10874_v40  ;;  %v4710_v60 = vsel %vm4677_vm7, 1, %v14512_v52  ;;  %v11087_v8 = vadd.f32 %v2820_v62, %v10771_v39  ;;  %v14955_v36 = vld [vmem:[#allocation199_spill] sm:$0xff]  ;;  %v14956_v39 = vld [vmem:[#allocation200_spill] sm:$0xff]  ;;  %v14958_v62 = vld [vmem:[#allocation202_spill] sm:$0xff] }
 0x5cf   : > { %14945 = vst [vmem:[#allocation105_spill] sm:$0xff] %v11035_v22  ;;  %v3053_v22 = vsel %vm3020_vm6, %v10946_v50, 0.0  ;;  %v11093_v1 = vadd.f32 %v3060_v6, %v10929_v29  ;;  %vm3023_vm10 = vcmp.eq.s32.totalorder %v14954_v13, 1  ;;  %vm3033_vm11 = vcmp.eq.s32.totalorder %v14955_v36, 1  ;;  %v14957_v29 = vld [vmem:[#allocation201_spill] sm:$0xff]  ;;  %v14966_v13 = vld [vmem:[#allocation204_spill] sm:$0xff] }
 0x5d0   : > { %14946 = vst [vmem:[#allocation106_spill] sm:$0xff] %v11037_v38  ;;  %v11054_v9 = vpop.permute.xlu0 %4476  ;;  %v14952_v38 = vld [vmem:[#allocation196_spill] sm:$0xff]  ;;  %vm3022_vm12 = vcmp.eq.s32.totalorder %v14956_v39, 1  ;;  %vm3026_vm13 = vcmp.eq.s32.totalorder %v14957_v29, 1  ;;  %vm3036_vm14 = vcmp.eq.s32.totalorder %v14958_v62, 1  ;;  %v14967_v62 = vld [vmem:[#allocation205_spill] sm:$0xff] }
 0x5d1   : > { %14950 = vst [vmem:[#allocation109_spill] sm:$0xff] %v11054_v9  ;;  %v2823_v9 = vsel %vm2790_vm3, %v10632_v47, 0.0  ;;  %vm3030_vm8 = vcmp.eq.s32.totalorder %v14952_v38, 1  ;;  %v11090_v47 = vadd.f32 %v3050_v49, %v10704_v30  ;;  %v14953_v38 = vld [vmem:[#allocation197_spill] sm:$0xff]  ;;  %v11103_v30 = vadd.f32 %v3053_v22, %v10763_v35 }
 0x5d2   : > { %vm3019_vm9 = vcmp.eq.s32.totalorder %v14953_v38, 1  ;;  %v11097_v46 = vadd.f32 %v2823_v9, %v10780_v54  ;;  %v3063_v40 = vsel %vm3030_vm8, %v10946_v50, 0.0  ;;  %v14959_v9 = vld [vmem:[#allocation203_spill] sm:$0xff]  ;;  %v11119_v35 = vld [vmem:[%s7996_s22 + $0xa0] sm:$0xff]  ;;  %vm3029_vm3 = vcmp.eq.s32.totalorder %v14966_v13, 1 }
 0x5d3   : > { %v3052_v54 = vsel %vm3019_vm9, %v10946_v50, 0.0  ;;  %vm3025_vm15 = vcmp.eq.s32.totalorder %v14959_v9, 1  ;;  %14963 = vst [vmem:[#allocation114_spill] sm:$0xff] %v11119_v35  ;;  %vm4682_vm1 = vcmp.eq.s32.totalorder %v11119_v35, 12  ;;  %v11123_v22 = vadd.f32 %v3063_v40, %v10938_v34 }
 0x5d4   : > { %4776 = vperm.xlu1 %7390, %v4711_v21   ;;  %4779 = vperm.xlu2 %7391, %v4712_v7   ;;  %v11115_v21 = vld [vmem:[%s7996_s22 + $0x98] sm:$0xff]  ;;  %v3056_v7 = vsel %vm3023_vm10, %v10946_v50, 0.0  ;;  %v3059_v34 = vsel %vm3026_vm13, %v10946_v50, 0.0  ;;  %v3069_v40 = vsel %vm3036_vm14, %v10946_v50, 0.0  ;;  %v11148_v36 = vadd.f32 %v3052_v54, %v10842_v27 }
 0x5d5   : > { %4773 = vperm.xlu0 %7389, %v4710_v60   ;;  %14962 = vst [vmem:[#allocation113_spill] sm:$0xff] %v11115_v21  ;;  %vm4681_vm0 = vcmp.eq.s32.totalorder %v11115_v21, 12  ;;  %v3066_v60 = vsel %vm3033_vm11, %v10946_v50, 0.0  ;;  %v4715_v21 = vsel %vm4682_vm1, 1, %v14512_v52  ;;  %v11156_v29 = vadd.f32 %v3056_v7, %v10774_v16  ;;  %v14969_v7 = vld [vmem:[#allocation207_spill] sm:$0xff] }
 0x5d6   : > { %v11110_v49 = vpop.permute.xlu1 %4488  ;;  %v11112_v6 = vpop.permute.xlu2 %4518  ;;  %v4714_v39 = vsel %vm4681_vm0, 1, %v14512_v52  ;;  %v11159_v35 = vadd.f32 %v3066_v60, %v10969_v0  ;;  %vm3039_vm4 = vcmp.eq.s32.totalorder %v14967_v62, 1  ;;  %v11167_v54 = vadd.f32 %v3059_v34, %v10783_v25  ;;  %v14968_v0 = vld [vmem:[#allocation206_spill] sm:$0xff]  ;;  %v14970_v60 = vld [vmem:[#allocation208_spill] sm:$0xff]  ;;  %v14971_v25 = vld [vmem:[#allocation209_spill] sm:$0xff] }
 0x5d7   : > { %14960 = vst [vmem:[#allocation111_spill] sm:$0xff] %v11110_v49  ;;  %v3055_v49 = vsel %vm3022_vm12, %v10946_v50, 0.0  ;;  %v11170_v9 = vadd.f32 %v3069_v40, %v11010_v55  ;;  %vm3028_vm5 = vcmp.eq.s32.totalorder %v14968_v0, 1  ;;  %vm3032_vm6 = vcmp.eq.s32.totalorder %v14969_v7, 1  ;;  %v14972_v55 = vld [vmem:[#allocation210_spill] sm:$0xff] }
 0x5d8   : > { %14961 = vst [vmem:[#allocation112_spill] sm:$0xff] %v11112_v6  ;;  %v11131_v38 = vpop.permute.xlu0 %4485  ;;  %v11134_v6 = vld [vmem:[%s7996_s22 + $0x90] sm:$0xff]  ;;  %v11164_v27 = vadd.f32 %v3055_v49, %v10852_v56  ;;  %vm3042_vm7 = vcmp.eq.s32.totalorder %v14970_v60, 1  ;;  %v3072_v56 = vsel %vm3039_vm4, %v10946_v50, 0.0  ;;  %vm3031_vm8 = vcmp.eq.s32.totalorder %v14971_v25, 1 }
 0x5d9   : > { %14964 = vst [vmem:[#allocation115_spill] sm:$0xff] %v11131_v38  ;;  %vm4680_vm2 = vcmp.eq.s32.totalorder %v11134_v6, 12  ;;  %v3058_v38 = vsel %vm3025_vm15, %v10946_v50, 0.0  ;;  %vm3035_vm9 = vcmp.eq.s32.totalorder %v14972_v55, 1  ;;  %v14973_v49 = vld [vmem:[#allocation211_spill] sm:$0xff]  ;;  %v3061_v62 = vsel %vm3028_vm5, %v10946_v50, 0.0 }
 0x5da   : > { %14965 = vst [vmem:[#allocation116_spill] sm:$0xff] %v11134_v6  ;;  %v4713_v13 = vsel %vm4680_vm2, 1, %v14512_v52  ;;  %v3062_v6 = vsel %vm3029_vm3, %v10946_v50, 0.0  ;;  %v11174_v16 = vadd.f32 %v3058_v38, %v10862_v44  ;;  %vm3045_vm10 = vcmp.eq.s32.totalorder %v14973_v49, 1  ;;  %v14974_v38 = vld [vmem:[#allocation212_spill] sm:$0xff] }
 0x5db   : > { %v11184_v44 = vadd.f32 %v3062_v6, %v10845_v48  ;;  %vm3034_vm11 = vcmp.eq.s32.totalorder %v14974_v38, 1  ;;  %v3065_v48 = vsel %vm3032_vm6, %v10946_v50, 0.0  ;;  %v3075_v6 = vsel %vm3042_vm7, %v10946_v50, 0.0 }
 0x5dc   : > { %4785 = vperm.xlu1 %7390, %v4714_v39   ;;  %4788 = vperm.xlu2 %7391, %v4715_v21   ;;  %v11192_v21 = vld [vmem:[%s7996_s22 + $0xb0] sm:$0xff]  ;;  %v11196_v39 = vld [vmem:[%s7996_s22 + $0xb8] sm:$0xff]  ;;  %v3064_v0 = vsel %vm3031_vm8, %v10946_v50, 0.0  ;;  %v3068_v7 = vsel %vm3035_vm9, %v10946_v50, 0.0  ;;  %v3078_v60 = vsel %vm3045_vm10, %v10946_v50, 0.0  ;;  %v11233_v25 = vadd.f32 %v3061_v62, %v10921_v17 }
 0x5dd   : > { %4782 = vperm.xlu0 %7389, %v4713_v13   ;;  %14977 = vst [vmem:[#allocation117_spill] sm:$0xff] %v11192_v21  ;;  %vm4684_vm12 = vcmp.eq.s32.totalorder %v11192_v21, 12  ;;  %vm4685_vm13 = vcmp.eq.s32.totalorder %v11196_v39, 12  ;;  %v14981_v21 = vld [vmem:[#allocation213_spill] sm:$0xff]  ;;  %v11236_v55 = vadd.f32 %v3065_v48, %v10855_v61  ;;  %v11243_v38 = vadd.f32 %v3064_v0, %v10932_v10  ;;  %v14984_v62 = vld [vmem:[#allocation216_spill] sm:$0xff] }
 0x5de   : > { %v11187_v34 = vpop.permute.xlu1 %4497  ;;  %v11189_v40 = vpop.permute.xlu2 %4527  ;;  %14978 = vst [vmem:[#allocation333_spill] sm:$0xff] %v11196_v39  ;;  %vm3038_vm15 = vcmp.eq.s32.totalorder %v14981_v21, 1  ;;  %v11239_v39 = vadd.f32 %v3075_v6, %v11061_v5  ;;  %v11246_v21 = vadd.f32 %v3068_v7, %v10865_v42  ;;  %vm3048_vm0 = vcmp.eq.s32.totalorder %v14982_v53, 1  ;;  %v14983_v5 = vld [vmem:[#allocation215_spill] sm:$0xff]  ;;  %v11258_v10 = vld [vmem:[#allocation6 + $0x6] ss:$0 sm:$0xff] }
 0x5df   : > { %14975 = vst [vmem:[#allocation301_spill] sm:$0xff] %v11187_v34  ;;  %v11211_v34 = vld [vmem:[%s7996_s22 + $0xa8] sm:$0xff]  ;;  %v3071_v61 = vsel %vm3038_vm15, %v10946_v50, 0.0  ;;  %vm3037_vm1 = vcmp.eq.s32.totalorder %v14983_v5, 1  ;;  %vm3041_vm2 = vcmp.eq.s32.totalorder %v14984_v62, 1  ;;  %v14985_v42 = vld [vmem:[#allocation217_spill] sm:$0xff] }
 0x5e0   : > { %14976 = vst [vmem:[#allocation299_spill] sm:$0xff] %v11189_v40  ;;  %v11208_v13 = vpop.permute.xlu0 %4494  ;;  %vm4683_vm14 = vcmp.eq.s32.totalorder %v11211_v34, 12  ;;  %v11215_v40 = vadd.f32 %v3072_v56, %v11020_v2  ;;  %v4717_v2 = vsel %vm4684_vm12, 1, %v14512_v52  ;;  %v4718_v56 = vsel %vm4685_vm13, 1, %v14512_v52  ;;  %v14987_v53 = vld [vmem:[#allocation219_spill] sm:$0xff]  ;;  %v14989_v6 = vld [vmem:[#allocation221_spill] sm:$0xff] }
 0x5e1   : > { %14979 = vst [vmem:[#allocation118_spill] sm:$0xff] %v11208_v13  ;;  %v3067_v13 = vsel %vm3034_vm11, %v10946_v50, 0.0  ;;  %v4716_v49 = vsel %vm4683_vm14, 1, %v14512_v52  ;;  %vm3277_vm3 = vcmp.eq.s32.totalorder %v14985_v42, 1  ;;  %vm3044_vm5 = vcmp.eq.s32.totalorder %v14987_v53, 1  ;;  %v11271_v7 = vld [vmem:[%s7996_s22 + $0xc8] sm:$0xff] }
 0x5e2   : > { %14980 = vst [vmem:[#allocation119_spill] sm:$0xff] %v11211_v34  ;;  %v11249_v34 = vadd.f32 %v3078_v60, %v11087_v8  ;;  %v11253_v17 = vadd.f32 %v3067_v13, %v10941_v43  ;;  %v14986_v8 = vld [vmem:[#allocation218_spill] sm:$0xff]  ;;  %v14988_v43 = vld [vmem:[#allocation220_spill] sm:$0xff]  ;;  %v3081_v48 = vsel %vm3048_vm0, %v10946_v50, 0.0  ;;  %vm3043_vm7 = vcmp.eq.s32.totalorder %v14989_v6, 1 }
 0x5e3   : > { %vm3040_vm4 = vcmp.eq.s32.totalorder %v14986_v8, 1  ;;  %vm3280_vm6 = vcmp.eq.s32.totalorder %v14988_v43, 1  ;;  %14992 = vst [vmem:[#allocation122_spill] sm:$0xff] %v11271_v7  ;;  %vm4687_vm8 = vcmp.eq.s32.totalorder %v11271_v7, 12  ;;  %v11275_v60 = vld [vmem:[%s7996_s22 + $0xd0] sm:$0xff]  ;;  %v3310_v7 = vsel %vm3277_vm3, %v11258_v10, 0.0 }
 0x5e4   : > { %4794 = vperm.xlu1 %7390, %v4717_v2   ;;  %4797 = vperm.xlu2 %7391, %v4718_v56   ;;  %14993 = vst [vmem:[#allocation123_spill] sm:$0xff] %v11275_v60  ;;  %vm4688_vm9 = vcmp.eq.s32.totalorder %v11275_v60, 12  ;;  %v11279_v2 = vadd.f32 %v3071_v61, %v10924_v51  ;;  %v3070_v56 = vsel %vm3037_vm1, %v10946_v50, 0.0  ;;  %v3073_v51 = vsel %vm3040_vm4, %v10946_v50, 0.0 }
 0x5e5   : > { %4791 = vperm.xlu0 %7389, %v4716_v49   ;;  %v3074_v49 = vsel %vm3041_vm2, %v10946_v50, 0.0  ;;  %v3077_v61 = vsel %vm3044_vm5, %v10946_v50, 0.0  ;;  %v3313_v5 = vsel %vm3280_vm6, %v11258_v10, 0.0  ;;  %v11306_v62 = vadd.f32 %v3081_v48, %v11097_v46 }
 0x5e6   : > { %v11266_v13 = vpop.permute.xlu1 %4506  ;;  %v11268_v0 = vpop.permute.xlu2 %4536  ;;  %v3076_v42 = vsel %vm3043_vm7, %v10946_v50, 0.0  ;;  %v4721_v8 = vsel %vm4688_vm9, 1, %v14512_v52  ;;  %v11314_v60 = vadd.f32 %v3070_v56, %v11002_v58  ;;  %v11317_v53 = vadd.f32 %v3074_v49, %v10935_v23  ;;  %v14997_v23 = vld [vmem:[#allocation223_spill] sm:$0xff]  ;;  %v14999_v56 = vld [vmem:[#allocation225_spill] sm:$0xff] }
 0x5e7   : > { %14990 = vst [vmem:[#allocation120_spill] sm:$0xff] %v11266_v13  ;;  %v11322_v46 = vadd.f32 %v3310_v7, %v11148_v36  ;;  %v11325_v48 = vadd.f32 %v3073_v51, %v11013_v15  ;;  %v11328_v6 = vadd.f32 %v3077_v61, %v10949_v32  ;;  %v11331_v33 = vadd.f32 %v3313_v5, %v11164_v27  ;;  %v15000_v36 = vld [vmem:[#allocation226_spill] sm:$0xff]  ;;  %v15001_v32 = vld [vmem:[#allocation227_spill] sm:$0xff]  ;;  %v15002_v27 = vld [vmem:[#allocation228_spill] sm:$0xff] }
 0x5e8   : > { %14991 = vst [vmem:[#allocation121_spill] sm:$0xff] %v11268_v0  ;;  %v11287_v13 = vpop.permute.xlu0 %4503  ;;  %v11290_v0 = vld [vmem:[%s7996_s22 + $0xc0] sm:$0xff]  ;;  %v11334_v58 = vadd.f32 %v3076_v42, %v11023_v31  ;;  %vm3283_vm12 = vcmp.eq.s32.totalorder %v14997_v23, 1  ;;  %vm3276_vm14 = vcmp.eq.s32.totalorder %v14999_v56, 1  ;;  %vm3286_vm15 = vcmp.eq.s32.totalorder %v15000_v36, 1 }
 0x5e9   : > { %14994 = vst [vmem:[#allocation124_spill] sm:$0xff] %v11287_v13  ;;  %vm4686_vm10 = vcmp.eq.s32.totalorder %v11290_v0, 12  ;;  %v4720_v13 = vsel %vm4687_vm8, 1, %v14512_v52  ;;  %vm3275_vm0 = vcmp.eq.s32.totalorder %v15001_v32, 1  ;;  %vm3279_vm1 = vcmp.eq.s32.totalorder %v15002_v27, 1  ;;  %v15003_v31 = vld [vmem:[#allocation229_spill] sm:$0xff] }
 0x5ea   : > { %14995 = vst [vmem:[#allocation125_spill] sm:$0xff] %v11290_v0  ;;  %v14996_v0 = vld [vmem:[#allocation222_spill] sm:$0xff]  ;;  %v4719_v43 = vsel %vm4686_vm10, 1, %v14512_v52  ;;  %vm3289_vm2 = vcmp.eq.s32.totalorder %v15003_v31, 1  ;;  %vm4690_vm4 = vcmp.eq.s32.totalorder %v10493_v4, 12  ;;  %v3316_v61 = vsel %vm3283_vm12, %v11258_v10, 0.0 }
 0x5eb   : > { %vm3047_vm11 = vcmp.eq.s32.totalorder %v14996_v0, 1  ;;  %v14998_v0 = vld [vmem:[#allocation224_spill] sm:$0xff]  ;;  %v15004_v7 = vld [vmem:[#allocation230_spill] sm:$0xff]  ;;  %v3309_v42 = vsel %vm3276_vm14, %v11258_v10, 0.0  ;;  %vm4689_vm6 = vcmp.eq.s32.totalorder %v10489_v63, 12  ;;  %v3308_v23 = vsel %vm3275_vm0, %v11258_v10, 0.0 }
 0x5ec   : > { %vm3046_vm13 = vcmp.eq.s32.totalorder %v14998_v0, 1  ;;  %4803 = vperm.xlu1 %7390, %v4720_v13   ;;  %4806 = vperm.xlu2 %7391, %v4721_v8   ;;  %v3080_v15 = vsel %vm3047_vm11, %v10946_v50, 0.0  ;;  %vm3278_vm3 = vcmp.eq.s32.totalorder %v15004_v7, 1  ;;  %v11351_v13 = vld [vmem:[%s7996_s22 + $0xe8] sm:$0xff]  ;;  %v3322_v0 = vsel %vm3289_vm2, %v11258_v10, 0.0 }
 0x5ed   : > { %4800 = vperm.xlu0 %7389, %v4719_v43   ;;  %vm4691_vm5 = vcmp.eq.s32.totalorder %v11351_v13, 12  ;;  %v3079_v5 = vsel %vm3046_vm13, %v10946_v50, 0.0  ;;  %v11367_v4 = vadd.f32 %v3080_v15, %v11005_v28  ;;  %v3319_v43 = vsel %vm3286_vm15, %v11258_v10, 0.0 }
 0x5ee   : > { %v11345_v49 = vpop.permute.xlu1 %4515  ;;  %v11347_v51 = vpop.permute.xlu2 %4545  ;;  %v3312_v50 = vsel %vm3279_vm1, %v11258_v10, 0.0  ;;  %v3311_v63 = vsel %vm3278_vm3, %v11258_v10, 0.0  ;;  %v4723_v28 = vsel %vm4690_vm4, 1, %v14512_v52  ;;  %v4724_v56 = vsel %vm4691_vm5, 1, %v14512_v52 }
 0x5ef   : > { %15005 = vst [vmem:[#allocation306_spill] sm:$0xff] %v11347_v51  ;;  %v11387_v15 = vadd.f32 %v3316_v61, %v11174_v16  ;;  %v11390_v36 = vadd.f32 %v3079_v5, %v11079_v45  ;;  %v11393_v32 = vadd.f32 %v3309_v42, %v11016_v37  ;;  %v4722_v27 = vsel %vm4689_vm6, 1, %v14512_v52  ;;  %v15008_v37 = vld [vmem:[#allocation232_spill] sm:$0xff]  ;;  %v15009_v61 = vld [vmem:[#allocation233_spill] sm:$0xff]  ;;  %v15014_v42 = vld [vmem:[#allocation238_spill] sm:$0xff] }
 0x5f0   : > { %v11363_v8 = vpop.permute.xlu0 %4512  ;;  %v11397_v31 = vadd.f32 %v3319_v43, %v11233_v25  ;;  %v11400_v7 = vadd.f32 %v3308_v23, %v11090_v47  ;;  %v11403_v51 = vadd.f32 %v3312_v50, %v11032_v19  ;;  %v11407_v16 = vadd.f32 %v3322_v0, %v11243_v38  ;;  %v15010_v25 = vld [vmem:[#allocation234_spill] sm:$0xff]  ;;  %v15011_v47 = vld [vmem:[#allocation235_spill] sm:$0xff]  ;;  %v15012_v19 = vld [vmem:[#allocation236_spill] sm:$0xff] }
 0x5f1   : > { %15006 = vst [vmem:[#allocation304_spill] sm:$0xff] %v11363_v8  ;;  %v15007_v8 = vld [vmem:[#allocation231_spill] sm:$0xff]  ;;  %v11410_v45 = vadd.f32 %v3311_v63, %v11103_v30  ;;  %vm3292_vm8 = vcmp.eq.s32.totalorder %v15008_v37, 1  ;;  %vm3281_vm9 = vcmp.eq.s32.totalorder %v15009_v61, 1  ;;  %vm3285_vm10 = vcmp.eq.s32.totalorder %v15010_v25, 1  ;;  %v15013_v5 = vld [vmem:[#allocation237_spill] sm:$0xff] }
 0x5f2   : > { %vm3282_vm7 = vcmp.eq.s32.totalorder %v15007_v8, 1  ;;  %vm3295_vm11 = vcmp.eq.s32.totalorder %v15011_v47, 1  ;;  %vm3284_vm12 = vcmp.eq.s32.totalorder %v15012_v19, 1  ;;  %vm3288_vm13 = vcmp.eq.s32.totalorder %v15013_v5, 1  ;;  %v15016_v50 = vld [vmem:[#allocation239_spill] sm:$0xff] }
 0x5f3   : > { %v3315_v38 = vsel %vm3282_vm7, %v11258_v10, 0.0  ;;  %vm3298_vm14 = vcmp.eq.s32.totalorder %v15014_v42, 1  ;;  %vm4693_vm15 = vcmp.eq.s32.totalorder %v10567_v14, 12  ;;  %vm4920_vm0 = vcmp.eq.s32.totalorder %v10660_v41, 13 }
 0x5f4   : > { %4812 = vperm.xlu1 %7390, %v4723_v28   ;;  %4815 = vperm.xlu2 %7391, %v4724_v56   ;;  %v3325_v43 = vsel %vm3292_vm8, %v11258_v10, 0.0  ;;  %v3314_v23 = vsel %vm3281_vm9, %v11258_v10, 0.0  ;;  %vm3287_vm1 = vcmp.eq.s32.totalorder %v15016_v50, 1  ;;  %vm4692_vm2 = vcmp.eq.s32.totalorder %v10563_v20, 12  ;;  %v11482_v50 = vld [vmem:[#allocation6 + $0x7] ss:$0 sm:$0xff] }
 0x5f5   : > { %4809 = vperm.xlu0 %7389, %v4722_v27   ;;  %v3318_v63 = vsel %vm3285_vm10, %v11258_v10, 0.0  ;;  %v3328_v14 = vsel %vm3295_vm11, %v11258_v10, 0.0  ;;  %v3317_v41 = vsel %vm3284_vm12, %v11258_v10, 0.0  ;;  %v3321_v28 = vsel %vm3288_vm13, %v11258_v10, 0.0 }
 0x5f6   : > { %v11420_v30 = vpop.permute.xlu1 %4524  ;;  %v11422_v8 = vpop.permute.xlu2 %4554  ;;  %v11445_v56 = vadd.f32 %v3315_v38, %v11082_v59  ;;  %v3331_v20 = vsel %vm3298_vm14, %v11258_v10, 0.0  ;;  %v4726_v27 = vsel %vm4693_vm15, 1, %v14512_v52  ;;  %v4953_v37 = vsel %vm4920_vm0, 1, %v14512_v52 }
 0x5f7   : > { %15015 = vst [vmem:[#allocation337_spill] sm:$0xff] %v11422_v8  ;;  %v11451_v61 = vadd.f32 %v3325_v43, %v11253_v17  ;;  %v11454_v25 = vadd.f32 %v3314_v23, %v11156_v29  ;;  %v3320_v47 = vsel %vm3287_vm1, %v11258_v10, 0.0  ;;  %v4725_v19 = vsel %vm4692_vm2, 1, %v14512_v52  ;;  %v15017_v29 = vld [vmem:[#allocation240_spill] sm:$0xff]  ;;  %v15018_v43 = vld [vmem:[#allocation241_spill] sm:$0xff]  ;;  %v15019_v23 = vld [vmem:[#allocation242_spill] sm:$0xff] }
 0x5f8   : > { %v11429_v0 = vpop.permute.xlu0 %4521  ;;  %v11459_v5 = vadd.f32 %v3318_v63, %v11093_v1  ;;  %v11462_v59 = vadd.f32 %v3328_v14, %v11314_v60  ;;  %v11465_v38 = vadd.f32 %v3317_v41, %v11167_v54  ;;  %v11468_v42 = vadd.f32 %v3321_v28, %v11123_v22  ;;  %v15020_v60 = vld [vmem:[#allocation243_spill] sm:$0xff]  ;;  %v15021_v54 = vld [vmem:[#allocation244_spill] sm:$0xff]  ;;  %v15022_v22 = vld [vmem:[#allocation245_spill] sm:$0xff] }
 0x5f9   : > { %v11471_v17 = vadd.f32 %v3331_v20, %v11325_v48  ;;  %vm3291_vm3 = vcmp.eq.s32.totalorder %v15017_v29, 1  ;;  %vm3301_vm4 = vcmp.eq.s32.totalorder %v15018_v43, 1  ;;  %vm3290_vm5 = vcmp.eq.s32.totalorder %v15019_v23, 1  ;;  %v15023_v48 = vld [vmem:[#allocation246_spill] sm:$0xff]  ;;  %v15024_v63 = vld [vmem:[#allocation247_spill] sm:$0xff] }
 0x5fa   : > { %v11477_v1 = vadd.f32 %v3320_v47, %v11184_v44  ;;  %vm3294_vm6 = vcmp.eq.s32.totalorder %v15020_v60, 1  ;;  %vm3304_vm7 = vcmp.eq.s32.totalorder %v15021_v54, 1  ;;  %vm3293_vm8 = vcmp.eq.s32.totalorder %v15022_v22, 1  ;;  %v15026_v47 = vld [vmem:[#allocation248_spill] sm:$0xff] }
 0x5fb   : > { %vm3297_vm9 = vcmp.eq.s32.totalorder %v15023_v48, 1  ;;  %vm3533_vm10 = vcmp.eq.s32.totalorder %v15024_v63, 1  ;;  %vm4922_vm11 = vcmp.eq.s32.totalorder %v10645_v11, 13  ;;  %vm4923_vm12 = vcmp.eq.s32.totalorder %v10739_v57, 13 }
 0x5fc   : > { %4821 = vperm.xlu1 %7390, %v4726_v27   ;;  %4986 = vperm.xlu2 %7391, %v4953_v37   ;;  %v3324_v44 = vsel %vm3291_vm3, %v11258_v10, 0.0  ;;  %v3334_v28 = vsel %vm3301_vm4, %v11258_v10, 0.0  ;;  %v3323_v20 = vsel %vm3290_vm5, %v11258_v10, 0.0  ;;  %vm4921_vm13 = vcmp.eq.s32.totalorder %v10641_v18, 13 }
 0x5fd   : > { %4818 = vperm.xlu0 %7389, %v4725_v19   ;;  %v3327_v11 = vsel %vm3294_vm6, %v11258_v10, 0.0  ;;  %v3337_v57 = vsel %vm3304_vm7, %v11258_v10, 0.0  ;;  %v3326_v37 = vsel %vm3293_vm8, %v11258_v10, 0.0  ;;  %vm3296_vm14 = vcmp.eq.s32.totalorder %v15026_v47, 1 }
 0x5fe   : > { %v11486_v14 = vpop.permute.xlu1 %4533  ;;  %v11488_v41 = vpop.permute.xlu2 %4563  ;;  %v3330_v19 = vsel %vm3297_vm9, %v11258_v10, 0.0  ;;  %v3566_v29 = vsel %vm3533_vm10, %v11482_v50, 0.0  ;;  %v4955_v18 = vsel %vm4922_vm11, 1, %v14512_v52  ;;  %v4956_v43 = vsel %vm4923_vm12, 1, %v14512_v52 }
 0x5ff   : > { %15025 = vst [vmem:[#allocation126_spill] sm:$0xff] %v11488_v41  ;;  %v11519_v23 = vadd.f32 %v3324_v44, %v11159_v35  ;;  %v11522_v60 = vadd.f32 %v3334_v28, %v11334_v58  ;;  %v11525_v54 = vadd.f32 %v3323_v20, %v11236_v55  ;;  %v4954_v22 = vsel %vm4921_vm13, 1, %v14512_v52  ;;  %v15027_v55 = vld [vmem:[#allocation249_spill] sm:$0xff]  ;;  %v15028_v28 = vld [vmem:[#allocation250_spill] sm:$0xff] }
 0x600   : > { %v11501_v27 = vpop.permute.xlu0 %4530  ;;  %v11529_v48 = vadd.f32 %v3327_v11, %v11170_v9  ;;  %v11532_v63 = vadd.f32 %v3337_v57, %v11390_v36  ;;  %v11535_v47 = vadd.f32 %v3326_v37, %v11246_v21  ;;  %v3329_v35 = vsel %vm3296_vm14, %v11258_v10, 0.0  ;;  %v15029_v9 = vld [vmem:[#allocation251_spill] sm:$0xff]  ;;  %v15030_v36 = vld [vmem:[#allocation252_spill] sm:$0xff]  ;;  %v15031_v21 = vld [vmem:[#allocation253_spill] sm:$0xff] }
 0x601   : > { %v11539_v44 = vadd.f32 %v3330_v19, %v11215_v40  ;;  %v11542_v58 = vadd.f32 %v3566_v29, %v11400_v7  ;;  %vm3300_vm15 = vcmp.eq.s32.totalorder %v15027_v55, 1  ;;  %vm3536_vm0 = vcmp.eq.s32.totalorder %v15028_v28, 1  ;;  %v15032_v20 = vld [vmem:[#allocation254_spill] sm:$0xff]  ;;  %v15033_v7 = vld [vmem:[#allocation255_spill] sm:$0xff]  ;;  %v15035_v29 = vld [vmem:[#allocation256_spill] sm:$0xff] }
 0x602   : > { %vm3299_vm1 = vcmp.eq.s32.totalorder %v15029_v9, 1  ;;  %vm3303_vm2 = vcmp.eq.s32.totalorder %v15030_v36, 1  ;;  %vm3539_vm3 = vcmp.eq.s32.totalorder %v15031_v21, 1  ;;  %vm3302_vm4 = vcmp.eq.s32.totalorder %v15032_v20, 1  ;;  %v11728_v41 = vld [vmem:[#allocation6 + $0x8] ss:$0 sm:$0xff] }
 0x603   : > { %v11551_v40 = vadd.f32 %v3329_v35, %v11279_v2  ;;  %vm3306_vm5 = vcmp.eq.s32.totalorder %v15033_v7, 1  ;;  %vm4925_vm6 = vcmp.eq.s32.totalorder %v10726_v12, 13  ;;  %vm4926_vm7 = vcmp.eq.s32.totalorder %v10820_v24, 13  ;;  %v15037_v35 = vld [vmem:[#allocation257_spill] sm:$0xff] }
 0x604   : > { %4992 = vperm.xlu1 %7390, %v4955_v18   ;;  %4995 = vperm.xlu2 %7391, %v4956_v43   ;;  %v3333_v37 = vsel %vm3300_vm15, %v11258_v10, 0.0  ;;  %v3569_v19 = vsel %vm3536_vm0, %v11482_v50, 0.0  ;;  %vm3542_vm8 = vcmp.eq.s32.totalorder %v15035_v29, 1  ;;  %vm4924_vm9 = vcmp.eq.s32.totalorder %v10722_v3, 13 }
 0x605   : > { %4989 = vperm.xlu0 %7389, %v4954_v22   ;;  %v3332_v2 = vsel %vm3299_vm1, %v11258_v10, 0.0  ;;  %v3336_v12 = vsel %vm3303_vm2, %v11258_v10, 0.0  ;;  %v3572_v24 = vsel %vm3539_vm3, %v11482_v50, 0.0  ;;  %v3335_v43 = vsel %vm3302_vm4, %v11258_v10, 0.0 }
 0x606   : > { %v11554_v11 = vpop.permute.xlu1 %4542  ;;  %v11556_v57 = vpop.permute.xlu2 %4734  ;;  %v3339_v22 = vsel %vm3306_vm5, %v11258_v10, 0.0  ;;  %vm3305_vm10 = vcmp.eq.s32.totalorder %v15037_v35, 1  ;;  %v4958_v3 = vsel %vm4925_vm6, 1, %v14512_v52  ;;  %v4959_v55 = vsel %vm4926_vm7, 1, %v14512_v52 }
 0x607   : > { %15034 = vst [vmem:[#allocation127_spill] sm:$0xff] %v11556_v57  ;;  %v11583_v28 = vadd.f32 %v3333_v37, %v11239_v39  ;;  %v11586_v9 = vadd.f32 %v3569_v19, %v11410_v45  ;;  %v3575_v36 = vsel %vm3542_vm8, %v11482_v50, 0.0  ;;  %v4957_v21 = vsel %vm4924_vm9, 1, %v14512_v52  ;;  %v15038_v37 = vld [vmem:[#allocation258_spill] sm:$0xff]  ;;  %v15039_v19 = vld [vmem:[#allocation259_spill] sm:$0xff] }
 0x608   : > { %v11563_v18 = vpop.permute.xlu0 %4539  ;;  %v11591_v20 = vadd.f32 %v3332_v2, %v11317_v53  ;;  %v11594_v7 = vadd.f32 %v3336_v12, %v11249_v34  ;;  %v11597_v29 = vadd.f32 %v3572_v24, %v11454_v25  ;;  %v11600_v35 = vadd.f32 %v3335_v43, %v11328_v6  ;;  %v15040_v53 = vld [vmem:[#allocation260_spill] sm:$0xff]  ;;  %v15041_v25 = vld [vmem:[#allocation261_spill] sm:$0xff]  ;;  %v15042_v6 = vld [vmem:[#allocation262_spill] sm:$0xff] }
 0x609   : > { %15036 = vst [vmem:[#allocation128_spill] sm:$0xff] %v11563_v18  ;;  %v11603_v39 = vadd.f32 %v3339_v22, %v11306_v62  ;;  %v3338_v45 = vsel %vm3305_vm10, %v11258_v10, 0.0  ;;  %vm3535_vm11 = vcmp.eq.s32.totalorder %v15038_v37, 1  ;;  %vm3545_vm12 = vcmp.eq.s32.totalorder %v15039_v19, 1  ;;  %v15043_v62 = vld [vmem:[#allocation263_spill] sm:$0xff]  ;;  %v15044_v2 = vld [vmem:[#allocation264_spill] sm:$0xff] }
 0x60a   : > { %v11609_v34 = vadd.f32 %v3575_v36, %v11465_v38  ;;  %vm3534_vm13 = vcmp.eq.s32.totalorder %v15040_v53, 1  ;;  %vm3538_vm14 = vcmp.eq.s32.totalorder %v15041_v25, 1  ;;  %vm3548_vm15 = vcmp.eq.s32.totalorder %v15042_v6, 1  ;;  %v15046_v24 = vld [vmem:[#allocation98_spill] sm:$0xff]  ;;  %v15065_v57 = vld [vmem:[#allocation275_spill] sm:$0xff] }
 0x60b   : > { %vm3537_vm0 = vcmp.eq.s32.totalorder %v15043_v62, 1  ;;  %vm3541_vm1 = vcmp.eq.s32.totalorder %v15044_v2, 1  ;;  %vm4928_vm2 = vcmp.eq.s32.totalorder %v10805_v26, 13  ;;  %vm4929_vm3 = vcmp.eq.s32.totalorder %v15046_v24, 13  ;;  %v15050_v62 = vld [vmem:[#allocation266_spill] sm:$0xff] }
 0x60c   : > { %5001 = vperm.xlu1 %7390, %v4958_v3   ;;  %5004 = vperm.xlu2 %7391, %v4959_v55   ;;  %v11623_v38 = vadd.f32 %v3338_v45, %v11367_v4  ;;  %v3568_v43 = vsel %vm3535_vm11, %v11482_v50, 0.0  ;;  %v3578_v22 = vsel %vm3545_vm12, %v11482_v50, 0.0  ;;  %v15048_v55 = vld [vmem:[#allocation91_spill] sm:$0xff]  ;;  %v3567_v36 = vsel %vm3534_vm13, %v11482_v50, 0.0  ;;  %v15049_v4 = vld [vmem:[#allocation265_spill] sm:$0xff] }
 0x60d   : > { %4998 = vperm.xlu0 %7389, %v4957_v21   ;;  %vm4927_vm4 = vcmp.eq.s32.totalorder %v15048_v55, 13  ;;  %v3571_v26 = vsel %vm3538_vm14, %v11482_v50, 0.0  ;;  %v3581_v21 = vsel %vm3548_vm15, %v11482_v50, 0.0  ;;  %vm3551_vm5 = vcmp.eq.s32.totalorder %v15049_v4, 1 }
 0x60e   : > { %v11616_v10 = vpop.permute.xlu1 %4551  ;;  %v11618_v12 = vpop.permute.xlu2 %4743  ;;  %v3570_v45 = vsel %vm3537_vm0, %v11482_v50, 0.0  ;;  %v3574_v37 = vsel %vm3541_vm1, %v11482_v50, 0.0  ;;  %v4961_v53 = vsel %vm4928_vm2, 1, %v14512_v52  ;;  %v4962_v19 = vsel %vm4929_vm3, 1, %v14512_v52 }
 0x60f   : > { %15045 = vst [vmem:[#allocation129_spill] sm:$0xff] %v11618_v12  ;;  %v11643_v25 = vadd.f32 %v3568_v43, %v11322_v46  ;;  %v11646_v6 = vadd.f32 %v3578_v22, %v11477_v1  ;;  %vm3540_vm6 = vcmp.eq.s32.totalorder %v15050_v62, 1  ;;  %v4960_v2 = vsel %vm4927_vm4, 1, %v14512_v52  ;;  %v15051_v43 = vld [vmem:[#allocation267_spill] sm:$0xff]  ;;  %v15052_v22 = vld [vmem:[#allocation268_spill] sm:$0xff]  ;;  %v15061_v62 = vld [vmem:[#allocation273_spill] sm:$0xff] }
 0x610   : > { %v11631_v3 = vpop.permute.xlu0 %4548  ;;  %v11651_v24 = vadd.f32 %v3567_v36, %v11393_v32  ;;  %v11654_v55 = vadd.f32 %v3571_v26, %v11331_v33  ;;  %v11657_v4 = vadd.f32 %v3581_v21, %v11525_v54  ;;  %v3584_v12 = vsel %vm3551_vm5, %v11482_v50, 0.0  ;;  %v15053_v32 = vld [vmem:[#allocation269_spill] sm:$0xff]  ;;  %v15054_v54 = vld [vmem:[#allocation270_spill] sm:$0xff]  ;;  %v15055_v36 = vld [vmem:[#allocation271_spill] sm:$0xff] }
 0x611   : > { %15047 = vst [vmem:[#allocation130_spill] sm:$0xff] %v11631_v3  ;;  %v11661_v46 = vadd.f32 %v3570_v45, %v11403_v51  ;;  %v11664_v1 = vadd.f32 %v3574_v37, %v11387_v15  ;;  %vm3544_vm7 = vcmp.eq.s32.totalorder %v15051_v43, 1  ;;  %vm3554_vm8 = vcmp.eq.s32.totalorder %v15052_v22, 1  ;;  %v15056_v15 = vld [vmem:[#allocation272_spill] sm:$0xff] }
 0x612   : > { %v3573_v33 = vsel %vm3540_vm6, %v11482_v50, 0.0  ;;  %vm3543_vm9 = vcmp.eq.s32.totalorder %v15053_v32, 1  ;;  %vm3547_vm10 = vcmp.eq.s32.totalorder %v15054_v54, 1  ;;  %vm3557_vm11 = vcmp.eq.s32.totalorder %v15055_v36, 1  ;;  %v15059_v45 = vld [vmem:[#allocation96_spill] sm:$0xff] }
 0x613   : > { %v11673_v51 = vadd.f32 %v3584_v12, %v11535_v47  ;;  %vm3546_vm12 = vcmp.eq.s32.totalorder %v15056_v15, 1  ;;  %vm4931_vm13 = vcmp.eq.s32.totalorder %v15059_v45, 13  ;;  %v15060_v37 = vld [vmem:[#allocation104_spill] sm:$0xff]  ;;  %vm3550_vm15 = vcmp.eq.s32.totalorder %v15061_v62, 1  ;;  %v15063_v47 = vld [vmem:[#allocation95_spill] sm:$0xff] }
 0x614   : > { %5010 = vperm.xlu1 %7390, %v4961_v53   ;;  %5013 = vperm.xlu2 %7391, %v4962_v19   ;;  %vm4932_vm14 = vcmp.eq.s32.totalorder %v15060_v37, 13  ;;  %v3577_v53 = vsel %vm3544_vm7, %v11482_v50, 0.0  ;;  %v3587_v19 = vsel %vm3554_vm8, %v11482_v50, 0.0  ;;  %vm4930_vm0 = vcmp.eq.s32.totalorder %v15063_v47, 13  ;;  %v15064_v37 = vld [vmem:[#allocation274_spill] sm:$0xff] }
 0x615   : > { %5007 = vperm.xlu0 %7389, %v4960_v2   ;;  %v11689_v12 = vadd.f32 %v3573_v33, %v11445_v56  ;;  %v3576_v43 = vsel %vm3543_vm9, %v11482_v50, 0.0  ;;  %v3580_v22 = vsel %vm3547_vm10, %v11482_v50, 0.0  ;;  %v3590_v15 = vsel %vm3557_vm11, %v11482_v50, 0.0 }
 0x616   : > { %v11676_v26 = vpop.permute.xlu1 %4560  ;;  %v11678_v21 = vpop.permute.xlu2 %4752  ;;  %v3579_v45 = vsel %vm3546_vm12, %v11482_v50, 0.0  ;;  %vm3560_vm1 = vcmp.eq.s32.totalorder %v15064_v37, 1  ;;  %v4964_v62 = vsel %vm4931_vm13, 1, %v14512_v52  ;;  %v4965_v56 = vsel %vm4932_vm14, 1, %v14512_v52 }
 0x617   : > { %15057 = vst [vmem:[#allocation131_spill] sm:$0xff] %v11676_v26  ;;  %v11705_v33 = vadd.f32 %v3577_v53, %v11397_v31  ;;  %v11708_v32 = vadd.f32 %v3587_v19, %v11551_v40  ;;  %v3583_v54 = vsel %vm3550_vm15, %v11482_v50, 0.0  ;;  %v4963_v47 = vsel %vm4930_vm0, 1, %v14512_v52  ;;  %v15066_v53 = vld [vmem:[#allocation276_spill] sm:$0xff]  ;;  %v15067_v19 = vld [vmem:[#allocation277_spill] sm:$0xff] }
 0x618   : > { %15058 = vst [vmem:[#allocation132_spill] sm:$0xff] %v11678_v21  ;;  %v11685_v2 = vpop.permute.xlu0 %4557  ;;  %v11713_v36 = vadd.f32 %v3576_v43, %v11459_v5  ;;  %v11716_v21 = vadd.f32 %v3580_v22, %v11407_v16  ;;  %v11719_v37 = vadd.f32 %v3590_v15, %v11591_v20  ;;  %vm3549_vm2 = vcmp.eq.s32.totalorder %v15065_v57, 1  ;;  %v15068_v5 = vld [vmem:[#allocation278_spill] sm:$0xff]  ;;  %v15069_v20 = vld [vmem:[#allocation279_spill] sm:$0xff]  ;;  %v15070_v57 = vld [vmem:[#allocation280_spill] sm:$0xff] }
 0x619   : > { %15062 = vst [vmem:[#allocation133_spill] sm:$0xff] %v11685_v2  ;;  %v11723_v31 = vadd.f32 %v3579_v45, %v11468_v42  ;;  %v3593_v40 = vsel %vm3560_vm1, %v11482_v50, 0.0  ;;  %vm3553_vm3 = vcmp.eq.s32.totalorder %v15066_v53, 1  ;;  %vm3563_vm4 = vcmp.eq.s32.totalorder %v15067_v19, 1  ;;  %v15071_v43 = vld [vmem:[#allocation281_spill] sm:$0xff]  ;;  %v15074_v45 = vld [vmem:[#allocation102_spill] sm:$0xff] }
 0x61a   : > { %v11731_v16 = vadd.f32 %v3583_v54, %v11451_v61  ;;  %vm3552_vm5 = vcmp.eq.s32.totalorder %v15068_v5, 1  ;;  %vm3556_vm6 = vcmp.eq.s32.totalorder %v15069_v20, 1  ;;  %vm3792_vm7 = vcmp.eq.s32.totalorder %v15070_v57, 1  ;;  %v15077_v5 = vld [vmem:[#allocation101_spill] sm:$0xff] }
 0x61b   : > { %v3582_v42 = vsel %vm3549_vm2, %v11482_v50, 0.0  ;;  %vm3555_vm8 = vcmp.eq.s32.totalorder %v15071_v43, 1  ;;  %vm4934_vm9 = vcmp.eq.s32.totalorder %v15074_v45, 13  ;;  %v11745_v61 = vadd.f32 %v3593_v40, %v11600_v35  ;;  %v15078_v35 = vld [vmem:[#allocation282_spill] sm:$0xff] }
 0x61c   : > { %5019 = vperm.xlu1 %7390, %v4964_v62   ;;  %5022 = vperm.xlu2 %7391, %v4965_v56   ;;  %v15075_v62 = vld [vmem:[#allocation110_spill] sm:$0xff]  ;;  %v3586_v56 = vsel %vm3553_vm3, %v11482_v50, 0.0  ;;  %v3596_v54 = vsel %vm3563_vm4, %v11482_v50, 0.0  ;;  %vm4933_vm11 = vcmp.eq.s32.totalorder %v15077_v5, 13  ;;  %v3585_v20 = vsel %vm3552_vm5, %v11482_v50, 0.0 }
 0x61d   : > { %5016 = vperm.xlu0 %7389, %v4963_v47   ;;  %vm4935_vm10 = vcmp.eq.s32.totalorder %v15075_v62, 13  ;;  %v3589_v57 = vsel %vm3556_vm6, %v11482_v50, 0.0  ;;  %v3825_v43 = vsel %vm3792_vm7, %v11728_v41, 0.0  ;;  %vm3559_vm12 = vcmp.eq.s32.totalorder %v15078_v35, 1 }
 0x61e   : > { %v11738_v22 = vpop.permute.xlu1 %4731  ;;  %v11740_v15 = vpop.permute.xlu2 %4761  ;;  %v11761_v40 = vadd.f32 %v3582_v42, %v11519_v23  ;;  %v3588_v53 = vsel %vm3555_vm8, %v11482_v50, 0.0  ;;  %v4967_v19 = vsel %vm4934_vm9, 1, %v14512_v52  ;;  %v4968_v45 = vsel %vm4935_vm10, 1, %v14512_v52 }
 0x61f   : > { %15072 = vst [vmem:[#allocation134_spill] sm:$0xff] %v11738_v22  ;;  %v11767_v62 = vadd.f32 %v3586_v56, %v11462_v59  ;;  %v11770_v5 = vadd.f32 %v3596_v54, %v11623_v38  ;;  %v11775_v35 = vadd.f32 %v3585_v20, %v11529_v48  ;;  %v11778_v23 = vadd.f32 %v3589_v57, %v11471_v17  ;;  %v15080_v38 = vld [vmem:[#allocation284_spill] sm:$0xff]  ;;  %v15081_v56 = vld [vmem:[#allocation285_spill] sm:$0xff]  ;;  %v15083_v17 = vld [vmem:[#allocation287_spill] sm:$0xff] }
 0x620   : > { %15073 = vst [vmem:[#allocation341_spill] sm:$0xff] %v11740_v15  ;;  %v11753_v47 = vpop.permute.xlu0 %4728  ;;  %v15079_v15 = vld [vmem:[#allocation283_spill] sm:$0xff]  ;;  %v11781_v42 = vadd.f32 %v3825_v43, %v11651_v24  ;;  %v3592_v2 = vsel %vm3559_vm12, %v11482_v50, 0.0  ;;  %v11785_v59 = vadd.f32 %v3588_v53, %v11539_v44  ;;  %vm3558_vm14 = vcmp.eq.s32.totalorder %v15080_v38, 1  ;;  %v15084_v54 = vld [vmem:[#allocation288_spill] sm:$0xff]  ;;  %v15085_v24 = vld [vmem:[#allocation289_spill] sm:$0xff] }
 0x621   : > { %15076 = vst [vmem:[#allocation135_spill] sm:$0xff] %v11753_v47  ;;  %vm3795_vm13 = vcmp.eq.s32.totalorder %v15079_v15, 1  ;;  %v4966_v47 = vsel %vm4933_vm11, 1, %v14512_v52  ;;  %vm3562_vm15 = vcmp.eq.s32.totalorder %v15081_v56, 1  ;;  %v15082_v15 = vld [vmem:[#allocation286_spill] sm:$0xff]  ;;  %vm3561_vm1 = vcmp.eq.s32.totalorder %v15083_v17, 1 }
 0x622   : > { %vm3798_vm0 = vcmp.eq.s32.totalorder %v15082_v15, 1  ;;  %v3828_v48 = vsel %vm3795_vm13, %v11728_v41, 0.0  ;;  %vm3791_vm2 = vcmp.eq.s32.totalorder %v15084_v54, 1  ;;  %vm3801_vm3 = vcmp.eq.s32.totalorder %v15085_v24, 1  ;;  %v15086_v20 = vld [vmem:[#allocation290_spill] sm:$0xff]  ;;  %v15088_v53 = vld [vmem:[#allocation108_spill] sm:$0xff] }
 0x623   : > { %v11795_v44 = vadd.f32 %v3592_v2, %v11522_v60  ;;  %vm3564_vm4 = vcmp.eq.s32.totalorder %v15086_v20, 1  ;;  %vm4937_vm5 = vcmp.eq.s32.totalorder %v15088_v53, 13  ;;  %v3831_v60 = vsel %vm3798_vm0, %v11728_v41, 0.0  ;;  %v15091_v20 = vld [vmem:[#allocation107_spill] sm:$0xff] }
 0x624   : > { %5028 = vperm.xlu1 %7390, %v4967_v19   ;;  %5031 = vperm.xlu2 %7391, %v4968_v45   ;;  %v15089_v19 = vld [vmem:[#allocation116_spill] sm:$0xff]  ;;  %v3591_v45 = vsel %vm3558_vm14, %v11482_v50, 0.0  ;;  %vm4936_vm7 = vcmp.eq.s32.totalorder %v15091_v20, 13  ;;  %v11817_v53 = vadd.f32 %v3828_v48, %v11661_v46  ;;  %v3594_v38 = vsel %vm3561_vm1, %v11482_v50, 0.0 }
 0x625   : > { %5025 = vperm.xlu0 %7389, %v4966_v47   ;;  %vm4938_vm6 = vcmp.eq.s32.totalorder %v15089_v19, 13  ;;  %v3595_v47 = vsel %vm3562_vm15, %v11482_v50, 0.0  ;;  %v3824_v56 = vsel %vm3791_vm2, %v11728_v41, 0.0  ;;  %v3834_v15 = vsel %vm3801_vm3, %v11728_v41, 0.0 }
 0x626   : > { %v11798_v57 = vpop.permute.xlu1 %4740  ;;  %v11800_v43 = vpop.permute.xlu2 %4770  ;;  %v3597_v19 = vsel %vm3564_vm4, %v11482_v50, 0.0  ;;  %v4970_v20 = vsel %vm4937_vm5, 1, %v14512_v52  ;;  %v4971_v46 = vsel %vm4938_vm6, 1, %v14512_v52  ;;  %v11833_v48 = vadd.f32 %v3591_v45, %v11583_v28  ;;  %v15095_v45 = vld [vmem:[#allocation294_spill] sm:$0xff] }
 0x627   : > { %15087 = vst [vmem:[#allocation136_spill] sm:$0xff] %v11798_v57  ;;  %v11836_v17 = vadd.f32 %v3595_v47, %v11532_v63  ;;  %v11839_v54 = vadd.f32 %v3831_v60, %v11689_v12  ;;  %v4969_v24 = vsel %vm4936_vm7, 1, %v14512_v52  ;;  %v11843_v8 = vadd.f32 %v3594_v38, %v11594_v7  ;;  %v15093_v57 = vld [vmem:[#allocation292_spill] sm:$0xff]  ;;  %v15094_v12 = vld [vmem:[#allocation293_spill] sm:$0xff]  ;;  %v15096_v7 = vld [vmem:[#allocation295_spill] sm:$0xff] }
 0x628   : > { %v11813_v2 = vpop.permute.xlu0 %4737  ;;  %v11846_v50 = vadd.f32 %v3824_v56, %v11542_v58  ;;  %vm3804_vm9 = vcmp.eq.s32.totalorder %v15093_v57, 1  ;;  %v11853_v28 = vadd.f32 %v3597_v19, %v11603_v39  ;;  %vm3793_vm10 = vcmp.eq.s32.totalorder %v15094_v12, 1  ;;  %v15097_v58 = vld [vmem:[#allocation296_spill] sm:$0xff]  ;;  %v15098_v47 = vld [vmem:[#allocation297_spill] sm:$0xff]  ;;  %v15102_v56 = vld [vmem:[#allocation114_spill] sm:$0xff] }
 0x629   : > { %15090 = vst [vmem:[#allocation137_spill] sm:$0xff] %v11813_v2  ;;  %v15092_v2 = vld [vmem:[#allocation291_spill] sm:$0xff]  ;;  %vm3797_vm11 = vcmp.eq.s32.totalorder %v15095_v45, 1  ;;  %vm3807_vm12 = vcmp.eq.s32.totalorder %v15096_v7, 1  ;;  %vm3796_vm13 = vcmp.eq.s32.totalorder %v15097_v58, 1  ;;  %vm3800_vm14 = vcmp.eq.s32.totalorder %v15098_v47, 1 }
 0x62a   : > { %vm3794_vm8 = vcmp.eq.s32.totalorder %v15092_v2, 1  ;;  %v11849_v2 = vadd.f32 %v3834_v15, %v11713_v36  ;;  %v15099_v36 = vld [vmem:[#allocation298_spill] sm:$0xff]  ;;  %v3837_v39 = vsel %vm3804_vm9, %v11728_v41, 0.0  ;;  %v15100_v57 = vld [vmem:[#allocation300_spill] sm:$0xff]  ;;  %vm4940_vm1 = vcmp.eq.s32.totalorder %v15102_v56, 13  ;;  %v15103_v15 = vld [vmem:[#allocation119_spill] sm:$0xff] }
 0x62b   : > { %v3827_v63 = vsel %vm3794_vm8, %v11728_v41, 0.0  ;;  %vm3810_vm15 = vcmp.eq.s32.totalorder %v15099_v36, 1  ;;  %vm3799_vm0 = vcmp.eq.s32.totalorder %v15100_v57, 1  ;;  %vm4941_vm2 = vcmp.eq.s32.totalorder %v15103_v15, 13  ;;  %v15105_v57 = vld [vmem:[#allocation113_spill] sm:$0xff]  ;;  %v15106_v47 = vld [vmem:[#allocation302_spill] sm:$0xff] }
 0x62c   : > { %5037 = vperm.xlu1 %7390, %v4970_v20   ;;  %5040 = vperm.xlu2 %7391, %v4971_v46   ;;  %v11871_v19 = vadd.f32 %v3827_v63, %v11586_v9  ;;  %v3826_v20 = vsel %vm3793_vm10, %v11728_v41, 0.0  ;;  %v3830_v46 = vsel %vm3797_vm11, %v11728_v41, 0.0  ;;  %vm4939_vm3 = vcmp.eq.s32.totalorder %v15105_v57, 13 }
 0x62d   : > { %5034 = vperm.xlu0 %7389, %v4969_v24   ;;  %v3840_v56 = vsel %vm3807_vm12, %v11728_v41, 0.0  ;;  %v3829_v9 = vsel %vm3796_vm13, %v11728_v41, 0.0  ;;  %v3833_v63 = vsel %vm3800_vm14, %v11728_v41, 0.0  ;;  %v3843_v12 = vsel %vm3810_vm15, %v11728_v41, 0.0 }
 0x62e   : > { %v11864_v60 = vpop.permute.xlu1 %4749  ;;  %v11866_v38 = vpop.permute.xlu2 %4779  ;;  %v11895_v45 = vadd.f32 %v3837_v39, %v11723_v31  ;;  %v3832_v15 = vsel %vm3799_vm0, %v11728_v41, 0.0  ;;  %v4973_v7 = vsel %vm4940_vm1, 1, %v14512_v52  ;;  %v4974_v57 = vsel %vm4941_vm2, 1, %v14512_v52 }
 0x62f   : > { %15101 = vst [vmem:[#allocation138_spill] sm:$0xff] %v11864_v60  ;;  %v11901_v58 = vadd.f32 %v3826_v20, %v11643_v25  ;;  %vm3803_vm4 = vcmp.eq.s32.totalorder %v15106_v47, 1  ;;  %v4972_v36 = vsel %vm4939_vm3, 1, %v14512_v52  ;;  %v11909_v60 = vadd.f32 %v3840_v56, %v11761_v40  ;;  %v15108_v20 = vld [vmem:[#allocation305_spill] sm:$0xff]  ;;  %v15110_v40 = vld [vmem:[#allocation308_spill] sm:$0xff]  ;;  %v15112_v56 = vld [vmem:[#allocation310_spill] sm:$0xff] }
 0x630   : > { %v11879_v24 = vpop.permute.xlu0 %4746  ;;  %v11912_v31 = vadd.f32 %v3829_v9, %v11654_v55  ;;  %v11915_v39 = vadd.f32 %v3833_v63, %v11609_v34  ;;  %v11918_v3 = vadd.f32 %v3843_v12, %v11775_v35  ;;  %v11921_v25 = vadd.f32 %v3832_v15, %v11664_v1  ;;  %v15111_v34 = vld [vmem:[#allocation309_spill] sm:$0xff]  ;;  %v15113_v35 = vld [vmem:[#allocation311_spill] sm:$0xff]  ;;  %v15114_v1 = vld [vmem:[#allocation312_spill] sm:$0xff] }
 0x631   : > { %15104 = vst [vmem:[#allocation139_spill] sm:$0xff] %v11879_v24  ;;  %v11904_v24 = vadd.f32 %v3830_v46, %v11597_v29  ;;  %v15107_v29 = vld [vmem:[#allocation303_spill] sm:$0xff]  ;;  %vm3802_vm6 = vcmp.eq.s32.totalorder %v15108_v20, 1  ;;  %v3836_v55 = vsel %vm3803_vm4, %v11728_v41, 0.0  ;;  %vm3816_vm8 = vcmp.eq.s32.totalorder %v15110_v40, 1  ;;  %v15117_v12 = vld [vmem:[#allocation333_spill] sm:$0xff] }
 0x632   : > { %vm3813_vm5 = vcmp.eq.s32.totalorder %v15107_v29, 1  ;;  %v15109_v46 = vld [vmem:[#allocation307_spill] sm:$0xff]  ;;  %vm3805_vm9 = vcmp.eq.s32.totalorder %v15111_v34, 1  ;;  %vm3809_vm10 = vcmp.eq.s32.totalorder %v15112_v56, 1  ;;  %vm3819_vm11 = vcmp.eq.s32.totalorder %v15113_v35, 1  ;;  %v15118_v15 = vld [vmem:[#allocation125_spill] sm:$0xff] }
 0x633   : > { %vm3806_vm7 = vcmp.eq.s32.totalorder %v15109_v46, 1  ;;  %vm3808_vm12 = vcmp.eq.s32.totalorder %v15114_v1, 1  ;;  %vm4943_vm13 = vcmp.eq.s32.totalorder %v15117_v12, 13  ;;  %vm4944_vm14 = vcmp.eq.s32.totalorder %v15118_v15, 13  ;;  %v15120_v35 = vld [vmem:[#allocation117_spill] sm:$0xff] }
 0x634   : > { %5046 = vperm.xlu1 %7390, %v4973_v7   ;;  %5049 = vperm.xlu2 %7391, %v4974_v57   ;;  %v3846_v7 = vsel %vm3813_vm5, %v11728_v41, 0.0  ;;  %v3835_v57 = vsel %vm3802_vm6, %v11728_v41, 0.0  ;;  %v3839_v47 = vsel %vm3806_vm7, %v11728_v41, 0.0  ;;  %vm4942_vm15 = vcmp.eq.s32.totalorder %v15120_v35, 13 }
 0x635   : > { %5043 = vperm.xlu0 %7389, %v4972_v36   ;;  %v11951_v1 = vadd.f32 %v3836_v55, %v11646_v6  ;;  %v3849_v29 = vsel %vm3816_vm8, %v11728_v41, 0.0  ;;  %v3838_v20 = vsel %vm3805_vm9, %v11728_v41, 0.0  ;;  %v3842_v46 = vsel %vm3809_vm10, %v11728_v41, 0.0 }
 0x636   : > { %v11932_v9 = vpop.permute.xlu1 %4758  ;;  %v11934_v63 = vpop.permute.xlu2 %4788  ;;  %v3852_v12 = vsel %vm3819_vm11, %v11728_v41, 0.0  ;;  %v3841_v15 = vsel %vm3808_vm12, %v11728_v41, 0.0  ;;  %v4976_v35 = vsel %vm4943_vm13, 1, %v14512_v52  ;;  %v4977_v6 = vsel %vm4944_vm14, 1, %v14512_v52 }
 0x637   : > { %15115 = vst [vmem:[#allocation140_spill] sm:$0xff] %v11932_v9  ;;  %v11967_v55 = vadd.f32 %v3846_v7, %v11785_v59  ;;  %v11970_v40 = vadd.f32 %v3835_v57, %v11705_v33  ;;  %v11973_v34 = vadd.f32 %v3839_v47, %v11657_v4  ;;  %v4975_v56 = vsel %vm4942_vm15, 1, %v14512_v52  ;;  %v15122_v4 = vld [vmem:[#allocation314_spill] sm:$0xff]  ;;  %v15123_v7 = vld [vmem:[#allocation315_spill] sm:$0xff]  ;;  %v15128_v57 = vld [vmem:[#allocation320_spill] sm:$0xff] }
 0x638   : > { %15116 = vst [vmem:[#allocation141_spill] sm:$0xff] %v11934_v63  ;;  %v11947_v36 = vpop.permute.xlu0 %4755  ;;  %v11980_v9 = vadd.f32 %v3838_v20, %v11716_v21  ;;  %v11983_v22 = vadd.f32 %v3842_v46, %v11673_v51  ;;  %v15121_v63 = vld [vmem:[#allocation313_spill] sm:$0xff]  ;;  %v11987_v59 = vadd.f32 %v3852_v12, %v11843_v8  ;;  %v11990_v33 = vadd.f32 %v3841_v15, %v11731_v16  ;;  %v15124_v21 = vld [vmem:[#allocation316_spill] sm:$0xff]  ;;  %v15127_v8 = vld [vmem:[#allocation319_spill] sm:$0xff] }
 0x639   : > { %15119 = vst [vmem:[#allocation142_spill] sm:$0xff] %v11947_v36  ;;  %v11977_v36 = vadd.f32 %v3849_v29, %v11833_v48  ;;  %vm3812_vm0 = vcmp.eq.s32.totalorder %v15121_v63, 1  ;;  %vm3822_vm1 = vcmp.eq.s32.totalorder %v15122_v4, 1  ;;  %vm3811_vm2 = vcmp.eq.s32.totalorder %v15123_v7, 1  ;;  %v11994_v48 = vld [vmem:[#allocation6 + $0x9] ss:$0 sm:$0xff] }
 0x63a   : > { %vm3815_vm3 = vcmp.eq.s32.totalorder %v15124_v21, 1  ;;  %v15125_v51 = vld [vmem:[#allocation317_spill] sm:$0xff]  ;;  %v15126_v63 = vld [vmem:[#allocation318_spill] sm:$0xff]  ;;  %vm3818_vm6 = vcmp.eq.s32.totalorder %v15127_v8, 1  ;;  %v3845_v16 = vsel %vm3812_vm0, %v11728_v41, 0.0  ;;  %vm4054_vm7 = vcmp.eq.s32.totalorder %v15128_v57, 1 }
 0x63b   : > { %vm4051_vm4 = vcmp.eq.s32.totalorder %v15125_v51, 1  ;;  %vm3814_vm5 = vcmp.eq.s32.totalorder %v15126_v63, 1  ;;  %v15130_v20 = vld [vmem:[#allocation123_spill] sm:$0xff]  ;;  %v12008_v46 = vld [vmem:[%s7996_s22 + $0xd8] sm:$0xff]  ;;  %v3855_v12 = vsel %vm3822_vm1, %v11728_v41, 0.0  ;;  %v3844_v15 = vsel %vm3811_vm2, %v11728_v41, 0.0 }
 0x63c   : > { %5055 = vperm.xlu1 %7390, %v4976_v35   ;;  %5058 = vperm.xlu2 %7391, %v4977_v6   ;;  %vm4946_vm8 = vcmp.eq.s32.totalorder %v15130_v20, 13  ;;  %vm4947_vm9 = vcmp.eq.s32.totalorder %v12008_v46, 13  ;;  %v15131_v35 = vld [vmem:[#allocation321_spill] sm:$0xff]  ;;  %v3848_v20 = vsel %vm3815_vm3, %v11728_v41, 0.0  ;;  %v3847_v4 = vsel %vm3814_vm5, %v11728_v41, 0.0 }
 0x63d   : > { %5052 = vperm.xlu0 %7389, %v4975_v56   ;;  %vm3817_vm10 = vcmp.eq.s32.totalorder %v15131_v35, 1  ;;  %v15133_v56 = vld [vmem:[#allocation122_spill] sm:$0xff]  ;;  %v3851_v7 = vsel %vm3818_vm6, %v11728_v41, 0.0  ;;  %v12034_v35 = vadd.f32 %v3845_v16, %v11708_v32  ;;  %v4087_v21 = vsel %vm4054_vm7, %v11994_v48, 0.0 }
 0x63e   : > { %v12002_v47 = vpop.permute.xlu1 %4767  ;;  %v12004_v29 = vpop.permute.xlu2 %4797  ;;  %vm4945_vm11 = vcmp.eq.s32.totalorder %v15133_v56, 13  ;;  %v4979_v56 = vsel %vm4946_vm8, 1, %v14512_v52  ;;  %v4980_v51 = vsel %vm4947_vm9, 1, %v14512_v52  ;;  %v12045_v63 = vadd.f32 %v3844_v15, %v11767_v62  ;;  %v15134_v62 = vld [vmem:[#allocation322_spill] sm:$0xff]  ;;  %v15136_v15 = vld [vmem:[#allocation324_spill] sm:$0xff] }
 0x63f   : > { %15129 = vst [vmem:[#allocation143_spill] sm:$0xff] %v12004_v29  ;;  %v4084_v29 = vsel %vm4051_vm4, %v11994_v48, 0.0  ;;  %v3850_v8 = vsel %vm3817_vm10, %v11728_v41, 0.0  ;;  %v4978_v18 = vsel %vm4945_vm11, 1, %v14512_v52  ;;  %v12050_v32 = vadd.f32 %v3848_v20, %v11719_v37 }
 0x640   : > { %v12018_v6 = vpop.permute.xlu0 %4764  ;;  %v12053_v16 = vadd.f32 %v4084_v29, %v11901_v58  ;;  %v12056_v57 = vadd.f32 %v3847_v4, %v11778_v23  ;;  %v12059_v26 = vadd.f32 %v3851_v7, %v11745_v61  ;;  %vm3821_vm12 = vcmp.eq.s32.totalorder %v15134_v62, 1  ;;  %v15137_v23 = vld [vmem:[#allocation325_spill] sm:$0xff]  ;;  %v15138_v61 = vld [vmem:[#allocation326_spill] sm:$0xff]  ;;  %v15139_v58 = vld [vmem:[#allocation327_spill] sm:$0xff] }
 0x641   : > { %15132 = vst [vmem:[#allocation345_spill] sm:$0xff] %v12018_v6  ;;  %v12042_v6 = vadd.f32 %v3855_v12, %v11853_v28  ;;  %v12062_v28 = vadd.f32 %v4087_v21, %v11912_v31  ;;  %v15135_v12 = vld [vmem:[#allocation323_spill] sm:$0xff]  ;;  %vm3820_vm14 = vcmp.eq.s32.totalorder %v15136_v15, 1  ;;  %v12068_v37 = vadd.f32 %v3850_v8, %v11795_v44  ;;  %v15140_v31 = vld [vmem:[#allocation328_spill] sm:$0xff]  ;;  %v15141_v29 = vld [vmem:[#allocation329_spill] sm:$0xff] }
 0x642   : > { %vm4057_vm13 = vcmp.eq.s32.totalorder %v15135_v12, 1  ;;  %vm4050_vm15 = vcmp.eq.s32.totalorder %v15137_v23, 1  ;;  %vm4060_vm0 = vcmp.eq.s32.totalorder %v15138_v61, 1  ;;  %vm4049_vm1 = vcmp.eq.s32.totalorder %v15139_v58, 1  ;;  %v12081_v44 = vld [vmem:[%s7996_s22 + $0xf0] sm:$0xff]  ;;  %v15146_v12 = vld [vmem:[#allocation330_spill] sm:$0xff] }
 0x643   : > { %vm4053_vm2 = vcmp.eq.s32.totalorder %v15140_v31, 1  ;;  %vm4063_vm3 = vcmp.eq.s32.totalorder %v15141_v29, 1  ;;  %vm4949_vm4 = vcmp.eq.s32.totalorder %v11351_v13, 13  ;;  %15144 = vst [vmem:[#allocation146_spill] sm:$0xff] %v12081_v44  ;;  %vm4950_vm5 = vcmp.eq.s32.totalorder %v12081_v44, 13 }
 0x644   : > { %5064 = vperm.xlu1 %7390, %v4979_v56   ;;  %5067 = vperm.xlu2 %7391, %v4980_v51   ;;  %v3854_v7 = vsel %vm3821_vm12, %v11728_v41, 0.0  ;;  %v3853_v21 = vsel %vm3820_vm14, %v11728_v41, 0.0  ;;  %v12096_v51 = vld [vmem:[%s7996_s22 + $0xe0] sm:$0xff]  ;;  %v4083_v13 = vsel %vm4050_vm15, %v11994_v48, 0.0  ;;  %v4093_v8 = vsel %vm4060_vm0, %v11994_v48, 0.0 }
 0x645   : > { %5061 = vperm.xlu0 %7389, %v4978_v18   ;;  %v4090_v18 = vsel %vm4057_vm13, %v11994_v48, 0.0  ;;  %15145 = vst [vmem:[#allocation147_spill] sm:$0xff] %v12096_v51  ;;  %vm4948_vm6 = vcmp.eq.s32.totalorder %v12096_v51, 13  ;;  %v4082_v62 = vsel %vm4049_vm1, %v11994_v48, 0.0  ;;  %vm4052_vm7 = vcmp.eq.s32.totalorder %v15146_v12, 1 }
 0x646   : > { %v12075_v20 = vpop.permute.xlu1 %4776  ;;  %v12077_v4 = vpop.permute.xlu2 %4806  ;;  %v4086_v41 = vsel %vm4053_vm2, %v11994_v48, 0.0  ;;  %v4096_v15 = vsel %vm4063_vm3, %v11994_v48, 0.0  ;;  %v4982_v23 = vsel %vm4949_vm4, 1, %v14512_v52  ;;  %v12118_v61 = vadd.f32 %v3854_v7, %v11770_v5  ;;  %v15148_v7 = vld [vmem:[#allocation331_spill] sm:$0xff] }
 0x647   : > { %15142 = vst [vmem:[#allocation144_spill] sm:$0xff] %v12075_v20  ;;  %v12121_v58 = vadd.f32 %v4090_v18, %v11921_v25  ;;  %v12124_v12 = vadd.f32 %v3853_v21, %v11836_v17  ;;  %v4981_v31 = vsel %vm4948_vm6, 1, %v14512_v52  ;;  %v12128_v44 = vadd.f32 %v4083_v13, %v11781_v42  ;;  %v15149_v42 = vld [vmem:[#allocation332_spill] sm:$0xff]  ;;  %v15153_v21 = vld [vmem:[#allocation338_spill] sm:$0xff] }
 0x648   : > { %15143 = vst [vmem:[#allocation145_spill] sm:$0xff] %v12077_v4  ;;  %v12093_v56 = vpop.permute.xlu0 %4773  ;;  %v4983_v4 = vsel %vm4950_vm5, 1, %v14512_v52  ;;  %v12131_v29 = vadd.f32 %v4093_v8, %v11970_v40  ;;  %v12134_v51 = vadd.f32 %v4082_v62, %v11846_v50  ;;  %v4085_v5 = vsel %vm4052_vm7, %v11994_v48, 0.0  ;;  %v15150_v40 = vld [vmem:[#allocation334_spill] sm:$0xff]  ;;  %v15151_v50 = vld [vmem:[#allocation335_spill] sm:$0xff]  ;;  %v15152_v18 = vld [vmem:[#allocation336_spill] sm:$0xff] }
 0x649   : > { %v12138_v25 = vadd.f32 %v4086_v41, %v11817_v53  ;;  %v12141_v17 = vadd.f32 %v4096_v15, %v11980_v9  ;;  %vm4056_vm8 = vcmp.eq.s32.totalorder %v15148_v7, 1  ;;  %vm4066_vm9 = vcmp.eq.s32.totalorder %v15149_v42, 1  ;;  %v15154_v9 = vld [vmem:[#allocation339_spill] sm:$0xff]  ;;  %v15159_v15 = vld [vmem:[#allocation340_spill] sm:$0xff] }
 0x64a   : > { %15147 = vst [vmem:[#allocation148_spill] sm:$0xff] %v12131_v29  ;;  %vm4055_vm10 = vcmp.eq.s32.totalorder %v15150_v40, 1  ;;  %vm4059_vm11 = vcmp.eq.s32.totalorder %v15151_v50, 1  ;;  %vm4069_vm12 = vcmp.eq.s32.totalorder %v15152_v18, 1  ;;  %vm4058_vm13 = vcmp.eq.s32.totalorder %v15153_v21, 1  ;;  %v12162_v62 = vld [vmem:[%s7996_s22 + $0x8] sm:$0xff] }
 0x64b   : > { %v12150_v53 = vadd.f32 %v4085_v5, %v11871_v19  ;;  %vm4062_vm14 = vcmp.eq.s32.totalorder %v15154_v9, 1  ;;  %15158 = vst [vmem:[#allocation152_spill] sm:$0xff] %v12162_v62  ;;  %vm5179_vm0 = vcmp.eq.s32.totalorder %v12162_v62, 14  ;;  %v4089_v41 = vsel %vm4056_vm8, %v11994_v48, 0.0 }
 0x64c   : > { %5073 = vperm.xlu1 %7390, %v4982_v23   ;;  %5076 = vperm.xlu2 %7391, %v4983_v4   ;;  %v12158_v4 = vld [vmem:[%s7996_s22] sm:$0xff]  ;;  %v4099_v19 = vsel %vm4066_vm9, %v11994_v48, 0.0  ;;  %vm4072_vm1 = vcmp.eq.s32.totalorder %v15159_v15, 1  ;;  %v4088_v5 = vsel %vm4055_vm10, %v11994_v48, 0.0  ;;  %v4092_v7 = vsel %vm4059_vm11, %v11994_v48, 0.0 }
 0x64d   : > { %5070 = vperm.xlu0 %7389, %v4981_v31   ;;  %15157 = vst [vmem:[#allocation151_spill] sm:$0xff] %v12158_v4  ;;  %vm5178_vm15 = vcmp.eq.s32.totalorder %v12158_v4, 14  ;;  %v12175_v31 = vld [vmem:[%s7996_s22 + $0xf8] sm:$0xff]  ;;  %v4102_v42 = vsel %vm4069_vm12, %v11994_v48, 0.0  ;;  %v4091_v15 = vsel %vm4058_vm13, %v11994_v48, 0.0  ;;  %v4095_v29 = vsel %vm4062_vm14, %v11994_v48, 0.0 }
 0x64e   : > { %v12153_v13 = vpop.permute.xlu1 %4785  ;;  %v12155_v8 = vpop.permute.xlu2 %4815  ;;  %15160 = vst [vmem:[#allocation153_spill] sm:$0xff] %v12175_v31  ;;  %vm4951_vm2 = vcmp.eq.s32.totalorder %v12175_v31, 13  ;;  %v5211_v40 = vsel %vm5178_vm15, 1, %v14512_v52  ;;  %v5212_v4 = vsel %vm5179_vm0, 1, %v14512_v52  ;;  %v12197_v50 = vadd.f32 %v4089_v41, %v11839_v54  ;;  %v15162_v41 = vld [vmem:[#allocation343_spill] sm:$0xff] }
 0x64f   : > { %15155 = vst [vmem:[#allocation149_spill] sm:$0xff] %v12153_v13  ;;  %v12200_v18 = vadd.f32 %v4099_v19, %v11990_v33  ;;  %v4105_v62 = vsel %vm4072_vm1, %v11994_v48, 0.0  ;;  %v4984_v21 = vsel %vm4951_vm2, 1, %v14512_v52  ;;  %v12205_v31 = vadd.f32 %v4088_v5, %v11904_v24  ;;  %v15163_v24 = vld [vmem:[#allocation344_spill] sm:$0xff] }
 0x650   : > { %15156 = vst [vmem:[#allocation150_spill] sm:$0xff] %v12155_v8  ;;  %v12172_v23 = vpop.permute.xlu0 %4782  ;;  %v15161_v8 = vld [vmem:[#allocation342_spill] sm:$0xff]  ;;  %v12208_v9 = vadd.f32 %v4092_v7, %v11849_v2  ;;  %v12214_v13 = vadd.f32 %v4091_v15, %v11915_v39  ;;  %v12217_v54 = vadd.f32 %v4095_v29, %v11895_v45  ;;  %vm4065_vm4 = vcmp.eq.s32.totalorder %v15162_v41, 1  ;;  %v15165_v39 = vld [vmem:[#allocation347_spill] sm:$0xff]  ;;  %v15166_v19 = vld [vmem:[#allocation348_spill] sm:$0xff] }
 0x651   : > { %vm4061_vm3 = vcmp.eq.s32.totalorder %v15161_v8, 1  ;;  %v12211_v8 = vadd.f32 %v4102_v42, %v12045_v63  ;;  %vm4075_vm5 = vcmp.eq.s32.totalorder %v15163_v24, 1  ;;  %v12223_v2 = vadd.f32 %v4105_v62, %v12056_v57  ;;  %v15164_v63 = vld [vmem:[#allocation346_spill] sm:$0xff]  ;;  %v15167_v45 = vld [vmem:[#allocation349_spill] sm:$0xff] }
 0x652   : > { %v4094_v33 = vsel %vm4061_vm3, %v11994_v48, 0.0  ;;  %vm4064_vm6 = vcmp.eq.s32.totalorder %v15164_v63, 1  ;;  %vm4068_vm7 = vcmp.eq.s32.totalorder %v15165_v39, 1  ;;  %vm4078_vm8 = vcmp.eq.s32.totalorder %v15166_v19, 1  ;;  %v15168_v29 = vld [vmem:[#allocation53_spill] sm:$0xff]  ;;  %v15175_v24 = vld [vmem:[#allocation54_spill] sm:$0xff] }
 0x653   : > { %vm4067_vm9 = vcmp.eq.s32.totalorder %v15167_v45, 1  ;;  %vm4071_vm10 = vcmp.eq.s32.totalorder %v15168_v29, 1  ;;  %v12239_v57 = vld [vmem:[%s7996_s22 + $0x20] sm:$0xff]  ;;  %v12243_v62 = vadd.f32 %v4094_v33, %v11951_v1  ;;  %v4098_v42 = vsel %vm4065_vm4, %v11994_v48, 0.0 }
 0x654   : > { %5244 = vperm.xlu1 %7390, %v5211_v40   ;;  %5247 = vperm.xlu2 %7391, %v5212_v4   ;;  %v12235_v4 = vld [vmem:[%s7996_s22 + $0x18] sm:$0xff]  ;;  %15172 = vst [vmem:[#allocation157_spill] sm:$0xff] %v12239_v57  ;;  %vm5182_vm12 = vcmp.eq.s32.totalorder %v12239_v57, 14  ;;  %v4108_v15 = vsel %vm4075_vm5, %v11994_v48, 0.0  ;;  %v12251_v40 = vld [vmem:[#allocation6 + $0xa] ss:$0 sm:$0xff] }
 0x655   : > { %5079 = vperm.xlu0 %7389, %v4984_v21   ;;  %15171 = vst [vmem:[#allocation156_spill] sm:$0xff] %v12235_v4  ;;  %vm5181_vm11 = vcmp.eq.s32.totalorder %v12235_v4, 14  ;;  %v4097_v1 = vsel %vm4064_vm6, %v11994_v48, 0.0  ;;  %v4101_v33 = vsel %vm4068_vm7, %v11994_v48, 0.0  ;;  %v4111_v41 = vsel %vm4078_vm8, %v11994_v48, 0.0 }
 0x656   : > { %v12230_v5 = vpop.permute.xlu1 %4794  ;;  %v12232_v7 = vpop.permute.xlu2 %4986  ;;  %15173 = vst [vmem:[#allocation158_spill] sm:$0xff] %v12243_v62  ;;  %vm4307_vm14 = vcmp.eq.s32.totalorder %v15175_v24, 1  ;;  %v4100_v62 = vsel %vm4067_vm9, %v11994_v48, 0.0  ;;  %v4104_v57 = vsel %vm4071_vm10, %v11994_v48, 0.0  ;;  %v5214_v63 = vsel %vm5181_vm11, 1, %v14512_v52  ;;  %v15176_v24 = vld [vmem:[#allocation55_spill] sm:$0xff] }
 0x657   : > { %15169 = vst [vmem:[#allocation154_spill] sm:$0xff] %v12230_v5  ;;  %v5215_v39 = vsel %vm5182_vm12, 1, %v14512_v52  ;;  %v12283_v19 = vadd.f32 %v4108_v15, %v12068_v37  ;;  %vm4070_vm15 = vcmp.eq.s32.totalorder %v15176_v24, 1  ;;  %v12288_v5 = vadd.f32 %v4097_v1, %v11973_v34  ;;  %v15178_v34 = vld [vmem:[#allocation58_spill] sm:$0xff]  ;;  %v15180_v15 = vld [vmem:[#allocation61_spill] sm:$0xff]  ;;  %v15181_v1 = vld [vmem:[#allocation64_spill] sm:$0xff] }
 0x658   : > { %15170 = vst [vmem:[#allocation155_spill] sm:$0xff] %v12232_v7  ;;  %v12253_v21 = vpop.permute.xlu0 %4791  ;;  %v12256_v7 = vld [vmem:[%s7996_s22 + $0x10] sm:$0xff]  ;;  %v12291_v29 = vadd.f32 %v4101_v33, %v11918_v3  ;;  %v12294_v4 = vadd.f32 %v4111_v41, %v12124_v12  ;;  %v4340_v20 = vsel %vm4307_vm14, %v12251_v40, 0.0  ;;  %v12301_v37 = vadd.f32 %v4104_v57, %v11967_v55  ;;  %v15179_v12 = vld [vmem:[#allocation57_spill] sm:$0xff]  ;;  %v12335_v24 = vld [vmem:[%s7996_s22 + $0x28] sm:$0xff] }
 0x659   : > { %15174 = vst [vmem:[#allocation159_spill] sm:$0xff] %v12256_v7  ;;  %vm5180_vm13 = vcmp.eq.s32.totalorder %v12256_v7, 14  ;;  %v12280_v7 = vadd.f32 %v4098_v42, %v11909_v60  ;;  %v12298_v60 = vadd.f32 %v4100_v62, %v11983_v22  ;;  %v15177_v42 = vld [vmem:[#allocation56_spill] sm:$0xff]  ;;  %vm4310_vm1 = vcmp.eq.s32.totalorder %v15178_v34, 1  ;;  %v15182_v55 = vld [vmem:[#allocation59_spill] sm:$0xff] }
 0x65a   : > { %v5213_v45 = vsel %vm5180_vm13, 1, %v14512_v52  ;;  %vm4074_vm0 = vcmp.eq.s32.totalorder %v15177_v42, 1  ;;  %v4103_v3 = vsel %vm4070_vm15, %v11994_v48, 0.0  ;;  %vm4073_vm2 = vcmp.eq.s32.totalorder %v15179_v12, 1  ;;  %v12318_v33 = vld [vmem:[%s7996_s22 + $0x30] sm:$0xff]  ;;  %v12322_v41 = vld [vmem:[%s7996_s22 + $0x38] sm:$0xff] }
 0x65b   : > { %vm4077_vm3 = vcmp.eq.s32.totalorder %v15180_v15, 1  ;;  %vm4313_vm4 = vcmp.eq.s32.totalorder %v15181_v1, 1  ;;  %v12310_v22 = vadd.f32 %v4340_v20, %v12134_v51  ;;  %vm4076_vm5 = vcmp.eq.s32.totalorder %v15182_v55, 1  ;;  %15185 = vst [vmem:[#allocation162_spill] sm:$0xff] %v12318_v33  ;;  %v15187_v51 = vld [vmem:[#allocation60_spill] sm:$0xff] }
 0x65c   : > { %5253 = vperm.xlu1 %7390, %v5214_v63   ;;  %5256 = vperm.xlu2 %7391, %v5215_v39   ;;  %vm5184_vm6 = vcmp.eq.s32.totalorder %v12318_v33, 14  ;;  %15186 = vst [vmem:[#allocation163_spill] sm:$0xff] %v12322_v41  ;;  %vm5185_vm7 = vcmp.eq.s32.totalorder %v12322_v41, 14  ;;  %v4107_v63 = vsel %vm4074_vm0, %v11994_v48, 0.0  ;;  %v4343_v20 = vsel %vm4310_vm1, %v12251_v40, 0.0  ;;  %v15189_v33 = vld [vmem:[#allocation62_spill] sm:$0xff] }
 0x65d   : > { %5250 = vperm.xlu0 %7389, %v5213_v45   ;;  %vm4080_vm8 = vcmp.eq.s32.totalorder %v15187_v51, 1  ;;  %15188 = vst [vmem:[#allocation164_spill] sm:$0xff] %v12335_v24  ;;  %vm5183_vm9 = vcmp.eq.s32.totalorder %v12335_v24, 14  ;;  %v12339_v45 = vadd.f32 %v4103_v3, %v12034_v35  ;;  %v4106_v42 = vsel %vm4073_vm2, %v11994_v48, 0.0 }
 0x65e   : > { %v12313_v57 = vpop.permute.xlu1 %4803  ;;  %v12315_v62 = vpop.permute.xlu2 %4995  ;;  %v4110_v34 = vsel %vm4077_vm3, %v11994_v48, 0.0  ;;  %v4346_v51 = vsel %vm4313_vm4, %v12251_v40, 0.0  ;;  %vm4316_vm10 = vcmp.eq.s32.totalorder %v15189_v33, 1  ;;  %v5217_v35 = vsel %vm5184_vm6, 1, %v14512_v52 }
 0x65f   : > { %15183 = vst [vmem:[#allocation160_spill] sm:$0xff] %v12313_v57  ;;  %v5218_v3 = vsel %vm5185_vm7, 1, %v14512_v52  ;;  %v12357_v12 = vadd.f32 %v4107_v63, %v11977_v36  ;;  %v12360_v15 = vadd.f32 %v4343_v20, %v12150_v53  ;;  %v4113_v41 = vsel %vm4080_vm8, %v11994_v48, 0.0  ;;  %v15191_v57 = vld [vmem:[#allocation63_spill] sm:$0xff]  ;;  %v15192_v63 = vld [vmem:[#allocation65_spill] sm:$0xff] }
 0x660   : > { %15184 = vst [vmem:[#allocation161_spill] sm:$0xff] %v12315_v62  ;;  %v12332_v39 = vpop.permute.xlu0 %4800  ;;  %v4109_v62 = vsel %vm4076_vm5, %v11994_v48, 0.0  ;;  %v5216_v1 = vsel %vm5183_vm9, 1, %v14512_v52  ;;  %v12365_v24 = vadd.f32 %v4106_v42, %v12050_v32  ;;  %v12368_v55 = vadd.f32 %v4110_v34, %v11987_v59  ;;  %v15193_v20 = vld [vmem:[#allocation67_spill] sm:$0xff]  ;;  %v15194_v32 = vld [vmem:[#allocation68_spill] sm:$0xff] }
 0x661   : > { %v12371_v33 = vadd.f32 %v4346_v51, %v12205_v31  ;;  %vm4079_vm11 = vcmp.eq.s32.totalorder %v15191_v57, 1  ;;  %v12375_v36 = vadd.f32 %v4109_v62, %v12059_v26  ;;  %v4349_v53 = vsel %vm4316_vm10, %v12251_v40, 0.0  ;;  %v15195_v31 = vld [vmem:[#allocation69_spill] sm:$0xff]  ;;  %v15196_v57 = vld [vmem:[#allocation70_spill] sm:$0xff]  ;;  %v15197_v62 = vld [vmem:[#allocation71_spill] sm:$0xff] }
 0x662   : > { %vm4309_vm12 = vcmp.eq.s32.totalorder %v15192_v63, 1  ;;  %vm4308_vm13 = vcmp.eq.s32.totalorder %v15193_v20, 1  ;;  %v12381_v59 = vadd.f32 %v4113_v41, %v12042_v6  ;;  %vm4312_vm14 = vcmp.eq.s32.totalorder %v15194_v32, 1  ;;  %v12393_v51 = vld [vmem:[%s7996_s22 + $0x48] sm:$0xff]  ;;  %v12397_v6 = vld [vmem:[%s7996_s22 + $0x50] sm:$0xff] }
 0x663   : > { %15190 = vst [vmem:[#allocation165_spill] sm:$0xff] %v12371_v33  ;;  %vm4322_vm15 = vcmp.eq.s32.totalorder %v15195_v31, 1  ;;  %vm4311_vm0 = vcmp.eq.s32.totalorder %v15196_v57, 1  ;;  %v4112_v26 = vsel %vm4079_vm11, %v11994_v48, 0.0  ;;  %vm4315_vm1 = vcmp.eq.s32.totalorder %v15197_v62, 1 }
 0x664   : > { %5262 = vperm.xlu1 %7390, %v5217_v35   ;;  %5265 = vperm.xlu2 %7391, %v5218_v3   ;;  %15199 = vst [vmem:[#allocation167_spill] sm:$0xff] %v12393_v51  ;;  %vm5187_vm2 = vcmp.eq.s32.totalorder %v12393_v51, 14  ;;  %vm5188_vm3 = vcmp.eq.s32.totalorder %v12397_v6, 14  ;;  %v4342_v41 = vsel %vm4309_vm12, %v12251_v40, 0.0  ;;  %v4341_v48 = vsel %vm4308_vm13, %v12251_v40, 0.0  ;;  %v15201_v35 = vld [vmem:[#allocation72_spill] sm:$0xff] }
 0x665   : > { %5259 = vperm.xlu0 %7389, %v5216_v1   ;;  %15200 = vst [vmem:[#allocation168_spill] sm:$0xff] %v12397_v6  ;;  %vm4325_vm4 = vcmp.eq.s32.totalorder %v15201_v35, 1  ;;  %v12410_v1 = vld [vmem:[%s7996_s22 + $0x40] sm:$0xff]  ;;  %v4345_v63 = vsel %vm4312_vm14, %v12251_v40, 0.0  ;;  %v4355_v20 = vsel %vm4322_vm15, %v12251_v40, 0.0  ;;  %v4344_v35 = vsel %vm4311_vm0, %v12251_v40, 0.0 }
 0x666   : > { %v12388_v42 = vpop.permute.xlu1 %4812  ;;  %v12390_v34 = vpop.permute.xlu2 %5004  ;;  %15202 = vst [vmem:[#allocation169_spill] sm:$0xff] %v12410_v1  ;;  %vm5186_vm5 = vcmp.eq.s32.totalorder %v12410_v1, 14  ;;  %v12426_v33 = vadd.f32 %v4112_v26, %v12118_v61  ;;  %v5221_v32 = vsel %vm5188_vm3, 1, %v14512_v52  ;;  %v12437_v31 = vadd.f32 %v4341_v48, %v12128_v44  ;;  %v15205_v6 = vld [vmem:[#allocation73_spill] sm:$0xff]  ;;  %v15207_v44 = vld [vmem:[#allocation75_spill] sm:$0xff]  ;;  %v15221_v1 = vld [vmem:[#allocation84_spill] sm:$0xff] }
 0x667   : > { %15198 = vst [vmem:[#allocation166_spill] sm:$0xff] %v12390_v34  ;;  %v12414_v34 = vadd.f32 %v4349_v53, %v12214_v13  ;;  %v4348_v13 = vsel %vm4315_vm1, %v12251_v40, 0.0  ;;  %v5220_v53 = vsel %vm5187_vm2, 1, %v14512_v52  ;;  %v4358_v57 = vsel %vm4325_vm4, %v12251_v40, 0.0  ;;  %v15209_v48 = vld [vmem:[#allocation77_spill] sm:$0xff] }
 0x668   : > { %v12407_v3 = vpop.permute.xlu0 %4809  ;;  %v5219_v51 = vsel %vm5186_vm5, 1, %v14512_v52  ;;  %v12442_v61 = vadd.f32 %v4345_v63, %v12062_v28  ;;  %v12445_v26 = vadd.f32 %v4355_v20, %v12288_v5  ;;  %v12448_v62 = vadd.f32 %v4344_v35, %v12138_v25  ;;  %v15210_v25 = vld [vmem:[#allocation78_spill] sm:$0xff]  ;;  %v15211_v5 = vld [vmem:[#allocation79_spill] sm:$0xff]  ;;  %v15213_v63 = vld [vmem:[#allocation81_spill] sm:$0xff] }
 0x669   : > { %15203 = vst [vmem:[#allocation170_spill] sm:$0xff] %v12414_v34  ;;  %v12434_v34 = vadd.f32 %v4342_v41, %v12053_v16  ;;  %vm4314_vm6 = vcmp.eq.s32.totalorder %v15205_v6, 1  ;;  %v12452_v16 = vadd.f32 %v4348_v13, %v12121_v58  ;;  %vm4328_vm7 = vcmp.eq.s32.totalorder %v15207_v44, 1  ;;  %v15208_v41 = vld [vmem:[#allocation76_spill] sm:$0xff]  ;;  %v12470_v13 = vld [vmem:[%s7996_s22 + $0x60] sm:$0xff] }
 0x66a   : > { %15204 = vst [vmem:[#allocation171_spill] sm:$0xff] %v12442_v61  ;;  %vm4317_vm8 = vcmp.eq.s32.totalorder %v15208_v41, 1  ;;  %vm4321_vm9 = vcmp.eq.s32.totalorder %v15209_v48, 1  ;;  %v12458_v28 = vadd.f32 %v4358_v57, %v12298_v60  ;;  %vm4331_vm10 = vcmp.eq.s32.totalorder %v15210_v25, 1  ;;  %v15212_v6 = vld [vmem:[#allocation80_spill] sm:$0xff]  ;;  %v12474_v60 = vld [vmem:[%s7996_s22 + $0x68] sm:$0xff] }
 0x66b   : > { %15206 = vst [vmem:[#allocation172_spill] sm:$0xff] %v12452_v16  ;;  %vm4320_vm11 = vcmp.eq.s32.totalorder %v15211_v5, 1  ;;  %vm4324_vm12 = vcmp.eq.s32.totalorder %v15212_v6, 1  ;;  %v4347_v58 = vsel %vm4314_vm6, %v12251_v40, 0.0  ;;  %vm4334_vm13 = vcmp.eq.s32.totalorder %v15213_v63, 1  ;;  %v15219_v48 = vld [vmem:[#allocation82_spill] sm:$0xff] }
 0x66c   : > { %5271 = vperm.xlu1 %7390, %v5220_v53   ;;  %5274 = vperm.xlu2 %7391, %v5221_v32   ;;  %15216 = vst [vmem:[#allocation175_spill] sm:$0xff] %v12470_v13  ;;  %vm5190_vm14 = vcmp.eq.s32.totalorder %v12470_v13, 14  ;;  %vm5191_vm15 = vcmp.eq.s32.totalorder %v12474_v60, 14  ;;  %v4350_v53 = vsel %vm4317_vm8, %v12251_v40, 0.0  ;;  %v4354_v32 = vsel %vm4321_vm9, %v12251_v40, 0.0  ;;  %v15220_v13 = vld [vmem:[#allocation83_spill] sm:$0xff] }
 0x66d   : > { %5268 = vperm.xlu0 %7389, %v5219_v51   ;;  %15217 = vst [vmem:[#allocation176_spill] sm:$0xff] %v12474_v60  ;;  %v4361_v51 = vsel %vm4328_vm7, %v12251_v40, 0.0  ;;  %v4364_v16 = vsel %vm4331_vm10, %v12251_v40, 0.0  ;;  %v4353_v44 = vsel %vm4320_vm11, %v12251_v40, 0.0  ;;  %v4357_v41 = vsel %vm4324_vm12, %v12251_v40, 0.0 }
 0x66e   : > { %v12465_v20 = vpop.permute.xlu1 %4821  ;;  %v12467_v35 = vpop.permute.xlu2 %5013  ;;  %vm4323_vm1 = vcmp.eq.s32.totalorder %v15219_v48, 1  ;;  %v4367_v61 = vsel %vm4334_vm13, %v12251_v40, 0.0  ;;  %vm4327_vm2 = vcmp.eq.s32.totalorder %v15220_v13, 1  ;;  %v5223_v60 = vsel %vm5190_vm14, 1, %v14512_v52 }
 0x66f   : > { %15214 = vst [vmem:[#allocation173_spill] sm:$0xff] %v12465_v20  ;;  %v5224_v25 = vsel %vm5191_vm15, 1, %v14512_v52  ;;  %v12512_v5 = vadd.f32 %v4361_v51, %v12339_v45  ;;  %v12515_v6 = vadd.f32 %v4350_v53, %v12208_v9  ;;  %v12519_v63 = vadd.f32 %v4354_v32, %v12141_v17  ;;  %v12555_v53 = vld [vmem:[%s7996_s22 + $0x80] sm:$0xff] }
 0x670   : > { %15215 = vst [vmem:[#allocation174_spill] sm:$0xff] %v12467_v35  ;;  %v12486_v57 = vpop.permute.xlu0 %4818  ;;  %v12489_v35 = vld [vmem:[%s7996_s22 + $0x58] sm:$0xff]  ;;  %v12522_v13 = vadd.f32 %v4364_v16, %v12365_v24  ;;  %v4356_v20 = vsel %vm4323_vm1, %v12251_v40, 0.0  ;;  %vm4337_vm3 = vcmp.eq.s32.totalorder %v15221_v1, 1  ;;  %v12530_v45 = vadd.f32 %v4357_v41, %v12200_v18  ;;  %v15223_v1 = vld [vmem:[#allocation86_spill] sm:$0xff] }
 0x671   : > { %15218 = vst [vmem:[#allocation177_spill] sm:$0xff] %v12489_v35  ;;  %vm5189_vm0 = vcmp.eq.s32.totalorder %v12489_v35, 14  ;;  %v12509_v35 = vadd.f32 %v4347_v58, %v12197_v50  ;;  %v12527_v50 = vadd.f32 %v4353_v44, %v12217_v54  ;;  %v12533_v9 = vadd.f32 %v4367_v61, %v12375_v36  ;;  %v12536_v58 = vld [vmem:[#allocation6 + $0xb] ss:$0 sm:$0xff]  ;;  %v15222_v24 = vld [vmem:[#allocation85_spill] sm:$0xff]  ;;  %v15224_v54 = vld [vmem:[#allocation87_spill] sm:$0xff] }
 0x672   : > { %v5222_v48 = vsel %vm5189_vm0, 1, %v14512_v52  ;;  %v4360_v17 = vsel %vm4327_vm2, %v12251_v40, 0.0  ;;  %vm4326_vm4 = vcmp.eq.s32.totalorder %v15222_v24, 1  ;;  %vm4330_vm5 = vcmp.eq.s32.totalorder %v15223_v1, 1  ;;  %v15225_v16 = vld [vmem:[#allocation88_spill] sm:$0xff]  ;;  %15229 = vst [vmem:[#allocation181_spill] sm:$0xff] %v12555_v53 }
 0x673   : > { %vm4566_vm6 = vcmp.eq.s32.totalorder %v15224_v54, 1  ;;  %vm4329_vm7 = vcmp.eq.s32.totalorder %v15225_v16, 1  ;;  %v12543_v18 = vadd.f32 %v4356_v20, %v12280_v7  ;;  %v4370_v36 = vsel %vm4337_vm3, %v12251_v40, 0.0  ;;  %v15230_v44 = vld [vmem:[#allocation89_spill] sm:$0xff]  ;;  %v12566_v20 = vld [vmem:[%s7996_s22 + $0x70] sm:$0xff] }
 0x674   : > { %5280 = vperm.xlu1 %7390, %v5223_v60   ;;  %5283 = vperm.xlu2 %7391, %v5224_v25   ;;  %v12551_v60 = vld [vmem:[%s7996_s22 + $0x78] sm:$0xff]  ;;  %vm5194_vm9 = vcmp.eq.s32.totalorder %v12555_v53, 14  ;;  %v12559_v32 = vadd.f32 %v4360_v17, %v12211_v8  ;;  %vm4333_vm10 = vcmp.eq.s32.totalorder %v15230_v44, 1  ;;  %vm4580_vm11 = vcmp.eq.s32.totalorder %v11345_v49, 1  ;;  %15231 = vst [vmem:[#allocation182_spill] sm:$0xff] %v12566_v20 }
 0x675   : > { %5277 = vperm.xlu0 %7389, %v5222_v48   ;;  %15228 = vst [vmem:[#allocation180_spill] sm:$0xff] %v12551_v60  ;;  %vm5193_vm8 = vcmp.eq.s32.totalorder %v12551_v60, 14  ;;  %vm5192_vm12 = vcmp.eq.s32.totalorder %v12566_v20, 14  ;;  %v4359_v41 = vsel %vm4326_vm4, %v12251_v40, 0.0  ;;  %v4363_v25 = vsel %vm4330_vm5, %v12251_v40, 0.0  ;;  %v15232_v48 = vld [vmem:[#allocation90_spill] sm:$0xff] }
 0x676   : > { %v12546_v61 = vpop.permute.xlu1 %4992  ;;  %v12548_v51 = vpop.permute.xlu2 %5022  ;;  %v4599_v8 = vsel %vm4566_vm6, %v12536_v58, 0.0  ;;  %v4362_v49 = vsel %vm4329_vm7, %v12251_v40, 0.0  ;;  %vm4569_vm13 = vcmp.eq.s32.totalorder %v15232_v48, 1  ;;  %vm4838_vm14 = vcmp.eq.s32.totalorder %v12093_v56, 1  ;;  %v15233_v48 = vld [vmem:[#allocation92_spill] sm:$0xff]  ;;  %v15234_v53 = vld [vmem:[#allocation93_spill] sm:$0xff] }
 0x677   : > { %15226 = vst [vmem:[#allocation178_spill] sm:$0xff] %v12546_v61  ;;  %v5226_v17 = vsel %vm5193_vm8, 1, %v14512_v52  ;;  %v5227_v24 = vsel %vm5194_vm9, 1, %v14512_v52  ;;  %v12586_v44 = vadd.f32 %v4370_v36, %v12426_v33  ;;  %v4366_v1 = vsel %vm4333_vm10, %v12251_v40, 0.0 }
 0x678   : > { %15227 = vst [vmem:[#allocation179_spill] sm:$0xff] %v12548_v51  ;;  %v12563_v7 = vpop.permute.xlu0 %4989  ;;  %v4613_v54 = vsel %vm4580_vm11, %v12536_v58, 0.0  ;;  %v12590_v51 = vld [vmem:[#allocation6 + $0xc] ss:$0 sm:$0xff]  ;;  %v5225_v16 = vsel %vm5192_vm12, 1, %v14512_v52  ;;  %v12594_v60 = vadd.f32 %v4359_v41, %v12291_v29  ;;  %v12597_v56 = vadd.f32 %v4363_v25, %v12223_v2  ;;  %v15235_v41 = vld [vmem:[#allocation94_spill] sm:$0xff] }
 0x679   : > { %vm4332_vm15 = vcmp.eq.s32.totalorder %v15233_v48, 1  ;;  %vm4336_vm0 = vcmp.eq.s32.totalorder %v15234_v53, 1  ;;  %v12602_v33 = vadd.f32 %v4599_v8, %v12437_v31  ;;  %v12605_v36 = vadd.f32 %v4362_v49, %v12301_v37  ;;  %v15236_v53 = vld [vmem:[#allocation97_spill] sm:$0xff]  ;;  %v12617_v8 = vld [vmem:[#allocation6 + $0xd] ss:$0 sm:$0xff] }
 0x67a   : > { %v4602_v20 = vsel %vm4569_vm13, %v12536_v58, 0.0  ;;  %v4871_v29 = vsel %vm4838_vm14, %v12590_v51, 0.0  ;;  %v12610_v2 = vadd.f32 %v4366_v1, %v12283_v19  ;;  %vm4572_vm1 = vcmp.eq.s32.totalorder %v15235_v41, 1  ;;  %v12626_v19 = vld [vmem:[%s7996_s22 + $0x98] sm:$0xff] }
 0x67b   : > { %vm4335_vm2 = vcmp.eq.s32.totalorder %v15236_v53, 1  ;;  %v4645_v31 = vadd.f32 %v4613_v54, %v12445_v26  ;;  %v4365_v37 = vsel %vm4332_vm15, %v12251_v40, 0.0  ;;  %v4369_v25 = vsel %vm4336_vm0, %v12251_v40, 0.0  ;;  %15239 = vst [vmem:[#allocation185_spill] sm:$0xff] %v12626_v19  ;;  %v12633_v54 = vld [vmem:[%s7996_s22 + $0x88] sm:$0xff]  ;;  %v15243_v41 = vld [vmem:[#allocation100_spill] sm:$0xff] }
 0x67c   : > { %5289 = vperm.xlu1 %7390, %v5226_v17   ;;  %5292 = vperm.xlu2 %7391, %v5227_v24   ;;  %v12622_v24 = vld [vmem:[%s7996_s22 + $0x90] sm:$0xff]  ;;  %vm5197_vm4 = vcmp.eq.s32.totalorder %v12626_v19, 14  ;;  %vm4583_vm5 = vcmp.eq.s32.totalorder %v11420_v30, 1  ;;  %15240 = vst [vmem:[#allocation186_spill] sm:$0xff] %v12633_v54  ;;  %vm5195_vm7 = vcmp.eq.s32.totalorder %v12633_v54, 14  ;;  %v4368_v48 = vsel %vm4335_vm2, %v12251_v40, 0.0 }
 0x67d   : > { %5286 = vperm.xlu0 %7389, %v5225_v16   ;;  %15238 = vst [vmem:[#allocation184_spill] sm:$0xff] %v12622_v24  ;;  %vm5196_vm3 = vcmp.eq.s32.totalorder %v12622_v24, 14  ;;  %v4903_v26 = vadd.f32 %v4871_v29, %v4645_v31  ;;  %v4605_v16 = vsel %vm4572_vm1, %v12536_v58, 0.0  ;;  %v15241_v24 = vld [vmem:[#allocation99_spill] sm:$0xff]  ;;  %vm4841_vm9 = vcmp.eq.s32.totalorder %v12172_v23, 1 }
 0x67e   : > { %v12619_v49 = vpop.permute.xlu1 %5001  ;;  %v5032_v17 = vpop.permute.xlu2 %5031  ;;  %vm4565_vm8 = vcmp.eq.s32.totalorder %v15241_v24, 1  ;;  %v5229_v31 = vsel %vm5196_vm3, 1, %v14512_v52  ;;  %vm4575_vm10 = vcmp.eq.s32.totalorder %v15243_v41, 1  ;;  %v4616_v53 = vsel %vm4583_vm5, %v12536_v58, 0.0  ;;  %v12684_v41 = vld [vmem:[%s7996_s22 + $0xa8] sm:$0xff] }
 0x67f   : > { %15237 = vst [vmem:[#allocation183_spill] sm:$0xff] %v12619_v49  ;;  %vm5096_vm6 = vcmp.eq.s32.totalorder %v5032_v17, 1  ;;  %v5230_v17 = vsel %vm5197_vm4, 1, %v14512_v52  ;;  %v12650_v49 = vadd.f32 %v4602_v20, %v12448_v62  ;;  %v5228_v54 = vsel %vm5195_vm7, 1, %v14512_v52 }
 0x680   : > { %v12630_v1 = vpop.permute.xlu0 %4998  ;;  %v5129_v19 = vsel %vm5096_vm6, %v12617_v8, 0.0  ;;  %v12658_v61 = vadd.f32 %v4365_v37, %v12357_v12  ;;  %v12661_v23 = vadd.f32 %v4369_v25, %v12294_v4  ;;  %v12666_v62 = vadd.f32 %v4605_v16, %v12509_v35  ;;  %v15246_v37 = vld [vmem:[#allocation106_spill] sm:$0xff]  ;;  %v15247_v25 = vld [vmem:[#allocation109_spill] sm:$0xff]  ;;  %15248 = vst [vmem:[#allocation188_spill] sm:$0xff] %v12684_v41 }
 0x681   : > { %v12645_v29 = vadd.f32 %v5129_v19, %v4903_v26  ;;  %v15244_v19 = vld [vmem:[#allocation103_spill] sm:$0xff]  ;;  %v15245_v26 = vld [vmem:[#allocation105_spill] sm:$0xff]  ;;  %v12669_v20 = vadd.f32 %v4368_v48, %v12368_v55  ;;  %v4598_v30 = vsel %vm4565_vm8, %v12536_v58, 0.0  ;;  %v4874_v12 = vsel %vm4841_vm9, %v12590_v51, 0.0 }
 0x682   : > { %vm4338_vm11 = vcmp.eq.s32.totalorder %v15244_v19, 1  ;;  %vm4568_vm12 = vcmp.eq.s32.totalorder %v15245_v26, 1  ;;  %v4608_v4 = vsel %vm4575_vm10, %v12536_v58, 0.0  ;;  %vm4578_vm13 = vcmp.eq.s32.totalorder %v15246_v37, 1  ;;  %v15250_v19 = vld [vmem:[#allocation111_spill] sm:$0xff] }
 0x683   : > { %15242 = vst [vmem:[#allocation187_spill] sm:$0xff] %v12645_v29  ;;  %vm4567_vm14 = vcmp.eq.s32.totalorder %v15247_v25, 1  ;;  %v4648_v35 = vadd.f32 %v4616_v53, %v12458_v28  ;;  %v4371_v55 = vsel %vm4338_vm11, %v12251_v40, 0.0  ;;  %v4601_v24 = vsel %vm4568_vm12, %v12536_v58, 0.0  ;;  %v12695_v40 = vld [vmem:[%s7996_s22 + $0xa0] sm:$0xff]  ;;  %v15251_v29 = vld [vmem:[#allocation112_spill] sm:$0xff] }
 0x684   : > { %5298 = vperm.xlu1 %7390, %v5229_v31   ;;  %5301 = vperm.xlu2 %7391, %v5230_v17   ;;  %vm5199_vm15 = vcmp.eq.s32.totalorder %v12684_v41, 14  ;;  %v12688_v31 = vld [vmem:[%s7996_s22 + $0xb0] sm:$0xff]  ;;  %vm4586_vm1 = vcmp.eq.s32.totalorder %v11486_v14, 1  ;;  %vm5198_vm3 = vcmp.eq.s32.totalorder %v12695_v40, 14  ;;  %v4600_v53 = vsel %vm4567_vm14, %v12536_v58, 0.0 }
 0x685   : > { %5295 = vperm.xlu0 %7389, %v5228_v54   ;;  %15249 = vst [vmem:[#allocation189_spill] sm:$0xff] %v12688_v31  ;;  %vm5200_vm0 = vcmp.eq.s32.totalorder %v12688_v31, 14  ;;  %v4906_v17 = vadd.f32 %v4874_v12, %v4648_v35  ;;  %v4611_v54 = vsel %vm4578_vm13, %v12536_v58, 0.0  ;;  %vm4571_vm4 = vcmp.eq.s32.totalorder %v15250_v19, 1  ;;  %v15252_v37 = vld [vmem:[#allocation299_spill] sm:$0xff] }
 0x686   : > { %v12681_v16 = vpop.permute.xlu1 %5010  ;;  %v5041_v48 = vpop.permute.xlu2 %5040  ;;  %vm4844_vm5 = vcmp.eq.s32.totalorder %v12253_v21, 1  ;;  %v5232_v35 = vsel %vm5199_vm15, 1, %v14512_v52  ;;  %vm4581_vm6 = vcmp.eq.s32.totalorder %v15251_v29, 1  ;;  %vm4584_vm7 = vcmp.eq.s32.totalorder %v15252_v37, 1 }
 0x687   : > { %vm5099_vm2 = vcmp.eq.s32.totalorder %v5041_v48, 1  ;;  %v5233_v48 = vsel %vm5200_vm0, 1, %v14512_v52  ;;  %v4619_v25 = vsel %vm4586_vm1, %v12536_v58, 0.0  ;;  %v5231_v41 = vsel %vm5198_vm3, 1, %v14512_v52 }
 0x688   : > { %v12692_v28 = vpop.permute.xlu0 %5007  ;;  %v5132_v26 = vsel %vm5099_vm2, %v12617_v8, 0.0  ;;  %v12718_v31 = vadd.f32 %v4598_v30, %v12310_v22  ;;  %v12721_v21 = vadd.f32 %v4608_v4, %v12515_v6  ;;  %v12728_v29 = vadd.f32 %v4601_v24, %v12360_v15  ;;  %v12752_v24 = vld [vmem:[%s7996_s22 + $0xc8] sm:$0xff] }
 0x689   : > { %v12707_v12 = vadd.f32 %v5132_v26, %v4906_v17  ;;  %v12724_v17 = vadd.f32 %v4371_v55, %v12381_v59  ;;  %v15253_v26 = vld [vmem:[#allocation304_spill] sm:$0xff]  ;;  %v4643_v14 = vadd.f32 %v4611_v54, %v12527_v50  ;;  %v12732_v37 = vadd.f32 %v4600_v53, %v12434_v34  ;;  %v12748_v55 = vld [vmem:[%s7996_s22 + $0xc0] sm:$0xff] }
 0x68a   : > { %vm4579_vm8 = vcmp.eq.s32.totalorder %v15253_v26, 1  ;;  %v4877_v22 = vsel %vm4844_vm5, %v12590_v51, 0.0  ;;  %v12738_v59 = vsel %vm4571_vm4, %v12536_v58, 0.0  ;;  %v4614_v6 = vsel %vm4581_vm6, %v12536_v58, 0.0 }
 0x68b   : > { %v4617_v15 = vsel %vm4584_vm7, %v12536_v58, 0.0  ;;  %v4651_v50 = vadd.f32 %v4619_v25, %v12512_v5  ;;  %v4612_v34 = vsel %vm4579_vm8, %v12536_v58, 0.0  ;;  %vm4589_vm9 = vcmp.eq.s32.totalorder %v11554_v11, 1 }
 0x68c   : > { %5307 = vperm.xlu1 %7390, %v5232_v35   ;;  %5310 = vperm.xlu2 %7391, %v5233_v48   ;;  %vm5202_vm10 = vcmp.eq.s32.totalorder %v12748_v55, 14  ;;  %vm5203_vm11 = vcmp.eq.s32.totalorder %v12752_v24, 14  ;;  %vm4837_vm12 = vcmp.eq.s32.totalorder %v11800_v43, 1  ;;  %vm4582_vm15 = vcmp.eq.s32.totalorder %v11429_v0, 1 }
 0x68d   : > { %5304 = vperm.xlu0 %7389, %v5231_v41   ;;  %v4909_v54 = vadd.f32 %v4877_v22, %v4651_v50  ;;  %v12759_v41 = vld [vmem:[%s7996_s22 + $0xb8] sm:$0xff]  ;;  %vm4836_vm0 = vcmp.eq.s32.totalorder %v12002_v47, 1  ;;  %vm4847_vm1 = vcmp.eq.s32.totalorder %v12332_v39, 1  ;;  %v4622_v19 = vsel %vm4589_vm9, %v12536_v58, 0.0 }
 0x68e   : > { %v12745_v30 = vpop.permute.xlu1 %5019  ;;  %v5050_v4 = vpop.permute.xlu2 %5049  ;;  %vm5201_vm14 = vcmp.eq.s32.totalorder %v12759_v41, 14  ;;  %v5235_v48 = vsel %vm5202_vm10, 1, %v14512_v52  ;;  %v5236_v25 = vsel %vm5203_vm11, 1, %v14512_v52  ;;  %v4646_v26 = vadd.f32 %v4614_v6, %v12543_v18  ;;  %v15255_v6 = vld [vmem:[#allocation144_spill] sm:$0xff] }
 0x68f   : > { %vm5102_vm13 = vcmp.eq.s32.totalorder %v5050_v4, 1  ;;  %vm4592_vm2 = vcmp.eq.s32.totalorder %v11616_v10, 1  ;;  %v4870_v47 = vsel %vm4837_vm12, %v12590_v51, 0.0  ;;  %v5234_v39 = vsel %vm5201_vm14, 1, %v14512_v52 }
 0x690   : > { %v12756_v5 = vpop.permute.xlu0 %5016  ;;  %v5135_v53 = vsel %vm5102_vm13, %v12617_v8, 0.0  ;;  %v12780_v22 = vadd.f32 %v4617_v15, %v12594_v60  ;;  %v4644_v11 = vadd.f32 %v4612_v34, %v12519_v63  ;;  %v4869_v50 = vsel %vm4836_vm0, %v12590_v51, 0.0 }
 0x691   : > { %v12769_v35 = vadd.f32 %v5135_v53, %v4909_v54  ;;  %v4880_v4 = vsel %vm4847_vm1, %v12590_v51, 0.0  ;;  %v15254_v54 = vld [vmem:[#allocation121_spill] sm:$0xff]  ;;  %v4615_v10 = vsel %vm4582_vm15, %v12536_v58, 0.0  ;;  %vm4585_vm4 = vcmp.eq.s32.totalorder %v11501_v27, 1  ;;  %v15256_v53 = vld [vmem:[#allocation147_spill] sm:$0xff] }
 0x692   : > { %vm4587_vm3 = vcmp.eq.s32.totalorder %v15254_v54, 1  ;;  %v4654_v43 = vadd.f32 %v4622_v19, %v12522_v13  ;;  %v4625_v18 = vsel %vm4592_vm2, %v12536_v58, 0.0  ;;  %v4902_v63 = vadd.f32 %v4870_v47, %v4644_v11  ;;  %v12798_v19 = vld [vmem:[%s7996_s22 + $0xd0] sm:$0xff] }
 0x693   : > { %vm4840_vm5 = vcmp.eq.s32.totalorder %v11866_v38, 1  ;;  %vm5205_vm6 = vcmp.eq.s32.totalorder %v12008_v46, 14  ;;  %v4901_v60 = vadd.f32 %v4869_v50, %v4643_v14  ;;  %vm4839_vm7 = vcmp.eq.s32.totalorder %v15255_v6, 1  ;;  %v15259_v38 = vld [vmem:[#allocation306_spill] sm:$0xff]  ;;  %v15261_v6 = vld [vmem:[#allocation141_spill] sm:$0xff] }
 0x694   : > { %5316 = vperm.xlu1 %7390, %v5235_v48   ;;  %5319 = vperm.xlu2 %7391, %v5236_v25   ;;  %v4912_v0 = vadd.f32 %v4880_v4, %v4654_v43  ;;  %vm5206_vm8 = vcmp.eq.s32.totalorder %v15256_v53, 14  ;;  %vm4850_vm9 = vcmp.eq.s32.totalorder %v12407_v3, 1  ;;  %vm5204_vm12 = vcmp.eq.s32.totalorder %v12798_v19, 14  ;;  %v15258_v4 = vld [vmem:[#allocation131_spill] sm:$0xff]  ;;  %v15262_v3 = vld [vmem:[#allocation146_spill] sm:$0xff] }
 0x695   : > { %5313 = vperm.xlu0 %7389, %v5234_v39   ;;  %v5238_v25 = vsel %vm5205_vm6, 1, %v14512_v52  ;;  %v5239_v50 = vsel %vm5206_vm8, 1, %v14512_v52  ;;  %vm4595_vm14 = vcmp.eq.s32.totalorder %v15258_v4, 1  ;;  %v4873_v43 = vsel %vm4840_vm5, %v12590_v51, 0.0 }
 0x696   : > { %v5029_v15 = vpop.permute.xlu1 %5028  ;;  %v5059_v34 = vpop.permute.xlu2 %5058  ;;  %v4620_v46 = vsel %vm4587_vm3, %v12536_v58, 0.0  ;;  %v4883_v53 = vsel %vm4850_vm9, %v12590_v51, 0.0  ;;  %vm4590_vm15 = vcmp.eq.s32.totalorder %v15259_v38, 1  ;;  %v4657_v54 = vadd.f32 %v4625_v18, %v12533_v9  ;;  %v12842_v18 = vld [vmem:[%s7996_s22 + $0xe8] sm:$0xff] }
 0x697   : > { %vm5095_vm10 = vcmp.eq.s32.totalorder %v5029_v15, 1  ;;  %vm5105_vm11 = vcmp.eq.s32.totalorder %v5059_v34, 1  ;;  %v5237_v34 = vsel %vm5204_vm12, 1, %v14512_v52  ;;  %vm4843_vm1 = vcmp.eq.s32.totalorder %v15261_v6, 1 }
 0x698   : > { %v5026_v13 = vpop.permute.xlu0 %5025  ;;  %v5128_v48 = vsel %vm5095_vm10, %v12617_v8, 0.0  ;;  %v5138_v14 = vsel %vm5105_vm11, %v12617_v8, 0.0  ;;  %vm5208_vm2 = vcmp.eq.s32.totalorder %v15262_v3, 14  ;;  %v4915_v27 = vadd.f32 %v4883_v53, %v4657_v54 }
 0x699   : > { %vm5094_vm13 = vcmp.eq.s32.totalorder %v5026_v13, 1  ;;  %v12806_v47 = vadd.f32 %v5128_v48, %v4902_v63  ;;  %v12808_v39 = vadd.f32 %v5138_v14, %v4912_v0  ;;  %v4647_v63 = vadd.f32 %v4615_v10, %v12530_v45  ;;  %v15260_v13 = vld [vmem:[#allocation128_spill] sm:$0xff]  ;;  %v15263_v14 = vld [vmem:[#allocation149_spill] sm:$0xff] }
 0x69a   : > { %v5127_v11 = vsel %vm5094_vm13, %v12617_v8, 0.0  ;;  %v4872_v0 = vsel %vm4839_vm7, %v12590_v51, 0.0  ;;  %vm4588_vm0 = vcmp.eq.s32.totalorder %v15260_v13, 1  ;;  %v4628_v45 = vsel %vm4595_vm14, %v12536_v58, 0.0 }
 0x69b   : > { %15257 = vst [vmem:[#allocation190_spill] sm:$0xff] %v12808_v39  ;;  %v12816_v15 = vadd.f32 %v5127_v11, %v4901_v60  ;;  %v4618_v60 = vsel %vm4585_vm4, %v12536_v58, 0.0  ;;  %v4905_v10 = vadd.f32 %v4873_v43, %v4647_v63  ;;  %v4904_v48 = vadd.f32 %v4872_v0, %v4646_v26  ;;  %v15264_v39 = vld [vmem:[#allocation153_spill] sm:$0xff]  ;;  %v15265_v0 = vld [vmem:[#allocation134_spill] sm:$0xff] }
 0x69c   : > { %5325 = vperm.xlu1 %7390, %v5238_v25   ;;  %5328 = vperm.xlu2 %7391, %v5239_v50   ;;  %vm4842_vm3 = vcmp.eq.s32.totalorder %v15263_v14, 1  ;;  %vm5209_vm4 = vcmp.eq.s32.totalorder %v15264_v39, 14  ;;  %vm4853_vm5 = vcmp.eq.s32.totalorder %v12486_v57, 1  ;;  %vm5207_vm8 = vcmp.eq.s32.totalorder %v12842_v18, 14  ;;  %v15268_v57 = vld [vmem:[#allocation152_spill] sm:$0xff]  ;;  %v15269_v14 = vld [vmem:[#allocation154_spill] sm:$0xff] }
 0x69d   : > { %5322 = vperm.xlu0 %7389, %v5237_v34   ;;  %v5241_v50 = vsel %vm5208_vm2, 1, %v14512_v52  ;;  %v5242_v63 = vsel %vm5209_vm4, 1, %v14512_v52  ;;  %vm4824_vm10 = vcmp.eq.s32.totalorder %v15265_v0, 1  ;;  %v4876_v53 = vsel %vm4843_vm1, %v12590_v51, 0.0 }
 0x69e   : > { %v5038_v11 = vpop.permute.xlu1 %5037  ;;  %v5068_v4 = vpop.permute.xlu2 %5067  ;;  %v4652_v3 = vadd.f32 %v4620_v46, %v12605_v36  ;;  %v4623_v6 = vsel %vm4590_vm15, %v12536_v58, 0.0  ;;  %v4857_v36 = vsel %vm4824_vm10, %v12590_v51, 0.0  ;;  %vm5437_vm13 = vcmp.eq.s32.totalorder %v15268_v57, 15 }
 0x69f   : > { %vm5098_vm6 = vcmp.eq.s32.totalorder %v5038_v11, 1  ;;  %vm5108_vm7 = vcmp.eq.s32.totalorder %v5068_v4, 1  ;;  %v5240_v11 = vsel %vm5207_vm8, 1, %v14512_v52  ;;  %v4886_v4 = vsel %vm4853_vm5, %v12590_v51, 0.0 }
 0x6a0   : > { %v5035_v9 = vpop.permute.xlu0 %5034  ;;  %v5131_v25 = vsel %vm5098_vm6, %v12617_v8, 0.0  ;;  %v5141_v26 = vsel %vm5108_vm7, %v12617_v8, 0.0  ;;  %vm4845_vm14 = vcmp.eq.s32.totalorder %v15269_v14, 1  ;;  %v15275_v14 = vld [vmem:[#allocation145_spill] sm:$0xff] }
 0x6a1   : > { %vm5097_vm9 = vcmp.eq.s32.totalorder %v5035_v9, 1  ;;  %v12850_v43 = vadd.f32 %v5131_v25, %v4905_v10  ;;  %v12852_v39 = vadd.f32 %v5141_v26, %v4915_v27  ;;  %v4650_v10 = vadd.f32 %v4618_v60, %v12559_v32  ;;  %v15266_v9 = vld [vmem:[#allocation130_spill] sm:$0xff]  ;;  %v15267_v60 = vld [vmem:[#allocation143_spill] sm:$0xff] }
 0x6a2   : > { %v5130_v34 = vsel %vm5097_vm9, %v12617_v8, 0.0  ;;  %v4875_v27 = vsel %vm4842_vm3, %v12590_v51, 0.0  ;;  %vm4591_vm11 = vcmp.eq.s32.totalorder %v15266_v9, 1  ;;  %v4660_v32 = vadd.f32 %v4628_v45, %v12586_v44  ;;  %v15271_v45 = vld [vmem:[#allocation151_spill] sm:$0xff] }
 0x6a3   : > { %v12860_v54 = vadd.f32 %v5130_v34, %v4904_v48  ;;  %v4621_v48 = vsel %vm4588_vm0, %v12536_v58, 0.0  ;;  %v4908_v46 = vadd.f32 %v4876_v53, %v4650_v10  ;;  %vm4846_vm12 = vcmp.eq.s32.totalorder %v15267_v60, 1  ;;  %v15270_v34 = vld [vmem:[#allocation159_spill] sm:$0xff] }
 0x6a4   : > { %5334 = vperm.xlu1 %7390, %v5241_v50   ;;  %5337 = vperm.xlu2 %7391, %v5242_v63   ;;  %v4907_v38 = vadd.f32 %v4875_v27, %v12780_v22  ;;  %v4918_v13 = vadd.f32 %v4886_v4, %v4660_v32  ;;  %vm5438_vm15 = vcmp.eq.s32.totalorder %v15270_v34, 15  ;;  %vm5082_vm0 = vcmp.eq.s32.totalorder %v12563_v7, 1  ;;  %v15272_v27 = vld [vmem:[#allocation136_spill] sm:$0xff]  ;;  %v15273_v34 = vld [vmem:[#allocation337_spill] sm:$0xff] }
 0x6a5   : > { %5331 = vperm.xlu0 %7389, %v5240_v11   ;;  %vm5436_vm3 = vcmp.eq.s32.totalorder %v15271_v45, 15  ;;  %v5470_v22 = vsel %vm5437_vm13, 1, %v14512_v52  ;;  %v5471_v10 = vsel %vm5438_vm15, 1, %v14512_v52  ;;  %vm4827_vm5 = vcmp.eq.s32.totalorder %v15272_v27, 1  ;;  %v15276_v7 = vld [vmem:[#allocation157_spill] sm:$0xff]  ;;  %v15277_v45 = vld [vmem:[#allocation160_spill] sm:$0xff] }
 0x6a6   : > { %v5047_v25 = vpop.permute.xlu1 %5046  ;;  %v5077_v26 = vpop.permute.xlu2 %5076  ;;  %v4879_v4 = vsel %vm4846_vm12, %v12590_v51, 0.0  ;;  %v5469_v57 = vsel %vm5436_vm3, 1, %v14512_v52  ;;  %vm4593_vm6 = vcmp.eq.s32.totalorder %v15273_v34, 1  ;;  %v4624_v60 = vsel %vm4591_vm11, %v12536_v58, 0.0 }
 0x6a7   : > { %vm5101_vm1 = vcmp.eq.s32.totalorder %v5047_v25, 1  ;;  %vm5111_vm2 = vcmp.eq.s32.totalorder %v5077_v26, 1  ;;  %v4655_v25 = vadd.f32 %v4623_v6, %v12658_v61  ;;  %v5115_v26 = vsel %vm5082_vm0, %v12617_v8, 0.0 }
 0x6a8   : > { %v5044_v44 = vpop.permute.xlu0 %5043  ;;  %v5134_v50 = vsel %vm5101_vm1, %v12617_v8, 0.0  ;;  %v5144_v63 = vsel %vm5111_vm2, %v12617_v8, 0.0  ;;  %v4889_v61 = vadd.f32 %v4857_v36, %v12602_v33  ;;  %v4860_v6 = vsel %vm4827_vm5, %v12590_v51, 0.0  ;;  %v15279_v36 = vld [vmem:[#allocation156_spill] sm:$0xff] }
 0x6a9   : > { %vm5100_vm4 = vcmp.eq.s32.totalorder %v5044_v44, 1  ;;  %v12890_v0 = vadd.f32 %v5134_v50, %v4908_v46  ;;  %v12892_v53 = vadd.f32 %v5144_v63, %v4918_v13  ;;  %v4653_v46 = vadd.f32 %v4621_v48, %v12597_v56  ;;  %v12917_v56 = vld [vmem:[#allocation6 + $0xe] ss:$0 sm:$0xff] }
 0x6aa   : > { %v5133_v11 = vsel %vm5100_vm4, %v12617_v8, 0.0  ;;  %v4878_v13 = vsel %vm4845_vm14, %v12590_v51, 0.0  ;;  %vm4849_vm8 = vcmp.eq.s32.totalorder %v15275_v14, 1  ;;  %vm5440_vm9 = vcmp.eq.s32.totalorder %v15276_v7, 15  ;;  %v15281_v14 = vld [vmem:[#allocation126_spill] sm:$0xff] }
 0x6ab   : > { %v12900_v32 = vadd.f32 %v5133_v11, %v4907_v38  ;;  %v15274_v38 = vld [vmem:[#allocation133_spill] sm:$0xff]  ;;  %v4911_v48 = vadd.f32 %v4879_v4, %v4653_v46  ;;  %v4910_v44 = vadd.f32 %v4878_v13, %v4652_v3  ;;  %vm4848_vm10 = vcmp.eq.s32.totalorder %v15277_v45, 1  ;;  %v15278_v11 = vld [vmem:[#allocation164_spill] sm:$0xff]  ;;  %v15280_v13 = vld [vmem:[#allocation138_spill] sm:$0xff] }
 0x6ac   : > { %vm4594_vm7 = vcmp.eq.s32.totalorder %v15274_v38, 1  ;;  %5505 = vperm.xlu1 %7390, %v5470_v22   ;;  %5508 = vperm.xlu2 %7391, %v5471_v10   ;;  %v5147_v9 = vadd.f32 %v5115_v26, %v4889_v61  ;;  %vm5441_vm11 = vcmp.eq.s32.totalorder %v15278_v11, 15  ;;  %vm5085_vm12 = vcmp.eq.s32.totalorder %v12630_v1, 1  ;;  %v15282_v11 = vld [vmem:[#allocation135_spill] sm:$0xff]  ;;  %v15283_v45 = vld [vmem:[#allocation150_spill] sm:$0xff] }
 0x6ad   : > { %5502 = vperm.xlu0 %7389, %v5469_v57   ;;  %vm5439_vm15 = vcmp.eq.s32.totalorder %v15279_v36, 15  ;;  %v5473_v3 = vsel %vm5440_vm9, 1, %v14512_v52  ;;  %v5474_v46 = vsel %vm5441_vm11, 1, %v14512_v52  ;;  %vm4830_vm1 = vcmp.eq.s32.totalorder %v15280_v13, 1  ;;  %v15284_v1 = vld [vmem:[#allocation163_spill] sm:$0xff] }
 0x6ae   : > { %v5056_v50 = vpop.permute.xlu1 %5055  ;;  %v5248_v63 = vpop.permute.xlu2 %5247  ;;  %v4882_v26 = vsel %vm4849_vm8, %v12590_v51, 0.0  ;;  %v5472_v7 = vsel %vm5439_vm15, 1, %v14512_v52  ;;  %vm4596_vm2 = vcmp.eq.s32.totalorder %v15281_v14, 1  ;;  %vm4823_vm3 = vcmp.eq.s32.totalorder %v15282_v11, 1 }
 0x6af   : > { %vm5104_vm13 = vcmp.eq.s32.totalorder %v5056_v50, 1  ;;  %vm5340_vm14 = vcmp.eq.s32.totalorder %v5248_v63, 1  ;;  %v4881_v50 = vsel %vm4848_vm10, %v12590_v51, 0.0  ;;  %v5118_v63 = vsel %vm5085_vm12, %v12617_v8, 0.0 }
 0x6b0   : > { %v5053_v33 = vpop.permute.xlu0 %5052  ;;  %v5137_v22 = vsel %vm5104_vm13, %v12617_v8, 0.0  ;;  %v5373_v10 = vsel %vm5340_vm14, %v12917_v56, 0.0  ;;  %v4892_v34 = vadd.f32 %v4860_v6, %v12650_v49  ;;  %vm4852_vm4 = vcmp.eq.s32.totalorder %v15283_v45, 1  ;;  %v15286_v6 = vld [vmem:[#allocation162_spill] sm:$0xff] }
 0x6b1   : > { %vm5103_vm0 = vcmp.eq.s32.totalorder %v5053_v33, 1  ;;  %v12929_v27 = vadd.f32 %v5137_v22, %v4911_v48  ;;  %v12931_v4 = vadd.f32 %v5373_v10, %v5147_v9  ;;  %v4626_v48 = vsel %vm4593_vm6, %v12536_v58, 0.0  ;;  %v15285_v10 = vld [vmem:[#allocation169_spill] sm:$0xff] }
 0x6b2   : > { %v5136_v57 = vsel %vm5103_vm0, %v12617_v8, 0.0  ;;  %v4656_v9 = vadd.f32 %v4624_v60, %v12610_v2  ;;  %v4863_v2 = vsel %vm4830_vm1, %v12590_v51, 0.0  ;;  %vm5443_vm5 = vcmp.eq.s32.totalorder %v15284_v1, 15 }
 0x6b3   : > { %v12939_v61 = vadd.f32 %v5136_v57, %v4910_v44  ;;  %v4627_v44 = vsel %vm4594_vm7, %v12536_v58, 0.0  ;;  %v4913_v33 = vadd.f32 %v4881_v50, %v4655_v25  ;;  %vm4851_vm6 = vcmp.eq.s32.totalorder %v12388_v42, 1 }
 0x6b4   : > { %5514 = vperm.xlu1 %7390, %v5473_v3   ;;  %5517 = vperm.xlu2 %7391, %v5474_v46   ;;  %v4914_v60 = vadd.f32 %v4882_v26, %v4656_v9  ;;  %v5150_v36 = vadd.f32 %v5118_v63, %v4892_v34  ;;  %vm5444_vm7 = vcmp.eq.s32.totalorder %v15285_v10, 15  ;;  %vm5088_vm8 = vcmp.eq.s32.totalorder %v12692_v28, 1  ;;  %v15287_v3 = vld [vmem:[#allocation115_spill] sm:$0xff]  ;;  %v15292_v28 = vld [vmem:[#allocation168_spill] sm:$0xff]  ;;  %v15293_v10 = vld [vmem:[#allocation173_spill] sm:$0xff] }
 0x6b5   : > { %5511 = vperm.xlu0 %7389, %v5472_v7   ;;  %vm5442_vm11 = vcmp.eq.s32.totalorder %v15286_v6, 15  ;;  %vm4570_vm12 = vcmp.eq.s32.totalorder %v15287_v3, 1  ;;  %v5476_v46 = vsel %vm5443_vm5, 1, %v14512_v52  ;;  %v5477_v9 = vsel %vm5444_vm7, 1, %v14512_v52 }
 0x6b6   : > { %v5065_v38 = vpop.permute.xlu1 %5064  ;;  %v5257_v22 = vpop.permute.xlu2 %5256  ;;  %v4658_v50 = vadd.f32 %v4626_v48, %v12669_v20  ;;  %v4885_v63 = vsel %vm4852_vm4, %v12590_v51, 0.0  ;;  %v4659_v1 = vadd.f32 %v4627_v44, %v12661_v23  ;;  %v5121_v20 = vsel %vm5088_vm8, %v12617_v8, 0.0  ;;  %v15288_v48 = vld [vmem:[#allocation127_spill] sm:$0xff]  ;;  %v15290_v23 = vld [vmem:[#allocation140_spill] sm:$0xff] }
 0x6b7   : > { %vm5107_vm9 = vcmp.eq.s32.totalorder %v5065_v38, 1  ;;  %vm5343_vm10 = vcmp.eq.s32.totalorder %v5257_v22, 1  ;;  %v5475_v38 = vsel %vm5442_vm11, 1, %v14512_v52  ;;  %vm4825_vm14 = vcmp.eq.s32.totalorder %v15288_v48, 1  ;;  %v15291_v44 = vld [vmem:[#allocation155_spill] sm:$0xff]  ;;  %v15300_v48 = vld [vmem:[#allocation178_spill] sm:$0xff] }
 0x6b8   : > { %v5062_v49 = vpop.permute.xlu0 %5061  ;;  %v5140_v57 = vsel %vm5107_vm9, %v12617_v8, 0.0  ;;  %v5376_v25 = vsel %vm5343_vm10, %v12917_v56, 0.0  ;;  %v4856_v45 = vsel %vm4823_vm3, %v12590_v51, 0.0  ;;  %v4895_v14 = vadd.f32 %v4863_v2, %v12666_v62  ;;  %v15295_v2 = vld [vmem:[#allocation167_spill] sm:$0xff] }
 0x6b9   : > { %vm5106_vm13 = vcmp.eq.s32.totalorder %v5062_v49, 1  ;;  %v12971_v13 = vadd.f32 %v5140_v57, %v4914_v60  ;;  %v12973_v26 = vadd.f32 %v5376_v25, %v5150_v36  ;;  %v4629_v60 = vsel %vm4596_vm2, %v12536_v58, 0.0  ;;  %v15294_v57 = vld [vmem:[#allocation177_spill] sm:$0xff] }
 0x6ba   : > { %v5139_v7 = vsel %vm5106_vm13, %v12617_v8, 0.0  ;;  %v4884_v36 = vsel %vm4851_vm6, %v12590_v51, 0.0  ;;  %vm4833_vm0 = vcmp.eq.s32.totalorder %v15290_v23, 1  ;;  %v4917_v42 = vadd.f32 %v4885_v63, %v4659_v1 }
 0x6bb   : > { %v12981_v34 = vadd.f32 %v5139_v7, %v4913_v33  ;;  %v15289_v33 = vld [vmem:[#allocation137_spill] sm:$0xff]  ;;  %vm5081_vm1 = vcmp.eq.s32.totalorder %v15291_v44, 1  ;;  %vm5446_vm2 = vcmp.eq.s32.totalorder %v15292_v28, 15  ;;  %v4916_v22 = vadd.f32 %v4884_v36, %v4658_v50 }
 0x6bc   : > { %vm4826_vm15 = vcmp.eq.s32.totalorder %v15289_v33, 1  ;;  %5523 = vperm.xlu1 %7390, %v5476_v46   ;;  %5526 = vperm.xlu2 %7391, %v5477_v9   ;;  %vm4854_vm4 = vcmp.eq.s32.totalorder %v15293_v10, 1  ;;  %v5153_v49 = vadd.f32 %v5121_v20, %v4895_v14  ;;  %vm5447_vm3 = vcmp.eq.s32.totalorder %v15294_v57, 15  ;;  %v15296_v28 = vld [vmem:[#allocation301_spill] sm:$0xff] }
 0x6bd   : > { %5520 = vperm.xlu0 %7389, %v5475_v38   ;;  %vm5091_vm5 = vcmp.eq.s32.totalorder %v12756_v5, 1  ;;  %vm5445_vm8 = vcmp.eq.s32.totalorder %v15295_v2, 15  ;;  %v5479_v7 = vsel %vm5446_vm2, 1, %v14512_v52  ;;  %v5480_v38 = vsel %vm5447_vm3, 1, %v14512_v52 }
 0x6be   : > { %v5074_v11 = vpop.permute.xlu1 %5073  ;;  %v5266_v6 = vpop.permute.xlu2 %5265  ;;  %v4866_v1 = vsel %vm4833_vm0, %v12590_v51, 0.0  ;;  %v5114_v36 = vsel %vm5081_vm1, %v12617_v8, 0.0  ;;  %v5478_v14 = vsel %vm5445_vm8, 1, %v14512_v52  ;;  %vm4574_vm10 = vcmp.eq.s32.totalorder %v15296_v28, 1  ;;  %v15310_v28 = vld [vmem:[#allocation166_spill] sm:$0xff] }
 0x6bf   : > { %vm5110_vm6 = vcmp.eq.s32.totalorder %v5074_v11, 1  ;;  %vm5346_vm7 = vcmp.eq.s32.totalorder %v5266_v6, 1  ;;  %v4887_v23 = vsel %vm4854_vm4, %v12590_v51, 0.0  ;;  %v15297_v11 = vld [vmem:[#allocation118_spill] sm:$0xff]  ;;  %v4661_v44 = vadd.f32 %v4629_v60, %v12724_v17  ;;  %v15298_v6 = vld [vmem:[#allocation176_spill] sm:$0xff]  ;;  %v15299_v17 = vld [vmem:[#allocation161_spill] sm:$0xff] }
 0x6c0   : > { %v5071_v62 = vpop.permute.xlu0 %5070  ;;  %v5143_v25 = vsel %vm5110_vm6, %v12617_v8, 0.0  ;;  %v5379_v46 = vsel %vm5346_vm7, %v12917_v56, 0.0  ;;  %vm4573_vm11 = vcmp.eq.s32.totalorder %v15297_v11, 1  ;;  %v5124_v3 = vsel %vm5091_vm5, %v12617_v8, 0.0 }
 0x6c1   : > { %vm5109_vm9 = vcmp.eq.s32.totalorder %v5071_v62, 1  ;;  %v13010_v9 = vadd.f32 %v5143_v25, %v4917_v42  ;;  %v13012_v50 = vadd.f32 %v5379_v46, %v5153_v49  ;;  %v4603_v42 = vsel %vm4570_vm12, %v12536_v58, 0.0  ;;  %v15301_v62 = vld [vmem:[#allocation182_spill] sm:$0xff]  ;;  %v15302_v25 = vld [vmem:[#allocation175_spill] sm:$0xff] }
 0x6c2   : > { %v5142_v63 = vsel %vm5109_vm9, %v12617_v8, 0.0  ;;  %v4888_v49 = vadd.f32 %v4856_v45, %v12718_v31  ;;  %v4859_v31 = vsel %vm4826_vm15, %v12590_v51, 0.0  ;;  %v4898_v45 = vadd.f32 %v4866_v1, %v12721_v21  ;;  %v15303_v21 = vld [vmem:[#allocation66_spill] sm:$0xff] }
 0x6c3   : > { %v13022_v20 = vadd.f32 %v5142_v63, %v4916_v22  ;;  %v4858_v22 = vsel %vm4825_vm14, %v12590_v51, 0.0  ;;  %vm5449_vm12 = vcmp.eq.s32.totalorder %v15298_v6, 15  ;;  %vm5084_vm13 = vcmp.eq.s32.totalorder %v15299_v17, 1  ;;  %v15307_v6 = vld [vmem:[#allocation165_spill] sm:$0xff] }
 0x6c4   : > { %5532 = vperm.xlu1 %7390, %v5479_v7   ;;  %5535 = vperm.xlu2 %7391, %v5480_v38   ;;  %v5146_v10 = vadd.f32 %v5114_v36, %v4888_v49  ;;  %v4919_v60 = vadd.f32 %v4887_v23, %v4661_v44  ;;  %vm5083_vm14 = vcmp.eq.s32.totalorder %v15300_v48, 1  ;;  %vm5450_vm0 = vcmp.eq.s32.totalorder %v15301_v62, 15  ;;  %v15304_v49 = vld [vmem:[#allocation129_spill] sm:$0xff]  ;;  %v15305_v23 = vld [vmem:[#allocation139_spill] sm:$0xff] }
 0x6c5   : > { %5529 = vperm.xlu0 %7389, %v5478_v14   ;;  %v5156_v2 = vadd.f32 %v5124_v3, %v4898_v45  ;;  %vm5448_vm15 = vcmp.eq.s32.totalorder %v15302_v25, 15  ;;  %vm4319_vm4 = vcmp.eq.s32.totalorder %v15303_v21, 1  ;;  %v5482_v63 = vsel %vm5449_vm12, 1, %v14512_v52  ;;  %v15306_v45 = vld [vmem:[#allocation74_spill] sm:$0xff]  ;;  %v15308_v62 = vld [vmem:[#allocation171_spill] sm:$0xff]  ;;  %v15318_v21 = vld [vmem:[#allocation120_spill] sm:$0xff] }
 0x6c6   : > { %v5245_v57 = vpop.permute.xlu1 %5244  ;;  %v5275_v5 = vpop.permute.xlu2 %5274  ;;  %v5483_v14 = vsel %vm5450_vm0, 1, %v14512_v52  ;;  %vm4828_vm5 = vcmp.eq.s32.totalorder %v15304_v49, 1  ;;  %vm4829_vm6 = vcmp.eq.s32.totalorder %v15305_v23, 1  ;;  %v5481_v3 = vsel %vm5448_vm15, 1, %v14512_v52 }
 0x6c7   : > { %vm5339_vm1 = vcmp.eq.s32.totalorder %v5245_v57, 1  ;;  %vm5349_vm2 = vcmp.eq.s32.totalorder %v5275_v5, 1  ;;  %vm4318_vm7 = vcmp.eq.s32.totalorder %v15306_v45, 1  ;;  %v5117_v57 = vsel %vm5084_vm13, %v12617_v8, 0.0 }
 0x6c8   : > { %v5080_v33 = vpop.permute.xlu0 %5079  ;;  %v5372_v46 = vsel %vm5339_vm1, %v12917_v56, 0.0  ;;  %v5382_v7 = vsel %vm5349_vm2, %v12917_v56, 0.0  ;;  %v5116_v5 = vsel %vm5083_vm14, %v12617_v8, 0.0  ;;  %v4891_v25 = vadd.f32 %v4859_v31, %v12728_v29  ;;  %v15311_v29 = vld [vmem:[#allocation186_spill] sm:$0xff]  ;;  %v15312_v31 = vld [vmem:[#allocation183_spill] sm:$0xff] }
 0x6c9   : > { %vm5112_vm3 = vcmp.eq.s32.totalorder %v5080_v33, 1  ;;  %v13056_v38 = vadd.f32 %v5372_v46, %v5146_v10  ;;  %v13058_v1 = vadd.f32 %v5382_v7, %v5156_v2  ;;  %v4636_v10 = vadd.f32 %v12738_v59, %v15307_v6 }
 0x6ca   : > { %v5145_v36 = vsel %vm5112_vm3, %v12617_v8, 0.0  ;;  %v4635_v2 = vadd.f32 %v4603_v42, %v15308_v62  ;;  %v4890_v33 = vadd.f32 %v4858_v22, %v12732_v37  ;;  %v4606_v59 = vsel %vm4573_vm11, %v12536_v58, 0.0  ;;  %v15309_v42 = vld [vmem:[#allocation181_spill] sm:$0xff]  ;;  %v15315_v62 = vld [vmem:[#allocation142_spill] sm:$0xff] }
 0x6cb   : > { %v13064_v44 = vadd.f32 %v5145_v36, %v4919_v60  ;;  %v4607_v60 = vsel %vm4574_vm10, %v12536_v58, 0.0  ;;  %v4861_v17 = vsel %vm4828_vm5, %v12590_v51, 0.0  ;;  %v4862_v48 = vsel %vm4829_vm6, %v12590_v51, 0.0 }
 0x6cc   : > { %5541 = vperm.xlu1 %7390, %v5482_v63   ;;  %5544 = vperm.xlu2 %7391, %v5483_v14   ;;  %vm5452_vm8 = vcmp.eq.s32.totalorder %v15309_v42, 15  ;;  %v5149_v46 = vadd.f32 %v5117_v57, %v4891_v25  ;;  %vm5087_vm9 = vcmp.eq.s32.totalorder %v15310_v28, 1  ;;  %v5148_v7 = vadd.f32 %v5116_v5, %v4890_v33  ;;  %v15313_v63 = vld [vmem:[#allocation180_spill] sm:$0xff]  ;;  %v7537_v42 = vld [vmem:[#allocation6 + $0xa] ss:$0 sm:$0xff] }
 0x6cd   : > { %5538 = vperm.xlu0 %7389, %v5481_v3   ;;  %vm5453_vm10 = vcmp.eq.s32.totalorder %v15311_v29, 15  ;;  %vm5086_vm12 = vcmp.eq.s32.totalorder %v15312_v31, 1  ;;  %vm5451_vm11 = vcmp.eq.s32.totalorder %v15313_v63, 15  ;;  %v5485_v49 = vsel %vm5452_vm8, 1, %v14512_v52  ;;  %v15314_v5 = vld [vmem:[#allocation132_spill] sm:$0xff]  ;;  %v15319_v31 = vld [vmem:[#allocation185_spill] sm:$0xff] }
 0x6ce   : > { %v5254_v37 = vpop.permute.xlu1 %5253  ;;  %v5284_v22 = vpop.permute.xlu2 %5283  ;;  %v5486_v57 = vsel %vm5453_vm10, 1, %v14512_v52  ;;  %vm4831_vm1 = vcmp.eq.s32.totalorder %v15314_v5, 1  ;;  %vm4832_vm2 = vcmp.eq.s32.totalorder %v15315_v62, 1  ;;  %v5484_v25 = vsel %vm5451_vm11, 1, %v14512_v52 }
 0x6cf   : > { %vm5342_vm13 = vcmp.eq.s32.totalorder %v5254_v37, 1  ;;  %vm5352_vm14 = vcmp.eq.s32.totalorder %v5284_v22, 1  ;;  %v15316_v37 = vld [vmem:[#allocation170_spill] sm:$0xff]  ;;  %v5119_v29 = vsel %vm5086_vm12, %v12617_v8, 0.0  ;;  %vm4577_vm15 = vcmp.eq.s32.totalorder %v15318_v21, 1 }
 0x6d0   : > { %v5251_v11 = vpop.permute.xlu0 %5250  ;;  %v5375_v36 = vsel %vm5342_vm13, %v12917_v56, 0.0  ;;  %v5385_v14 = vsel %vm5352_vm14, %v12917_v56, 0.0  ;;  %v4639_v22 = vadd.f32 %v4607_v60, %v15316_v37  ;;  %v4864_v60 = vsel %vm4831_vm1, %v12590_v51, 0.0  ;;  %v15322_v37 = vld [vmem:[#allocation124_spill] sm:$0xff] }
 0x6d1   : > { %vm5341_vm0 = vcmp.eq.s32.totalorder %v5251_v11, 1  ;;  %v13095_v23 = vadd.f32 %v5375_v36, %v5149_v46  ;;  %v13098_v3 = vadd.f32 %v5385_v14, %v12816_v15  ;;  %v4352_v46 = vsel %vm4319_vm4, %v7537_v42, 0.0  ;;  %v15317_v11 = vld [vmem:[#allocation172_spill] sm:$0xff] }
 0x6d2   : > { %v5374_v6 = vsel %vm5341_vm0, %v12917_v56, 0.0  ;;  %v5120_v15 = vsel %vm5087_vm9, %v12617_v8, 0.0  ;;  %v4638_v63 = vadd.f32 %v4606_v59, %v15317_v11  ;;  %v4893_v36 = vadd.f32 %v4861_v17, %v4635_v2 }
 0x6d3   : > { %v13104_v33 = vadd.f32 %v5374_v6, %v5148_v7  ;;  %v4351_v7 = vsel %vm4318_vm7, %v7537_v42, 0.0  ;;  %v4894_v14 = vadd.f32 %v4862_v48, %v4636_v10  ;;  %v4865_v28 = vsel %vm4832_vm2, %v12590_v51, 0.0  ;;  %v15320_v6 = vld [vmem:[#allocation174_spill] sm:$0xff]  ;;  %v15321_v48 = vld [vmem:[#allocation184_spill] sm:$0xff] }
 0x6d4   : > { %5550 = vperm.xlu1 %7390, %v5485_v49   ;;  %5553 = vperm.xlu2 %7391, %v5486_v57   ;;  %vm5455_vm4 = vcmp.eq.s32.totalorder %v15319_v31, 15  ;;  %vm5090_vm3 = vcmp.eq.s32.totalorder %v15320_v6, 1  ;;  %v5151_v2 = vadd.f32 %v5119_v29, %v4893_v36  ;;  %vm5456_vm5 = vcmp.eq.s32.totalorder %v12695_v40, 15  ;;  %v15324_v36 = vld [vmem:[#allocation158_spill] sm:$0xff] }
 0x6d5   : > { %5547 = vperm.xlu0 %7389, %v5484_v25   ;;  %v5152_v45 = vadd.f32 %v5120_v15, %v4894_v14  ;;  %vm5089_vm6 = vcmp.eq.s32.totalorder %v12681_v16, 1  ;;  %vm5454_vm9 = vcmp.eq.s32.totalorder %v15321_v48, 15  ;;  %v5488_v5 = vsel %vm5455_vm4, 1, %v14512_v52  ;;  %v15323_v15 = vld [vmem:[#allocation345_spill] sm:$0xff] }
 0x6d6   : > { %v5263_v10 = vpop.permute.xlu1 %5262  ;;  %v5293_v59 = vpop.permute.xlu2 %5292  ;;  %v5489_v42 = vsel %vm5456_vm5, 1, %v14512_v52  ;;  %vm4576_vm12 = vcmp.eq.s32.totalorder %v15322_v37, 1  ;;  %vm4835_vm13 = vcmp.eq.s32.totalorder %v15323_v15, 1  ;;  %v5487_v11 = vsel %vm5454_vm9, 1, %v14512_v52  ;;  %v15326_v48 = vld [vmem:[#allocation341_spill] sm:$0xff] }
 0x6d7   : > { %vm5345_vm7 = vcmp.eq.s32.totalorder %v5263_v10, 1  ;;  %vm5355_vm8 = vcmp.eq.s32.totalorder %v5293_v59, 1  ;;  %v4384_v14 = vadd.f32 %v4352_v46, %v15324_v36  ;;  %v5123_v31 = vsel %vm5090_vm3, %v12617_v8, 0.0 }
 0x6d8   : > { %v5260_v17 = vpop.permute.xlu0 %5259  ;;  %v5378_v49 = vsel %vm5345_vm7, %v12917_v56, 0.0  ;;  %v5388_v57 = vsel %vm5355_vm8, %v12917_v56, 0.0  ;;  %v4610_v59 = vsel %vm4577_vm15, %v12536_v58, 0.0  ;;  %v4609_v46 = vsel %vm4576_vm12, %v12536_v58, 0.0 }
 0x6d9   : > { %vm5344_vm10 = vcmp.eq.s32.totalorder %v5260_v17, 1  ;;  %v13134_v62 = vadd.f32 %v5378_v49, %v5152_v45  ;;  %v13137_v25 = vadd.f32 %v5388_v57, %v12860_v54  ;;  %v5122_v54 = vsel %vm5089_vm6, %v12617_v8, 0.0  ;;  %v15325_v45 = vld [vmem:[#allocation148_spill] sm:$0xff]  ;;  %v15327_v49 = vld [vmem:[#allocation189_spill] sm:$0xff]  ;;  %v15328_v57 = vld [vmem:[#allocation179_spill] sm:$0xff] }
 0x6da   : > { %v5377_v40 = vsel %vm5344_vm10, %v12917_v56, 0.0  ;;  %v4383_v10 = vadd.f32 %v4351_v7, %v15325_v45  ;;  %v4897_v17 = vadd.f32 %v4865_v28, %v4639_v22  ;;  %vm4834_vm14 = vcmp.eq.s32.totalorder %v15326_v48, 1  ;;  %v15329_v22 = vld [vmem:[#allocation188_spill] sm:$0xff] }
 0x6db   : > { %v13143_v29 = vadd.f32 %v5377_v40, %v5151_v2  ;;  %v4896_v2 = vadd.f32 %v4864_v60, %v4638_v63  ;;  %v4868_v6 = vsel %vm4835_vm13, %v12590_v51, 0.0  ;;  %vm5458_vm11 = vcmp.eq.s32.totalorder %v15327_v49, 15 }
 0x6dc   : > { %5559 = vperm.xlu1 %7390, %v5488_v5   ;;  %5562 = vperm.xlu2 %7391, %v5489_v42   ;;  %v5155_v16 = vadd.f32 %v5123_v31, %v4897_v17  ;;  %vm5093_vm0 = vcmp.eq.s32.totalorder %v15328_v57, 1  ;;  %vm5459_vm1 = vcmp.eq.s32.totalorder %v12759_v41, 15  ;;  %vm5092_vm2 = vcmp.eq.s32.totalorder %v12745_v30, 1  ;;  %v13204_v57 = vld [vmem:[%s7996_s22 + $0xe0] sm:$0xff] }
 0x6dd   : > { %5556 = vperm.xlu0 %7389, %v5487_v11   ;;  %v5154_v7 = vadd.f32 %v5122_v54, %v4896_v2  ;;  %vm5457_vm3 = vcmp.eq.s32.totalorder %v15329_v22, 15  ;;  %v5491_v28 = vsel %vm5458_vm11, 1, %v14512_v52  ;;  %v5492_v37 = vsel %vm5459_vm1, 1, %v14512_v52 }
 0x6de   : > { %v5272_v40 = vpop.permute.xlu1 %5271  ;;  %v5302_v21 = vpop.permute.xlu2 %5301  ;;  %v4642_v15 = vadd.f32 %v4610_v59, %v4384_v14  ;;  %v4867_v11 = vsel %vm4834_vm14, %v12590_v51, 0.0  ;;  %v5490_v31 = vsel %vm5457_vm3, 1, %v14512_v52  ;;  %v4641_v54 = vadd.f32 %v4609_v46, %v4383_v10 }
 0x6df   : > { %vm5348_vm15 = vcmp.eq.s32.totalorder %v5272_v40, 1  ;;  %vm5358_vm4 = vcmp.eq.s32.totalorder %v5302_v21, 1  ;;  %v5126_v45 = vsel %vm5093_vm0, %v12617_v8, 0.0  ;;  %v5125_v2 = vsel %vm5092_vm2, %v12617_v8, 0.0  ;;  %v13209_v21 = vld [vmem:[%s7996_s22 + $0xd8] sm:$0xff] }
 0x6e0   : > { %v5269_v58 = vpop.permute.xlu0 %5268  ;;  %v5381_v63 = vsel %vm5348_vm15, %v12917_v56, 0.0  ;;  %v5391_v60 = vsel %vm5358_vm4, %v12917_v56, 0.0  ;;  %v4899_v14 = vadd.f32 %v4867_v11, %v4641_v54  ;;  %vm5461_vm6 = vcmp.eq.s32.totalorder %v12752_v24, 15 }
 0x6e1   : > { %vm5347_vm5 = vcmp.eq.s32.totalorder %v5269_v58, 1  ;;  %v13168_v5 = vadd.f32 %v5381_v63, %v5155_v16  ;;  %v13171_v42 = vadd.f32 %v5391_v60, %v12900_v32  ;;  %v4900_v32 = vadd.f32 %v4868_v6, %v4642_v15  ;;  %v15330_v60 = vld [vmem:[#allocation187_spill] sm:$0xff] }
 0x6e2   : > { %v5380_v41 = vsel %vm5347_vm5, %v12917_v56, 0.0  ;;  %vm5462_vm7 = vcmp.eq.s32.totalorder %v12798_v19, 15  ;;  %v5157_v10 = vadd.f32 %v5125_v2, %v4899_v14  ;;  %vm5460_vm10 = vcmp.eq.s32.totalorder %v12748_v55, 15  ;;  %v13233_v2 = vld [vmem:[%s7996_s22 + $0xf0] sm:$0xff] }
 0x6e3   : > { %v13178_v36 = vadd.f32 %v5380_v41, %v5154_v7  ;;  %v5158_v51 = vadd.f32 %v5126_v45, %v4900_v32  ;;  %v5494_v48 = vsel %vm5461_vm6, 1, %v14512_v52  ;;  %v5495_v49 = vsel %vm5462_vm7, 1, %v14512_v52  ;;  %v7541_v45 = vld [vmem:[%s7996_s22] sm:$0xff] }
 0x6e4   : > { %5568 = vperm.xlu1 %7390, %v5491_v28   ;;  %5571 = vperm.xlu2 %7391, %v5492_v37   ;;  %v5493_v55 = vsel %vm5460_vm10, 1, %v14512_v52  ;;  %vm5464_vm13 = vcmp.eq.s32.totalorder %v13204_v57, 15  ;;  %vm5465_vm14 = vcmp.eq.s32.totalorder %v12842_v18, 15  ;;  %vm5463_vm1 = vcmp.eq.s32.totalorder %v13209_v21, 15 }
 0x6e5   : > { %5565 = vperm.xlu0 %7389, %v5490_v31   ;;  %v5497_v63 = vsel %vm5464_vm13, 1, %v14512_v52  ;;  %v5498_v37 = vsel %vm5465_vm14, 1, %v14512_v52  ;;  %v5496_v11 = vsel %vm5463_vm1, 1, %v14512_v52  ;;  %v13228_v31 = vld [vmem:[%s7996_s22 + $0xf8] sm:$0xff]  ;;  %vm5694_vm4 = vcmp.eq.s32.totalorder %v7541_v45, 16  ;;  %v7548_v45 = vld [vmem:[%s7996_s22 + $0x20] sm:$0xff] }
 0x6e6   : > { %v5281_v59 = vpop.permute.xlu1 %5280  ;;  %v5311_v17 = vpop.permute.xlu2 %5310  ;;  %vm5467_vm15 = vcmp.eq.s32.totalorder %v13228_v31, 15  ;;  %vm5466_vm6 = vcmp.eq.s32.totalorder %v13233_v2, 15 }
 0x6e7   : > { %vm5351_vm8 = vcmp.eq.s32.totalorder %v5281_v59, 1  ;;  %vm5361_vm9 = vcmp.eq.s32.totalorder %v5311_v17, 1 }
 0x6e8   : > { %v5278_v46 = vpop.permute.xlu0 %5277  ;;  %v5384_v8 = vsel %vm5351_vm8, %v12917_v56, 0.0  ;;  %v5394_v30 = vsel %vm5361_vm9, %v12917_v56, 0.0 }
 0x6e9   : > { %vm5350_vm12 = vcmp.eq.s32.totalorder %v5278_v46, 1  ;;  %v13193_v24 = vadd.f32 %v5384_v8, %v5158_v51  ;;  %v13196_v6 = vadd.f32 %v5394_v30, %v12939_v61  ;;  %v5500_v51 = vsel %vm5467_vm15, 1, %v14512_v52 }
 0x6ea   : > { %v5383_v19 = vsel %vm5350_vm12, %v12917_v56, 0.0  ;;  %v5727_v46 = vsel %vm5694_vm4, 1, %v14512_v52  ;;  %v5499_v30 = vsel %vm5466_vm6, 1, %v14512_v52  ;;  %vm5698_vm15 = vcmp.eq.s32.totalorder %v7548_v45, 16  ;;  %v7553_v45 = vld [vmem:[%s7996_s22 + $0x60] sm:$0xff] }
 0x6eb   : > { %v13200_v16 = vadd.f32 %v5383_v19, %v5157_v10 }
 0x6ec   : > { %5577 = vperm.xlu1 %7390, %v5494_v48   ;;  %5580 = vperm.xlu2 %7391, %v5495_v49   ;;  %v7543_v48 = vld [vmem:[%s7996_s22 + $0x10] sm:$0xff]  ;;  %v7544_v49 = vld [vmem:[%s7996_s22 + $0x18] sm:$0xff] }
 0x6ed   : > { %5574 = vperm.xlu0 %7389, %v5493_v55   ;;  %vm5696_vm8 = vcmp.eq.s32.totalorder %v7543_v48, 16  ;;  %vm5697_vm9 = vcmp.eq.s32.totalorder %v7544_v49, 16  ;;  %v7545_v55 = vld [vmem:[%s7996_s22 + $0x8] sm:$0xff] }
 0x6ee   : > { %v5290_v7 = vpop.permute.xlu1 %5289  ;;  %v5320_v40 = vpop.permute.xlu2 %5319  ;;  %vm5695_vm13 = vcmp.eq.s32.totalorder %v7545_v55, 16  ;;  %v7550_v55 = vld [vmem:[%s7996_s22 + $0x48] sm:$0xff] }
 0x6ef   : > { %vm5354_vm11 = vcmp.eq.s32.totalorder %v5290_v7, 1  ;;  %vm5364_vm0 = vcmp.eq.s32.totalorder %v5320_v40, 1  ;;  %v5729_v40 = vsel %vm5696_vm8, 1, %v14512_v52 }
 0x6f0   : > { %v5287_v61 = vpop.permute.xlu0 %5286  ;;  %v5387_v58 = vsel %vm5354_vm11, %v12917_v56, 0.0  ;;  %v5397_v22 = vsel %vm5364_vm0, %v12917_v56, 0.0 }
 0x6f1   : > { %vm5353_vm2 = vcmp.eq.s32.totalorder %v5287_v61, 1  ;;  %v13216_v28 = vadd.f32 %v5387_v58, %v15330_v60  ;;  %v13219_v18 = vadd.f32 %v5397_v22, %v12981_v34 }
 0x6f2   : > { %v5386_v41 = vsel %vm5353_vm2, %v12917_v56, 0.0 }
 0x6f3   : > { %v13224_v15 = vadd.f32 %v5386_v41, %v12806_v47  ;;  %v5728_v41 = vsel %vm5695_vm13, 1, %v14512_v52 }
 0x6f4   : > { %5586 = vperm.xlu1 %7390, %v5497_v63   ;;  %5589 = vperm.xlu2 %7391, %v5498_v37   ;;  %v5730_v63 = vsel %vm5697_vm9, 1, %v14512_v52  ;;  %v13269_v37 = vld [vmem:[#allocation6 + $0xf] ss:$0 sm:$0xff] }
 0x6f5   : > { %5583 = vperm.xlu0 %7389, %v5496_v11  }
 0x6f6   : > { %v5299_v54 = vpop.permute.xlu1 %5298  ;;  %v5329_v34 = vpop.permute.xlu2 %5328 }
 0x6f7   : > { %vm5357_vm3 = vcmp.eq.s32.totalorder %v5299_v54, 1  ;;  %vm5367_vm5 = vcmp.eq.s32.totalorder %v5329_v34, 1  ;;  %v7547_v54 = vld [vmem:[%s7996_s22 + $0x30] sm:$0xff] }
 0x6f8   : > { %v5296_v32 = vpop.permute.xlu0 %5295  ;;  %v5390_v47 = vsel %vm5357_vm3, %v12917_v56, 0.0  ;;  %v5400_v14 = vsel %vm5367_vm5, %v12917_v56, 0.0  ;;  %vm5700_vm0 = vcmp.eq.s32.totalorder %v7547_v54, 16  ;;  %vm5703_vm5 = vcmp.eq.s32.totalorder %v7550_v55, 16  ;;  %v7552_v54 = vld [vmem:[%s7996_s22 + $0x58] sm:$0xff] }
 0x6f9   : > { %vm5356_vm7 = vcmp.eq.s32.totalorder %v5296_v32, 1  ;;  %v13240_v59 = vadd.f32 %v5390_v47, %v12707_v12  ;;  %v13243_v17 = vadd.f32 %v5400_v14, %v13022_v20  ;;  %v15331_v14 = vld [vmem:[#allocation190_spill] sm:$0xff] }
 0x6fa   : > { %v5389_v10 = vsel %vm5356_vm7, %v12917_v56, 0.0 }
 0x6fb   : > { %v13248_v8 = vadd.f32 %v5389_v10, %v12850_v43 }
 0x6fc   : > { %5595 = vperm.xlu1 %7390, %v5500_v51   ;;  %5760 = vperm.xlu2 %7391, %v5727_v46  }
 0x6fd   : > { %5592 = vperm.xlu0 %7389, %v5499_v30   ;;  %v5733_v30 = vsel %vm5700_vm0, 1, %v14512_v52 }
 0x6fe   : > { %v5308_v12 = vpop.permute.xlu1 %5307  ;;  %v5338_v19 = vpop.permute.xlu2 %5337 }
 0x6ff   : > { %vm5360_vm10 = vcmp.eq.s32.totalorder %v5308_v12, 1  ;;  %vm5370_vm12 = vcmp.eq.s32.totalorder %v5338_v19, 1  ;;  %v5731_v12 = vsel %vm5698_vm15, 1, %v14512_v52  ;;  %v7549_v19 = vld [vmem:[%s7996_s22 + $0x40] sm:$0xff] }
 0x700   : > { %v5305_v20 = vpop.permute.xlu0 %5304  ;;  %v5393_v43 = vsel %vm5360_vm10, %v12917_v56, 0.0  ;;  %v5403_v7 = vsel %vm5370_vm12, %v12917_v56, 0.0  ;;  %vm5702_vm3 = vcmp.eq.s32.totalorder %v7549_v19, 16  ;;  %vm5705_vm10 = vcmp.eq.s32.totalorder %v7552_v54, 16 }
 0x701   : > { %vm5359_vm14 = vcmp.eq.s32.totalorder %v5305_v20, 1  ;;  %v13258_v61 = vadd.f32 %v5393_v43, %v12769_v35  ;;  %v13261_v58 = vadd.f32 %v5403_v7, %v13064_v44  ;;  %v7546_v35 = vld [vmem:[%s7996_s22 + $0x28] sm:$0xff]  ;;  %v7551_v43 = vld [vmem:[%s7996_s22 + $0x38] sm:$0xff]  ;;  %vm5706_vm12 = vcmp.eq.s32.totalorder %v7553_v45, 16  ;;  %v7559_v45 = vld [vmem:[%s7996_s22 + $0x90] sm:$0xff] }
 0x702   : > { %v5392_v22 = vsel %vm5359_vm14, %v12917_v56, 0.0  ;;  %vm5699_vm11 = vcmp.eq.s32.totalorder %v7546_v35, 16  ;;  %vm5701_vm8 = vcmp.eq.s32.totalorder %v7551_v43, 16  ;;  %v5736_v35 = vsel %vm5703_vm5, 1, %v14512_v52 }
 0x703   : > { %v13266_v60 = vadd.f32 %v5392_v22, %v12890_v0  ;;  %v5732_v47 = vsel %vm5699_vm11, 1, %v14512_v52 }
 0x704   : > { %5766 = vperm.xlu1 %7390, %v5729_v40   ;;  %5769 = vperm.xlu2 %7391, %v5730_v63   ;;  %v5735_v40 = vsel %vm5702_vm3, 1, %v14512_v52 }
 0x705   : > { %5763 = vperm.xlu0 %7389, %v5728_v41  }
 0x706   : > { %v5317_v11 = vpop.permute.xlu1 %5316  ;;  %v5509_v44 = vpop.permute.xlu2 %5508 }
 0x707   : > { %vm5363_vm1 = vcmp.eq.s32.totalorder %v5317_v11, 1  ;;  %vm5599_vm2 = vcmp.eq.s32.totalorder %v5509_v44, 1  ;;  %v5734_v44 = vsel %vm5701_vm8, 1, %v14512_v52 }
 0x708   : > { %v5314_v34 = vpop.permute.xlu0 %5313  ;;  %v5396_v0 = vsel %vm5363_vm1, %v12917_v56, 0.0  ;;  %v5632_v32 = vsel %vm5599_vm2, %v13269_v37, 0.0 }
 0x709   : > { %vm5362_vm4 = vcmp.eq.s32.totalorder %v5314_v34, 1  ;;  %v13278_v51 = vadd.f32 %v5396_v0, %v15331_v14  ;;  %v13281_v10 = vadd.f32 %v5632_v32, %v13104_v33  ;;  %v7554_v0 = vld [vmem:[%s7996_s22 + $0x50] sm:$0xff] }
 0x70a   : > { %v5395_v46 = vsel %vm5362_vm4, %v12917_v56, 0.0  ;;  %vm5704_vm11 = vcmp.eq.s32.totalorder %v7554_v0, 16 }
 0x70b   : > { %v13286_v48 = vadd.f32 %v5395_v46, %v12929_v27 }
 0x70c   : > { %5775 = vperm.xlu1 %7390, %v5732_v47   ;;  %5778 = vperm.xlu2 %7391, %v5733_v30   ;;  %v5738_v47 = vsel %vm5705_vm10, 1, %v14512_v52 }
 0x70d   : > { %5772 = vperm.xlu0 %7389, %v5731_v12   ;;  %v5739_v12 = vsel %vm5706_vm12, 1, %v14512_v52 }
 0x70e   : > { %v5326_v49 = vpop.permute.xlu1 %5325  ;;  %v5518_v20 = vpop.permute.xlu2 %5517 }
 0x70f   : > { %vm5366_vm6 = vcmp.eq.s32.totalorder %v5326_v49, 1  ;;  %vm5602_vm7 = vcmp.eq.s32.totalorder %v5518_v20, 1  ;;  %v5737_v49 = vsel %vm5704_vm11, 1, %v14512_v52  ;;  %v7555_v20 = vld [vmem:[%s7996_s22 + $0x70] sm:$0xff] }
 0x710   : > { %v5323_v33 = vpop.permute.xlu0 %5322  ;;  %v5399_v27 = vsel %vm5366_vm6, %v12917_v56, 0.0  ;;  %v5635_v7 = vsel %vm5602_vm7, %v13269_v37, 0.0  ;;  %vm5708_vm1 = vcmp.eq.s32.totalorder %v7555_v20, 16  ;;  %vm5712_vm7 = vcmp.eq.s32.totalorder %v7559_v45, 16  ;;  %v7565_v45 = vld [vmem:[%s7996_s22 + $0xc0] sm:$0xff] }
 0x711   : > { %vm5365_vm9 = vcmp.eq.s32.totalorder %v5323_v33, 1  ;;  %v13296_v22 = vadd.f32 %v5399_v27, %v12852_v39  ;;  %v13299_v63 = vadd.f32 %v5635_v7, %v13143_v29  ;;  %v7556_v33 = vld [vmem:[%s7996_s22 + $0x78] sm:$0xff]  ;;  %v5741_v27 = vsel %vm5708_vm1, 1, %v14512_v52 }
 0x712   : > { %v5398_v41 = vsel %vm5365_vm9, %v12917_v56, 0.0  ;;  %vm5709_vm2 = vcmp.eq.s32.totalorder %v7556_v33, 16  ;;  %v7562_v33 = vld [vmem:[%s7996_s22 + $0xa8] sm:$0xff] }
 0x713   : > { %v13304_v11 = vadd.f32 %v5398_v41, %v12971_v13 }
 0x714   : > { %5784 = vperm.xlu1 %7390, %v5735_v40   ;;  %5787 = vperm.xlu2 %7391, %v5736_v35   ;;  %v5742_v35 = vsel %vm5709_vm2, 1, %v14512_v52 }
 0x715   : > { %5781 = vperm.xlu0 %7389, %v5734_v44  }
 0x716   : > { %v5335_v39 = vpop.permute.xlu1 %5334  ;;  %v5527_v34 = vpop.permute.xlu2 %5526 }
 0x717   : > { %vm5369_vm13 = vcmp.eq.s32.totalorder %v5335_v39, 1  ;;  %vm5605_vm14 = vcmp.eq.s32.totalorder %v5527_v34, 1  ;;  %v7558_v39 = vld [vmem:[%s7996_s22 + $0x88] sm:$0xff] }
 0x718   : > { %v5332_v29 = vpop.permute.xlu0 %5331  ;;  %v5402_v13 = vsel %vm5369_vm13, %v12917_v56, 0.0  ;;  %v5638_v32 = vsel %vm5605_vm14, %v13269_v37, 0.0  ;;  %vm5711_vm6 = vcmp.eq.s32.totalorder %v7558_v39, 16  ;;  %vm5715_vm14 = vcmp.eq.s32.totalorder %v7562_v33, 16  ;;  %v7568_v33 = vld [vmem:[%s7996_s22 + $0xc8] sm:$0xff] }
 0x719   : > { %vm5368_vm0 = vcmp.eq.s32.totalorder %v5332_v29, 1  ;;  %v13314_v14 = vadd.f32 %v5402_v13, %v12892_v53  ;;  %v13317_v46 = vadd.f32 %v5638_v32, %v13178_v36  ;;  %v7557_v36 = vld [vmem:[%s7996_s22 + $0x68] sm:$0xff]  ;;  %v7560_v29 = vld [vmem:[%s7996_s22 + $0x80] sm:$0xff]  ;;  %v5744_v13 = vsel %vm5711_vm6, 1, %v14512_v52 }
 0x71a   : > { %v5401_v30 = vsel %vm5368_vm0, %v12917_v56, 0.0  ;;  %vm5707_vm3 = vcmp.eq.s32.totalorder %v7557_v36, 16  ;;  %vm5710_vm10 = vcmp.eq.s32.totalorder %v7560_v29, 16 }
 0x71b   : > { %v13322_v19 = vadd.f32 %v5401_v30, %v13010_v9  ;;  %v5740_v54 = vsel %vm5707_vm3, 1, %v14512_v52  ;;  %v5743_v20 = vsel %vm5710_vm10, 1, %v14512_v52 }
 0x71c   : > { %5793 = vperm.xlu1 %7390, %v5738_v47   ;;  %5796 = vperm.xlu2 %7391, %v5739_v12   ;;  %v5745_v12 = vsel %vm5712_vm7, 1, %v14512_v52 }
 0x71d   : > { %5790 = vperm.xlu0 %7389, %v5737_v49  }
 0x71e   : > { %v5506_v53 = vpop.permute.xlu1 %5505  ;;  %v5536_v55 = vpop.permute.xlu2 %5535 }
 0x71f   : > { %vm5598_vm15 = vcmp.eq.s32.totalorder %v5506_v53, 1  ;;  %vm5608_vm4 = vcmp.eq.s32.totalorder %v5536_v55, 1  ;;  %v7561_v53 = vld [vmem:[%s7996_s22 + $0xa0] sm:$0xff] }
 0x720   : > { %v5503_v56 = vpop.permute.xlu0 %5502  ;;  %v5631_v9 = vsel %vm5598_vm15, %v13269_v37, 0.0  ;;  %v5641_v43 = vsel %vm5608_vm4, %v13269_v37, 0.0  ;;  %vm5714_vm13 = vcmp.eq.s32.totalorder %v7561_v53, 16  ;;  %vm5718_vm4 = vcmp.eq.s32.totalorder %v7565_v45, 16 }
 0x721   : > { %vm5597_vm5 = vcmp.eq.s32.totalorder %v5503_v56, 1  ;;  %v13332_v7 = vadd.f32 %v5631_v9, %v12931_v4  ;;  %v13335_v40 = vadd.f32 %v5641_v43, %v13200_v16  ;;  %v7563_v56 = vld [vmem:[%s7996_s22 + $0x98] sm:$0xff]  ;;  %v5747_v9 = vsel %vm5714_vm13, 1, %v14512_v52 }
 0x722   : > { %v5630_v41 = vsel %vm5597_vm5, %v13269_v37, 0.0  ;;  %vm5713_vm1 = vcmp.eq.s32.totalorder %v7563_v56, 16  ;;  %vm5719_vm13 = vcmp.eq.s32.totalorder %v7568_v33, 16 }
 0x723   : > { %v13340_v44 = vadd.f32 %v5630_v41, %v13056_v38  ;;  %v5746_v39 = vsel %vm5713_vm1, 1, %v14512_v52 }
 0x724   : > { %5802 = vperm.xlu1 %7390, %v5741_v27   ;;  %5805 = vperm.xlu2 %7391, %v5742_v35   ;;  %v5748_v35 = vsel %vm5715_vm14, 1, %v14512_v52 }
 0x725   : > { %5799 = vperm.xlu0 %7389, %v5740_v54  }
 0x726   : > { %v5515_v4 = vpop.permute.xlu1 %5514  ;;  %v5545_v34 = vpop.permute.xlu2 %5544 }
 0x727   : > { %vm5601_vm8 = vcmp.eq.s32.totalorder %v5515_v4, 1  ;;  %vm5611_vm9 = vcmp.eq.s32.totalorder %v5545_v34, 1  ;;  %v7564_v4 = vld [vmem:[%s7996_s22 + $0xb8] sm:$0xff] }
 0x728   : > { %v5512_v16 = vpop.permute.xlu0 %5511  ;;  %v5634_v38 = vsel %vm5601_vm8, %v13269_v37, 0.0  ;;  %v5644_v0 = vsel %vm5611_vm9, %v13269_v37, 0.0  ;;  %vm5717_vm15 = vcmp.eq.s32.totalorder %v7564_v4, 16  ;;  %vm5721_vm9 = vcmp.eq.s32.totalorder %v13209_v21, 16 }
 0x729   : > { %vm5600_vm12 = vcmp.eq.s32.totalorder %v5512_v16, 1  ;;  %v13350_v32 = vadd.f32 %v5634_v38, %v12973_v26  ;;  %v13353_v47 = vadd.f32 %v5644_v0, %v13224_v15  ;;  %v7566_v16 = vld [vmem:[%s7996_s22 + $0xb0] sm:$0xff]  ;;  %v5750_v38 = vsel %vm5717_vm15, 1, %v14512_v52 }
 0x72a   : > { %v5633_v30 = vsel %vm5600_vm12, %v13269_v37, 0.0  ;;  %vm5716_vm6 = vcmp.eq.s32.totalorder %v7566_v16, 16  ;;  %vm5722_vm15 = vcmp.eq.s32.totalorder %v13204_v57, 16 }
 0x72b   : > { %v13358_v49 = vadd.f32 %v5633_v30, %v13095_v23  ;;  %v5749_v53 = vsel %vm5716_vm6, 1, %v14512_v52  ;;  %v5755_v57 = vsel %vm5722_vm15, 1, %v14512_v52  ;;  %vm5725_vm6 = vcmp.eq.s32.totalorder %v13228_v31, 16 }
 0x72c   : > { %5811 = vperm.xlu1 %7390, %v5744_v13   ;;  %5814 = vperm.xlu2 %7391, %v5745_v12   ;;  %v5751_v12 = vsel %vm5718_vm4, 1, %v14512_v52 }
 0x72d   : > { %5808 = vperm.xlu0 %7389, %v5743_v20  }
 0x72e   : > { %v5524_v26 = vpop.permute.xlu1 %5523  ;;  %v5554_v55 = vpop.permute.xlu2 %5553 }
 0x72f   : > { %vm5604_vm11 = vcmp.eq.s32.totalorder %v5524_v26, 1  ;;  %vm5614_vm0 = vcmp.eq.s32.totalorder %v5554_v55, 1  ;;  %v7567_v26 = vld [vmem:[%s7996_s22 + $0xd0] sm:$0xff] }
 0x730   : > { %v5521_v15 = vpop.permute.xlu0 %5520  ;;  %v5637_v23 = vsel %vm5604_vm11, %v13269_v37, 0.0  ;;  %v5647_v36 = vsel %vm5614_vm0, %v13269_v37, 0.0  ;;  %vm5720_vm8 = vcmp.eq.s32.totalorder %v7567_v26, 16  ;;  %vm5724_vm0 = vcmp.eq.s32.totalorder %v13233_v2, 16 }
 0x731   : > { %vm5603_vm2 = vcmp.eq.s32.totalorder %v5521_v15, 1  ;;  %v13368_v43 = vadd.f32 %v5637_v23, %v13012_v50  ;;  %v13371_v27 = vadd.f32 %v5647_v36, %v13248_v8  ;;  %v5753_v56 = vsel %vm5720_vm8, 1, %v14512_v52 }
 0x732   : > { %v5636_v41 = vsel %vm5603_vm2, %v13269_v37, 0.0  ;;  %v5757_v16 = vsel %vm5724_vm0, 1, %v14512_v52 }
 0x733   : > { %v13376_v54 = vadd.f32 %v5636_v41, %v13134_v62 }
 0x734   : > { %5820 = vperm.xlu1 %7390, %v5747_v9   ;;  %5823 = vperm.xlu2 %7391, %v5748_v35   ;;  %v5754_v9 = vsel %vm5721_vm9, 1, %v14512_v52  ;;  %v5752_v35 = vsel %vm5719_vm13, 1, %v14512_v52 }
 0x735   : > { %5817 = vperm.xlu0 %7389, %v5746_v39   ;;  %v7569_v39 = vld [vmem:[%s7996_s22 + $0xe8] sm:$0xff] }
 0x736   : > { %v5533_v50 = vpop.permute.xlu1 %5532  ;;  %v5563_v34 = vpop.permute.xlu2 %5562  ;;  %vm5723_vm11 = vcmp.eq.s32.totalorder %v7569_v39, 16 }
 0x737   : > { %vm5607_vm3 = vcmp.eq.s32.totalorder %v5533_v50, 1  ;;  %vm5617_vm5 = vcmp.eq.s32.totalorder %v5563_v34, 1  ;;  %v5756_v34 = vsel %vm5723_vm11, 1, %v14512_v52 }
 0x738   : > { %v5530_v8 = vpop.permute.xlu0 %5529  ;;  %v5640_v62 = vsel %vm5607_vm3, %v13269_v37, 0.0  ;;  %v5650_v29 = vsel %vm5617_vm5, %v13269_v37, 0.0 }
 0x739   : > { %vm5606_vm7 = vcmp.eq.s32.totalorder %v5530_v8, 1  ;;  %v13386_v0 = vadd.f32 %v5640_v62, %v13058_v1  ;;  %v13389_v13 = vadd.f32 %v5650_v29, %v13266_v60 }
 0x73a   : > { %v5639_v30 = vsel %vm5606_vm7, %v13269_v37, 0.0 }
 0x73b   : > { %v13394_v20 = vadd.f32 %v5639_v30, %v13168_v5 }
 0x73c   : > { %5829 = vperm.xlu1 %7390, %v5750_v38   ;;  %5832 = vperm.xlu2 %7391, %v5751_v12  }
 0x73d   : > { %5826 = vperm.xlu0 %7389, %v5749_v53  }
 0x73e   : > { %v5542_v1 = vpop.permute.xlu1 %5541  ;;  %v5572_v55 = vpop.permute.xlu2 %5571 }
 0x73f   : > { %vm5610_vm10 = vcmp.eq.s32.totalorder %v5542_v1, 1  ;;  %vm5620_vm12 = vcmp.eq.s32.totalorder %v5572_v55, 1  ;;  %v5758_v1 = vsel %vm5725_vm6, 1, %v14512_v52  ;;  %v13447_v55 = vld [vmem:[#allocation6 + $0x10] ss:$0 sm:$0xff] }
 0x740   : > { %v5539_v60 = vpop.permute.xlu0 %5538  ;;  %v5643_v5 = vsel %vm5610_vm10, %v13269_v37, 0.0  ;;  %v5653_v15 = vsel %vm5620_vm12, %v13269_v37, 0.0 }
 0x741   : > { %vm5609_vm14 = vcmp.eq.s32.totalorder %v5539_v60, 1  ;;  %v13404_v23 = vadd.f32 %v5643_v5, %v13098_v3  ;;  %v13407_v36 = vadd.f32 %v5653_v15, %v13286_v48 }
 0x742   : > { %v5642_v21 = vsel %vm5609_vm14, %v13269_v37, 0.0 }
 0x743   : > { %v13412_v41 = vadd.f32 %v5642_v21, %v13193_v24 }
 0x744   : > { %5838 = vperm.xlu1 %7390, %v5753_v56   ;;  %5841 = vperm.xlu2 %7391, %v5754_v9  }
 0x745   : > { %5835 = vperm.xlu0 %7389, %v5752_v35  }
 0x746   : > { %v5551_v4 = vpop.permute.xlu1 %5550  ;;  %v5581_v3 = vpop.permute.xlu2 %5580 }
 0x747   : > { %vm5613_vm1 = vcmp.eq.s32.totalorder %v5551_v4, 1  ;;  %vm5623_vm2 = vcmp.eq.s32.totalorder %v5581_v3, 1 }
 0x748   : > { %v5548_v48 = vpop.permute.xlu0 %5547  ;;  %v5646_v50 = vsel %vm5613_vm1, %v13269_v37, 0.0  ;;  %v5656_v24 = vsel %vm5623_vm2, %v13269_v37, 0.0 }
 0x749   : > { %vm5612_vm4 = vcmp.eq.s32.totalorder %v5548_v48, 1  ;;  %v13422_v45 = vadd.f32 %v5646_v50, %v13137_v25  ;;  %v13425_v8 = vadd.f32 %v5656_v24, %v13304_v11 }
 0x74a   : > { %v5645_v2 = vsel %vm5612_vm4, %v13269_v37, 0.0 }
 0x74b   : > { %v13430_v62 = vadd.f32 %v5645_v2, %v13216_v28 }
 0x74c   : > { %5847 = vperm.xlu1 %7390, %v5756_v34   ;;  %5850 = vperm.xlu2 %7391, %v5757_v16  }
 0x74d   : > { %5844 = vperm.xlu0 %7389, %v5755_v57  }
 0x74e   : > { %v5560_v29 = vpop.permute.xlu1 %5559  ;;  %v5590_v38 = vpop.permute.xlu2 %5589 }
 0x74f   : > { %vm5616_vm3 = vcmp.eq.s32.totalorder %v5560_v29, 1  ;;  %vm5626_vm5 = vcmp.eq.s32.totalorder %v5590_v38, 1 }
 0x750   : > { %v5557_v25 = vpop.permute.xlu0 %5556  ;;  %v5649_v11 = vsel %vm5616_vm3, %v13269_v37, 0.0  ;;  %v5659_v30 = vsel %vm5626_vm5, %v13269_v37, 0.0 }
 0x751   : > { %vm5615_vm7 = vcmp.eq.s32.totalorder %v5557_v25, 1  ;;  %v13437_v28 = vadd.f32 %v5649_v11, %v13171_v42  ;;  %v13440_v12 = vadd.f32 %v5659_v30, %v13322_v19 }
 0x752   : > { %v5648_v53 = vsel %vm5615_vm7, %v13269_v37, 0.0 }
 0x753   : > { %v13444_v26 = vadd.f32 %v5648_v53, %v13240_v59 }
 0x755   : > { %5853 = vperm.xlu0 %7389, %v5758_v1  }
 0x756   : > { %v5569_v31 = vpop.permute.xlu1 %5568  ;;  %v5761_v60 = vpop.permute.xlu2 %5760 }
 0x757   : > { %vm5619_vm8 = vcmp.eq.s32.totalorder %v5569_v31, 1  ;;  %vm5855_vm9 = vcmp.eq.s32.totalorder %v5761_v60, 1 }
 0x758   : > { %v5566_v33 = vpop.permute.xlu0 %5565  ;;  %v5652_v42 = vsel %vm5619_vm8, %v13269_v37, 0.0  ;;  %v5888_v19 = vsel %vm5855_vm9, %v13447_v55, 0.0 }
 0x759   : > { %vm5618_vm10 = vcmp.eq.s32.totalorder %v5566_v33, 1  ;;  %v13452_v5 = vadd.f32 %v5652_v42, %v13196_v6  ;;  %v13455_v59 = vadd.f32 %v5888_v19, %v13340_v44 }
 0x75a   : > { %v5651_v52 = vsel %vm5618_vm10, %v13269_v37, 0.0 }
 0x75b   : > { %v13459_v15 = vadd.f32 %v5651_v52, %v13258_v61 }
 0x75e   : > { %v5578_v56 = vpop.permute.xlu1 %5577  ;;  %v5770_v21 = vpop.permute.xlu2 %5769 }
 0x75f   : > { %vm5622_vm12 = vcmp.eq.s32.totalorder %v5578_v56, 1  ;;  %vm5858_vm13 = vcmp.eq.s32.totalorder %v5770_v21, 1 }
 0x760   : > { %v5575_v9 = vpop.permute.xlu0 %5574  ;;  %v5655_v35 = vsel %vm5622_vm12, %v13269_v37, 0.0  ;;  %v5891_v39 = vsel %vm5858_vm13, %v13447_v55, 0.0 }
 0x761   : > { %vm5621_vm14 = vcmp.eq.s32.totalorder %v5575_v9, 1  ;;  %v13464_v6 = vadd.f32 %v5655_v35, %v13219_v18  ;;  %v13467_v44 = vadd.f32 %v5891_v39, %v13358_v49 }
 0x762   : > { %v5654_v4 = vsel %vm5621_vm14, %v13269_v37, 0.0 }
 0x763   : > { %v13471_v61 = vadd.f32 %v5654_v4, %v13278_v51 }
 0x766   : > { %v5587_v3 = vpop.permute.xlu1 %5586  ;;  %v5779_v48 = vpop.permute.xlu2 %5778 }
 0x767   : > { %vm5625_vm11 = vcmp.eq.s32.totalorder %v5587_v3, 1  ;;  %vm5861_vm0 = vcmp.eq.s32.totalorder %v5779_v48, 1 }
 0x768   : > { %v5584_v50 = vpop.permute.xlu0 %5583  ;;  %v5658_v24 = vsel %vm5625_vm11, %v13269_v37, 0.0  ;;  %v5894_v34 = vsel %vm5861_vm0, %v13447_v55, 0.0 }
 0x769   : > { %vm5624_vm1 = vcmp.eq.s32.totalorder %v5584_v50, 1  ;;  %v13476_v18 = vadd.f32 %v5658_v24, %v13243_v17  ;;  %v13479_v49 = vadd.f32 %v5894_v34, %v13376_v54 }
 0x76a   : > { %v5657_v2 = vsel %vm5624_vm1, %v13269_v37, 0.0 }
 0x76b   : > { %v13483_v51 = vadd.f32 %v5657_v2, %v13296_v22 }
 0x76e   : > { %v5596_v16 = vpop.permute.xlu1 %5595  ;;  %v5788_v57 = vpop.permute.xlu2 %5787 }
 0x76f   : > { %vm5628_vm2 = vcmp.eq.s32.totalorder %v5596_v16, 1  ;;  %vm5864_vm15 = vcmp.eq.s32.totalorder %v5788_v57, 1 }
 0x770   : > { %v5593_v29 = vpop.permute.xlu0 %5592  ;;  %v5661_v38 = vsel %vm5628_vm2, %v13269_v37, 0.0  ;;  %v5897_v25 = vsel %vm5864_vm15, %v13447_v55, 0.0 }
 0x771   : > { %vm5627_vm4 = vcmp.eq.s32.totalorder %v5593_v29, 1  ;;  %v13488_v17 = vadd.f32 %v5661_v38, %v13261_v58  ;;  %v13491_v54 = vadd.f32 %v5897_v25, %v13394_v20 }
 0x772   : > { %v5660_v11 = vsel %vm5627_vm4, %v13269_v37, 0.0 }
 0x773   : > { %v13495_v22 = vadd.f32 %v5660_v11, %v13314_v14 }
 0x776   : > { %v5767_v30 = vpop.permute.xlu1 %5766  ;;  %v5797_v53 = vpop.permute.xlu2 %5796 }
 0x777   : > { %vm5857_vm3 = vcmp.eq.s32.totalorder %v5767_v30, 1  ;;  %vm5867_vm5 = vcmp.eq.s32.totalorder %v5797_v53, 1 }
 0x778   : > { %v5764_v1 = vpop.permute.xlu0 %5763  ;;  %v5890_v31 = vsel %vm5857_vm3, %v13447_v55, 0.0  ;;  %v5900_v60 = vsel %vm5867_vm5, %v13447_v55, 0.0 }
 0x779   : > { %vm5856_vm6 = vcmp.eq.s32.totalorder %v5764_v1, 1  ;;  %v13500_v58 = vadd.f32 %v5890_v31, %v13281_v10  ;;  %v13503_v20 = vadd.f32 %v5900_v60, %v13412_v41 }
 0x77a   : > { %v5889_v37 = vsel %vm5856_vm6, %v13447_v55, 0.0 }
 0x77b   : > { %v13507_v14 = vadd.f32 %v5889_v37, %v13332_v7 }
 0x77e   : > { %v5776_v33 = vpop.permute.xlu1 %5775  ;;  %v5806_v42 = vpop.permute.xlu2 %5805 }
 0x77f   : > { %vm5860_vm7 = vcmp.eq.s32.totalorder %v5776_v33, 1  ;;  %vm5870_vm8 = vcmp.eq.s32.totalorder %v5806_v42, 1 }
 0x780   : > { %v5773_v19 = vpop.permute.xlu0 %5772  ;;  %v5893_v52 = vsel %vm5860_vm7, %v13447_v55, 0.0  ;;  %v5903_v56 = vsel %vm5870_vm8, %v13447_v55, 0.0 }
 0x781   : > { %vm5859_vm9 = vcmp.eq.s32.totalorder %v5773_v19, 1  ;;  %v13512_v10 = vadd.f32 %v5893_v52, %v13299_v63  ;;  %v13515_v41 = vadd.f32 %v5903_v56, %v13430_v62 }
 0x782   : > { %v5892_v21 = vsel %vm5859_vm9, %v13447_v55, 0.0 }
 0x783   : > { %v13519_v7 = vadd.f32 %v5892_v21, %v13350_v32 }
 0x786   : > { %v5785_v9 = vpop.permute.xlu1 %5784  ;;  %v5815_v35 = vpop.permute.xlu2 %5814 }
 0x787   : > { %vm5863_vm10 = vcmp.eq.s32.totalorder %v5785_v9, 1  ;;  %vm5873_vm12 = vcmp.eq.s32.totalorder %v5815_v35, 1 }
 0x788   : > { %v5782_v39 = vpop.permute.xlu0 %5781  ;;  %v5896_v4 = vsel %vm5863_vm10, %v13447_v55, 0.0  ;;  %v5906_v3 = vsel %vm5873_vm12, %v13447_v55, 0.0 }
 0x789   : > { %vm5862_vm13 = vcmp.eq.s32.totalorder %v5782_v39, 1  ;;  %v13524_v63 = vadd.f32 %v5896_v4, %v13317_v46  ;;  %v13527_v62 = vadd.f32 %v5906_v3, %v13444_v26  ;;  %v13581_v39 = vld [vmem:[#allocation9] sm:$0x1]  ;;  %v13583_v4 = vld [vmem:[#allocation11] sm:$0x1] }
 0x78a   : > { %v5895_v48 = vsel %vm5862_vm13, %v13447_v55, 0.0 }
 0x78b   : > { %v13531_v32 = vadd.f32 %v5895_v48, %v13368_v43 }
 0x78e   : > { %v5794_v50 = vpop.permute.xlu1 %5793  ;;  %v5824_v24 = vpop.permute.xlu2 %5823 }
 0x78f   : > { %vm5866_vm14 = vcmp.eq.s32.totalorder %v5794_v50, 1  ;;  %vm5876_vm11 = vcmp.eq.s32.totalorder %v5824_v24, 1 }
 0x790   : > { %v5791_v34 = vpop.permute.xlu0 %5790  ;;  %v5899_v2 = vsel %vm5866_vm14, %v13447_v55, 0.0  ;;  %v5909_v16 = vsel %vm5876_vm11, %v13447_v55, 0.0 }
 0x791   : > { %vm5865_vm0 = vcmp.eq.s32.totalorder %v5791_v34, 1  ;;  %v13536_v46 = vadd.f32 %v5899_v2, %v13335_v40  ;;  %v13539_v26 = vadd.f32 %v5909_v16, %v13459_v15 }
 0x792   : > { %v5898_v57 = vsel %vm5865_vm0, %v13447_v55, 0.0 }
 0x793   : > { %v13543_v43 = vadd.f32 %v5898_v57, %v13386_v0 }
 0x796   : > { %v5803_v29 = vpop.permute.xlu1 %5802  ;;  %v5833_v38 = vpop.permute.xlu2 %5832 }
 0x797   : > { %vm5869_vm1 = vcmp.eq.s32.totalorder %v5803_v29, 1  ;;  %vm5879_vm2 = vcmp.eq.s32.totalorder %v5833_v38, 1 }
 0x798   : > { %v5800_v25 = vpop.permute.xlu0 %5799  ;;  %v5902_v11 = vsel %vm5869_vm1, %v13447_v55, 0.0  ;;  %v5912_v30 = vsel %vm5879_vm2, %v13447_v55, 0.0 }
 0x799   : > { %vm5868_vm15 = vcmp.eq.s32.totalorder %v5800_v25, 1  ;;  %v13548_v40 = vadd.f32 %v5902_v11, %v13353_v47  ;;  %v13551_v15 = vadd.f32 %v5912_v30, %v13471_v61 }
 0x79a   : > { %v5901_v53 = vsel %vm5868_vm15, %v13447_v55, 0.0 }
 0x79b   : > { %v13555_v0 = vadd.f32 %v5901_v53, %v13404_v23 }
 0x79e   : > { %v5812_v1 = vpop.permute.xlu1 %5811  ;;  %v5842_v31 = vpop.permute.xlu2 %5841 }
 0x79f   : > { %vm5872_vm4 = vcmp.eq.s32.totalorder %v5812_v1, 1  ;;  %vm5882_vm3 = vcmp.eq.s32.totalorder %v5842_v31, 1 }
 0x7a0   : > { %v5809_v60 = vpop.permute.xlu0 %5808  ;;  %v5905_v37 = vsel %vm5872_vm4, %v13447_v55, 0.0  ;;  %v5915_v33 = vsel %vm5882_vm3, %v13447_v55, 0.0 }
 0x7a1   : > { %vm5871_vm5 = vcmp.eq.s32.totalorder %v5809_v60, 1  ;;  %v13560_v47 = vadd.f32 %v5905_v37, %v13371_v27  ;;  %v13563_v61 = vadd.f32 %v5915_v33, %v13483_v51 }
 0x7a2   : > { %v5904_v42 = vsel %vm5871_vm5, %v13447_v55, 0.0 }
 0x7a3   : > { %v13567_v23 = vadd.f32 %v5904_v42, %v13422_v45 }
 0x7a6   : > { %v5821_v19 = vpop.permute.xlu1 %5820  ;;  %v5851_v52 = vpop.permute.xlu2 %5850 }
 0x7a7   : > { %vm5875_vm6 = vcmp.eq.s32.totalorder %v5821_v19, 1  ;;  %vm5885_vm7 = vcmp.eq.s32.totalorder %v5851_v52, 1 }
 0x7a8   : > { %v5818_v56 = vpop.permute.xlu0 %5817  ;;  %v5908_v21 = vsel %vm5875_vm6, %v13447_v55, 0.0  ;;  %v5918_v9 = vsel %vm5885_vm7, %v13447_v55, 0.0 }
 0x7a9   : > { %vm5874_vm8 = vcmp.eq.s32.totalorder %v5818_v56, 1  ;;  %v13572_v27 = vadd.f32 %v5908_v21, %v13389_v13  ;;  %v13575_v51 = vadd.f32 %v5918_v9, %v13495_v22 }
 0x7aa   : > { %v5907_v35 = vsel %vm5874_vm8, %v13447_v55, 0.0 }
 0x7ab   : > { %v13579_v45 = vadd.f32 %v5907_v35, %v13437_v28 }
 0x7ae   : > { %v5830_v3 = vpop.permute.xlu1 %5829 }
 0x7af   : > { %vm5878_vm9 = vcmp.eq.s32.totalorder %v5830_v3, 1 }
 0x7b0   : > { %v5827_v48 = vpop.permute.xlu0 %5826  ;;  %v5911_v50 = vsel %vm5878_vm9, %v13447_v55, 0.0 }
 0x7b1   : > { %vm5877_vm10 = vcmp.eq.s32.totalorder %v5827_v48, 1  ;;  %v13587_v13 = vadd.f32 %v5911_v50, %v13407_v36 }
 0x7b2   : > { %v5910_v22 = vsel %vm5877_vm10, %v13447_v55, 0.0 }
 0x7b3   : > { %v13591_v24 = vadd.f32 %v5910_v22, %v13452_v5 }
 0x7b6   : > { %v5839_v28 = vpop.permute.xlu1 %5838 }
 0x7b7   : > { %vm5881_vm12 = vcmp.eq.s32.totalorder %v5839_v28, 1 }
 0x7b8   : > { %v5836_v34 = vpop.permute.xlu0 %5835  ;;  %v5914_v2 = vsel %vm5881_vm12, %v13447_v55, 0.0 }
 0x7b9   : > { %vm5880_vm13 = vcmp.eq.s32.totalorder %v5836_v34, 1  ;;  %v13595_v16 = vadd.f32 %v5914_v2, %v13425_v8 }
 0x7ba   : > { %v5913_v57 = vsel %vm5880_vm13, %v13447_v55, 0.0 }
 0x7bb   : > { %v13599_v29 = vadd.f32 %v5913_v57, %v13464_v6 }
 0x7be   : > { %v5848_v36 = vpop.permute.xlu1 %5847 }
 0x7bf   : > { %vm5884_vm14 = vcmp.eq.s32.totalorder %v5848_v36, 1 }
 0x7c0   : > { %v5845_v38 = vpop.permute.xlu0 %5844  ;;  %v5917_v5 = vsel %vm5884_vm14, %v13447_v55, 0.0 }
 0x7c1   : > { %vm5883_vm11 = vcmp.eq.s32.totalorder %v5845_v38, 1  ;;  %v13603_v25 = vadd.f32 %v5917_v5, %v13440_v12 }
 0x7c2   : > { %v5916_v11 = vsel %vm5883_vm11, %v13447_v55, 0.0 }
 0x7c3   : > { %v13607_v30 = vadd.f32 %v5916_v11, %v13476_v18 }
 0x7c8   : > { %v5854_v8 = vpop.permute.xlu0 %5853 }
 0x7c9   : > { %vm5886_vm0 = vcmp.eq.s32.totalorder %v5854_v8, 1 }
 0x7ca   : > { %v5919_v53 = vsel %vm5886_vm0, %v13447_v55, 0.0 }
 0x7cb   : > { %v13611_v6 = vadd.f32 %v5919_v53, %v13488_v17 }
 0x7cc   : > { %7808 = dma.done.wait [#allocation3], 1024 }
 0x7cd   : > { %7809 = vsyncadd [#allocation3], 4294966272  ;;  %v5961_v1 = vld [vmem:[#allocation2 + $0x20] sm:$0xff]  ;;  %v5959_v31 = vld [vmem:[#allocation2 + $0x10] sm:$0xff]  ;;  %v7859_v21 = vmov 128.0  }
 0x7ce   : > { %v5957_v60 = vld [vmem:[#allocation2] sm:$0xff]  ;;  %v5969_v12 = vadd.f32 %v5961_v1, %v13519_v7  ;;  %v5967_v37 = vadd.f32 %v5959_v31, %v13500_v58  ;;  %v5962_v18 = vld [vmem:[#allocation2 + $0x28] sm:$0xff]  ;;  %v5960_v42 = vld [vmem:[#allocation2 + $0x18] sm:$0xff]  ;;  %7570 = vrcp.f32 %v7859_v21 }
 0x7cf   : > { %v5965_v33 = vadd.f32 %v5957_v60, %v13455_v59  ;;  %v5958_v55 = vld [vmem:[#allocation2 + $0x8] sm:$0xff]  ;;  %v5970_v17 = vadd.f32 %v5962_v18, %v13512_v10  ;;  %v5968_v19 = vadd.f32 %v5960_v42, %v13467_v44  ;;  %v5964_v7 = vld [vmem:[#allocation2 + $0x38] sm:$0xff]  ;;  %v5963_v56 = vld [vmem:[#allocation2 + $0x30] sm:$0xff] }
 0x7d0   : > { %5981 = vadd.xlane.f32.xlu2 %v5969_v12  ;;  %5977 = vadd.xlane.f32.xlu1 %v5967_v37  ;;  %v5966_v52 = vadd.f32 %v5958_v55, %v13507_v14  ;;  %v5972_v58 = vadd.f32 %v5964_v7, %v13531_v32  ;;  %v5971_v59 = vadd.f32 %v5963_v56, %v13479_v49 }
 0x7d1   : > { %5973 = vadd.xlane.f32.xlu0 %v5965_v33 }
 0x7d4   : > { %v7571_v9 = vpop.eup %7570 }
 0x7d5   : > { %v5990_v35 = vmul.f32 128.0, %v7571_v9  ;;  %vm5994_vm1 = vweird.f32 %v7571_v9 }
 0x7d7   : > { %v5991_v10 = vsub.f32 1.0, %v5990_v35 }
 0x7d8   : > { %5983 = vadd.xlane.f32.xlu2 %v5970_v17  ;;  %5979 = vadd.xlane.f32.xlu1 %v5968_v19 }
 0x7d9   : > { %5975 = vadd.xlane.f32.xlu0 %v5966_v52  ;;  %v5992_v3 = vmul.f32 %v7571_v9, %v5991_v10 }
 0x7db   : > { %v5993_v44 = vadd.f32 %v7571_v9, %v5992_v3 }
 0x7dd   : > { %v13621_v14 = vsel %vm5994_vm1, %v7571_v9, %v5993_v44 }
 0x7e0   : > { %5987 = vadd.xlane.f32.xlu1 %v5972_v58 }
 0x7e1   : > { %5985 = vadd.xlane.f32.xlu0 %v5971_v59 }
 0x843   : > { %v5982_v48 = vpop.xlane.xlu2 %5981  ;;  %v5978_v50 = vpop.xlane.xlu1 %5977 }
 0x844   : > { %v5998_v22 = vmul.f32 %v13621_v14, %v5978_v50  ;;  %v5974_v28 = vpop.xlane.xlu0 %5973  ;;  %v6000_v60 = vmul.f32 %v13621_v14, %v5982_v48 }
 0x845   : > { %v5996_v32 = vmul.f32 %v13621_v14, %v5974_v28 }
 0x846   : > { %v13625_v49 = vsub.f32 %v5967_v37, %v5998_v22  ;;  %v13649_v55 = vsub.f32 %v5969_v12, %v6000_v60 }
 0x847   : > { %v13627_v34 = vsub.f32 %v5965_v33, %v5996_v32 }
 0x848   : > { %v6014_v2 = vmul.f32 %v13625_v49, %v13625_v49  ;;  %v6016_v56 = vmul.f32 %v13649_v55, %v13649_v55 }
 0x849   : > { %v6012_v57 = vmul.f32 %v13627_v34, %v13627_v34 }
 0x84a   : > { %6024 = vadd.xlane.f32.xlu1 %v6014_v2 }
 0x84b   : > { %6020 = vadd.xlane.f32.xlu2 %v6012_v57  ;;  %v5984_v36 = vpop.xlane.xlu2 %5983  ;;  %v5980_v38 = vpop.xlane.xlu1 %5979 }
 0x84c   : > { %v6001_v5 = vmul.f32 %v13621_v14, %v5984_v36  ;;  %v5999_v11 = vmul.f32 %v13621_v14, %v5980_v38  ;;  %v5976_v8 = vpop.xlane.xlu0 %5975 }
 0x84d   : > { %v5997_v53 = vmul.f32 %v13621_v14, %v5976_v8 }
 0x84e   : > { %v13636_v1 = vsub.f32 %v5970_v17, %v6001_v5  ;;  %v13638_v31 = vsub.f32 %v5968_v19, %v5999_v11 }
 0x84f   : > { %v13641_v37 = vsub.f32 %v5966_v52, %v5997_v53 }
 0x850   : > { %v6017_v33 = vmul.f32 %v13636_v1, %v13636_v1  ;;  %v6015_v18 = vmul.f32 %v13638_v31, %v13638_v31 }
 0x851   : > { %v6013_v42 = vmul.f32 %v13641_v37, %v13641_v37 }
 0x852   : > { %6030 = vadd.xlane.f32.xlu1 %v6017_v33 }
 0x853   : > { %6026 = vadd.xlane.f32.xlu2 %v6015_v18  ;;  %6022 = vadd.xlane.f32.xlu0 %v6013_v42  ;;  %v5988_v19 = vpop.xlane.xlu1 %5987 }
 0x854   : > { %v5986_v17 = vpop.xlane.xlu0 %5985  ;;  %v6003_v21 = vmul.f32 %v13621_v14, %v5988_v19 }
 0x855   : > { %v6002_v7 = vmul.f32 %v13621_v14, %v5986_v17 }
 0x856   : > { %v13659_v12 = vsub.f32 %v5972_v58, %v6003_v21 }
 0x857   : > { %v13652_v52 = vsub.f32 %v5971_v59, %v6002_v7 }
 0x858   : > { %v6019_v35 = vmul.f32 %v13659_v12, %v13659_v12 }
 0x859   : > { %v6018_v9 = vmul.f32 %v13652_v52, %v13652_v52 }
 0x85b   : > { %6028 = vadd.xlane.f32.xlu0 %v6016_v56  ;;  %6032 = vadd.xlane.f32.xlu2 %v6018_v9 }
 0x863   : > { %6034 = vadd.xlane.f32.xlu0 %v6019_v35 }
 0x8bd   : > { %v6025_v10 = vpop.xlane.xlu1 %6024 }
 0x8be   : > { %v6038_v59 = vmul.f32 %v6025_v10, %v13621_v14  ;;  %v6021_v3 = vpop.xlane.xlu2 %6020  ;;  %v13677_v10 = vperm.slane %v13581_v39, 0 }
 0x8bf   : > { %v6036_v44 = vmul.f32 %v6021_v3, %v13621_v14 }
 0x8c0   : > { %v6046_v48 = vadd.f32 1e-05, %v6038_v59 }
 0x8c1   : > { %v6044_v50 = vadd.f32 1e-05, %v6036_v44  ;;  %v13680_v44 = vperm.slane %v13583_v4, 0 }
 0x8c2   : > { %7572 = vrsqrt.f32 %v6046_v48  ;;  %vm6078_vm2 = vweird.f32 %v6046_v48 }
 0x8c3   : > { %7574 = vrsqrt.f32 %v6044_v50  ;;  %vm6058_vm5 = vweird.f32 %v6044_v50 }
 0x8c5   : > { %v6031_v22 = vpop.xlane.xlu1 %6030 }
 0x8c6   : > { %v6041_v28 = vmul.f32 %v6031_v22, %v13621_v14  ;;  %v6027_v32 = vpop.xlane.xlu2 %6026  ;;  %v6023_v58 = vpop.xlane.xlu0 %6022 }
 0x8c7   : > { %v6039_v2 = vmul.f32 %v6027_v32, %v13621_v14  ;;  %v6037_v57 = vmul.f32 %v6023_v58, %v13621_v14 }
 0x8c8   : > { %v7573_v36 = vpop.eup %7572  ;;  %v6049_v38 = vadd.f32 1e-05, %v6041_v28 }
 0x8c9   : > { %v7575_v5 = vpop.eup %7574  ;;  %v6073_v11 = vmul.f32 %v7573_v36, %v6046_v48  ;;  %v13668_v8 = vadd.f32 1e-05, %v6039_v2  ;;  %v13670_v53 = vadd.f32 1e-05, %v6037_v57  ;;  %vm6079_vm15 = vweird.f32 %v7573_v36 }
 0x8ca   : > { %v6053_v60 = vmul.f32 %v7575_v5, %v6044_v50  ;;  %7576 = vrsqrt.f32 %v6049_v38  ;;  %vm6059_vm4 = vweird.f32 %v7575_v5  ;;  %vm6080_vm3 = vmor %vm6078_vm2, %vm6079_vm15  ;;  %vm6108_vm7 = vweird.f32 %v6049_v38 }
 0x8cb   : > { %v6074_v33 = vmul.f32 %v7573_v36, %v6073_v11  ;;  %7578 = vrsqrt.f32 %v13668_v8  ;;  %vm6060_vm6 = vmor %vm6058_vm5, %vm6059_vm4  ;;  %vm6088_vm9 = vweird.f32 %v13668_v8  ;;  %vm6068_vm11 = vweird.f32 %v13670_v53 }
 0x8cc   : > { %v6054_v18 = vmul.f32 %v7575_v5, %v6053_v60  ;;  %7580 = vrsqrt.f32 %v13670_v53 }
 0x8cd   : > { %v6075_v42 = vmul.f32 0.5, %v6074_v33 }
 0x8ce   : > { %v6055_v17 = vmul.f32 0.5, %v6054_v18  ;;  %v6033_v19 = vpop.xlane.xlu2 %6032  ;;  %v6029_v7 = vpop.xlane.xlu0 %6028 }
 0x8cf   : > { %v6076_v56 = vsub.f32 1.5, %v6075_v42  ;;  %v6042_v21 = vmul.f32 %v6033_v19, %v13621_v14  ;;  %v6040_v9 = vmul.f32 %v6029_v7, %v13621_v14 }
 0x8d0   : > { %v7577_v35 = vpop.eup %7576  ;;  %v6056_v59 = vsub.f32 1.5, %v6055_v17 }
 0x8d1   : > { %v7579_v3 = vpop.eup %7578  ;;  %v6077_v22 = vmul.f32 %v7573_v36, %v6076_v56  ;;  %v6103_v28 = vmul.f32 %v7577_v35, %v6049_v38  ;;  %v13682_v32 = vadd.f32 1e-05, %v6042_v21  ;;  %v13686_v11 = vadd.f32 1e-05, %v6040_v9 }
 0x8d2   : > { %v7581_v58 = vpop.eup %7580  ;;  %v6057_v2 = vmul.f32 %v7575_v5, %v6056_v59  ;;  %v6083_v57 = vmul.f32 %v7579_v3, %v13668_v8  ;;  %vm6109_vm8 = vweird.f32 %v7577_v35  ;;  %vm6089_vm12 = vweird.f32 %v7579_v3 }
 0x8d3   : > { %v6081_v39 = vsel %vm6080_vm3, %v7573_v36, %v6077_v22  ;;  %v6104_v60 = vmul.f32 %v7577_v35, %v6103_v28  ;;  %v6063_v4 = vmul.f32 %v7581_v58, %v13670_v53  ;;  %7582 = vrsqrt.f32 %v13682_v32  ;;  %vm13699_vm10 = vmor %vm6108_vm7, %vm6109_vm8 }
 0x8d4   : > { %v6134_v33 = vmul.f32 %v6081_v39, %v13625_v49  ;;  %v6061_v18 = vsel %vm6060_vm6, %v7575_v5, %v6057_v2  ;;  %v6084_v42 = vmul.f32 %v7579_v3, %v6083_v57  ;;  %7584 = vrsqrt.f32 %v13686_v11  ;;  %vm6090_vm14 = vmor %vm6088_vm9, %vm6089_vm12 }
 0x8d5   : > { %v6132_v48 = vmul.f32 %v6061_v18, %v13627_v34  ;;  %v6105_v17 = vmul.f32 0.5, %v6104_v60  ;;  %v6064_v50 = vmul.f32 %v7581_v58, %v6063_v4  ;;  %vm6069_vm13 = vweird.f32 %v7581_v58 }
 0x8d6   : > { %v6145_v19 = vmul.f32 %v13677_v10, %v6134_v33  ;;  %v6085_v7 = vmul.f32 0.5, %v6084_v42  ;;  %v6035_v36 = vpop.xlane.xlu0 %6034  ;;  %vm6070_vm0 = vmor %vm6068_vm11, %vm6069_vm13  ;;  %vm6118_vm1 = vweird.f32 %v13682_v32  ;;  %vm6098_vm3 = vweird.f32 %v13686_v11 }
 0x8d7   : > { %v6143_v49 = vmul.f32 %v13677_v10, %v6132_v48  ;;  %v6106_v5 = vsub.f32 1.5, %v6105_v17  ;;  %v6065_v56 = vmul.f32 0.5, %v6064_v50  ;;  %v6043_v21 = vmul.f32 %v6035_v36, %v13621_v14 }
 0x8d8   : > { %v6156_v34 = vadd.f32 %v13680_v44, %v6145_v19  ;;  %v6086_v59 = vsub.f32 1.5, %v6085_v7 }
 0x8d9   : > { %v6154_v22 = vadd.f32 %v13680_v44, %v6143_v49  ;;  %v6107_v28 = vmul.f32 %v7577_v35, %v6106_v5  ;;  %v6066_v2 = vsub.f32 1.5, %v6065_v56  ;;  %v6051_v57 = vadd.f32 1e-05, %v6043_v21  ;;  %v7583_v39 = vpop.eup %7582 }
 0x8da   : > { %6164 = vst [vmem:[%s7998_s23 + $0x10] sm:$0xff] %v6156_v34  ;;  %v6087_v60 = vmul.f32 %v7579_v3, %v6086_v59  ;;  %v6113_v33 = vmul.f32 %v7583_v39, %v13682_v32  ;;  %v7585_v18 = vpop.eup %7584  ;;  %vm6119_vm2 = vweird.f32 %v7583_v39 }
 0x8db   : > { %6162 = vst [vmem:[%s7998_s23] sm:$0xff] %v6154_v22  ;;  %v6111_v4 = vsel %vm13699_vm10, %v7577_v35, %v6107_v28  ;;  %v6067_v38 = vmul.f32 %v7581_v58, %v6066_v2  ;;  %7586 = vrsqrt.f32 %v6051_v57  ;;  %v6093_v8 = vmul.f32 %v7585_v18, %v13686_v11  ;;  %vm6120_vm4 = vmor %vm6118_vm1, %vm6119_vm2 }
 0x8dc   : > { %v6137_v42 = vmul.f32 %v6111_v4, %v13636_v1  ;;  %v6091_v48 = vsel %vm6090_vm14, %v7579_v3, %v6087_v60  ;;  %v6114_v35 = vmul.f32 %v7583_v39, %v6113_v33  ;;  %vm6099_vm15 = vweird.f32 %v7585_v18 }
 0x8dd   : > { %v6135_v17 = vmul.f32 %v6091_v48, %v13638_v31  ;;  %v6071_v50 = vsel %vm6070_vm0, %v7581_v58, %v6067_v38  ;;  %v6094_v1 = vmul.f32 %v7585_v18, %v6093_v8  ;;  %vm6100_vm5 = vmor %vm6098_vm3, %vm6099_vm15  ;;  %vm6128_vm7 = vweird.f32 %v6051_v57 }
 0x8de   : > { %v6148_v19 = vmul.f32 %v13677_v10, %v6137_v42  ;;  %v6133_v53 = vmul.f32 %v6071_v50, %v13641_v37  ;;  %v6115_v36 = vmul.f32 0.5, %v6114_v35 }
 0x8df   : > { %v6146_v7 = vmul.f32 %v13677_v10, %v6135_v17  ;;  %v6095_v5 = vmul.f32 0.5, %v6094_v1 }
 0x8e0   : > { %v6159_v3 = vadd.f32 %v13680_v44, %v6148_v19  ;;  %v6144_v49 = vmul.f32 %v13677_v10, %v6133_v53  ;;  %v6116_v58 = vsub.f32 1.5, %v6115_v36 }
 0x8e1   : > { %v6157_v31 = vadd.f32 %v13680_v44, %v6146_v7  ;;  %v7587_v56 = vpop.eup %7586  ;;  %v6096_v34 = vsub.f32 1.5, %v6095_v5 }
 0x8e2   : > { %6167 = vst [vmem:[%s7998_s23 + $0x28] sm:$0xff] %v6159_v3  ;;  %v6155_v37 = vadd.f32 %v13680_v44, %v6144_v49  ;;  %v6117_v21 = vmul.f32 %v7583_v39, %v6116_v58  ;;  %v6123_v9 = vmul.f32 %v7587_v56, %v6051_v57  ;;  %vm6129_vm6 = vweird.f32 %v7587_v56 }
 0x8e3   : > { %6165 = vst [vmem:[%s7998_s23 + $0x18] sm:$0xff] %v6157_v31  ;;  %v6097_v22 = vmul.f32 %v7585_v18, %v6096_v34  ;;  %vm6130_vm8 = vmor %vm6128_vm7, %vm6129_vm6 }
 0x8e4   : > { %6163 = vst [vmem:[%s7998_s23 + $0x8] sm:$0xff] %v6155_v37  ;;  %v6121_v59 = vsel %vm6120_vm4, %v7583_v39, %v6117_v21  ;;  %v6124_v32 = vmul.f32 %v7587_v56, %v6123_v9 }
 0x8e5   : > { %v6138_v28 = vmul.f32 %v6121_v59, %v13652_v52  ;;  %v6101_v2 = vsel %vm6100_vm5, %v7585_v18, %v6097_v22 }
 0x8e6   : > { %v6125_v60 = vmul.f32 0.5, %v6124_v32  ;;  %v6136_v38 = vmul.f32 %v6101_v2, %v13649_v55 }
 0x8e7   : > { %v6149_v4 = vmul.f32 %v13677_v10, %v6138_v28 }
 0x8e8   : > { %v6126_v33 = vsub.f32 1.5, %v6125_v60  ;;  %v6147_v42 = vmul.f32 %v13677_v10, %v6136_v38 }
 0x8e9   : > { %v6160_v39 = vadd.f32 %v13680_v44, %v6149_v4 }
 0x8ea   : > { %v6127_v48 = vmul.f32 %v7587_v56, %v6126_v33  ;;  %v6158_v52 = vadd.f32 %v13680_v44, %v6147_v42 }
 0x8eb   : > { %6168 = vst [vmem:[%s7998_s23 + $0x30] sm:$0xff] %v6160_v39 }
 0x8ec   : > { %v6131_v11 = vsel %vm6130_vm8, %v7587_v56, %v6127_v48  ;;  %6166 = vst [vmem:[%s7998_s23 + $0x20] sm:$0xff] %v6158_v52 }
 0x8ed   : > { %v6139_v18 = vmul.f32 %v6131_v11, %v13659_v12 }
 0x8ef   : > { %v6150_v17 = vmul.f32 %v13677_v10, %v6139_v18 }
 0x8f1   : > { %v6161_v55 = vadd.f32 %v13680_v44, %v6150_v17 }
 0x8f3   : > { %6169 = vst [vmem:[%s7998_s23 + $0x38] sm:$0xff] %v6161_v55 }
 0x8f4   : > { %7810 = dma.done.wait [#allocation3 + $0x1], 1024 }
 0x8f5   : > { %7811 = vsyncadd [#allocation3 + $0x1], 4294966272  ;;  %v6177_v50 = vld [vmem:[#allocation2 + $0x60] sm:$0xff]  ;;  %v6175_v35 = vld [vmem:[#allocation2 + $0x50] sm:$0xff] }
 0x8f6   : > { %v6173_v8 = vld [vmem:[#allocation2 + $0x40] sm:$0xff]  ;;  %v6185_v57 = vadd.f32 %v6177_v50, %v13503_v20  ;;  %v6183_v19 = vadd.f32 %v6175_v35, %v13543_v43  ;;  %v6178_v12 = vld [vmem:[#allocation2 + $0x68] sm:$0xff]  ;;  %v6176_v7 = vld [vmem:[#allocation2 + $0x58] sm:$0xff] }
 0x8f7   : > { %v6181_v53 = vadd.f32 %v6173_v8, %v13524_v63  ;;  %v6174_v36 = vld [vmem:[#allocation2 + $0x48] sm:$0xff]  ;;  %v6186_v1 = vadd.f32 %v6178_v12, %v13555_v0  ;;  %v6184_v3 = vadd.f32 %v6176_v7, %v13536_v46  ;;  %v6180_v20 = vld [vmem:[#allocation2 + $0x78] sm:$0xff]  ;;  %v6179_v31 = vld [vmem:[#allocation2 + $0x70] sm:$0xff] }
 0x8f8   : > { %6197 = vadd.xlane.f32.xlu2 %v6185_v57  ;;  %6193 = vadd.xlane.f32.xlu1 %v6183_v19  ;;  %v6182_v49 = vadd.f32 %v6174_v36, %v13491_v54  ;;  %v6188_v43 = vadd.f32 %v6180_v20, %v13515_v41  ;;  %v6187_v63 = vadd.f32 %v6179_v31, %v13548_v40 }
 0x8f9   : > { %6189 = vadd.xlane.f32.xlu0 %v6181_v53 }
 0x900   : > { %6199 = vadd.xlane.f32.xlu2 %v6186_v1  ;;  %6195 = vadd.xlane.f32.xlu1 %v6184_v3 }
 0x901   : > { %6191 = vadd.xlane.f32.xlu0 %v6182_v49 }
 0x908   : > { %6203 = vadd.xlane.f32.xlu1 %v6188_v43 }
 0x909   : > { %6201 = vadd.xlane.f32.xlu0 %v6187_v63 }
 0x96b   : > { %v6198_v58 = vpop.xlane.xlu2 %6197  ;;  %v6194_v5 = vpop.xlane.xlu1 %6193 }
 0x96c   : > { %v6207_v56 = vmul.f32 %v6194_v5, %v13621_v14  ;;  %v6190_v0 = vpop.xlane.xlu0 %6189  ;;  %v6209_v60 = vmul.f32 %v6198_v58, %v13621_v14 }
 0x96d   : > { %v6205_v46 = vmul.f32 %v6190_v0, %v13621_v14 }
 0x96e   : > { %v13750_v37 = vsub.f32 %v6183_v19, %v6207_v56  ;;  %v13774_v42 = vsub.f32 %v6185_v57, %v6209_v60 }
 0x96f   : > { %v13752_v54 = vsub.f32 %v6181_v53, %v6205_v46 }
 0x970   : > { %v6223_v21 = vmul.f32 %v13750_v37, %v13750_v37  ;;  %v6225_v17 = vmul.f32 %v13774_v42, %v13774_v42 }
 0x971   : > { %v6221_v41 = vmul.f32 %v13752_v54, %v13752_v54 }
 0x972   : > { %6233 = vadd.xlane.f32.xlu1 %v6223_v21 }
 0x973   : > { %6229 = vadd.xlane.f32.xlu2 %v6221_v41  ;;  %v6200_v40 = vpop.xlane.xlu2 %6199  ;;  %v6196_v34 = vpop.xlane.xlu1 %6195 }
 0x974   : > { %v6210_v9 = vmul.f32 %v6200_v40, %v13621_v14  ;;  %v6208_v59 = vmul.f32 %v6196_v34, %v13621_v14  ;;  %v6192_v22 = vpop.xlane.xlu0 %6191 }
 0x975   : > { %v6206_v32 = vmul.f32 %v6192_v22, %v13621_v14 }
 0x976   : > { %v13761_v28 = vsub.f32 %v6186_v1, %v6210_v9  ;;  %v13763_v2 = vsub.f32 %v6184_v3, %v6208_v59 }
 0x977   : > { %v13766_v4 = vsub.f32 %v6182_v49, %v6206_v32 }
 0x978   : > { %v6226_v38 = vmul.f32 %v13761_v28, %v13761_v28  ;;  %v6224_v33 = vmul.f32 %v13763_v2, %v13763_v2 }
 0x979   : > { %v6222_v39 = vmul.f32 %v13766_v4, %v13766_v4 }
 0x97a   : > { %6239 = vadd.xlane.f32.xlu1 %v6226_v38 }
 0x97b   : > { %6235 = vadd.xlane.f32.xlu2 %v6224_v33  ;;  %6231 = vadd.xlane.f32.xlu0 %v6222_v39  ;;  %v6204_v52 = vpop.xlane.xlu1 %6203 }
 0x97c   : > { %v6202_v48 = vpop.xlane.xlu0 %6201  ;;  %v6212_v55 = vmul.f32 %v6204_v52, %v13621_v14 }
 0x97d   : > { %v6211_v11 = vmul.f32 %v6202_v48, %v13621_v14 }
 0x97e   : > { %v13784_v35 = vsub.f32 %v6188_v43, %v6212_v55 }
 0x97f   : > { %v13777_v18 = vsub.f32 %v6187_v63, %v6211_v11 }
 0x980   : > { %v6228_v8 = vmul.f32 %v13784_v35, %v13784_v35 }
 0x981   : > { %v6227_v50 = vmul.f32 %v13777_v18, %v13777_v18 }
 0x983   : > { %6237 = vadd.xlane.f32.xlu0 %v6225_v17  ;;  %6241 = vadd.xlane.f32.xlu2 %v6227_v50 }
 0x98b   : > { %6243 = vadd.xlane.f32.xlu0 %v6228_v8 }
 0x9e5   : > { %v6234_v57 = vpop.xlane.xlu1 %6233 }
 0x9e6   : > { %v6247_v19 = vmul.f32 %v6234_v57, %v13621_v14  ;;  %v6230_v53 = vpop.xlane.xlu2 %6229 }
 0x9e7   : > { %v6245_v12 = vmul.f32 %v6230_v53, %v13621_v14 }
 0x9e8   : > { %v6255_v7 = vadd.f32 1e-05, %v6247_v19 }
 0x9e9   : > { %v6253_v36 = vadd.f32 1e-05, %v6245_v12 }
 0x9ea   : > { %7588 = vrsqrt.f32 %v6255_v7  ;;  %vm6287_vm9 = vweird.f32 %v6255_v7 }
 0x9eb   : > { %7590 = vrsqrt.f32 %v6253_v36  ;;  %vm6267_vm14 = vweird.f32 %v6253_v36 }
 0x9ed   : > { %v6240_v1 = vpop.xlane.xlu1 %6239 }
 0x9ee   : > { %v6250_v3 = vmul.f32 %v6240_v1, %v13621_v14  ;;  %v6236_v49 = vpop.xlane.xlu2 %6235  ;;  %v6232_v20 = vpop.xlane.xlu0 %6231 }
 0x9ef   : > { %v6248_v31 = vmul.f32 %v6236_v49, %v13621_v14  ;;  %v6246_v43 = vmul.f32 %v6232_v20, %v13621_v14 }
 0x9f0   : > { %v7589_v63 = vpop.eup %7588  ;;  %v6258_v58 = vadd.f32 1e-05, %v6250_v3 }
 0x9f1   : > { %v7591_v5 = vpop.eup %7590  ;;  %v6282_v56 = vmul.f32 %v7589_v63, %v6255_v7  ;;  %v13793_v0 = vadd.f32 1e-05, %v6248_v31  ;;  %v13795_v46 = vadd.f32 1e-05, %v6246_v43  ;;  %vm6288_vm10 = vweird.f32 %v7589_v63 }
 0x9f2   : > { %v6262_v21 = vmul.f32 %v7591_v5, %v6253_v36  ;;  %7592 = vrsqrt.f32 %v6258_v58  ;;  %vm6268_vm12 = vweird.f32 %v7591_v5  ;;  %vm6289_vm13 = vmor %vm6287_vm9, %vm6288_vm10  ;;  %vm6317_vm0 = vweird.f32 %v6258_v58 }
 0x9f3   : > { %v6283_v41 = vmul.f32 %v7589_v63, %v6282_v56  ;;  %7594 = vrsqrt.f32 %v13793_v0  ;;  %vm6269_vm11 = vmor %vm6267_vm14, %vm6268_vm12  ;;  %vm6297_vm2 = vweird.f32 %v13793_v0  ;;  %vm6277_vm6 = vweird.f32 %v13795_v46 }
 0x9f4   : > { %v6263_v40 = vmul.f32 %v7591_v5, %v6262_v21  ;;  %7596 = vrsqrt.f32 %v13795_v46 }
 0x9f5   : > { %v6284_v34 = vmul.f32 0.5, %v6283_v41 }
 0x9f6   : > { %v6264_v9 = vmul.f32 0.5, %v6263_v40  ;;  %v6242_v59 = vpop.xlane.xlu2 %6241  ;;  %v6238_v22 = vpop.xlane.xlu0 %6237 }
 0x9f7   : > { %v6285_v32 = vsub.f32 1.5, %v6284_v34  ;;  %v6251_v60 = vmul.f32 %v6242_v59, %v13621_v14  ;;  %v6249_v38 = vmul.f32 %v6238_v22, %v13621_v14 }
 0x9f8   : > { %v7593_v33 = vpop.eup %7592  ;;  %v6265_v39 = vsub.f32 1.5, %v6264_v9 }
 0x9f9   : > { %v7595_v48 = vpop.eup %7594  ;;  %v6286_v52 = vmul.f32 %v7589_v63, %v6285_v32  ;;  %v6312_v11 = vmul.f32 %v7593_v33, %v6258_v58  ;;  %v13801_v17 = vadd.f32 1e-05, %v6251_v60  ;;  %v13805_v57 = vadd.f32 1e-05, %v6249_v38 }
 0x9fa   : > { %v7597_v55 = vpop.eup %7596  ;;  %v6266_v50 = vmul.f32 %v7591_v5, %v6265_v39  ;;  %v6292_v8 = vmul.f32 %v7595_v48, %v13793_v0  ;;  %vm6318_vm1 = vweird.f32 %v7593_v33  ;;  %vm6298_vm4 = vweird.f32 %v7595_v48 }
 0x9fb   : > { %v6290_v19 = vsel %vm6289_vm13, %v7589_v63, %v6286_v52  ;;  %v6313_v53 = vmul.f32 %v7593_v33, %v6312_v11  ;;  %v6272_v12 = vmul.f32 %v7597_v55, %v13795_v46  ;;  %7598 = vrsqrt.f32 %v13801_v17  ;;  %vm13818_vm15 = vmor %vm6317_vm0, %vm6318_vm1 }
 0x9fc   : > { %v6343_v1 = vmul.f32 %v6290_v19, %v13750_v37  ;;  %v6270_v3 = vsel %vm6269_vm11, %v7591_v5, %v6266_v50  ;;  %v6293_v49 = vmul.f32 %v7595_v48, %v6292_v8  ;;  %7600 = vrsqrt.f32 %v13805_v57  ;;  %vm6299_vm5 = vmor %vm6297_vm2, %vm6298_vm4 }
 0x9fd   : > { %v6341_v7 = vmul.f32 %v6270_v3, %v13752_v54  ;;  %v6314_v20 = vmul.f32 0.5, %v6313_v53  ;;  %v6273_v36 = vmul.f32 %v7597_v55, %v6272_v12  ;;  %vm6278_vm3 = vweird.f32 %v7597_v55 }
 0x9fe   : > { %v6351_v31 = vmul.f32 %v6343_v1, %v13677_v10  ;;  %v6294_v43 = vmul.f32 0.5, %v6293_v49  ;;  %v6244_v63 = vpop.xlane.xlu0 %6243  ;;  %vm6279_vm7 = vmor %vm6277_vm6, %vm6278_vm3  ;;  %vm6327_vm8 = vweird.f32 %v13801_v17  ;;  %vm6307_vm13 = vweird.f32 %v13805_v57 }
 0x9ff   : > { %v6349_v37 = vmul.f32 %v6341_v7, %v13677_v10  ;;  %v6315_v5 = vsub.f32 1.5, %v6314_v20  ;;  %v6274_v56 = vmul.f32 0.5, %v6273_v36  ;;  %v6252_v21 = vmul.f32 %v6244_v63, %v13621_v14 }
 0xa00   : > { %v6359_v54 = vadd.f32 %v6351_v31, %v13680_v44  ;;  %v6295_v40 = vsub.f32 1.5, %v6294_v43 }
 0xa01   : > { %v6357_v34 = vadd.f32 %v6349_v37, %v13680_v44  ;;  %v6316_v9 = vmul.f32 %v7593_v33, %v6315_v5  ;;  %v6275_v59 = vsub.f32 1.5, %v6274_v56  ;;  %v6260_v22 = vadd.f32 1e-05, %v6252_v21  ;;  %v7599_v32 = vpop.eup %7598 }
 0xa02   : > { %6367 = vst [vmem:[%s7998_s23 + $0x50] sm:$0xff] %v6359_v54  ;;  %v6296_v60 = vmul.f32 %v7595_v48, %v6295_v40  ;;  %v6322_v39 = vmul.f32 %v7599_v32, %v13801_v17  ;;  %v7601_v52 = vpop.eup %7600  ;;  %vm6328_vm9 = vweird.f32 %v7599_v32 }
 0xa03   : > { %6365 = vst [vmem:[%s7998_s23 + $0x40] sm:$0xff] %v6357_v34  ;;  %v6320_v38 = vsel %vm13818_vm15, %v7593_v33, %v6316_v9  ;;  %v6276_v58 = vmul.f32 %v7597_v55, %v6275_v59  ;;  %7602 = vrsqrt.f32 %v6260_v22  ;;  %v6302_v0 = vmul.f32 %v7601_v52, %v13805_v57  ;;  %vm6329_vm12 = vmor %vm6327_vm8, %vm6328_vm9 }
 0xa04   : > { %v6346_v11 = vmul.f32 %v6320_v38, %v13761_v28  ;;  %v6300_v50 = vsel %vm6299_vm5, %v7595_v48, %v6296_v60  ;;  %v6323_v33 = vmul.f32 %v7599_v32, %v6322_v39  ;;  %vm6308_vm10 = vweird.f32 %v7601_v52 }
 0xa05   : > { %v6344_v8 = vmul.f32 %v6300_v50, %v13763_v2  ;;  %v6280_v19 = vsel %vm6279_vm7, %v7597_v55, %v6276_v58  ;;  %v6303_v28 = vmul.f32 %v7601_v52, %v6302_v0  ;;  %vm6309_vm14 = vmor %vm6307_vm13, %vm6308_vm10  ;;  %vm6337_vm0 = vweird.f32 %v6260_v22 }
 0xa06   : > { %v6354_v53 = vmul.f32 %v6346_v11, %v13677_v10  ;;  %v6342_v46 = vmul.f32 %v6280_v19, %v13766_v4  ;;  %v6324_v1 = vmul.f32 0.5, %v6323_v33 }
 0xa07   : > { %v6352_v12 = vmul.f32 %v6344_v8, %v13677_v10  ;;  %v6304_v49 = vmul.f32 0.5, %v6303_v28 }
 0xa08   : > { %v6362_v48 = vadd.f32 %v6354_v53, %v13680_v44  ;;  %v6350_v3 = vmul.f32 %v6342_v46, %v13677_v10  ;;  %v6325_v55 = vsub.f32 1.5, %v6324_v1 }
 0xa09   : > { %v6360_v2 = vadd.f32 %v6352_v12, %v13680_v44  ;;  %v7603_v7 = vpop.eup %7602  ;;  %v6305_v36 = vsub.f32 1.5, %v6304_v49 }
 0xa0a   : > { %6370 = vst [vmem:[%s7998_s23 + $0x68] sm:$0xff] %v6362_v48  ;;  %v6358_v4 = vadd.f32 %v6350_v3, %v13680_v44  ;;  %v6326_v20 = vmul.f32 %v7599_v32, %v6325_v55  ;;  %v6332_v31 = vmul.f32 %v7603_v7, %v6260_v22  ;;  %vm6338_vm11 = vweird.f32 %v7603_v7 }
 0xa0b   : > { %6368 = vst [vmem:[%s7998_s23 + $0x58] sm:$0xff] %v6360_v2  ;;  %v6306_v63 = vmul.f32 %v7601_v52, %v6305_v36  ;;  %vm6339_vm1 = vmor %vm6337_vm0, %vm6338_vm11 }
 0xa0c   : > { %6366 = vst [vmem:[%s7998_s23 + $0x48] sm:$0xff] %v6358_v4  ;;  %v6330_v43 = vsel %vm6329_vm12, %v7599_v32, %v6326_v20  ;;  %v6333_v17 = vmul.f32 %v7603_v7, %v6332_v31 }
 0xa0d   : > { %v6347_v37 = vmul.f32 %v6330_v43, %v13777_v18  ;;  %v6310_v5 = vsel %vm6309_vm14, %v7601_v52, %v6306_v63 }
 0xa0e   : > { %v6334_v56 = vmul.f32 0.5, %v6333_v17  ;;  %v6345_v54 = vmul.f32 %v6310_v5, %v13774_v42 }
 0xa0f   : > { %v6355_v21 = vmul.f32 %v6347_v37, %v13677_v10 }
 0xa10   : > { %v6335_v41 = vsub.f32 1.5, %v6334_v56  ;;  %v6353_v34 = vmul.f32 %v6345_v54, %v13677_v10 }
 0xa11   : > { %v6363_v40 = vadd.f32 %v6355_v21, %v13680_v44 }
 0xa12   : > { %v6336_v9 = vmul.f32 %v7603_v7, %v6335_v41  ;;  %v6361_v18 = vadd.f32 %v6353_v34, %v13680_v44 }
 0xa13   : > { %6371 = vst [vmem:[%s7998_s23 + $0x70] sm:$0xff] %v6363_v40 }
 0xa14   : > { %v6340_v57 = vsel %vm6339_vm1, %v7603_v7, %v6336_v9  ;;  %6369 = vst [vmem:[%s7998_s23 + $0x60] sm:$0xff] %v6361_v18 }
 0xa15   : > { %v6348_v59 = vmul.f32 %v6340_v57, %v13784_v35 }
 0xa17   : > { %v6356_v32 = vmul.f32 %v6348_v59, %v13677_v10 }
 0xa19   : > { %v6364_v42 = vadd.f32 %v6356_v32, %v13680_v44 }
 0xa1b   : > { %6372 = vst [vmem:[%s7998_s23 + $0x78] sm:$0xff] %v6364_v42 }
 0xa1c   : > { %7812 = dma.done.wait [#allocation3 + $0x2], 1024 }
 0xa1d   : > { %7813 = vsyncadd [#allocation3 + $0x2], 4294966272  ;;  %v6380_v60 = vld [vmem:[#allocation2 + $0xa0] sm:$0xff]  ;;  %v6378_v38 = vld [vmem:[#allocation2 + $0x90] sm:$0xff] }
 0xa1e   : > { %v6376_v58 = vld [vmem:[#allocation2 + $0x80] sm:$0xff]  ;;  %v6388_v22 = vadd.f32 %v6380_v60, %v13572_v27  ;;  %v6386_v39 = vadd.f32 %v6378_v38, %v13527_v62  ;;  %v6381_v35 = vld [vmem:[#allocation2 + $0xa8] sm:$0xff]  ;;  %v6379_v11 = vld [vmem:[#allocation2 + $0x98] sm:$0xff] }
 0xa1f   : > { %v6384_v52 = vadd.f32 %v6376_v58, %v13567_v23  ;;  %v6377_v50 = vld [vmem:[#allocation2 + $0x88] sm:$0xff]  ;;  %v6389_v8 = vadd.f32 %v6381_v35, %v13539_v26  ;;  %v6387_v19 = vadd.f32 %v6379_v11, %v13579_v45  ;;  %v6383_v27 = vld [vmem:[#allocation2 + $0xb8] sm:$0xff]  ;;  %v6382_v0 = vld [vmem:[#allocation2 + $0xb0] sm:$0xff] }
 0xa20   : > { %6400 = vadd.xlane.f32.xlu2 %v6388_v22  ;;  %6396 = vadd.xlane.f32.xlu1 %v6386_v39  ;;  %v6385_v33 = vadd.f32 %v6377_v50, %v13560_v47  ;;  %v6391_v62 = vadd.f32 %v6383_v27, %v13587_v13  ;;  %v6390_v23 = vadd.f32 %v6382_v0, %v13591_v24 }
 0xa21   : > { %6392 = vadd.xlane.f32.xlu0 %v6384_v52 }
 0xa28   : > { %6402 = vadd.xlane.f32.xlu2 %v6389_v8  ;;  %6398 = vadd.xlane.f32.xlu1 %v6387_v19 }
 0xa29   : > { %6394 = vadd.xlane.f32.xlu0 %v6385_v33 }
 0xa30   : > { %6406 = vadd.xlane.f32.xlu1 %v6391_v62 }
 0xa31   : > { %6404 = vadd.xlane.f32.xlu0 %v6390_v23 }
 0xa93   : > { %v6401_v53 = vpop.xlane.xlu2 %6400  ;;  %v6397_v46 = vpop.xlane.xlu1 %6396 }
 0xa94   : > { %v6410_v12 = vmul.f32 %v6397_v46, %v13621_v14  ;;  %v6393_v26 = vpop.xlane.xlu0 %6392  ;;  %v6412_v20 = vmul.f32 %v6401_v53, %v13621_v14 }
 0xa95   : > { %v6408_v45 = vmul.f32 %v6393_v26, %v13621_v14 }
 0xa96   : > { %v13869_v1 = vsub.f32 %v6386_v39, %v6410_v12  ;;  %v13893_v17 = vsub.f32 %v6388_v22, %v6412_v20 }
 0xa97   : > { %v13871_v47 = vsub.f32 %v6384_v52, %v6408_v45 }
 0xa98   : > { %v6426_v28 = vmul.f32 %v13869_v1, %v13869_v1  ;;  %v6428_v54 = vmul.f32 %v13893_v17, %v13893_v17 }
 0xa99   : > { %v6424_v13 = vmul.f32 %v13871_v47, %v13871_v47 }
 0xa9a   : > { %6436 = vadd.xlane.f32.xlu1 %v6426_v28 }
 0xa9b   : > { %6432 = vadd.xlane.f32.xlu2 %v6424_v13  ;;  %v6403_v24 = vpop.xlane.xlu2 %6402  ;;  %v6399_v48 = vpop.xlane.xlu1 %6398 }
 0xa9c   : > { %v6413_v3 = vmul.f32 %v6403_v24, %v13621_v14  ;;  %v6411_v2 = vmul.f32 %v6399_v48, %v13621_v14  ;;  %v6395_v55 = vpop.xlane.xlu0 %6394 }
 0xa9d   : > { %v6409_v49 = vmul.f32 %v6395_v55, %v13621_v14 }
 0xa9e   : > { %v13880_v7 = vsub.f32 %v6389_v8, %v6413_v3  ;;  %v13882_v4 = vsub.f32 %v6387_v19, %v6411_v2 }
 0xa9f   : > { %v13885_v36 = vsub.f32 %v6385_v33, %v6409_v49 }
 0xaa0   : > { %v6429_v31 = vmul.f32 %v13880_v7, %v13880_v7  ;;  %v6427_v43 = vmul.f32 %v13882_v4, %v13882_v4 }
 0xaa1   : > { %v6425_v63 = vmul.f32 %v13885_v36, %v13885_v36 }
 0xaa2   : > { %6442 = vadd.xlane.f32.xlu1 %v6429_v31 }
 0xaa3   : > { %6438 = vadd.xlane.f32.xlu2 %v6427_v43  ;;  %6434 = vadd.xlane.f32.xlu0 %v6425_v63  ;;  %v6407_v5 = vpop.xlane.xlu1 %6406 }
 0xaa4   : > { %v6405_v37 = vpop.xlane.xlu0 %6404  ;;  %v6415_v41 = vmul.f32 %v6407_v5, %v13621_v14 }
 0xaa5   : > { %v6414_v56 = vmul.f32 %v6405_v37, %v13621_v14 }
 0xaa6   : > { %v13903_v34 = vsub.f32 %v6391_v62, %v6415_v41 }
 0xaa7   : > { %v13896_v21 = vsub.f32 %v6390_v23, %v6414_v56 }
 0xaa8   : > { %v6431_v9 = vmul.f32 %v13903_v34, %v13903_v34 }
 0xaa9   : > { %v6430_v40 = vmul.f32 %v13896_v21, %v13896_v21 }
 0xaab   : > { %6440 = vadd.xlane.f32.xlu0 %v6428_v54  ;;  %6444 = vadd.xlane.f32.xlu2 %v6430_v40 }
 0xab3   : > { %6446 = vadd.xlane.f32.xlu0 %v6431_v9 }
 0xb0d   : > { %v6437_v18 = vpop.xlane.xlu1 %6436 }
 0xb0e   : > { %v6450_v57 = vmul.f32 %v6437_v18, %v13621_v14  ;;  %v6433_v59 = vpop.xlane.xlu2 %6432 }
 0xb0f   : > { %v6448_v32 = vmul.f32 %v6433_v59, %v13621_v14 }
 0xb10   : > { %v6458_v42 = vadd.f32 1e-05, %v6450_v57 }
 0xb11   : > { %v6456_v60 = vadd.f32 1e-05, %v6448_v32 }
 0xb12   : > { %7604 = vrsqrt.f32 %v6458_v42  ;;  %vm6490_vm2 = vweird.f32 %v6458_v42 }
 0xb13   : > { %7606 = vrsqrt.f32 %v6456_v60  ;;  %vm6470_vm5 = vweird.f32 %v6456_v60 }
 0xb15   : > { %v6443_v38 = vpop.xlane.xlu1 %6442 }
 0xb16   : > { %v6453_v58 = vmul.f32 %v6443_v38, %v13621_v14  ;;  %v6439_v22 = vpop.xlane.xlu2 %6438  ;;  %v6435_v39 = vpop.xlane.xlu0 %6434 }
 0xb17   : > { %v6451_v52 = vmul.f32 %v6439_v22, %v13621_v14  ;;  %v6449_v35 = vmul.f32 %v6435_v39, %v13621_v14 }
 0xb18   : > { %v7605_v11 = vpop.eup %7604  ;;  %v6461_v50 = vadd.f32 1e-05, %v6453_v58 }
 0xb19   : > { %v7607_v8 = vpop.eup %7606  ;;  %v6485_v19 = vmul.f32 %v7605_v11, %v6458_v42  ;;  %v13912_v33 = vadd.f32 1e-05, %v6451_v52  ;;  %v13914_v27 = vadd.f32 1e-05, %v6449_v35  ;;  %vm6491_vm15 = vweird.f32 %v7605_v11 }
 0xb1a   : > { %v6465_v0 = vmul.f32 %v7607_v8, %v6456_v60  ;;  %7608 = vrsqrt.f32 %v6461_v50  ;;  %vm6471_vm4 = vweird.f32 %v7607_v8  ;;  %vm6492_vm3 = vmor %vm6490_vm2, %vm6491_vm15  ;;  %vm6520_vm7 = vweird.f32 %v6461_v50 }
 0xb1b   : > { %v6486_v62 = vmul.f32 %v7605_v11, %v6485_v19  ;;  %7610 = vrsqrt.f32 %v13912_v33  ;;  %vm6472_vm6 = vmor %vm6470_vm5, %vm6471_vm4  ;;  %vm6500_vm9 = vweird.f32 %v13912_v33  ;;  %vm6480_vm11 = vweird.f32 %v13914_v27 }
 0xb1c   : > { %v6466_v23 = vmul.f32 %v7607_v8, %v6465_v0  ;;  %7612 = vrsqrt.f32 %v13914_v27 }
 0xb1d   : > { %v6487_v53 = vmul.f32 0.5, %v6486_v62 }
 0xb1e   : > { %v6467_v46 = vmul.f32 0.5, %v6466_v23  ;;  %v6445_v12 = vpop.xlane.xlu2 %6444  ;;  %v6441_v26 = vpop.xlane.xlu0 %6440 }
 0xb1f   : > { %v6488_v45 = vsub.f32 1.5, %v6487_v53  ;;  %v6454_v28 = vmul.f32 %v6445_v12, %v13621_v14  ;;  %v6452_v13 = vmul.f32 %v6441_v26, %v13621_v14 }
 0xb20   : > { %v7609_v24 = vpop.eup %7608  ;;  %v6468_v48 = vsub.f32 1.5, %v6467_v46 }
 0xb21   : > { %v7611_v3 = vpop.eup %7610  ;;  %v6489_v2 = vmul.f32 %v7605_v11, %v6488_v45  ;;  %v6515_v55 = vmul.f32 %v7609_v24, %v6461_v50  ;;  %v13920_v49 = vadd.f32 1e-05, %v6454_v28  ;;  %v13924_v63 = vadd.f32 1e-05, %v6452_v13 }
 0xb22   : > { %v7613_v20 = vpop.eup %7612  ;;  %v6469_v31 = vmul.f32 %v7607_v8, %v6468_v48  ;;  %v6495_v43 = vmul.f32 %v7611_v3, %v13912_v33  ;;  %vm6521_vm8 = vweird.f32 %v7609_v24  ;;  %vm6501_vm12 = vweird.f32 %v7611_v3 }
 0xb23   : > { %v6493_v37 = vsel %vm6492_vm3, %v7605_v11, %v6489_v2  ;;  %v6516_v5 = vmul.f32 %v7609_v24, %v6515_v55  ;;  %v6475_v56 = vmul.f32 %v7613_v20, %v13914_v27  ;;  %7614 = vrsqrt.f32 %v13920_v49  ;;  %vm13937_vm10 = vmor %vm6520_vm7, %vm6521_vm8 }
 0xb24   : > { %v6546_v54 = vmul.f32 %v6493_v37, %v13869_v1  ;;  %v6473_v41 = vsel %vm6472_vm6, %v7607_v8, %v6469_v31  ;;  %v6496_v40 = vmul.f32 %v7611_v3, %v6495_v43  ;;  %7616 = vrsqrt.f32 %v13924_v63  ;;  %vm6502_vm14 = vmor %vm6500_vm9, %vm6501_vm12 }
 0xb25   : > { %v6544_v9 = vmul.f32 %v6473_v41, %v13871_v47  ;;  %v6517_v18 = vmul.f32 0.5, %v6516_v5  ;;  %v6476_v57 = vmul.f32 %v7613_v20, %v6475_v56  ;;  %vm6481_vm13 = vweird.f32 %v7613_v20 }
 0xb26   : > { %v6554_v59 = vmul.f32 %v6546_v54, %v13677_v10  ;;  %v6497_v32 = vmul.f32 0.5, %v6496_v40  ;;  %v6447_v42 = vpop.xlane.xlu0 %6446  ;;  %vm6482_vm0 = vmor %vm6480_vm11, %vm6481_vm13  ;;  %vm6530_vm1 = vweird.f32 %v13920_v49  ;;  %vm6510_vm3 = vweird.f32 %v13924_v63 }
 0xb27   : > { %v6552_v1 = vmul.f32 %v6544_v9, %v13677_v10  ;;  %v6518_v60 = vsub.f32 1.5, %v6517_v18  ;;  %v6477_v38 = vmul.f32 0.5, %v6476_v57  ;;  %v6455_v58 = vmul.f32 %v6447_v42, %v13621_v14 }
 0xb28   : > { %v6562_v47 = vadd.f32 %v6554_v59, %v13680_v44  ;;  %v6498_v39 = vsub.f32 1.5, %v6497_v32 }
 0xb29   : > { %v6560_v52 = vadd.f32 %v6552_v1, %v13680_v44  ;;  %v6519_v35 = vmul.f32 %v7609_v24, %v6518_v60  ;;  %v6478_v11 = vsub.f32 1.5, %v6477_v38  ;;  %v6463_v8 = vadd.f32 1e-05, %v6455_v58  ;;  %v7615_v19 = vpop.eup %7614 }
 0xb2a   : > { %6570 = vst [vmem:[%s7998_s23 + $0x90] sm:$0xff] %v6562_v47  ;;  %v6499_v0 = vmul.f32 %v7611_v3, %v6498_v39  ;;  %v6525_v23 = vmul.f32 %v7615_v19, %v13920_v49  ;;  %v7617_v53 = vpop.eup %7616  ;;  %vm6531_vm2 = vweird.f32 %v7615_v19 }
 0xb2b   : > { %6568 = vst [vmem:[%s7998_s23 + $0x80] sm:$0xff] %v6560_v52  ;;  %v6523_v62 = vsel %vm13937_vm10, %v7609_v24, %v6519_v35  ;;  %v6479_v50 = vmul.f32 %v7613_v20, %v6478_v11  ;;  %7618 = vrsqrt.f32 %v6463_v8  ;;  %v6505_v33 = vmul.f32 %v7617_v53, %v13924_v63  ;;  %vm6532_vm4 = vmor %vm6530_vm1, %vm6531_vm2 }
 0xb2c   : > { %v6549_v46 = vmul.f32 %v6523_v62, %v13880_v7  ;;  %v6503_v12 = vsel %vm6502_vm14, %v7611_v3, %v6499_v0  ;;  %v6526_v28 = vmul.f32 %v7615_v19, %v6525_v23  ;;  %vm6511_vm15 = vweird.f32 %v7617_v53 }
 0xb2d   : > { %v6547_v26 = vmul.f32 %v6503_v12, %v13882_v4  ;;  %v6483_v45 = vsel %vm6482_vm0, %v7613_v20, %v6479_v50  ;;  %v6506_v7 = vmul.f32 %v7617_v53, %v6505_v33  ;;  %vm6512_vm5 = vmor %vm6510_vm3, %vm6511_vm15  ;;  %vm6540_vm7 = vweird.f32 %v6463_v8 }
 0xb2e   : > { %v6557_v13 = vmul.f32 %v6549_v46, %v13677_v10  ;;  %v6545_v27 = vmul.f32 %v6483_v45, %v13885_v36  ;;  %v6527_v48 = vmul.f32 0.5, %v6526_v28 }
 0xb2f   : > { %v6555_v24 = vmul.f32 %v6547_v26, %v13677_v10  ;;  %v6507_v20 = vmul.f32 0.5, %v6506_v7 }
 0xb30   : > { %v6565_v3 = vadd.f32 %v6557_v13, %v13680_v44  ;;  %v6553_v2 = vmul.f32 %v6545_v27, %v13677_v10  ;;  %v6528_v55 = vsub.f32 1.5, %v6527_v48 }
 0xb31   : > { %v6563_v4 = vadd.f32 %v6555_v24, %v13680_v44  ;;  %v7619_v31 = vpop.eup %7618  ;;  %v6508_v37 = vsub.f32 1.5, %v6507_v20 }
 0xb32   : > { %6573 = vst [vmem:[%s7998_s23 + $0xa8] sm:$0xff] %v6565_v3  ;;  %v6561_v36 = vadd.f32 %v6553_v2, %v13680_v44  ;;  %v6529_v43 = vmul.f32 %v7615_v19, %v6528_v55  ;;  %v6535_v5 = vmul.f32 %v7619_v31, %v6463_v8  ;;  %vm6541_vm6 = vweird.f32 %v7619_v31 }
 0xb33   : > { %6571 = vst [vmem:[%s7998_s23 + $0x98] sm:$0xff] %v6563_v4  ;;  %v6509_v54 = vmul.f32 %v7617_v53, %v6508_v37  ;;  %vm6542_vm8 = vmor %vm6540_vm7, %vm6541_vm6 }
 0xb34   : > { %6569 = vst [vmem:[%s7998_s23 + $0x88] sm:$0xff] %v6561_v36  ;;  %v6533_v56 = vsel %vm6532_vm4, %v7615_v19, %v6529_v43  ;;  %v6536_v49 = vmul.f32 %v7619_v31, %v6535_v5 }
 0xb35   : > { %v6550_v41 = vmul.f32 %v6533_v56, %v13896_v21  ;;  %v6513_v40 = vsel %vm6512_vm5, %v7617_v53, %v6509_v54 }
 0xb36   : > { %v6537_v9 = vmul.f32 0.5, %v6536_v49  ;;  %v6548_v57 = vmul.f32 %v6513_v40, %v13893_v17 }
 0xb37   : > { %v6558_v18 = vmul.f32 %v6550_v41, %v13677_v10 }
 0xb38   : > { %v6538_v59 = vsub.f32 1.5, %v6537_v9  ;;  %v6556_v42 = vmul.f32 %v6548_v57, %v13677_v10 }
 0xb39   : > { %v6566_v32 = vadd.f32 %v6558_v18, %v13680_v44 }
 0xb3a   : > { %v6539_v1 = vmul.f32 %v7619_v31, %v6538_v59  ;;  %v6564_v21 = vadd.f32 %v6556_v42, %v13680_v44 }
 0xb3b   : > { %6574 = vst [vmem:[%s7998_s23 + $0xb0] sm:$0xff] %v6566_v32 }
 0xb3c   : > { %v6543_v63 = vsel %vm6542_vm8, %v7619_v31, %v6539_v1  ;;  %6572 = vst [vmem:[%s7998_s23 + $0xa0] sm:$0xff] %v6564_v21 }
 0xb3d   : > { %v6551_v60 = vmul.f32 %v6543_v63, %v13903_v34 }
 0xb3f   : > { %v6559_v38 = vmul.f32 %v6551_v60, %v13677_v10 }
 0xb41   : > { %v6567_v17 = vadd.f32 %v6559_v38, %v13680_v44 }
 0xb43   : > { %6575 = vst [vmem:[%s7998_s23 + $0xb8] sm:$0xff] %v6567_v17 }
 0xb44   : > { %7814 = dma.done.wait [#allocation3 + $0x3], 1024 }
 0xb45   : > { %7815 = vsyncadd [#allocation3 + $0x3], 4294966272  ;;  %v6583_v58 = vld [vmem:[#allocation2 + $0xe0] sm:$0xff]  ;;  %v6581_v47 = vld [vmem:[#allocation2 + $0xd0] sm:$0xff]  ;;  %s6791_s0 = scalar_lea.hbm %s14137_s6, %s7991_s18  ;;  %s6792_s15 = sshll.u32 %s7998_s23, 4  ;;  %s6793_s15 = int_to_ptr.vmem [resolvable:$true] %s6792_s15 }
 0xb46   : > { %v6579_v22 = vld [vmem:[#allocation2 + $0xc0] sm:$0xff]  ;;  %v6591_v39 = vadd.f32 %v6583_v58, %v13607_v30  ;;  %v6589_v52 = vadd.f32 %v6581_v47, %v13595_v16  ;;  %v6584_v34 = vld [vmem:[#allocation2 + $0xe8] sm:$0xff]  ;;  %v6582_v11 = vld [vmem:[#allocation2 + $0xd8] sm:$0xff]  ;;  %s6794_s24 = sshll.u32 %s6791_s0, 4  ;;  %s15340_s2 = sand.u32 1, %s7826_s26   ;;  %s6795_s24 = int_to_ptr.hbm [resolvable:$true] %s6794_s24 }
 0xb47   : > { %v6587_v35 = vadd.f32 %v6579_v22, %v13551_v15  ;;  %v6580_v8 = vld [vmem:[#allocation2 + $0xc8] sm:$0xff]  ;;  %v6592_v19 = vadd.f32 %v6584_v34, %v13603_v25  ;;  %v6590_v0 = vadd.f32 %v6582_v11, %v13563_v61  ;;  %v6586_v30 = vld [vmem:[#allocation2 + $0xf8] sm:$0xff]  ;;  %v6585_v50 = vld [vmem:[#allocation2 + $0xf0] sm:$0xff]  ;;  %s6780_s18 = scalar_lea.sflag [#allocation8], %s15340_s2  ;;  %s7752_s7 = sshra.s32 %s6795_s24, 4  ;;  %s7753_s7 = int_to_ptr.hbm [resolvable:$true] %s7752_s7 }
 0xb48   : > { %6603 = vadd.xlane.f32.xlu2 %v6591_v39  ;;  %6599 = vadd.xlane.f32.xlu1 %v6589_v52  ;;  %v6588_v62 = vadd.f32 %v6580_v8, %v13599_v29  ;;  %v6594_v16 = vadd.f32 %v6586_v30, %v13611_v6  ;;  %v6593_v15 = vadd.f32 %v6585_v50, %v13575_v51  ;;  %s7754_s8 = scalar_lea.hbm %s7753_s7, 256  ;;  %s7758_s17 = scalar_lea.hbm %s14137_s6, 512 }
 0xb49   : > { %6595 = vadd.xlane.f32.xlu0 %v6587_v35  ;;  %p7755_p4 = scmp.ne.s32.totalorder %s7753_s7, %s7754_s8  ;;  %p7759_p9 = scmp.lt.s32.totalorder %s7753_s7, %s14137_s6 }
 0xb4a   : > { %p7760_p10 = scmp.lt.s32.totalorder %s7758_s17, %s7754_s8 }
 0xb4b   : > { %p7756_p7 = pnand %p7755_p4, %p7938_p5 }
 0xb4c   : > { %p7761_p11 = por %p7760_p10, %p7759_p9 }
 0xb4d   : > { %p7757_p8 = pneg %p7756_p7 }
 0xb4f   : > { %p7762_p12 = pnand %p7761_p11, %p7757_p8 }
 0xb50   : > { %6605 = vadd.xlane.f32.xlu2 %v6592_v19  ;;  %6601 = vadd.xlane.f32.xlu1 %v6590_v0 }
 0xb51   : > { %6597 = vadd.xlane.f32.xlu0 %v6588_v62 }
 0xb58   : > { %6609 = vadd.xlane.f32.xlu1 %v6594_v16 }
 0xb59   : > { %6607 = vadd.xlane.f32.xlu0 %v6593_v15 }
 0xbbb   : > { %v6604_v23 = vpop.xlane.xlu2 %6603  ;;  %v6600_v53 = vpop.xlane.xlu1 %6599 }
 0xbbc   : > { %v6613_v46 = vmul.f32 %v6600_v53, %v13621_v14  ;;  %v6596_v25 = vpop.xlane.xlu0 %6595  ;;  %v6615_v7 = vmul.f32 %v6604_v23, %v13621_v14 }
 0xbbd   : > { %v6611_v61 = vmul.f32 %v6596_v25, %v13621_v14 }
 0xbbe   : > { %v13988_v12 = vsub.f32 %v6589_v52, %v6613_v46  ;;  %v14012_v20 = vsub.f32 %v6591_v39, %v6615_v7 }
 0xbbf   : > { %v13990_v29 = vsub.f32 %v6587_v35, %v6611_v61 }
 0xbc0   : > { %v6629_v26 = vmul.f32 %v13988_v12, %v13988_v12  ;;  %v6631_v5 = vmul.f32 %v14012_v20, %v14012_v20 }
 0xbc1   : > { %v6627_v6 = vmul.f32 %v13990_v29, %v13990_v29 }
 0xbc2   : > { %6639 = vadd.xlane.f32.xlu1 %v6629_v26 }
 0xbc3   : > { %6635 = vadd.xlane.f32.xlu2 %v6627_v6  ;;  %v6606_v51 = vpop.xlane.xlu2 %6605  ;;  %v6602_v45 = vpop.xlane.xlu1 %6601 }
 0xbc4   : > { %v6616_v28 = vmul.f32 %v6606_v51, %v13621_v14  ;;  %v6614_v33 = vmul.f32 %v6602_v45, %v13621_v14  ;;  %v6598_v13 = vpop.xlane.xlu0 %6597 }
 0xbc5   : > { %v6612_v27 = vmul.f32 %v6598_v13, %v13621_v14 }
 0xbc6   : > { %v13999_v24 = vsub.f32 %v6592_v19, %v6616_v28  ;;  %v14001_v48 = vsub.f32 %v6590_v0, %v6614_v33 }
 0xbc7   : > { %v14004_v3 = vsub.f32 %v6588_v62, %v6612_v27 }
 0xbc8   : > { %v6632_v2 = vmul.f32 %v13999_v24, %v13999_v24  ;;  %v6630_v4 = vmul.f32 %v14001_v48, %v14001_v48 }
 0xbc9   : > { %v6628_v55 = vmul.f32 %v14004_v3, %v14004_v3 }
 0xbca   : > { %6645 = vadd.xlane.f32.xlu1 %v6632_v2 }
 0xbcb   : > { %6641 = vadd.xlane.f32.xlu2 %v6630_v4  ;;  %6637 = vadd.xlane.f32.xlu0 %v6628_v55  ;;  %v6610_v36 = vpop.xlane.xlu1 %6609 }
 0xbcc   : > { %v6608_v31 = vpop.xlane.xlu0 %6607  ;;  %v6618_v56 = vmul.f32 %v6610_v36, %v13621_v14 }
 0xbcd   : > { %v6617_v43 = vmul.f32 %v6608_v31, %v13621_v14 }
 0xbce   : > { %v14022_v49 = vsub.f32 %v6594_v16, %v6618_v56 }
 0xbcf   : > { %v14015_v37 = vsub.f32 %v6593_v15, %v6617_v43 }
 0xbd0   : > { %v6634_v41 = vmul.f32 %v14022_v49, %v14022_v49 }
 0xbd1   : > { %v6633_v54 = vmul.f32 %v14015_v37, %v14015_v37 }
 0xbd3   : > { %6643 = vadd.xlane.f32.xlu0 %v6631_v5  ;;  %6647 = vadd.xlane.f32.xlu2 %v6633_v54 }
 0xbdb   : > { %6649 = vadd.xlane.f32.xlu0 %v6634_v41 }
 0xc35   : > { %v6640_v40 = vpop.xlane.xlu1 %6639 }
 0xc36   : > { %v6653_v9 = vmul.f32 %v6640_v40, %v13621_v14  ;;  %v6636_v18 = vpop.xlane.xlu2 %6635 }
 0xc37   : > { %v6651_v57 = vmul.f32 %v6636_v18, %v13621_v14 }
 0xc38   : > { %v6661_v59 = vadd.f32 1e-05, %v6653_v9 }
 0xc39   : > { %v6659_v32 = vadd.f32 1e-05, %v6651_v57 }
 0xc3a   : > { %7620 = vrsqrt.f32 %v6661_v59  ;;  %vm6693_vm9 = vweird.f32 %v6661_v59 }
 0xc3b   : > { %7622 = vrsqrt.f32 %v6659_v32  ;;  %vm6673_vm14 = vweird.f32 %v6659_v32 }
 0xc3d   : > { %v6646_v42 = vpop.xlane.xlu1 %6645 }
 0xc3e   : > { %v6656_v1 = vmul.f32 %v6646_v42, %v13621_v14  ;;  %v6642_v21 = vpop.xlane.xlu2 %6641  ;;  %v6638_v63 = vpop.xlane.xlu0 %6637 }
 0xc3f   : > { %v6654_v60 = vmul.f32 %v6642_v21, %v13621_v14  ;;  %v6652_v38 = vmul.f32 %v6638_v63, %v13621_v14 }
 0xc40   : > { %v7621_v17 = vpop.eup %7620  ;;  %v6664_v58 = vadd.f32 1e-05, %v6656_v1 }
 0xc41   : > { %v7623_v47 = vpop.eup %7622  ;;  %v6688_v22 = vmul.f32 %v7621_v17, %v6661_v59  ;;  %v14031_v39 = vadd.f32 1e-05, %v6654_v60  ;;  %v14033_v52 = vadd.f32 1e-05, %v6652_v38  ;;  %vm6694_vm10 = vweird.f32 %v7621_v17 }
 0xc42   : > { %v6668_v35 = vmul.f32 %v7623_v47, %v6659_v32  ;;  %7624 = vrsqrt.f32 %v6664_v58  ;;  %vm6674_vm12 = vweird.f32 %v7623_v47  ;;  %vm6695_vm13 = vmor %vm6693_vm9, %vm6694_vm10  ;;  %vm6723_vm0 = vweird.f32 %v6664_v58 }
 0xc43   : > { %v6689_v34 = vmul.f32 %v7621_v17, %v6688_v22  ;;  %7626 = vrsqrt.f32 %v14031_v39  ;;  %vm6675_vm11 = vmor %vm6673_vm14, %vm6674_vm12  ;;  %vm6703_vm2 = vweird.f32 %v14031_v39  ;;  %vm6683_vm6 = vweird.f32 %v14033_v52 }
 0xc44   : > { %v6669_v11 = vmul.f32 %v7623_v47, %v6668_v35  ;;  %7628 = vrsqrt.f32 %v14033_v52 }
 0xc45   : > { %v6690_v8 = vmul.f32 0.5, %v6689_v34 }
 0xc46   : > { %v6670_v19 = vmul.f32 0.5, %v6669_v11  ;;  %v6648_v0 = vpop.xlane.xlu2 %6647  ;;  %v6644_v62 = vpop.xlane.xlu0 %6643 }
 0xc47   : > { %v6691_v30 = vsub.f32 1.5, %v6690_v8  ;;  %v6657_v50 = vmul.f32 %v6648_v0, %v13621_v14  ;;  %v6655_v16 = vmul.f32 %v6644_v62, %v13621_v14 }
 0xc48   : > { %v7625_v15 = vpop.eup %7624  ;;  %v6671_v23 = vsub.f32 1.5, %v6670_v19 }
 0xc49   : > { %v7627_v53 = vpop.eup %7626  ;;  %v6692_v46 = vmul.f32 %v7621_v17, %v6691_v30  ;;  %v6718_v25 = vmul.f32 %v7625_v15, %v6664_v58  ;;  %v14039_v61 = vadd.f32 1e-05, %v6657_v50  ;;  %v14043_v45 = vadd.f32 1e-05, %v6655_v16 }
 0xc4a   : > { %v7629_v26 = vpop.eup %7628  ;;  %v6672_v6 = vmul.f32 %v7623_v47, %v6671_v23  ;;  %v6698_v51 = vmul.f32 %v7627_v53, %v14031_v39  ;;  %vm6724_vm1 = vweird.f32 %v7625_v15  ;;  %vm6704_vm4 = vweird.f32 %v7627_v53 }
 0xc4b   : > { %v6696_v28 = vsel %vm6695_vm13, %v7621_v17, %v6692_v46  ;;  %v6719_v33 = vmul.f32 %v7625_v15, %v6718_v25  ;;  %v6678_v13 = vmul.f32 %v7629_v26, %v14033_v52  ;;  %7630 = vrsqrt.f32 %v14039_v61  ;;  %vm14056_vm15 = vmor %vm6723_vm0, %vm6724_vm1 }
 0xc4c   : > { %v6749_v27 = vmul.f32 %v6696_v28, %v13988_v12  ;;  %v6676_v7 = vsel %vm6675_vm11, %v7623_v47, %v6672_v6  ;;  %v6699_v2 = vmul.f32 %v7627_v53, %v6698_v51  ;;  %7632 = vrsqrt.f32 %v14043_v45  ;;  %vm6705_vm5 = vmor %vm6703_vm2, %vm6704_vm4 }
 0xc4d   : > { %v6747_v4 = vmul.f32 %v6676_v7, %v13990_v29  ;;  %v6720_v55 = vmul.f32 0.5, %v6719_v33  ;;  %v6679_v31 = vmul.f32 %v7629_v26, %v6678_v13  ;;  %vm6684_vm3 = vweird.f32 %v7629_v26 }
 0xc4e   : > { %v6757_v36 = vmul.f32 %v6749_v27, %v13677_v10  ;;  %v6700_v43 = vmul.f32 0.5, %v6699_v2  ;;  %v6650_v5 = vpop.xlane.xlu0 %6649  ;;  %vm6685_vm7 = vmor %vm6683_vm6, %vm6684_vm3  ;;  %vm6733_vm8 = vweird.f32 %v14039_v61  ;;  %vm6713_vm13 = vweird.f32 %v14043_v45 }
 0xc4f   : > { %v6755_v12 = vmul.f32 %v6747_v4, %v13677_v10  ;;  %v6721_v56 = vsub.f32 1.5, %v6720_v55  ;;  %v6680_v54 = vmul.f32 0.5, %v6679_v31  ;;  %v6658_v41 = vmul.f32 %v6650_v5, %v13621_v14 }
 0xc50   : > { %v6765_v29 = vadd.f32 %v6757_v36, %v13680_v44  ;;  %v6701_v9 = vsub.f32 1.5, %v6700_v43 }
 0xc51   : > { %v6763_v18 = vadd.f32 %v6755_v12, %v13680_v44  ;;  %v6722_v57 = vmul.f32 %v7625_v15, %v6721_v56  ;;  %v6681_v59 = vsub.f32 1.5, %v6680_v54  ;;  %v6666_v32 = vadd.f32 1e-05, %v6658_v41  ;;  %v7631_v42 = vpop.eup %7630 }
 0xc52   : > { %6773 = vst [vmem:[%s7998_s23 + $0xd0] sm:$0xff] %v6765_v29  ;;  %v6702_v1 = vmul.f32 %v7627_v53, %v6701_v9  ;;  %v6728_v63 = vmul.f32 %v7631_v42, %v14039_v61  ;;  %v7633_v60 = vpop.eup %7632  ;;  %vm6734_vm9 = vweird.f32 %v7631_v42 }
 0xc53   : > { %6771 = vst [vmem:[%s7998_s23 + $0xc0] sm:$0xff] %v6763_v18  ;;  %v6726_v14 = vsel %vm14056_vm15, %v7625_v15, %v6722_v57  ;;  %v6682_v21 = vmul.f32 %v7629_v26, %v6681_v59  ;;  %7634 = vrsqrt.f32 %v6666_v32  ;;  %v6708_v39 = vmul.f32 %v7633_v60, %v14043_v45  ;;  %vm6735_vm12 = vmor %vm6733_vm8, %vm6734_vm9 }
 0xc54   : > { %v6752_v38 = vmul.f32 %v6726_v14, %v13999_v24  ;;  %v6706_v17 = vsel %vm6705_vm5, %v7627_v53, %v6702_v1  ;;  %v6729_v22 = vmul.f32 %v7631_v42, %v6728_v63  ;;  %vm6714_vm10 = vweird.f32 %v7633_v60 }
 0xc55   : > { %v6750_v58 = vmul.f32 %v6706_v17, %v14001_v48  ;;  %v6686_v47 = vsel %vm6685_vm7, %v7629_v26, %v6682_v21  ;;  %v6709_v24 = vmul.f32 %v7633_v60, %v6708_v39  ;;  %vm6715_vm14 = vmor %vm6713_vm13, %vm6714_vm10  ;;  %vm6743_vm0 = vweird.f32 %v6666_v32 }
 0xc56   : > { %v6760_v35 = vmul.f32 %v6752_v38, %v13677_v10  ;;  %v6748_v52 = vmul.f32 %v6686_v47, %v14004_v3  ;;  %v6730_v11 = vmul.f32 0.5, %v6729_v22 }
 0xc57   : > { %v6758_v34 = vmul.f32 %v6750_v58, %v13677_v10  ;;  %v6710_v62 = vmul.f32 0.5, %v6709_v24 }
 0xc58   : > { %v6768_v8 = vadd.f32 %v6760_v35, %v13680_v44  ;;  %v6756_v19 = vmul.f32 %v6748_v52, %v13677_v10  ;;  %v6731_v0 = vsub.f32 1.5, %v6730_v11 }
 0xc59   : > { %v6766_v48 = vadd.f32 %v6758_v34, %v13680_v44  ;;  %v7635_v30 = vpop.eup %7634  ;;  %v6711_v16 = vsub.f32 1.5, %v6710_v62 }
 0xc5a   : > { %6776 = vst [vmem:[%s7998_s23 + $0xe8] sm:$0xff] %v6768_v8  ;;  %v6764_v3 = vadd.f32 %v6756_v19, %v13680_v44  ;;  %v6732_v50 = vmul.f32 %v7631_v42, %v6731_v0  ;;  %v6738_v15 = vmul.f32 %v7635_v30, %v6666_v32  ;;  %vm6744_vm11 = vweird.f32 %v7635_v30 }
 0xc5b   : > { %6774 = vst [vmem:[%s7998_s23 + $0xd8] sm:$0xff] %v6766_v48  ;;  %v6712_v53 = vmul.f32 %v7633_v60, %v6711_v16  ;;  %vm6745_vm1 = vmor %vm6743_vm0, %vm6744_vm11 }
 0xc5c   : > { %6772 = vst [vmem:[%s7998_s23 + $0xc8] sm:$0xff] %v6764_v3  ;;  %v6736_v23 = vsel %vm6735_vm12, %v7631_v42, %v6732_v50  ;;  %v6739_v46 = vmul.f32 %v7635_v30, %v6738_v15 }
 0xc5d   : > { %v6753_v25 = vmul.f32 %v6736_v23, %v14015_v37  ;;  %v6716_v61 = vsel %vm6715_vm14, %v7633_v60, %v6712_v53 }
 0xc5e   : > { %v6740_v26 = vmul.f32 0.5, %v6739_v46  ;;  %v6751_v51 = vmul.f32 %v6716_v61, %v14012_v20 }
 0xc5f   : > { %v6761_v6 = vmul.f32 %v6753_v25, %v13677_v10 }
 0xc60   : > { %v6741_v28 = vsub.f32 1.5, %v6740_v26  ;;  %v6759_v13 = vmul.f32 %v6751_v51, %v13677_v10 }
 0xc61   : > { %v6769_v33 = vadd.f32 %v6761_v6, %v13680_v44 }
 0xc62   : > { %v6742_v45 = vmul.f32 %v7635_v30, %v6741_v28  ;;  %v6767_v37 = vadd.f32 %v6759_v13, %v13680_v44 }
 0xc63   : > { %6777 = vst [vmem:[%s7998_s23 + $0xf0] sm:$0xff] %v6769_v33 }
 0xc64   : > { %v6746_v20 = vsel %vm6745_vm1, %v7635_v30, %v6742_v45  ;;  %6775 = vst [vmem:[%s7998_s23 + $0xe0] sm:$0xff] %v6767_v37 }
 0xc65   : > { %v6754_v27 = vmul.f32 %v6746_v20, %v14022_v49 }
 0xc67   : > { %v6762_v7 = vmul.f32 %v6754_v27, %v13677_v10 }
 0xc69   : > { %v6770_v2 = vadd.f32 %v6762_v7, %v13680_v44 }
 0xc6b   : > { %6778 = vst [vmem:[%s7998_s23 + $0xf8] sm:$0xff] %v6770_v2 }
 0xc6c   : > { %7765 = shalt.err (!%p7762_p12)
}
 0xc6d   : > { %s7860_s23 = smov 128   ;;  %s7861_s20 = smov 8  }
 0xc6e   : > { %7292 = dma.vmem_to_hbm [thread:$0]  (%p7938_p5), %s6793_s15, 4096, %s6795_s24, %s6780_s18, %s7860_s23, %s7860_s23, %s7861_s20  }
 0xc6f PF: > { %p7314_p13 = scmp.ge.s32.totalorder %s7834_s28, 2  ;;  %s6809_s21 = sand.u32 1, %s7822_s25  }
 0xc70   : > { %s6810_s29 = scalar_lea.sflag [#allocation8], %s6809_s21 }
 0xc71   : > { %p7305_p0 = pnand %p7314_p13, %p7942_p6 }
 0xc73   : > { %p7306_p1 = pneg %p7305_p0 }
 0xc75   : > { %7817 = dma.done.wait (%p7306_p1), %s6810_s29, 4096  }
 0xc76   : > { %7819 = vsyncadd (%p7306_p1), %s6810_s29, 4294963200  ;;  %p26_p2 = scmp.ge.s32.totalorder %s7925_s30, 4   ;;  %s15341_s25 = smov %s7826_s26 }
 0xc77   : > { %s15342_s26 = smov %s7830_s27  ;;  %s15343_s27 = smov %s7936_s9 }
 0xc78   : > { %s15344_s28 = smov %s7925_s30  ;;  %28 = sbr.rel (!%p26_p2) target bundleno = 11 (0xb), region = 1317 }
 0xc7d   :  { %6816 = vsyncpa [#allocation7], 1 }
 0xc7e   :  { %6818 = vsyncpa [#allocation7 + $0x1], 1 }
 0xc7f   :  { %6819 = vsyncpa [#allocation10], 1 }
 0xc80   :  { %6820 = vsyncpa [#allocation8], 1 }
 0xc81   :  { %6822 = vsyncpa [#allocation8 + $0x1], 1 }
 0xc82   :  { %6823 = vsyncmov [#allocation3] }
 0xc85   :  { %s6824_s28 = vpop.sfrf %6823 }
 0xc86   :  { %p7275_p5 = scmp.ne.s32.totalorder %s6824_s28, 0 }
 0xc88   :  { %6828 = shalt.err (%p7275_p5)  }
 0xc89   :  { %6830 = vsyncmov [#allocation3 + $0x1] }
 0xc8c   :  { %s6831_s10 = vpop.sfrf %6830 }
 0xc8d   :  { %p7276_p6 = scmp.ne.s32.totalorder %s6831_s10, 0 }
 0xc8f   :  { %6835 = shalt.err (%p7276_p6)  }
 0xc90   :  { %6837 = vsyncmov [#allocation3 + $0x2] }
 0xc93   :  { %s6838_s11 = vpop.sfrf %6837 }
 0xc94   :  { %p7277_p3 = scmp.ne.s32.totalorder %s6838_s11, 0 }
 0xc96   :  { %6842 = shalt.err (%p7277_p3)  }
 0xc97   :  { %6844 = vsyncmov [#allocation3 + $0x3] }
 0xc9a   :  { %s6845_s30 = vpop.sfrf %6844 }
 0xc9b   :  { %p7278_p4 = scmp.ne.s32.totalorder %s6845_s30, 0 }
 0xc9d   :  { %6849 = shalt.err (%p7278_p4)  }

</bundles_post_ra>
